<compile_context>
chip_gen: v5e
topology: v5e:2x2
jax: 0.10.0
libtpu: 0.0.40
codegen_flags: <defaults>
</compile_context>

<pallas_src>
import functools

import jax
import jax.numpy as jnp
from jax.experimental import pallas as pl
from jax.experimental.pallas import tpu as pltpu

_BN_EPS = 1e-5
_VMEM_BUDGET = 24 * 1024 * 1024   # per-kernel working-set target (all gens)
_VMEM_LIMIT = 48 * 1024 * 1024    # scoped VMEM limit (< v7x 64 MiB physical)


def _rup(x, m):
    return ((x + m - 1) // m) * m


# ------------------------------ tile selection -------------------------------

def _pick_tiles(N, H, W, Cp):
    """Choose (tn, tk, th): out-channel tile, contraction tile, rows per step."""
    tn = 256 if Cp % 256 == 0 else 128
    # Keep the whole (9, Cp, tn) weight slab VMEM-resident (fetched once per
    # output-channel tile) unless it would crowd VMEM.
    if 2 * 9 * Cp * tn * 2 <= _VMEM_BUDGET // 3:
        tk = Cp
    else:
        tk = 512 if Cp % 512 == 0 else (256 if Cp % 256 == 0 else 128)

    def working_set(th):
        inp = 2 * N * (th + 2) * (W + 2) * tk * 2   # bf16 input, double-buffered
        wgt = 2 * 9 * tk * tn * 2                   # bf16 weights, double-buffered
        zout = 2 * N * th * W * tn * 2              # bf16 output, double-buffered
        acc = N * th * W * tn * 4                   # f32 accumulator scratch
        return inp + wgt + zout + acc

    th = 1
    for cand in sorted((d for d in range(1, H + 1) if H % d == 0), reverse=True):
        if working_set(cand) <= _VMEM_BUDGET:
            th = cand
            break
    return tn, tk, th


def _row_tile(M, Cp):
    """Largest divisor of M (multiple of 8) whose tile fits the VMEM budget."""
    cap = max(8, min(M, _VMEM_BUDGET // (16 * Cp), 4096))
    for d in range(cap, 7, -1):
        if M % d == 0 and d % 8 == 0:
            return d
    for d in range(min(M, cap), 0, -1):
        if M % d == 0:
            return d
    return M


# --------------- Kernel A: 3x3 conv (no bias) + BN partial stats -------------

@functools.lru_cache(maxsize=None)
def _conv3x3_stats_fn(N, H, W, Cp, tn, tk, th):
    Wp = W + 2
    M = N * th * W
    nH = H // th

    def kernel(x_ref, w_ref, z_ref, st_ref, acc_ref):
        k = pl.program_id(2)

        @pl.when(k == 0)
        def _():
            acc_ref[...] = jnp.zeros_like(acc_ref)

        a = x_ref[...]                                   # (N, th+2, Wp, tk) bf16
        acc = acc_ref[...]
        for dy in range(3):                              # dy/dx: static VMEM slices
            for dx in range(3):
                win = a[:, dy:dy + th, dx:dx + W, :].reshape(M, tk)
                acc = acc + jnp.dot(win, w_ref[3 * dy + dx],
                                    preferred_element_type=jnp.float32)
        acc_ref[...] = acc

        @pl.when(k == pl.num_programs(2) - 1)
        def _():
            z_ref[...] = acc.astype(z_ref.dtype).reshape(N, th, W, tn)
            ssum = jnp.sum(acc, axis=0, keepdims=True)          # (1, tn)
            ssq = jnp.sum(acc * acc, axis=0, keepdims=True)     # (1, tn)
            st_ref[...] = jnp.concatenate([ssum, ssq], axis=0).reshape(1, 2, tn)

    if th == H:
        # One block spans the whole padded H: plain blocked indexing.
        x_spec = pl.BlockSpec((N, H + 2, Wp, tk), lambda j, h, k: (0, 0, 0, k))
    else:
        # Overlapping halo of th+2 padded rows starting at element offset h*th.
        x_spec = pl.BlockSpec((N, pl.Element(th + 2), Wp, tk),
                              lambda j, h, k: (0, h * th, 0, k))

    flops = 2 * 9 * N * H * W * Cp * Cp
    bytes_accessed = ((N * (H + 2) * Wp * Cp * 2) * max(Cp // tn, 1)
                      + 9 * Cp * Cp * 2 + N * H * W * Cp * 2 + nH * 2 * Cp * 4)

    return pl.pallas_call(
        kernel,
        out_shape=(jax.ShapeDtypeStruct((N, H, W, Cp), jnp.bfloat16),
                   jax.ShapeDtypeStruct((nH, 2, Cp), jnp.float32)),
        grid_spec=pltpu.PrefetchScalarGridSpec(
            num_scalar_prefetch=0,
            grid=(Cp // tn, nH, Cp // tk),               # (j, h, k), k innermost
            in_specs=[
                x_spec,
                pl.BlockSpec((9, tk, tn), lambda j, h, k: (0, k, j)),
            ],
            out_specs=(
                pl.BlockSpec((N, th, W, tn), lambda j, h, k: (0, h, 0, j)),
                pl.BlockSpec((1, 2, tn), lambda j, h, k: (h, 0, j)),
            ),
            scratch_shapes=[pltpu.VMEM((M, tn), jnp.float32)],
        ),
        compiler_params=pltpu.CompilerParams(
            dimension_semantics=("parallel", "parallel", "arbitrary"),
            vmem_limit_bytes=_VMEM_LIMIT),
        cost_estimate=pl.CostEstimate(flops=flops, transcendentals=0,
                                      bytes_accessed=bytes_accessed),
    )


# --------- Kernel B: BN apply + ReLU (+ fused recurrent residual add) --------

@functools.lru_cache(maxsize=None)
def _bn_apply_fn(M, Cp, tmb, add_residual, out_dtype):
    if add_residual:
        def kernel(z_ref, x_ref, sc_ref, sh_ref, o_ref):
            y = jnp.maximum(
                z_ref[...].astype(jnp.float32) * sc_ref[...] + sh_ref[...], 0.0)
            o_ref[...] = (x_ref[...].astype(jnp.float32) + y).astype(o_ref.dtype)
        n_big = 2
    else:
        def kernel(z_ref, sc_ref, sh_ref, o_ref):
            y = jnp.maximum(
                z_ref[...].astype(jnp.float32) * sc_ref[...] + sh_ref[...], 0.0)
            o_ref[...] = y.astype(o_ref.dtype)
        n_big = 1

    def row_spec():
        return pl.BlockSpec((tmb, Cp), lambda i: (i, 0))

    def vec_spec():
        return pl.BlockSpec((1, Cp), lambda i: (0, 0))

    return pl.pallas_call(
        kernel,
        out_shape=jax.ShapeDtypeStruct((M, Cp), jnp.dtype(out_dtype)),
        grid_spec=pltpu.PrefetchScalarGridSpec(
            num_scalar_prefetch=0,
            grid=(M // tmb,),
            in_specs=[row_spec() for _ in range(n_big)] + [vec_spec(), vec_spec()],
            out_specs=row_spec(),
        ),
        compiler_params=pltpu.CompilerParams(
            dimension_semantics=("parallel",),
            vmem_limit_bytes=_VMEM_LIMIT),
    )


# --------------------------------- wrapper -----------------------------------

def _bn_scale_shift(stats, gamma, beta, count):
    s = jnp.sum(stats, axis=0)                           # (2, Cp)
    mean = s[0] / count
    var = jnp.maximum(s[1] / count - mean * mean, 0.0)
    scale = gamma * jax.lax.rsqrt(var + _BN_EPS)
    shift = beta - mean * scale
    return scale.reshape(1, -1), shift.reshape(1, -1)


@functools.partial(jax.jit, static_argnames=("t",))
def recurrent_block(x_nchw, params, t=2):
    """Recurrent_block forward: conv->BN->ReLU applied t+1 times, with the
    recurrent residual (x + x1) feeding every call after the first."""
    N, C, H, W = x_nchw.shape
    if W % 8 != 0:
        raise ValueError("W must be a multiple of 8 for this kernel")
    w9 = params["w9"]
    Cp = w9.shape[1]
    tn, tk, th = _pick_tiles(N, H, W, Cp)
    M = N * H * W
    tmb = _row_tile(M, Cp)
    count = jnp.float32(M)

    conv = _conv3x3_stats_fn(N, H, W, Cp, tn, tk, th)
    bn_mid = _bn_apply_fn(M, Cp, tmb, True, "bfloat16")
    bn_last = _bn_apply_fn(M, Cp, tmb, False, "float32")

    x = jnp.transpose(x_nchw, (0, 2, 3, 1))                       # NCHW -> NHWC
    x = jnp.pad(x, ((0, 0), (0, 0), (0, 0), (0, Cp - C)))         # channel pad once
    x_b = x.astype(jnp.bfloat16)                                  # residual, bf16 once
    x_flat = x_b.reshape(M, Cp)

    u = x_b                                                       # conv input
    y = None
    for call in range(t + 1):
        u_pad = jnp.pad(u, ((0, 0), (1, 1), (1, 1), (0, 0)))      # spatial halo
        z, stats = conv(u_pad, w9)
        scale, shift = _bn_scale_shift(stats, params["gamma"], params["beta"],
                                       count)
        z_flat = z.reshape(M, Cp)
        if call < t:
            # next conv input: bf16 (x + relu(bn(z))) fused in one pass
            u = bn_mid(z_flat, x_flat, scale, shift).reshape(N, H, W, Cp)
        else:
            y = bn_last(z_flat, scale, shift).reshape(N, H, W, Cp)

    return jnp.transpose(y[..., :C], (0, 3, 1, 2))                # NHWC -> NCHW


# ------------------------------ parameter init --------------------------------

def init_recurrent_block(key, ch_out):
    """Parameters mirroring Conv2d(ch, ch, 3, pad=1) + BatchNorm2d.
    The conv bias is intentionally omitted: immediately followed by
    training-mode BatchNorm it is cancelled exactly (mean absorbs it, the
    variance is unchanged), so it can never affect the forward output."""
    Cp = _rup(ch_out, 128)
    fan_in = 9 * ch_out
    w = jax.random.normal(key, (3, 3, ch_out, ch_out), jnp.float32)
    w = w * (1.0 / fan_in) ** 0.5
    w9 = jnp.zeros((9, Cp, Cp), jnp.float32)
    w9 = w9.at[:, :ch_out, :ch_out].set(w.reshape(9, ch_out, ch_out))
    gamma = jnp.zeros((Cp,), jnp.float32).at[:ch_out].set(1.0)
    beta = jnp.zeros((Cp,), jnp.float32)
    return dict(w9=w9.astype(jnp.bfloat16), gamma=gamma, beta=beta)


# ------------------------------ pure-JAX reference ----------------------------

def _reference(x_nchw, params, t):
    """XLA reference that mirrors the kernel's bf16 rounding points."""
    w = params["w9"].astype(jnp.float32)
    Cp = w.shape[1]
    w = w.reshape(3, 3, Cp, Cp)                                   # HWIO
    gamma, beta = params["gamma"], params["beta"]
    C = x_nchw.shape[1]
    x = jnp.transpose(x_nchw, (0, 2, 3, 1))
    x = jnp.pad(x, ((0, 0), (0, 0), (0, 0), (0, Cp - C)))
    x = x.astype(jnp.bfloat16).astype(jnp.float32)

    def conv_bn_relu(u):
        ub = u.astype(jnp.bfloat16).astype(jnp.float32)
        z = jax.lax.conv_general_dilated(
            ub, w, window_strides=(1, 1), padding="SAME",
            dimension_numbers=("NHWC", "HWIO", "NHWC"),
            preferred_element_type=jnp.float32)
        mean = jnp.mean(z, axis=(0, 1, 2))
        var = jnp.maximum(jnp.mean(z * z, axis=(0, 1, 2)) - mean * mean, 0.0)
        scale = gamma * jax.lax.rsqrt(var + _BN_EPS)
        shift = beta - mean * scale
        zb = z.astype(jnp.bfloat16).astype(jnp.float32)           # kernel emits bf16 z
        return jnp.maximum(zb * scale + shift, 0.0)

    u = x
    y = None
    for call in range(t + 1):
        y = conv_bn_relu(u)
        if call < t:
            u = (x + y).astype(jnp.bfloat16).astype(jnp.float32)
    return jnp.transpose(y[..., :C], (0, 3, 1, 2))


if __name__ == "__main__":
    key = jax.random.PRNGKey(0)
    kx, kp = jax.random.split(key)
    ch, N, H, W = 32, 2, 16, 16
    params = init_recurrent_block(kp, ch)
    x = jax.random.normal(kx, (N, ch, H, W), jnp.float32)

    out = jax.block_until_ready(recurrent_block(x, params, t=2))
    assert out.shape == (N, ch, H, W), out.shape
    assert bool(jnp.all(jnp.isfinite(out)))

    ref = jax.block_until_ready(_reference(x, params, t=2))
    err = float(jnp.max(jnp.abs(out - ref)))
    assert err < 0.15, f"max |pallas - reference| too large: {err}"
    print("KERNEL_OK")
</pallas_src>

<mosaic_0001>
module attributes {stable_mosaic.version = 11 : i64} {
  func.func @kernel(%arg0: i32, %arg1: i32, %arg2: i32, %arg3: memref<2x18x18x128xbf16, #tpu.memory_space<vmem>>, %arg4: memref<9x128x128xbf16, #tpu.memory_space<vmem>>, %arg5: memref<2x16x16x128xbf16, #tpu.memory_space<vmem>>, %arg6: memref<1x2x128xf32, #tpu.memory_space<vmem>>, %arg7: memref<512x128xf32, #tpu.memory_space<vmem>>) attributes {dimension_semantics = [#tpu.dimension_semantics<parallel>, #tpu.dimension_semantics<parallel>, #tpu.dimension_semantics<arbitrary>], iteration_bounds = array<i64: 1, 1, 1>, scalar_prefetch = 0 : i64, scratch_operands = 1 : i64, tpu.core_type = #tpu.core_type<tc>, window_params = [{transform_indices = @transform_0, window_bounds = array<i64: 2, 18, 18, 128>}, {transform_indices = @transform_1, window_bounds = array<i64: 9, 128, 128>}, {transform_indices = @transform_2, window_bounds = array<i64: 2, 16, 16, 128>}, {transform_indices = @transform_3, window_bounds = array<i64: 1, 2, 128>}]} {
    %c0_i32 = arith.constant 0 : i32
    %0 = arith.cmpi eq, %arg2, %c0_i32 : i32
    %1 = arith.extui %0 : i1 to i32
    %c0_i32_0 = arith.constant 0 : i32
    %2 = arith.cmpi ne, %1, %c0_i32_0 : i32
    scf.if %2 {
      %cst_37 = arith.constant 0.000000e+00 : f32
      %63 = vector.broadcast %cst_37 : f32 to vector<512x128xf32>
      %c0_38 = arith.constant 0 : index
      %c0_39 = arith.constant 0 : index
      %64 = vector.load %arg7[%c0_38, %c0_39] : memref<512x128xf32, #tpu.memory_space<vmem>>, vector<512x128xf32>
      tpu.vector_store %arg7[%c0_38, %c0_39], %63 {strides = array<i32>} : memref<512x128xf32, #tpu.memory_space<vmem>>, vector<512x128xf32>,
    } else {
    }
    %c0 = arith.constant 0 : index
    %c0_1 = arith.constant 0 : index
    %c0_2 = arith.constant 0 : index
    %c0_3 = arith.constant 0 : index
    %3 = vector.load %arg3[%c0, %c0_1, %c0_2, %c0_3] : memref<2x18x18x128xbf16, #tpu.memory_space<vmem>>, vector<2x18x18x128xbf16>
    %c0_4 = arith.constant 0 : index
    %c0_5 = arith.constant 0 : index
    %4 = vector.load %arg7[%c0_4, %c0_5] : memref<512x128xf32, #tpu.memory_space<vmem>>, vector<512x128xf32>
    %5 = vector.extract_strided_slice %3 {offsets = [0, 0, 0, 0], sizes = [2, 16, 16, 128], strides = [1, 1, 1, 1]} : vector<2x18x18x128xbf16> to vector<2x16x16x128xbf16>
    %6 = vector.shape_cast %5 : vector<2x16x16x128xbf16> to vector<512x128xbf16>
    %c0_6 = arith.constant 0 : index
    %c0_7 = arith.constant 0 : index
    %c0_8 = arith.constant 0 : index
    %7 = vector.load %arg4[%c0_6, %c0_7, %c0_8] : memref<9x128x128xbf16, #tpu.memory_space<vmem>>, vector<1x128x128xbf16>
    %8 = vector.shape_cast %7 : vector<1x128x128xbf16> to vector<128x128xbf16>
    %cst = arith.constant dense<0.000000e+00> : vector<512x128xf32>
    %9 = tpu.matmul %6, %8, %cst {dimension_numbers = #tpu.dot_dimension_numbers<[1], [0], [0], [1], [0, 0, 1, 1], [], []>} : vector<512x128xbf16>, vector<128x128xbf16>, vector<512x128xf32> -> vector<512x128xf32>
    %10 = arith.addf %4, %9 : vector<512x128xf32>
    %11 = vector.extract_strided_slice %3 {offsets = [0, 0, 1, 0], sizes = [2, 16, 16, 128], strides = [1, 1, 1, 1]} : vector<2x18x18x128xbf16> to vector<2x16x16x128xbf16>
    %12 = vector.shape_cast %11 : vector<2x16x16x128xbf16> to vector<512x128xbf16>
    %c1 = arith.constant 1 : index
    %c0_9 = arith.constant 0 : index
    %c0_10 = arith.constant 0 : index
    %13 = vector.load %arg4[%c1, %c0_9, %c0_10] : memref<9x128x128xbf16, #tpu.memory_space<vmem>>, vector<1x128x128xbf16>
    %14 = vector.shape_cast %13 : vector<1x128x128xbf16> to vector<128x128xbf16>
    %cst_11 = arith.constant dense<0.000000e+00> : vector<512x128xf32>
    %15 = tpu.matmul %12, %14, %cst_11 {dimension_numbers = #tpu.dot_dimension_numbers<[1], [0], [0], [1], [0, 0, 1, 1], [], []>} : vector<512x128xbf16>, vector<128x128xbf16>, vector<512x128xf32> -> vector<512x128xf32>
    %16 = arith.addf %10, %15 : vector<512x128xf32>
    %17 = vector.extract_strided_slice %3 {offsets = [0, 0, 2, 0], sizes = [2, 16, 16, 128], strides = [1, 1, 1, 1]} : vector<2x18x18x128xbf16> to vector<2x16x16x128xbf16>
    %18 = vector.shape_cast %17 : vector<2x16x16x128xbf16> to vector<512x128xbf16>
    %c2 = arith.constant 2 : index
    %c0_12 = arith.constant 0 : index
    %c0_13 = arith.constant 0 : index
    %19 = vector.load %arg4[%c2, %c0_12, %c0_13] : memref<9x128x128xbf16, #tpu.memory_space<vmem>>, vector<1x128x128xbf16>
    %20 = vector.shape_cast %19 : vector<1x128x128xbf16> to vector<128x128xbf16>
    %cst_14 = arith.constant dense<0.000000e+00> : vector<512x128xf32>
    %21 = tpu.matmul %18, %20, %cst_14 {dimension_numbers = #tpu.dot_dimension_numbers<[1], [0], [0], [1], [0, 0, 1, 1], [], []>} : vector<512x128xbf16>, vector<128x128xbf16>, vector<512x128xf32> -> vector<512x128xf32>
    %22 = arith.addf %16, %21 : vector<512x128xf32>
    %23 = vector.extract_strided_slice %3 {offsets = [0, 1, 0, 0], sizes = [2, 16, 16, 128], strides = [1, 1, 1, 1]} : vector<2x18x18x128xbf16> to vector<2x16x16x128xbf16>
    %24 = vector.shape_cast %23 : vector<2x16x16x128xbf16> to vector<512x128xbf16>
    %c3 = arith.constant 3 : index
    %c0_15 = arith.constant 0 : index
    %c0_16 = arith.constant 0 : index
    %25 = vector.load %arg4[%c3, %c0_15, %c0_16] : memref<9x128x128xbf16, #tpu.memory_space<vmem>>, vector<1x128x128xbf16>
    %26 = vector.shape_cast %25 : vector<1x128x128xbf16> to vector<128x128xbf16>
    %cst_17 = arith.constant dense<0.000000e+00> : vector<512x128xf32>
    %27 = tpu.matmul %24, %26, %cst_17 {dimension_numbers = #tpu.dot_dimension_numbers<[1], [0], [0], [1], [0, 0, 1, 1], [], []>} : vector<512x128xbf16>, vector<128x128xbf16>, vector<512x128xf32> -> vector<512x128xf32>
    %28 = arith.addf %22, %27 : vector<512x128xf32>
    %29 = vector.extract_strided_slice %3 {offsets = [0, 1, 1, 0], sizes = [2, 16, 16, 128], strides = [1, 1, 1, 1]} : vector<2x18x18x128xbf16> to vector<2x16x16x128xbf16>
    %30 = vector.shape_cast %29 : vector<2x16x16x128xbf16> to vector<512x128xbf16>
    %c4 = arith.constant 4 : index
    %c0_18 = arith.constant 0 : index
    %c0_19 = arith.constant 0 : index
    %31 = vector.load %arg4[%c4, %c0_18, %c0_19] : memref<9x128x128xbf16, #tpu.memory_space<vmem>>, vector<1x128x128xbf16>
    %32 = vector.shape_cast %31 : vector<1x128x128xbf16> to vector<128x128xbf16>
    %cst_20 = arith.constant dense<0.000000e+00> : vector<512x128xf32>
    %33 = tpu.matmul %30, %32, %cst_20 {dimension_numbers = #tpu.dot_dimension_numbers<[1], [0], [0], [1], [0, 0, 1, 1], [], []>} : vector<512x128xbf16>, vector<128x128xbf16>, vector<512x128xf32> -> vector<512x128xf32>
    %34 = arith.addf %28, %33 : vector<512x128xf32>
    %35 = vector.extract_strided_slice %3 {offsets = [0, 1, 2, 0], sizes = [2, 16, 16, 128], strides = [1, 1, 1, 1]} : vector<2x18x18x128xbf16> to vector<2x16x16x128xbf16>
    %36 = vector.shape_cast %35 : vector<2x16x16x128xbf16> to vector<512x128xbf16>
    %c5 = arith.constant 5 : index
    %c0_21 = arith.constant 0 : index
    %c0_22 = arith.constant 0 : index
    %37 = vector.load %arg4[%c5, %c0_21, %c0_22] : memref<9x128x128xbf16, #tpu.memory_space<vmem>>, vector<1x128x128xbf16>
    %38 = vector.shape_cast %37 : vector<1x128x128xbf16> to vector<128x128xbf16>
    %cst_23 = arith.constant dense<0.000000e+00> : vector<512x128xf32>
    %39 = tpu.matmul %36, %38, %cst_23 {dimension_numbers = #tpu.dot_dimension_numbers<[1], [0], [0], [1], [0, 0, 1, 1], [], []>} : vector<512x128xbf16>, vector<128x128xbf16>, vector<512x128xf32> -> vector<512x128xf32>
    %40 = arith.addf %34, %39 : vector<512x128xf32>
    %41 = vector.extract_strided_slice %3 {offsets = [0, 2, 0, 0], sizes = [2, 16, 16, 128], strides = [1, 1, 1, 1]} : vector<2x18x18x128xbf16> to vector<2x16x16x128xbf16>
    %42 = vector.shape_cast %41 : vector<2x16x16x128xbf16> to vector<512x128xbf16>
    %c6 = arith.constant 6 : index
    %c0_24 = arith.constant 0 : index
    %c0_25 = arith.constant 0 : index
    %43 = vector.load %arg4[%c6, %c0_24, %c0_25] : memref<9x128x128xbf16, #tpu.memory_space<vmem>>, vector<1x128x128xbf16>
    %44 = vector.shape_cast %43 : vector<1x128x128xbf16> to vector<128x128xbf16>
    %cst_26 = arith.constant dense<0.000000e+00> : vector<512x128xf32>
    %45 = tpu.matmul %42, %44, %cst_26 {dimension_numbers = #tpu.dot_dimension_numbers<[1], [0], [0], [1], [0, 0, 1, 1], [], []>} : vector<512x128xbf16>, vector<128x128xbf16>, vector<512x128xf32> -> vector<512x128xf32>
    %46 = arith.addf %40, %45 : vector<512x128xf32>
    %47 = vector.extract_strided_slice %3 {offsets = [0, 2, 1, 0], sizes = [2, 16, 16, 128], strides = [1, 1, 1, 1]} : vector<2x18x18x128xbf16> to vector<2x16x16x128xbf16>
    %48 = vector.shape_cast %47 : vector<2x16x16x128xbf16> to vector<512x128xbf16>
    %c7 = arith.constant 7 : index
    %c0_27 = arith.constant 0 : index
    %c0_28 = arith.constant 0 : index
    %49 = vector.load %arg4[%c7, %c0_27, %c0_28] : memref<9x128x128xbf16, #tpu.memory_space<vmem>>, vector<1x128x128xbf16>
    %50 = vector.shape_cast %49 : vector<1x128x128xbf16> to vector<128x128xbf16>
    %cst_29 = arith.constant dense<0.000000e+00> : vector<512x128xf32>
    %51 = tpu.matmul %48, %50, %cst_29 {dimension_numbers = #tpu.dot_dimension_numbers<[1], [0], [0], [1], [0, 0, 1, 1], [], []>} : vector<512x128xbf16>, vector<128x128xbf16>, vector<512x128xf32> -> vector<512x128xf32>
    %52 = arith.addf %46, %51 : vector<512x128xf32>
    %53 = vector.extract_strided_slice %3 {offsets = [0, 2, 2, 0], sizes = [2, 16, 16, 128], strides = [1, 1, 1, 1]} : vector<2x18x18x128xbf16> to vector<2x16x16x128xbf16>
    %54 = vector.shape_cast %53 : vector<2x16x16x128xbf16> to vector<512x128xbf16>
    %c8 = arith.constant 8 : index
    %c0_30 = arith.constant 0 : index
    %c0_31 = arith.constant 0 : index
    %55 = vector.load %arg4[%c8, %c0_30, %c0_31] : memref<9x128x128xbf16, #tpu.memory_space<vmem>>, vector<1x128x128xbf16>
    %56 = vector.shape_cast %55 : vector<1x128x128xbf16> to vector<128x128xbf16>
    %cst_32 = arith.constant dense<0.000000e+00> : vector<512x128xf32>
    %57 = tpu.matmul %54, %56, %cst_32 {dimension_numbers = #tpu.dot_dimension_numbers<[1], [0], [0], [1], [0, 0, 1, 1], [], []>} : vector<512x128xbf16>, vector<128x128xbf16>, vector<512x128xf32> -> vector<512x128xf32>
    %58 = arith.addf %52, %57 : vector<512x128xf32>
    %c0_33 = arith.constant 0 : index
    %c0_34 = arith.constant 0 : index
    %59 = vector.load %arg7[%c0_33, %c0_34] : memref<512x128xf32, #tpu.memory_space<vmem>>, vector<512x128xf32>
    tpu.vector_store %arg7[%c0_33, %c0_34], %58 {strides = array<i32>} : memref<512x128xf32, #tpu.memory_space<vmem>>, vector<512x128xf32>,
    %c0_i32_35 = arith.constant 0 : i32
    %60 = arith.cmpi eq, %arg2, %c0_i32_35 : i32
    %61 = arith.extui %60 : i1 to i32
    %c0_i32_36 = arith.constant 0 : i32
    %62 = arith.cmpi ne, %61, %c0_i32_36 : i32
    scf.if %62 {
      %63 = arith.truncf %58 : vector<512x128xf32> to vector<512x128xbf16>
      %64 = vector.shape_cast %63 : vector<512x128xbf16> to vector<2x16x16x128xbf16>
      %c0_37 = arith.constant 0 : index
      %c0_38 = arith.constant 0 : index
      %c0_39 = arith.constant 0 : index
      %c0_40 = arith.constant 0 : index
      %65 = vector.load %arg5[%c0_37, %c0_38, %c0_39, %c0_40] : memref<2x16x16x128xbf16, #tpu.memory_space<vmem>>, vector<2x16x16x128xbf16>
      tpu.vector_store %arg5[%c0_37, %c0_38, %c0_39, %c0_40], %64 {strides = array<i32>} : memref<2x16x16x128xbf16, #tpu.memory_space<vmem>>, vector<2x16x16x128xbf16>,
      %cst_41 = arith.constant dense<0.000000e+00> : vector<128xf32>
      %66 = vector.multi_reduction <add>, %58, %cst_41 [0] : vector<512x128xf32> to vector<128xf32>
      %67 = vector.shape_cast %66 : vector<128xf32> to vector<1x128xf32>
      %68 = arith.mulf %58, %58 : vector<512x128xf32>
      %cst_42 = arith.constant dense<0.000000e+00> : vector<128xf32>
      %69 = vector.multi_reduction <add>, %68, %cst_42 [0] : vector<512x128xf32> to vector<128xf32>
      %70 = vector.shape_cast %69 : vector<128xf32> to vector<1x128xf32>
      %71 = tpu.concatenate %67, %70 in 0 : vector<1x128xf32>, vector<1x128xf32> -> vector<2x128xf32>
      %72 = vector.shape_cast %71 : vector<2x128xf32> to vector<1x2x128xf32>
      %c0_43 = arith.constant 0 : index
      %c0_44 = arith.constant 0 : index
      %c0_45 = arith.constant 0 : index
      %73 = vector.load %arg6[%c0_43, %c0_44, %c0_45] : memref<1x2x128xf32, #tpu.memory_space<vmem>>, vector<1x2x128xf32>
      tpu.vector_store %arg6[%c0_43, %c0_44, %c0_45], %72 {strides = array<i32>} : memref<1x2x128xf32, #tpu.memory_space<vmem>>, vector<1x2x128xf32>,
    } else {
    }
    return
  }
  func.func @transform_0(%arg0: i32, %arg1: i32, %arg2: i32) -> (i32, i32, i32, i32) {
    %c0_i32 = arith.constant 0 : i32
    %c0_i32_0 = arith.constant 0 : i32
    %c0_i32_1 = arith.constant 0 : i32
    %c0_i32_2 = arith.constant 0 : i32
    return %c0_i32, %c0_i32_0, %c0_i32_1, %arg2 : i32, i32, i32, i32
  }
  func.func @transform_1(%arg0: i32, %arg1: i32, %arg2: i32) -> (i32, i32, i32) {
    %c0_i32 = arith.constant 0 : i32
    %c0_i32_0 = arith.constant 0 : i32
    return %c0_i32, %arg2, %arg0 : i32, i32, i32
  }
  func.func @transform_2(%arg0: i32, %arg1: i32, %arg2: i32) -> (i32, i32, i32, i32) {
    %c0_i32 = arith.constant 0 : i32
    %c0_i32_0 = arith.constant 0 : i32
    %c0_i32_1 = arith.constant 0 : i32
    return %c0_i32, %arg1, %c0_i32_0, %arg0 : i32, i32, i32, i32
  }
  func.func @transform_3(%arg0: i32, %arg1: i32, %arg2: i32) -> (i32, i32, i32) {
    %c0_i32 = arith.constant 0 : i32
    %c0_i32_0 = arith.constant 0 : i32
    return %arg1, %c0_i32, %arg0 : i32, i32, i32
  }
}

module attributes {stable_mosaic.version = 11 : i64} {
  func.func @kernel(%arg0: i32, %arg1: memref<512x128xbf16, #tpu.memory_space<vmem>>, %arg2: memref<512x128xbf16, #tpu.memory_space<vmem>>, %arg3: memref<1x128xf32, #tpu.memory_space<vmem>>, %arg4: memref<1x128xf32, #tpu.memory_space<vmem>>, %arg5: memref<512x128xbf16, #tpu.memory_space<vmem>>) attributes {dimension_semantics = [#tpu.dimension_semantics<parallel>], iteration_bounds = array<i64: 1>, scalar_prefetch = 0 : i64, scratch_operands = 0 : i64, tpu.core_type = #tpu.core_type<tc>, window_params = [{transform_indices = @transform_0, window_bounds = array<i64: 512, 128>}, {transform_indices = @transform_1, window_bounds = array<i64: 512, 128>}, {pipeline_mode = #tpu.pipeline_mode<synchronous>, transform_indices = @transform_2, window_bounds = array<i64: 1, 128>}, {pipeline_mode = #tpu.pipeline_mode<synchronous>, transform_indices = @transform_3, window_bounds = array<i64: 1, 128>}, {transform_indices = @transform_4, window_bounds = array<i64: 512, 128>}]} {
    %c0 = arith.constant 0 : index
    %c0_0 = arith.constant 0 : index
    %0 = vector.load %arg1[%c0, %c0_0] : memref<512x128xbf16, #tpu.memory_space<vmem>>, vector<512x128xbf16>
    %1 = arith.extf %0 : vector<512x128xbf16> to vector<512x128xf32>
    %c0_1 = arith.constant 0 : index
    %c0_2 = arith.constant 0 : index
    %2 = vector.load %arg3[%c0_1, %c0_2] : memref<1x128xf32, #tpu.memory_space<vmem>>, vector<1x128xf32>
    %3 = vector.broadcast %2 : vector<1x128xf32> to vector<512x128xf32>
    %4 = arith.mulf %1, %3 : vector<512x128xf32>
    %c0_3 = arith.constant 0 : index
    %c0_4 = arith.constant 0 : index
    %5 = vector.load %arg4[%c0_3, %c0_4] : memref<1x128xf32, #tpu.memory_space<vmem>>, vector<1x128xf32>
    %6 = vector.broadcast %5 : vector<1x128xf32> to vector<512x128xf32>
    %7 = arith.addf %4, %6 : vector<512x128xf32>
    %cst = arith.constant 0.000000e+00 : f32
    %8 = vector.broadcast %cst : f32 to vector<512x128xf32>
    %9 = arith.maximumf %7, %8 : vector<512x128xf32>
    %c0_5 = arith.constant 0 : index
    %c0_6 = arith.constant 0 : index
    %10 = vector.load %arg2[%c0_5, %c0_6] : memref<512x128xbf16, #tpu.memory_space<vmem>>, vector<512x128xbf16>
    %11 = arith.extf %10 : vector<512x128xbf16> to vector<512x128xf32>
    %12 = arith.addf %11, %9 : vector<512x128xf32>
    %13 = arith.truncf %12 : vector<512x128xf32> to vector<512x128xbf16>
    %c0_7 = arith.constant 0 : index
    %c0_8 = arith.constant 0 : index
    %14 = vector.load %arg5[%c0_7, %c0_8] : memref<512x128xbf16, #tpu.memory_space<vmem>>, vector<512x128xbf16>
    tpu.vector_store %arg5[%c0_7, %c0_8], %13 {strides = array<i32>} : memref<512x128xbf16, #tpu.memory_space<vmem>>, vector<512x128xbf16>,
    return
  }
  func.func @transform_0(%arg0: i32) -> (i32, i32) {
    %c0_i32 = arith.constant 0 : i32
    %c0_i32_0 = arith.constant 0 : i32
    return %arg0, %c0_i32 : i32, i32
  }
  func.func @transform_1(%arg0: i32) -> (i32, i32) {
    %c0_i32 = arith.constant 0 : i32
    %c0_i32_0 = arith.constant 0 : i32
    return %arg0, %c0_i32 : i32, i32
  }
  func.func @transform_2(%arg0: i32) -> (i32, i32) {
    %c0_i32 = arith.constant 0 : i32
    %c0_i32_0 = arith.constant 0 : i32
    %c0_i32_1 = arith.constant 0 : i32
    return %c0_i32, %c0_i32_0 : i32, i32
  }
  func.func @transform_3(%arg0: i32) -> (i32, i32) {
    %c0_i32 = arith.constant 0 : i32
    %c0_i32_0 = arith.constant 0 : i32
    %c0_i32_1 = arith.constant 0 : i32
    return %c0_i32, %c0_i32_0 : i32, i32
  }
  func.func @transform_4(%arg0: i32) -> (i32, i32) {
    %c0_i32 = arith.constant 0 : i32
    %c0_i32_0 = arith.constant 0 : i32
    return %arg0, %c0_i32 : i32, i32
  }
}

module attributes {stable_mosaic.version = 11 : i64} {
  func.func @kernel(%arg0: i32, %arg1: memref<512x128xbf16, #tpu.memory_space<vmem>>, %arg2: memref<1x128xf32, #tpu.memory_space<vmem>>, %arg3: memref<1x128xf32, #tpu.memory_space<vmem>>, %arg4: memref<512x128xf32, #tpu.memory_space<vmem>>) attributes {dimension_semantics = [#tpu.dimension_semantics<parallel>], iteration_bounds = array<i64: 1>, scalar_prefetch = 0 : i64, scratch_operands = 0 : i64, tpu.core_type = #tpu.core_type<tc>, window_params = [{transform_indices = @transform_0, window_bounds = array<i64: 512, 128>}, {pipeline_mode = #tpu.pipeline_mode<synchronous>, transform_indices = @transform_1, window_bounds = array<i64: 1, 128>}, {pipeline_mode = #tpu.pipeline_mode<synchronous>, transform_indices = @transform_2, window_bounds = array<i64: 1, 128>}, {transform_indices = @transform_3, window_bounds = array<i64: 512, 128>}]} {
    %c0 = arith.constant 0 : index
    %c0_0 = arith.constant 0 : index
    %0 = vector.load %arg1[%c0, %c0_0] : memref<512x128xbf16, #tpu.memory_space<vmem>>, vector<512x128xbf16>
    %1 = arith.extf %0 : vector<512x128xbf16> to vector<512x128xf32>
    %c0_1 = arith.constant 0 : index
    %c0_2 = arith.constant 0 : index
    %2 = vector.load %arg2[%c0_1, %c0_2] : memref<1x128xf32, #tpu.memory_space<vmem>>, vector<1x128xf32>
    %3 = vector.broadcast %2 : vector<1x128xf32> to vector<512x128xf32>
    %4 = arith.mulf %1, %3 : vector<512x128xf32>
    %c0_3 = arith.constant 0 : index
    %c0_4 = arith.constant 0 : index
    %5 = vector.load %arg3[%c0_3, %c0_4] : memref<1x128xf32, #tpu.memory_space<vmem>>, vector<1x128xf32>
    %6 = vector.broadcast %5 : vector<1x128xf32> to vector<512x128xf32>
    %7 = arith.addf %4, %6 : vector<512x128xf32>
    %cst = arith.constant 0.000000e+00 : f32
    %8 = vector.broadcast %cst : f32 to vector<512x128xf32>
    %9 = arith.maximumf %7, %8 : vector<512x128xf32>
    %c0_5 = arith.constant 0 : index
    %c0_6 = arith.constant 0 : index
    %10 = vector.load %arg4[%c0_5, %c0_6] : memref<512x128xf32, #tpu.memory_space<vmem>>, vector<512x128xf32>
    tpu.vector_store %arg4[%c0_5, %c0_6], %9 {strides = array<i32>} : memref<512x128xf32, #tpu.memory_space<vmem>>, vector<512x128xf32>,
    return
  }
  func.func @transform_0(%arg0: i32) -> (i32, i32) {
    %c0_i32 = arith.constant 0 : i32
    %c0_i32_0 = arith.constant 0 : i32
    return %arg0, %c0_i32 : i32, i32
  }
  func.func @transform_1(%arg0: i32) -> (i32, i32) {
    %c0_i32 = arith.constant 0 : i32
    %c0_i32_0 = arith.constant 0 : i32
    %c0_i32_1 = arith.constant 0 : i32
    return %c0_i32, %c0_i32_0 : i32, i32
  }
  func.func @transform_2(%arg0: i32) -> (i32, i32) {
    %c0_i32 = arith.constant 0 : i32
    %c0_i32_0 = arith.constant 0 : i32
    %c0_i32_1 = arith.constant 0 : i32
    return %c0_i32, %c0_i32_0 : i32, i32
  }
  func.func @transform_3(%arg0: i32) -> (i32, i32) {
    %c0_i32 = arith.constant 0 : i32
    %c0_i32_0 = arith.constant 0 : i32
    return %arg0, %c0_i32 : i32, i32
  }
}

</mosaic_0001>

<bundles_post_ra>
// kernel: recurrent_block.11
= control target key start
LH: loop header
LB: loop body
LE: loop exit
PB: predicated region body
PF: predicated region fallthrough
CT: control target
= control target key end

     0   :  { %s1017_s0 = inlined_call_operand.vmem [shape: bf16[512,128], index: 0, kind: input, shape index: {}]   ;;  %s1018_s1 = inlined_call_operand.vmem [shape: f32[1,128], index: 1, kind: input, shape index: {}]   ;;  %s1019_s2 = inlined_call_operand.vmem [shape: f32[1,128], index: 2, kind: input, shape index: {}]   ;;  %s1020_s3 = inlined_call_operand.vmem [shape: f32[512,128], index: 3, kind: output, shape index: {}]  }
   0x1   :  { %v411_v0 = vld [vmem:[%s1017_s0] sm:$0xff]   ;;  %v538_v5 = vld [vmem:[%s1017_s0 + $0x8] sm:$0xff]   ;;  %v539_v8 = vld [vmem:[%s1017_s0 + $0x10] sm:$0xff]  }
   0x2   :  { %v597_v1 = vld [vmem:[%s1018_s1] ss:$0 sm:$0xff]  ;;  %v412_v2 = vunpack.c.l.bf16 %v411_v0  ;;  %v413_v4 = vunpack.c.h.bf16 %v411_v0  ;;  %v416_v6 = vunpack.c.l.bf16 %v538_v5  ;;  %v417_v7 = vunpack.c.h.bf16 %v538_v5  ;;  %v540_v9 = vld [vmem:[%s1017_s0 + $0x18] sm:$0xff]   ;;  %v542_v31 = vld [vmem:[%s1017_s0 + $0x28] sm:$0xff]  }
   0x3   :  { %v602_v3 = vld [vmem:[%s1019_s2] ss:$0 sm:$0xff]  ;;  %v420_v12 = vunpack.c.l.bf16 %v539_v8  ;;  %v421_v13 = vunpack.c.h.bf16 %v539_v8  ;;  %v424_v16 = vunpack.c.l.bf16 %v540_v9  ;;  %v425_v17 = vunpack.c.h.bf16 %v540_v9  ;;  %v543_v36 = vld [vmem:[%s1017_s0 + $0x30] sm:$0xff]   ;;  %v544_v41 = vld [vmem:[%s1017_s0 + $0x38] sm:$0xff]  }
   0x4   :  { %v146_v10 = vmul.f32 %v597_v1, %v412_v2  ;;  %v147_v11 = vmul.f32 %v597_v1, %v413_v4  ;;  %v148_v14 = vmul.f32 %v597_v1, %v416_v6  ;;  %v149_v15 = vmul.f32 %v597_v1, %v417_v7  ;;  %v541_v26 = vld [vmem:[%s1017_s0 + $0x20] sm:$0xff]   ;;  %v546_v5 = vld [vmem:[%s1017_s0 + $0x48] sm:$0xff]  }
   0x5   :  { %v150_v20 = vmul.f32 %v597_v1, %v420_v12  ;;  %v151_v21 = vmul.f32 %v597_v1, %v421_v13  ;;  %v152_v24 = vmul.f32 %v597_v1, %v424_v16  ;;  %v153_v25 = vmul.f32 %v597_v1, %v425_v17  ;;  %v545_v62 = vld [vmem:[%s1017_s0 + $0x40] sm:$0xff]  }
   0x6   :  { %v214_v18 = vadd.f32 %v602_v3, %v146_v10  ;;  %v215_v19 = vadd.f32 %v602_v3, %v147_v11  ;;  %v216_v22 = vadd.f32 %v602_v3, %v148_v14  ;;  %v217_v23 = vadd.f32 %v602_v3, %v149_v15  ;;  %v547_v10 = vld [vmem:[%s1017_s0 + $0x50] sm:$0xff]   ;;  %v548_v15 = vld [vmem:[%s1017_s0 + $0x58] sm:$0xff]  }
   0x7   :  { %v218_v29 = vadd.f32 %v602_v3, %v150_v20  ;;  %v219_v30 = vadd.f32 %v602_v3, %v151_v21  ;;  %v220_v34 = vadd.f32 %v602_v3, %v152_v24  ;;  %v221_v35 = vadd.f32 %v602_v3, %v153_v25 }
   0x8   :  { %v278_v27 = vmax.f32 %v214_v18, 0.0  ;;  %v279_v28 = vmax.f32 %v215_v19, 0.0  ;;  %v280_v32 = vmax.f32 %v216_v22, 0.0  ;;  %v281_v33 = vmax.f32 %v217_v23, 0.0 }
   0x9   :  { %v282_v37 = vmax.f32 %v218_v29, 0.0  ;;  %v283_v38 = vmax.f32 %v219_v30, 0.0  ;;  %v428_v39 = vunpack.c.l.bf16 %v541_v26  ;;  %v429_v40 = vunpack.c.h.bf16 %v541_v26 }
   0xa   :  { %342 = vst [vmem:[%s1020_s3] sm:$0xff] %v278_v27  ;;  %v284_v42 = vmax.f32 %v220_v34, 0.0  ;;  %v285_v43 = vmax.f32 %v221_v35, 0.0  ;;  %v432_v44 = vunpack.c.l.bf16 %v542_v31  ;;  %v433_v45 = vunpack.c.h.bf16 %v542_v31 }
   0xb   :  { %343 = vst [vmem:[%s1020_s3 + $0x8] sm:$0xff] %v279_v28  ;;  %v154_v46 = vmul.f32 %v597_v1, %v428_v39  ;;  %v155_v47 = vmul.f32 %v597_v1, %v429_v40  ;;  %v436_v48 = vunpack.c.l.bf16 %v543_v36  ;;  %v437_v49 = vunpack.c.h.bf16 %v543_v36  ;;  %v549_v36 = vld [vmem:[%s1017_s0 + $0x60] sm:$0xff]  }
   0xc   :  { %344 = vst [vmem:[%s1020_s3 + $0x10] sm:$0xff] %v280_v32  ;;  %v156_v50 = vmul.f32 %v597_v1, %v432_v44  ;;  %v157_v51 = vmul.f32 %v597_v1, %v433_v45  ;;  %v440_v52 = vunpack.c.l.bf16 %v544_v41  ;;  %v441_v53 = vunpack.c.h.bf16 %v544_v41  ;;  %v550_v41 = vld [vmem:[%s1017_s0 + $0x68] sm:$0xff]  }
   0xd   :  { %345 = vst [vmem:[%s1020_s3 + $0x18] sm:$0xff] %v281_v33  ;;  %v222_v54 = vadd.f32 %v602_v3, %v154_v46  ;;  %v223_v55 = vadd.f32 %v602_v3, %v155_v47  ;;  %v158_v56 = vmul.f32 %v597_v1, %v436_v48  ;;  %v159_v57 = vmul.f32 %v597_v1, %v437_v49  ;;  %v551_v46 = vld [vmem:[%s1017_s0 + $0x70] sm:$0xff]  }
   0xe   :  { %346 = vst [vmem:[%s1020_s3 + $0x20] sm:$0xff] %v282_v37  ;;  %v224_v58 = vadd.f32 %v602_v3, %v156_v50  ;;  %v225_v59 = vadd.f32 %v602_v3, %v157_v51  ;;  %v160_v60 = vmul.f32 %v597_v1, %v440_v52  ;;  %v161_v61 = vmul.f32 %v597_v1, %v441_v53  ;;  %v552_v51 = vld [vmem:[%s1017_s0 + $0x78] sm:$0xff]  }
   0xf   :  { %347 = vst [vmem:[%s1020_s3 + $0x28] sm:$0xff] %v283_v38  ;;  %v286_v63 = vmax.f32 %v222_v54, 0.0  ;;  %v287_v0 = vmax.f32 %v223_v55, 0.0  ;;  %v226_v2 = vadd.f32 %v602_v3, %v158_v56  ;;  %v227_v4 = vadd.f32 %v602_v3, %v159_v57 }
  0x10   :  { %348 = vst [vmem:[%s1020_s3 + $0x30] sm:$0xff] %v284_v42  ;;  %v288_v6 = vmax.f32 %v224_v58, 0.0  ;;  %v289_v7 = vmax.f32 %v225_v59, 0.0  ;;  %v228_v8 = vadd.f32 %v602_v3, %v160_v60  ;;  %v229_v9 = vadd.f32 %v602_v3, %v161_v61 }
  0x11   :  { %349 = vst [vmem:[%s1020_s3 + $0x38] sm:$0xff] %v285_v43  ;;  %v290_v11 = vmax.f32 %v226_v2, 0.0  ;;  %v291_v12 = vmax.f32 %v227_v4, 0.0  ;;  %v444_v13 = vunpack.c.l.bf16 %v545_v62  ;;  %v445_v14 = vunpack.c.h.bf16 %v545_v62 }
  0x12   :  { %350 = vst [vmem:[%s1020_s3 + $0x40] sm:$0xff] %v286_v63  ;;  %v292_v16 = vmax.f32 %v228_v8, 0.0  ;;  %v293_v17 = vmax.f32 %v229_v9, 0.0  ;;  %v448_v18 = vunpack.c.l.bf16 %v546_v5  ;;  %v449_v19 = vunpack.c.h.bf16 %v546_v5 }
  0x13   :  { %351 = vst [vmem:[%s1020_s3 + $0x48] sm:$0xff] %v287_v0  ;;  %v162_v20 = vmul.f32 %v597_v1, %v444_v13  ;;  %v163_v21 = vmul.f32 %v597_v1, %v445_v14  ;;  %v452_v22 = vunpack.c.l.bf16 %v547_v10  ;;  %v453_v23 = vunpack.c.h.bf16 %v547_v10  ;;  %v553_v10 = vld [vmem:[%s1017_s0 + $0x80] sm:$0xff]  }
  0x14   :  { %352 = vst [vmem:[%s1020_s3 + $0x50] sm:$0xff] %v288_v6  ;;  %v164_v24 = vmul.f32 %v597_v1, %v448_v18  ;;  %v165_v25 = vmul.f32 %v597_v1, %v449_v19  ;;  %v456_v26 = vunpack.c.l.bf16 %v548_v15  ;;  %v457_v27 = vunpack.c.h.bf16 %v548_v15  ;;  %v554_v15 = vld [vmem:[%s1017_s0 + $0x88] sm:$0xff]  }
  0x15   :  { %353 = vst [vmem:[%s1020_s3 + $0x58] sm:$0xff] %v289_v7  ;;  %v230_v28 = vadd.f32 %v602_v3, %v162_v20  ;;  %v231_v29 = vadd.f32 %v602_v3, %v163_v21  ;;  %v166_v30 = vmul.f32 %v597_v1, %v452_v22  ;;  %v167_v31 = vmul.f32 %v597_v1, %v453_v23  ;;  %v555_v20 = vld [vmem:[%s1017_s0 + $0x90] sm:$0xff]  }
  0x16   :  { %354 = vst [vmem:[%s1020_s3 + $0x60] sm:$0xff] %v290_v11  ;;  %v232_v32 = vadd.f32 %v602_v3, %v164_v24  ;;  %v233_v33 = vadd.f32 %v602_v3, %v165_v25  ;;  %v168_v34 = vmul.f32 %v597_v1, %v456_v26  ;;  %v169_v35 = vmul.f32 %v597_v1, %v457_v27  ;;  %v556_v25 = vld [vmem:[%s1017_s0 + $0x98] sm:$0xff]  }
  0x17   :  { %355 = vst [vmem:[%s1020_s3 + $0x68] sm:$0xff] %v291_v12  ;;  %v294_v37 = vmax.f32 %v230_v28, 0.0  ;;  %v295_v38 = vmax.f32 %v231_v29, 0.0  ;;  %v234_v39 = vadd.f32 %v602_v3, %v166_v30  ;;  %v235_v40 = vadd.f32 %v602_v3, %v167_v31 }
  0x18   :  { %356 = vst [vmem:[%s1020_s3 + $0x70] sm:$0xff] %v292_v16  ;;  %v296_v42 = vmax.f32 %v232_v32, 0.0  ;;  %v297_v43 = vmax.f32 %v233_v33, 0.0  ;;  %v236_v44 = vadd.f32 %v602_v3, %v168_v34  ;;  %v237_v45 = vadd.f32 %v602_v3, %v169_v35 }
  0x19   :  { %357 = vst [vmem:[%s1020_s3 + $0x78] sm:$0xff] %v293_v17  ;;  %v298_v47 = vmax.f32 %v234_v39, 0.0  ;;  %v299_v48 = vmax.f32 %v235_v40, 0.0  ;;  %v460_v49 = vunpack.c.l.bf16 %v549_v36  ;;  %v461_v50 = vunpack.c.h.bf16 %v549_v36 }
  0x1a   :  { %358 = vst [vmem:[%s1020_s3 + $0x80] sm:$0xff] %v294_v37  ;;  %v300_v52 = vmax.f32 %v236_v44, 0.0  ;;  %v301_v53 = vmax.f32 %v237_v45, 0.0  ;;  %v464_v54 = vunpack.c.l.bf16 %v550_v41  ;;  %v465_v55 = vunpack.c.h.bf16 %v550_v41 }
  0x1b   :  { %359 = vst [vmem:[%s1020_s3 + $0x88] sm:$0xff] %v295_v38  ;;  %v170_v56 = vmul.f32 %v597_v1, %v460_v49  ;;  %v171_v57 = vmul.f32 %v597_v1, %v461_v50  ;;  %v468_v58 = vunpack.c.l.bf16 %v551_v46  ;;  %v469_v59 = vunpack.c.h.bf16 %v551_v46  ;;  %v557_v46 = vld [vmem:[%s1017_s0 + $0xa0] sm:$0xff]  }
  0x1c   :  { %360 = vst [vmem:[%s1020_s3 + $0x90] sm:$0xff] %v296_v42  ;;  %v172_v60 = vmul.f32 %v597_v1, %v464_v54  ;;  %v173_v61 = vmul.f32 %v597_v1, %v465_v55  ;;  %v472_v62 = vunpack.c.l.bf16 %v552_v51  ;;  %v473_v63 = vunpack.c.h.bf16 %v552_v51  ;;  %v558_v51 = vld [vmem:[%s1017_s0 + $0xa8] sm:$0xff]  }
  0x1d   :  { %361 = vst [vmem:[%s1020_s3 + $0x98] sm:$0xff] %v297_v43  ;;  %v238_v0 = vadd.f32 %v602_v3, %v170_v56  ;;  %v239_v2 = vadd.f32 %v602_v3, %v171_v57  ;;  %v174_v4 = vmul.f32 %v597_v1, %v468_v58  ;;  %v175_v5 = vmul.f32 %v597_v1, %v469_v59  ;;  %v559_v56 = vld [vmem:[%s1017_s0 + $0xb0] sm:$0xff]  }
  0x1e   :  { %362 = vst [vmem:[%s1020_s3 + $0xa0] sm:$0xff] %v298_v47  ;;  %v240_v6 = vadd.f32 %v602_v3, %v172_v60  ;;  %v241_v7 = vadd.f32 %v602_v3, %v173_v61  ;;  %v176_v8 = vmul.f32 %v597_v1, %v472_v62  ;;  %v177_v9 = vmul.f32 %v597_v1, %v473_v63  ;;  %v560_v61 = vld [vmem:[%s1017_s0 + $0xb8] sm:$0xff]  }
  0x1f   :  { %363 = vst [vmem:[%s1020_s3 + $0xa8] sm:$0xff] %v299_v48  ;;  %v302_v11 = vmax.f32 %v238_v0, 0.0  ;;  %v303_v12 = vmax.f32 %v239_v2, 0.0  ;;  %v242_v13 = vadd.f32 %v602_v3, %v174_v4  ;;  %v243_v14 = vadd.f32 %v602_v3, %v175_v5 }
  0x20   :  { %364 = vst [vmem:[%s1020_s3 + $0xb0] sm:$0xff] %v300_v52  ;;  %v304_v16 = vmax.f32 %v240_v6, 0.0  ;;  %v305_v17 = vmax.f32 %v241_v7, 0.0  ;;  %v244_v18 = vadd.f32 %v602_v3, %v176_v8  ;;  %v245_v19 = vadd.f32 %v602_v3, %v177_v9 }
  0x21   :  { %365 = vst [vmem:[%s1020_s3 + $0xb8] sm:$0xff] %v301_v53  ;;  %v306_v21 = vmax.f32 %v242_v13, 0.0  ;;  %v307_v22 = vmax.f32 %v243_v14, 0.0  ;;  %v476_v23 = vunpack.c.l.bf16 %v553_v10  ;;  %v477_v24 = vunpack.c.h.bf16 %v553_v10 }
  0x22   :  { %366 = vst [vmem:[%s1020_s3 + $0xc0] sm:$0xff] %v302_v11  ;;  %v308_v26 = vmax.f32 %v244_v18, 0.0  ;;  %v309_v27 = vmax.f32 %v245_v19, 0.0  ;;  %v480_v28 = vunpack.c.l.bf16 %v554_v15  ;;  %v481_v29 = vunpack.c.h.bf16 %v554_v15 }
  0x23   :  { %367 = vst [vmem:[%s1020_s3 + $0xc8] sm:$0xff] %v303_v12  ;;  %v178_v30 = vmul.f32 %v597_v1, %v476_v23  ;;  %v179_v31 = vmul.f32 %v597_v1, %v477_v24  ;;  %v484_v32 = vunpack.c.l.bf16 %v555_v20  ;;  %v485_v33 = vunpack.c.h.bf16 %v555_v20  ;;  %v561_v20 = vld [vmem:[%s1017_s0 + $0xc0] sm:$0xff]  }
  0x24   :  { %368 = vst [vmem:[%s1020_s3 + $0xd0] sm:$0xff] %v304_v16  ;;  %v180_v34 = vmul.f32 %v597_v1, %v480_v28  ;;  %v181_v35 = vmul.f32 %v597_v1, %v481_v29  ;;  %v488_v36 = vunpack.c.l.bf16 %v556_v25  ;;  %v489_v37 = vunpack.c.h.bf16 %v556_v25  ;;  %v562_v25 = vld [vmem:[%s1017_s0 + $0xc8] sm:$0xff]  }
  0x25   :  { %369 = vst [vmem:[%s1020_s3 + $0xd8] sm:$0xff] %v305_v17  ;;  %v246_v38 = vadd.f32 %v602_v3, %v178_v30  ;;  %v247_v39 = vadd.f32 %v602_v3, %v179_v31  ;;  %v182_v40 = vmul.f32 %v597_v1, %v484_v32  ;;  %v183_v41 = vmul.f32 %v597_v1, %v485_v33  ;;  %v563_v30 = vld [vmem:[%s1017_s0 + $0xd0] sm:$0xff]  }
  0x26   :  { %370 = vst [vmem:[%s1020_s3 + $0xe0] sm:$0xff] %v306_v21  ;;  %v248_v42 = vadd.f32 %v602_v3, %v180_v34  ;;  %v249_v43 = vadd.f32 %v602_v3, %v181_v35  ;;  %v184_v44 = vmul.f32 %v597_v1, %v488_v36  ;;  %v185_v45 = vmul.f32 %v597_v1, %v489_v37  ;;  %v564_v35 = vld [vmem:[%s1017_s0 + $0xd8] sm:$0xff]  }
  0x27   :  { %371 = vst [vmem:[%s1020_s3 + $0xe8] sm:$0xff] %v307_v22  ;;  %v310_v47 = vmax.f32 %v246_v38, 0.0  ;;  %v311_v48 = vmax.f32 %v247_v39, 0.0  ;;  %v250_v49 = vadd.f32 %v602_v3, %v182_v40  ;;  %v251_v50 = vadd.f32 %v602_v3, %v183_v41 }
  0x28   :  { %372 = vst [vmem:[%s1020_s3 + $0xf0] sm:$0xff] %v308_v26  ;;  %v312_v52 = vmax.f32 %v248_v42, 0.0  ;;  %v313_v53 = vmax.f32 %v249_v43, 0.0  ;;  %v252_v54 = vadd.f32 %v602_v3, %v184_v44  ;;  %v253_v55 = vadd.f32 %v602_v3, %v185_v45 }
  0x29   :  { %373 = vst [vmem:[%s1020_s3 + $0xf8] sm:$0xff] %v309_v27  ;;  %v314_v57 = vmax.f32 %v250_v49, 0.0  ;;  %v315_v58 = vmax.f32 %v251_v50, 0.0  ;;  %v492_v59 = vunpack.c.l.bf16 %v557_v46  ;;  %v493_v60 = vunpack.c.h.bf16 %v557_v46 }
  0x2a   :  { %374 = vst [vmem:[%s1020_s3 + $0x100] sm:$0xff] %v310_v47  ;;  %v316_v62 = vmax.f32 %v252_v54, 0.0  ;;  %v317_v63 = vmax.f32 %v253_v55, 0.0  ;;  %v496_v0 = vunpack.c.l.bf16 %v558_v51  ;;  %v497_v2 = vunpack.c.h.bf16 %v558_v51 }
  0x2b   :  { %375 = vst [vmem:[%s1020_s3 + $0x108] sm:$0xff] %v311_v48  ;;  %v186_v4 = vmul.f32 %v597_v1, %v492_v59  ;;  %v187_v5 = vmul.f32 %v597_v1, %v493_v60  ;;  %v500_v6 = vunpack.c.l.bf16 %v559_v56  ;;  %v501_v7 = vunpack.c.h.bf16 %v559_v56  ;;  %v565_v56 = vld [vmem:[%s1017_s0 + $0xe0] sm:$0xff]  }
  0x2c   :  { %376 = vst [vmem:[%s1020_s3 + $0x110] sm:$0xff] %v312_v52  ;;  %v188_v8 = vmul.f32 %v597_v1, %v496_v0  ;;  %v189_v9 = vmul.f32 %v597_v1, %v497_v2  ;;  %v504_v10 = vunpack.c.l.bf16 %v560_v61  ;;  %v505_v11 = vunpack.c.h.bf16 %v560_v61  ;;  %v566_v61 = vld [vmem:[%s1017_s0 + $0xe8] sm:$0xff]  }
  0x2d   :  { %377 = vst [vmem:[%s1020_s3 + $0x118] sm:$0xff] %v313_v53  ;;  %v254_v12 = vadd.f32 %v602_v3, %v186_v4  ;;  %v255_v13 = vadd.f32 %v602_v3, %v187_v5  ;;  %v190_v14 = vmul.f32 %v597_v1, %v500_v6  ;;  %v191_v15 = vmul.f32 %v597_v1, %v501_v7  ;;  %v567_v4 = vld [vmem:[%s1017_s0 + $0xf0] sm:$0xff]  }
  0x2e   :  { %378 = vst [vmem:[%s1020_s3 + $0x120] sm:$0xff] %v314_v57  ;;  %v256_v16 = vadd.f32 %v602_v3, %v188_v8  ;;  %v257_v17 = vadd.f32 %v602_v3, %v189_v9  ;;  %v192_v18 = vmul.f32 %v597_v1, %v504_v10  ;;  %v193_v19 = vmul.f32 %v597_v1, %v505_v11  ;;  %v568_v9 = vld [vmem:[%s1017_s0 + $0xf8] sm:$0xff]  }
  0x2f   :  { %379 = vst [vmem:[%s1020_s3 + $0x128] sm:$0xff] %v315_v58  ;;  %v318_v21 = vmax.f32 %v254_v12, 0.0  ;;  %v319_v22 = vmax.f32 %v255_v13, 0.0  ;;  %v258_v23 = vadd.f32 %v602_v3, %v190_v14  ;;  %v259_v24 = vadd.f32 %v602_v3, %v191_v15 }
  0x30   :  { %380 = vst [vmem:[%s1020_s3 + $0x130] sm:$0xff] %v316_v62  ;;  %v320_v26 = vmax.f32 %v256_v16, 0.0  ;;  %v321_v27 = vmax.f32 %v257_v17, 0.0  ;;  %v260_v28 = vadd.f32 %v602_v3, %v192_v18  ;;  %v261_v29 = vadd.f32 %v602_v3, %v193_v19 }
  0x31   :  { %381 = vst [vmem:[%s1020_s3 + $0x138] sm:$0xff] %v317_v63  ;;  %v322_v31 = vmax.f32 %v258_v23, 0.0  ;;  %v323_v32 = vmax.f32 %v259_v24, 0.0  ;;  %v508_v33 = vunpack.c.l.bf16 %v561_v20  ;;  %v509_v34 = vunpack.c.h.bf16 %v561_v20 }
  0x32   :  { %382 = vst [vmem:[%s1020_s3 + $0x140] sm:$0xff] %v318_v21  ;;  %v324_v36 = vmax.f32 %v260_v28, 0.0  ;;  %v325_v37 = vmax.f32 %v261_v29, 0.0  ;;  %v512_v38 = vunpack.c.l.bf16 %v562_v25  ;;  %v513_v39 = vunpack.c.h.bf16 %v562_v25 }
  0x33   :  { %383 = vst [vmem:[%s1020_s3 + $0x148] sm:$0xff] %v319_v22  ;;  %v194_v40 = vmul.f32 %v597_v1, %v508_v33  ;;  %v195_v41 = vmul.f32 %v597_v1, %v509_v34  ;;  %v516_v42 = vunpack.c.l.bf16 %v563_v30  ;;  %v517_v43 = vunpack.c.h.bf16 %v563_v30 }
  0x34   :  { %384 = vst [vmem:[%s1020_s3 + $0x150] sm:$0xff] %v320_v26  ;;  %v196_v44 = vmul.f32 %v597_v1, %v512_v38  ;;  %v197_v45 = vmul.f32 %v597_v1, %v513_v39  ;;  %v520_v46 = vunpack.c.l.bf16 %v564_v35  ;;  %v521_v47 = vunpack.c.h.bf16 %v564_v35 }
  0x35   :  { %385 = vst [vmem:[%s1020_s3 + $0x158] sm:$0xff] %v321_v27  ;;  %v262_v48 = vadd.f32 %v602_v3, %v194_v40  ;;  %v263_v49 = vadd.f32 %v602_v3, %v195_v41  ;;  %v198_v50 = vmul.f32 %v597_v1, %v516_v42  ;;  %v199_v51 = vmul.f32 %v597_v1, %v517_v43 }
  0x36   :  { %386 = vst [vmem:[%s1020_s3 + $0x160] sm:$0xff] %v322_v31  ;;  %v264_v52 = vadd.f32 %v602_v3, %v196_v44  ;;  %v265_v53 = vadd.f32 %v602_v3, %v197_v45  ;;  %v200_v54 = vmul.f32 %v597_v1, %v520_v46  ;;  %v201_v55 = vmul.f32 %v597_v1, %v521_v47 }
  0x37   :  { %387 = vst [vmem:[%s1020_s3 + $0x168] sm:$0xff] %v323_v32  ;;  %v326_v57 = vmax.f32 %v262_v48, 0.0  ;;  %v327_v58 = vmax.f32 %v263_v49, 0.0  ;;  %v266_v59 = vadd.f32 %v602_v3, %v198_v50  ;;  %v267_v60 = vadd.f32 %v602_v3, %v199_v51 }
  0x38   :  { %388 = vst [vmem:[%s1020_s3 + $0x170] sm:$0xff] %v324_v36  ;;  %v328_v62 = vmax.f32 %v264_v52, 0.0  ;;  %v329_v63 = vmax.f32 %v265_v53, 0.0  ;;  %v268_v0 = vadd.f32 %v602_v3, %v200_v54  ;;  %v269_v2 = vadd.f32 %v602_v3, %v201_v55 }
  0x39   :  { %389 = vst [vmem:[%s1020_s3 + $0x178] sm:$0xff] %v325_v37  ;;  %v330_v5 = vmax.f32 %v266_v59, 0.0  ;;  %v331_v6 = vmax.f32 %v267_v60, 0.0  ;;  %v524_v7 = vunpack.c.l.bf16 %v565_v56  ;;  %v525_v8 = vunpack.c.h.bf16 %v565_v56 }
  0x3a   :  { %390 = vst [vmem:[%s1020_s3 + $0x180] sm:$0xff] %v326_v57  ;;  %v332_v10 = vmax.f32 %v268_v0, 0.0  ;;  %v333_v11 = vmax.f32 %v269_v2, 0.0  ;;  %v528_v12 = vunpack.c.l.bf16 %v566_v61  ;;  %v529_v13 = vunpack.c.h.bf16 %v566_v61 }
  0x3b   :  { %391 = vst [vmem:[%s1020_s3 + $0x188] sm:$0xff] %v327_v58  ;;  %v202_v14 = vmul.f32 %v597_v1, %v524_v7  ;;  %v203_v15 = vmul.f32 %v597_v1, %v525_v8  ;;  %v532_v16 = vunpack.c.l.bf16 %v567_v4  ;;  %v533_v17 = vunpack.c.h.bf16 %v567_v4 }
  0x3c   :  { %392 = vst [vmem:[%s1020_s3 + $0x190] sm:$0xff] %v328_v62  ;;  %v204_v18 = vmul.f32 %v597_v1, %v528_v12  ;;  %v205_v19 = vmul.f32 %v597_v1, %v529_v13  ;;  %v536_v20 = vunpack.c.l.bf16 %v568_v9  ;;  %v537_v21 = vunpack.c.h.bf16 %v568_v9 }
  0x3d   :  { %393 = vst [vmem:[%s1020_s3 + $0x198] sm:$0xff] %v329_v63  ;;  %v270_v22 = vadd.f32 %v602_v3, %v202_v14  ;;  %v271_v23 = vadd.f32 %v602_v3, %v203_v15  ;;  %v206_v24 = vmul.f32 %v597_v1, %v532_v16  ;;  %v207_v25 = vmul.f32 %v597_v1, %v533_v17 }
  0x3e   :  { %394 = vst [vmem:[%s1020_s3 + $0x1a0] sm:$0xff] %v330_v5  ;;  %v272_v26 = vadd.f32 %v602_v3, %v204_v18  ;;  %v273_v27 = vadd.f32 %v602_v3, %v205_v19  ;;  %v208_v28 = vmul.f32 %v597_v1, %v536_v20  ;;  %v209_v29 = vmul.f32 %v597_v1, %v537_v21 }
  0x3f   :  { %395 = vst [vmem:[%s1020_s3 + $0x1a8] sm:$0xff] %v331_v6  ;;  %v334_v30 = vmax.f32 %v270_v22, 0.0  ;;  %v335_v31 = vmax.f32 %v271_v23, 0.0  ;;  %v274_v32 = vadd.f32 %v602_v3, %v206_v24  ;;  %v275_v33 = vadd.f32 %v602_v3, %v207_v25 }
  0x40   :  { %396 = vst [vmem:[%s1020_s3 + $0x1b0] sm:$0xff] %v332_v10  ;;  %v336_v34 = vmax.f32 %v272_v26, 0.0  ;;  %v337_v35 = vmax.f32 %v273_v27, 0.0  ;;  %v276_v36 = vadd.f32 %v602_v3, %v208_v28  ;;  %v277_v1 = vadd.f32 %v602_v3, %v209_v29 }
  0x41   :  { %397 = vst [vmem:[%s1020_s3 + $0x1b8] sm:$0xff] %v333_v11  ;;  %v338_v37 = vmax.f32 %v274_v32, 0.0  ;;  %v339_v38 = vmax.f32 %v275_v33, 0.0 }
  0x42   :  { %398 = vst [vmem:[%s1020_s3 + $0x1c0] sm:$0xff] %v334_v30  ;;  %v340_v39 = vmax.f32 %v276_v36, 0.0  ;;  %v341_v3 = vmax.f32 %v277_v1, 0.0 }
  0x43   :  { %399 = vst [vmem:[%s1020_s3 + $0x1c8] sm:$0xff] %v335_v31 }
  0x44   :  { %400 = vst [vmem:[%s1020_s3 + $0x1d0] sm:$0xff] %v336_v34 }
  0x45   :  { %401 = vst [vmem:[%s1020_s3 + $0x1d8] sm:$0xff] %v337_v35 }
  0x46   :  { %402 = vst [vmem:[%s1020_s3 + $0x1e0] sm:$0xff] %v338_v37 }
  0x47   :  { %403 = vst [vmem:[%s1020_s3 + $0x1e8] sm:$0xff] %v339_v38 }
  0x48   :  { %404 = vst [vmem:[%s1020_s3 + $0x1f0] sm:$0xff] %v340_v39 }
  0x49   :  { %405 = vst [vmem:[%s1020_s3 + $0x1f8] sm:$0xff] %v341_v3 }

// kernel: recurrent_block.7
= control target key start
LH: loop header
LB: loop body
LE: loop exit
PB: predicated region body
PF: predicated region fallthrough
CT: control target
= control target key end

     0   :  { %s1631_s0 = inlined_call_operand.vmem [shape: bf16[512,128], index: 0, kind: input, shape index: {}]   ;;  %s1632_s1 = inlined_call_operand.vmem [shape: bf16[512,128], index: 1, kind: input, shape index: {}]   ;;  %s1633_s2 = inlined_call_operand.vmem [shape: f32[1,128], index: 2, kind: input, shape index: {}]   ;;  %s1634_s3 = inlined_call_operand.vmem [shape: f32[1,128], index: 3, kind: input, shape index: {}]   ;;  %s1635_s4 = inlined_call_operand.vmem [shape: bf16[512,128], index: 4, kind: output, shape index: {}]  }
   0x1   :  { %v670_v0 = vld [vmem:[%s1631_s0] sm:$0xff]   ;;  %v1085_v8 = vld [vmem:[%s1631_s0 + $0x8] sm:$0xff]   ;;  %v1086_v10 = vld [vmem:[%s1631_s0 + $0x10] sm:$0xff]  }
   0x2   :  { %v1211_v1 = vld [vmem:[%s1633_s2] ss:$0 sm:$0xff]  ;;  %v671_v2 = vunpack.c.l.bf16 %v670_v0  ;;  %v672_v3 = vunpack.c.h.bf16 %v670_v0  ;;  %v1116_v9 = vld [vmem:[%s1632_s1 + $0x8] sm:$0xff]   ;;  %v675_v13 = vunpack.c.l.bf16 %v1085_v8  ;;  %v676_v14 = vunpack.c.h.bf16 %v1085_v8  ;;  %v1117_v15 = vld [vmem:[%s1632_s1 + $0x10] sm:$0xff]  }
   0x3   :  { %v1216_v4 = vld [vmem:[%s1634_s3] ss:$0 sm:$0xff]  ;;  %v803_v16 = vunpack.c.l.bf16 %v1116_v9  ;;  %v804_v17 = vunpack.c.h.bf16 %v1116_v9  ;;  %v679_v18 = vunpack.c.l.bf16 %v1086_v10  ;;  %v680_v19 = vunpack.c.h.bf16 %v1086_v10  ;;  %v1087_v24 = vld [vmem:[%s1631_s0 + $0x18] sm:$0xff]   ;;  %v1089_v56 = vld [vmem:[%s1631_s0 + $0x28] sm:$0xff]  }
   0x4   :  { %v798_v5 = vld [vmem:[%s1632_s1] sm:$0xff]   ;;  %v149_v11 = vmul.f32 %v1211_v1, %v671_v2  ;;  %v150_v12 = vmul.f32 %v1211_v1, %v672_v3  ;;  %v151_v22 = vmul.f32 %v1211_v1, %v675_v13  ;;  %v152_v23 = vmul.f32 %v1211_v1, %v676_v14  ;;  %v1118_v37 = vld [vmem:[%s1632_s1 + $0x18] sm:$0xff]   ;;  %v1120_v61 = vld [vmem:[%s1632_s1 + $0x28] sm:$0xff]  }
   0x5   :  { %v799_v6 = vunpack.c.l.bf16 %v798_v5  ;;  %v800_v7 = vunpack.c.h.bf16 %v798_v5  ;;  %v153_v25 = vmul.f32 %v1211_v1, %v679_v18  ;;  %v154_v26 = vmul.f32 %v1211_v1, %v680_v19  ;;  %v1088_v46 = vld [vmem:[%s1631_s0 + $0x20] sm:$0xff]   ;;  %v1090_v8 = vld [vmem:[%s1631_s0 + $0x30] sm:$0xff]  }
   0x6   :  { %v217_v20 = vadd.f32 %v1216_v4, %v149_v11  ;;  %v218_v21 = vadd.f32 %v1216_v4, %v150_v12  ;;  %v807_v27 = vunpack.c.l.bf16 %v1117_v15  ;;  %v808_v28 = vunpack.c.h.bf16 %v1117_v15  ;;  %v1119_v51 = vld [vmem:[%s1632_s1 + $0x20] sm:$0xff]   ;;  %v1121_v13 = vld [vmem:[%s1632_s1 + $0x30] sm:$0xff]  }
   0x7   :  { %v219_v31 = vadd.f32 %v1216_v4, %v151_v22  ;;  %v220_v32 = vadd.f32 %v1216_v4, %v152_v23  ;;  %v221_v33 = vadd.f32 %v1216_v4, %v153_v25  ;;  %v222_v34 = vadd.f32 %v1216_v4, %v154_v26  ;;  %v1091_v22 = vld [vmem:[%s1631_s0 + $0x38] sm:$0xff]  }
   0x8   :  { %v281_v29 = vmax.f32 %v217_v20, 0.0  ;;  %v282_v30 = vmax.f32 %v218_v21, 0.0  ;;  %v683_v35 = vunpack.c.l.bf16 %v1087_v24  ;;  %v684_v36 = vunpack.c.h.bf16 %v1087_v24 }
   0x9   :  { %v283_v40 = vmax.f32 %v219_v31, 0.0  ;;  %v284_v41 = vmax.f32 %v220_v32, 0.0  ;;  %v285_v42 = vmax.f32 %v221_v33, 0.0  ;;  %v286_v43 = vmax.f32 %v222_v34, 0.0  ;;  %v1122_v31 = vld [vmem:[%s1632_s1 + $0x38] sm:$0xff]  }
   0xa   :  { %v473_v38 = vadd.f32 %v799_v6, %v281_v29  ;;  %v474_v39 = vadd.f32 %v800_v7, %v282_v30  ;;  %v155_v44 = vmul.f32 %v1211_v1, %v683_v35  ;;  %v156_v45 = vmul.f32 %v1211_v1, %v684_v36 }
   0xb   :  { %v475_v48 = vadd.f32 %v803_v16, %v283_v40  ;;  %v476_v49 = vadd.f32 %v804_v17, %v284_v41  ;;  %v811_v50 = vunpack.c.l.bf16 %v1118_v37  ;;  %v477_v52 = vadd.f32 %v807_v27, %v285_v42  ;;  %v1092_v40 = vld [vmem:[%s1631_s0 + $0x40] sm:$0xff]  }
   0xc   :  { %v928_v47 = vpack.c.bf16 %v474_v39, %v473_v38  ;;  %v478_v53 = vadd.f32 %v808_v28, %v286_v43  ;;  %v223_v54 = vadd.f32 %v1216_v4, %v155_v44  ;;  %v224_v55 = vadd.f32 %v1216_v4, %v156_v45 }
   0xd   :  { %v933_v57 = vpack.c.bf16 %v476_v49, %v475_v48  ;;  %v812_v58 = vunpack.c.h.bf16 %v1118_v37  ;;  %v687_v59 = vunpack.c.l.bf16 %v1088_v46  ;;  %v688_v60 = vunpack.c.h.bf16 %v1088_v46  ;;  %v1123_v49 = vld [vmem:[%s1632_s1 + $0x40] sm:$0xff]  }
   0xe   :  { %929 = vst [vmem:[%s1635_s4] sm:$0xff] %v928_v47   ;;  %v938_v62 = vpack.c.bf16 %v478_v53, %v477_v52  ;;  %v287_v63 = vmax.f32 %v223_v54, 0.0  ;;  %v288_v0 = vmax.f32 %v224_v55, 0.0  ;;  %v815_v2 = vunpack.c.l.bf16 %v1119_v51  ;;  %v1093_v54 = vld [vmem:[%s1631_s0 + $0x48] sm:$0xff]  }
   0xf   :  { %1147 = vst [vmem:[%s1635_s4 + $0x8] sm:$0xff] %v933_v57   ;;  %v157_v3 = vmul.f32 %v1211_v1, %v687_v59  ;;  %v158_v5 = vmul.f32 %v1211_v1, %v688_v60  ;;  %v816_v6 = vunpack.c.h.bf16 %v1119_v51  ;;  %v691_v7 = vunpack.c.l.bf16 %v1089_v56 }
  0x10   :  { %1148 = vst [vmem:[%s1635_s4 + $0x10] sm:$0xff] %v938_v62   ;;  %v479_v9 = vadd.f32 %v811_v50, %v287_v63  ;;  %v480_v10 = vadd.f32 %v812_v58, %v288_v0  ;;  %v692_v11 = vunpack.c.h.bf16 %v1089_v56  ;;  %v819_v12 = vunpack.c.l.bf16 %v1120_v61  ;;  %v1124_v63 = vld [vmem:[%s1632_s1 + $0x48] sm:$0xff]  }
  0x11   :  { %v225_v14 = vadd.f32 %v1216_v4, %v157_v3  ;;  %v226_v15 = vadd.f32 %v1216_v4, %v158_v5  ;;  %v159_v16 = vmul.f32 %v1211_v1, %v691_v7  ;;  %v820_v17 = vunpack.c.h.bf16 %v1120_v61 }
  0x12   :  { %v943_v18 = vpack.c.bf16 %v480_v10, %v479_v9  ;;  %v160_v19 = vmul.f32 %v1211_v1, %v692_v11  ;;  %v695_v20 = vunpack.c.l.bf16 %v1090_v8  ;;  %v696_v21 = vunpack.c.h.bf16 %v1090_v8  ;;  %v1125_v11 = vld [vmem:[%s1632_s1 + $0x50] sm:$0xff]  }
  0x13   :  { %v289_v23 = vmax.f32 %v225_v14, 0.0  ;;  %v290_v24 = vmax.f32 %v226_v15, 0.0  ;;  %v227_v25 = vadd.f32 %v1216_v4, %v159_v16  ;;  %v823_v26 = vunpack.c.l.bf16 %v1121_v13 }
  0x14   :  { %1149 = vst [vmem:[%s1635_s4 + $0x18] sm:$0xff] %v943_v18   ;;  %v228_v27 = vadd.f32 %v1216_v4, %v160_v19  ;;  %v161_v28 = vmul.f32 %v1211_v1, %v695_v20  ;;  %v162_v29 = vmul.f32 %v1211_v1, %v696_v21  ;;  %v824_v30 = vunpack.c.h.bf16 %v1121_v13  ;;  %v1095_v20 = vld [vmem:[%s1631_s0 + $0x58] sm:$0xff]  }
  0x15   :  { %v481_v32 = vadd.f32 %v815_v2, %v289_v23  ;;  %v482_v33 = vadd.f32 %v816_v6, %v290_v24  ;;  %v291_v34 = vmax.f32 %v227_v25, 0.0  ;;  %v699_v35 = vunpack.c.l.bf16 %v1091_v22  ;;  %v1094_v6 = vld [vmem:[%s1631_s0 + $0x50] sm:$0xff]  }
  0x16   :  { %v292_v36 = vmax.f32 %v228_v27, 0.0  ;;  %v229_v37 = vadd.f32 %v1216_v4, %v161_v28  ;;  %v230_v38 = vadd.f32 %v1216_v4, %v162_v29  ;;  %v700_v39 = vunpack.c.h.bf16 %v1091_v22  ;;  %v1126_v29 = vld [vmem:[%s1632_s1 + $0x58] sm:$0xff]  }
  0x17   :  { %v948_v41 = vpack.c.bf16 %v482_v33, %v481_v32  ;;  %v483_v42 = vadd.f32 %v819_v12, %v291_v34  ;;  %v163_v43 = vmul.f32 %v1211_v1, %v699_v35  ;;  %v827_v44 = vunpack.c.l.bf16 %v1122_v31 }
  0x18   :  { %v484_v45 = vadd.f32 %v820_v17, %v292_v36  ;;  %v293_v46 = vmax.f32 %v229_v37, 0.0  ;;  %v294_v47 = vmax.f32 %v230_v38, 0.0  ;;  %v164_v48 = vmul.f32 %v1211_v1, %v700_v39  ;;  %v1096_v38 = vld [vmem:[%s1631_s0 + $0x60] sm:$0xff]  }
  0x19   :  { %1150 = vst [vmem:[%s1635_s4 + $0x20] sm:$0xff] %v948_v41   ;;  %v231_v50 = vadd.f32 %v1216_v4, %v163_v43  ;;  %v828_v51 = vunpack.c.h.bf16 %v1122_v31  ;;  %v703_v52 = vunpack.c.l.bf16 %v1092_v40  ;;  %v704_v53 = vunpack.c.h.bf16 %v1092_v40  ;;  %v1127_v43 = vld [vmem:[%s1632_s1 + $0x60] sm:$0xff]  }
  0x1a   :  { %v953_v55 = vpack.c.bf16 %v484_v45, %v483_v42  ;;  %v485_v56 = vadd.f32 %v823_v26, %v293_v46  ;;  %v486_v57 = vadd.f32 %v824_v30, %v294_v47  ;;  %v232_v58 = vadd.f32 %v1216_v4, %v164_v48 }
  0x1b   :  { %v295_v59 = vmax.f32 %v231_v50, 0.0  ;;  %v165_v60 = vmul.f32 %v1211_v1, %v703_v52  ;;  %v166_v61 = vmul.f32 %v1211_v1, %v704_v53  ;;  %v831_v62 = vunpack.c.l.bf16 %v1123_v49  ;;  %v1097_v52 = vld [vmem:[%s1631_s0 + $0x68] sm:$0xff]  }
  0x1c   :  { %1151 = vst [vmem:[%s1635_s4 + $0x28] sm:$0xff] %v953_v55   ;;  %v958_v0 = vpack.c.bf16 %v486_v57, %v485_v56  ;;  %v296_v2 = vmax.f32 %v232_v58, 0.0  ;;  %v832_v3 = vunpack.c.h.bf16 %v1123_v49  ;;  %v707_v5 = vunpack.c.l.bf16 %v1093_v54 }
  0x1d   :  { %v487_v7 = vadd.f32 %v827_v44, %v295_v59  ;;  %v233_v8 = vadd.f32 %v1216_v4, %v165_v60  ;;  %v234_v9 = vadd.f32 %v1216_v4, %v166_v61  ;;  %v708_v10 = vunpack.c.h.bf16 %v1093_v54  ;;  %v1128_v61 = vld [vmem:[%s1632_s1 + $0x68] sm:$0xff]  }
  0x1e   :  { %1152 = vst [vmem:[%s1635_s4 + $0x30] sm:$0xff] %v958_v0   ;;  %v488_v12 = vadd.f32 %v828_v51, %v296_v2  ;;  %v167_v13 = vmul.f32 %v1211_v1, %v707_v5  ;;  %v835_v14 = vunpack.c.l.bf16 %v1124_v63  ;;  %v836_v15 = vunpack.c.h.bf16 %v1124_v63 }
  0x1f   :  { %v297_v16 = vmax.f32 %v233_v8, 0.0  ;;  %v298_v17 = vmax.f32 %v234_v9, 0.0  ;;  %v168_v18 = vmul.f32 %v1211_v1, %v708_v10  ;;  %v711_v19 = vunpack.c.l.bf16 %v1094_v6 }
  0x20   :  { %v963_v21 = vpack.c.bf16 %v488_v12, %v487_v7  ;;  %v235_v22 = vadd.f32 %v1216_v4, %v167_v13  ;;  %v712_v23 = vunpack.c.h.bf16 %v1094_v6  ;;  %v839_v24 = vunpack.c.l.bf16 %v1125_v11  ;;  %v1129_v13 = vld [vmem:[%s1632_s1 + $0x70] sm:$0xff]  }
  0x21   :  { %v489_v25 = vadd.f32 %v831_v62, %v297_v16  ;;  %v490_v26 = vadd.f32 %v832_v3, %v298_v17  ;;  %v236_v27 = vadd.f32 %v1216_v4, %v168_v18  ;;  %v169_v28 = vmul.f32 %v1211_v1, %v711_v19  ;;  %v1098_v3 = vld [vmem:[%s1631_s0 + $0x70] sm:$0xff]  }
  0x22   :  { %1153 = vst [vmem:[%s1635_s4 + $0x38] sm:$0xff] %v963_v21   ;;  %v299_v30 = vmax.f32 %v235_v22, 0.0  ;;  %v170_v31 = vmul.f32 %v1211_v1, %v712_v23  ;;  %v840_v32 = vunpack.c.h.bf16 %v1125_v11  ;;  %v715_v33 = vunpack.c.l.bf16 %v1095_v20  ;;  %v1099_v22 = vld [vmem:[%s1631_s0 + $0x78] sm:$0xff]  }
  0x23   :  { %v968_v34 = vpack.c.bf16 %v490_v26, %v489_v25  ;;  %v300_v35 = vmax.f32 %v236_v27, 0.0  ;;  %v237_v36 = vadd.f32 %v1216_v4, %v169_v28  ;;  %v716_v37 = vunpack.c.h.bf16 %v1095_v20  ;;  %v1130_v27 = vld [vmem:[%s1632_s1 + $0x78] sm:$0xff]  }
  0x24   :  { %v491_v39 = vadd.f32 %v835_v14, %v299_v30  ;;  %v238_v40 = vadd.f32 %v1216_v4, %v170_v31  ;;  %v171_v41 = vmul.f32 %v1211_v1, %v715_v33  ;;  %v843_v42 = vunpack.c.l.bf16 %v1126_v29 }
  0x25   :  { %1154 = vst [vmem:[%s1635_s4 + $0x40] sm:$0xff] %v968_v34   ;;  %v492_v44 = vadd.f32 %v836_v15, %v300_v35  ;;  %v301_v45 = vmax.f32 %v237_v36, 0.0  ;;  %v172_v46 = vmul.f32 %v1211_v1, %v716_v37  ;;  %v844_v47 = vunpack.c.h.bf16 %v1126_v29  ;;  %v1100_v36 = vld [vmem:[%s1631_s0 + $0x80] sm:$0xff]  }
  0x26   :  { %v302_v48 = vmax.f32 %v238_v40, 0.0  ;;  %v239_v49 = vadd.f32 %v1216_v4, %v171_v41  ;;  %v719_v50 = vunpack.c.l.bf16 %v1096_v38  ;;  %v720_v51 = vunpack.c.h.bf16 %v1096_v38  ;;  %v1131_v41 = vld [vmem:[%s1632_s1 + $0x80] sm:$0xff]  }
  0x27   :  { %v973_v53 = vpack.c.bf16 %v492_v44, %v491_v39  ;;  %v493_v54 = vadd.f32 %v839_v24, %v301_v45  ;;  %v240_v55 = vadd.f32 %v1216_v4, %v172_v46  ;;  %v847_v56 = vunpack.c.l.bf16 %v1127_v43 }
  0x28   :  { %v494_v57 = vadd.f32 %v840_v32, %v302_v48  ;;  %v303_v58 = vmax.f32 %v239_v49, 0.0  ;;  %v173_v59 = vmul.f32 %v1211_v1, %v719_v50  ;;  %v174_v60 = vmul.f32 %v1211_v1, %v720_v51  ;;  %v1101_v50 = vld [vmem:[%s1631_s0 + $0x88] sm:$0xff]  }
  0x29   :  { %1155 = vst [vmem:[%s1635_s4 + $0x48] sm:$0xff] %v973_v53   ;;  %v304_v62 = vmax.f32 %v240_v55, 0.0  ;;  %v848_v63 = vunpack.c.h.bf16 %v1127_v43  ;;  %v723_v0 = vunpack.c.l.bf16 %v1097_v52  ;;  %v724_v2 = vunpack.c.h.bf16 %v1097_v52  ;;  %v1132_v55 = vld [vmem:[%s1632_s1 + $0x88] sm:$0xff]  }
  0x2a   :  { %v978_v5 = vpack.c.bf16 %v494_v57, %v493_v54  ;;  %v495_v6 = vadd.f32 %v843_v42, %v303_v58  ;;  %v241_v7 = vadd.f32 %v1216_v4, %v173_v59  ;;  %v242_v8 = vadd.f32 %v1216_v4, %v174_v60 }
  0x2b   :  { %v496_v9 = vadd.f32 %v844_v47, %v304_v62  ;;  %v175_v10 = vmul.f32 %v1211_v1, %v723_v0  ;;  %v176_v11 = vmul.f32 %v1211_v1, %v724_v2  ;;  %v851_v12 = vunpack.c.l.bf16 %v1128_v61  ;;  %v1102_v0 = vld [vmem:[%s1631_s0 + $0x90] sm:$0xff]  }
  0x2c   :  { %1156 = vst [vmem:[%s1635_s4 + $0x50] sm:$0xff] %v978_v5   ;;  %v305_v14 = vmax.f32 %v241_v7, 0.0  ;;  %v306_v15 = vmax.f32 %v242_v8, 0.0  ;;  %v852_v16 = vunpack.c.h.bf16 %v1128_v61  ;;  %v727_v17 = vunpack.c.l.bf16 %v1098_v3 }
  0x2d   :  { %v983_v18 = vpack.c.bf16 %v496_v9, %v495_v6  ;;  %v243_v19 = vadd.f32 %v1216_v4, %v175_v10  ;;  %v244_v20 = vadd.f32 %v1216_v4, %v176_v11  ;;  %v728_v21 = vunpack.c.h.bf16 %v1098_v3  ;;  %v1133_v11 = vld [vmem:[%s1632_s1 + $0x90] sm:$0xff]  }
  0x2e   :  { %v497_v23 = vadd.f32 %v847_v56, %v305_v14  ;;  %v498_v24 = vadd.f32 %v848_v63, %v306_v15  ;;  %v177_v25 = vmul.f32 %v1211_v1, %v727_v17  ;;  %v855_v26 = vunpack.c.l.bf16 %v1129_v13 }
  0x2f   :  { %1157 = vst [vmem:[%s1635_s4 + $0x58] sm:$0xff] %v983_v18   ;;  %v307_v28 = vmax.f32 %v243_v19, 0.0  ;;  %v308_v29 = vmax.f32 %v244_v20, 0.0  ;;  %v178_v30 = vmul.f32 %v1211_v1, %v728_v21  ;;  %v856_v31 = vunpack.c.h.bf16 %v1129_v13  ;;  %v1103_v20 = vld [vmem:[%s1631_s0 + $0x98] sm:$0xff]  }
  0x30   :  { %v988_v32 = vpack.c.bf16 %v498_v24, %v497_v23  ;;  %v245_v33 = vadd.f32 %v1216_v4, %v177_v25  ;;  %v731_v34 = vunpack.c.l.bf16 %v1099_v22  ;;  %v732_v35 = vunpack.c.h.bf16 %v1099_v22  ;;  %v1134_v25 = vld [vmem:[%s1632_s1 + $0x98] sm:$0xff]  }
  0x31   :  { %v499_v37 = vadd.f32 %v851_v12, %v307_v28  ;;  %v500_v38 = vadd.f32 %v852_v16, %v308_v29  ;;  %v246_v39 = vadd.f32 %v1216_v4, %v178_v30  ;;  %v859_v40 = vunpack.c.l.bf16 %v1130_v27 }
  0x32   :  { %1158 = vst [vmem:[%s1635_s4 + $0x60] sm:$0xff] %v988_v32   ;;  %v309_v42 = vmax.f32 %v245_v33, 0.0  ;;  %v179_v43 = vmul.f32 %v1211_v1, %v731_v34  ;;  %v180_v44 = vmul.f32 %v1211_v1, %v732_v35  ;;  %v860_v45 = vunpack.c.h.bf16 %v1130_v27  ;;  %v1104_v34 = vld [vmem:[%s1631_s0 + $0xa0] sm:$0xff]  }
  0x33   :  { %v993_v46 = vpack.c.bf16 %v500_v38, %v499_v37  ;;  %v310_v47 = vmax.f32 %v246_v39, 0.0  ;;  %v735_v48 = vunpack.c.l.bf16 %v1100_v36  ;;  %v736_v49 = vunpack.c.h.bf16 %v1100_v36  ;;  %v1135_v39 = vld [vmem:[%s1632_s1 + $0xa0] sm:$0xff]  }
  0x34   :  { %v501_v51 = vadd.f32 %v855_v26, %v309_v42  ;;  %v247_v52 = vadd.f32 %v1216_v4, %v179_v43  ;;  %v248_v53 = vadd.f32 %v1216_v4, %v180_v44  ;;  %v863_v54 = vunpack.c.l.bf16 %v1131_v41 }
  0x35   :  { %1159 = vst [vmem:[%s1635_s4 + $0x68] sm:$0xff] %v993_v46   ;;  %v502_v56 = vadd.f32 %v856_v31, %v310_v47  ;;  %v181_v57 = vmul.f32 %v1211_v1, %v735_v48  ;;  %v182_v58 = vmul.f32 %v1211_v1, %v736_v49  ;;  %v864_v59 = vunpack.c.h.bf16 %v1131_v41  ;;  %v1105_v48 = vld [vmem:[%s1631_s0 + $0xa8] sm:$0xff]  }
  0x36   :  { %v311_v60 = vmax.f32 %v247_v52, 0.0  ;;  %v312_v61 = vmax.f32 %v248_v53, 0.0  ;;  %v739_v62 = vunpack.c.l.bf16 %v1101_v50  ;;  %v740_v63 = vunpack.c.h.bf16 %v1101_v50  ;;  %v1136_v53 = vld [vmem:[%s1632_s1 + $0xa8] sm:$0xff]  }
  0x37   :  { %v998_v2 = vpack.c.bf16 %v502_v56, %v501_v51  ;;  %v249_v3 = vadd.f32 %v1216_v4, %v181_v57  ;;  %v250_v5 = vadd.f32 %v1216_v4, %v182_v58  ;;  %v867_v6 = vunpack.c.l.bf16 %v1132_v55 }
  0x38   :  { %v503_v7 = vadd.f32 %v859_v40, %v311_v60  ;;  %v504_v8 = vadd.f32 %v860_v45, %v312_v61  ;;  %v183_v9 = vmul.f32 %v1211_v1, %v739_v62  ;;  %v184_v10 = vmul.f32 %v1211_v1, %v740_v63  ;;  %v1106_v62 = vld [vmem:[%s1631_s0 + $0xb0] sm:$0xff]  }
  0x39   :  { %1160 = vst [vmem:[%s1635_s4 + $0x70] sm:$0xff] %v998_v2   ;;  %v313_v12 = vmax.f32 %v249_v3, 0.0  ;;  %v314_v13 = vmax.f32 %v250_v5, 0.0  ;;  %v868_v14 = vunpack.c.h.bf16 %v1132_v55  ;;  %v743_v15 = vunpack.c.l.bf16 %v1102_v0 }
  0x3a   :  { %v1003_v16 = vpack.c.bf16 %v504_v8, %v503_v7  ;;  %v251_v17 = vadd.f32 %v1216_v4, %v183_v9  ;;  %v252_v18 = vadd.f32 %v1216_v4, %v184_v10  ;;  %v744_v19 = vunpack.c.h.bf16 %v1102_v0  ;;  %v1137_v9 = vld [vmem:[%s1632_s1 + $0xb0] sm:$0xff]  }
  0x3b   :  { %v505_v21 = vadd.f32 %v863_v54, %v313_v12  ;;  %v506_v22 = vadd.f32 %v864_v59, %v314_v13  ;;  %v185_v23 = vmul.f32 %v1211_v1, %v743_v15  ;;  %v871_v24 = vunpack.c.l.bf16 %v1133_v11 }
  0x3c   :  { %1161 = vst [vmem:[%s1635_s4 + $0x78] sm:$0xff] %v1003_v16   ;;  %v315_v26 = vmax.f32 %v251_v17, 0.0  ;;  %v316_v27 = vmax.f32 %v252_v18, 0.0  ;;  %v186_v28 = vmul.f32 %v1211_v1, %v744_v19  ;;  %v872_v29 = vunpack.c.h.bf16 %v1133_v11  ;;  %v1107_v18 = vld [vmem:[%s1631_s0 + $0xb8] sm:$0xff]  }
  0x3d   :  { %v1008_v30 = vpack.c.bf16 %v506_v22, %v505_v21  ;;  %v253_v31 = vadd.f32 %v1216_v4, %v185_v23  ;;  %v747_v32 = vunpack.c.l.bf16 %v1103_v20  ;;  %v748_v33 = vunpack.c.h.bf16 %v1103_v20  ;;  %v1138_v23 = vld [vmem:[%s1632_s1 + $0xb8] sm:$0xff]  }
  0x3e   :  { %v507_v35 = vadd.f32 %v867_v6, %v315_v26  ;;  %v508_v36 = vadd.f32 %v868_v14, %v316_v27  ;;  %v254_v37 = vadd.f32 %v1216_v4, %v186_v28  ;;  %v875_v38 = vunpack.c.l.bf16 %v1134_v25 }
  0x3f   :  { %1162 = vst [vmem:[%s1635_s4 + $0x80] sm:$0xff] %v1008_v30   ;;  %v317_v40 = vmax.f32 %v253_v31, 0.0  ;;  %v187_v41 = vmul.f32 %v1211_v1, %v747_v32  ;;  %v188_v42 = vmul.f32 %v1211_v1, %v748_v33  ;;  %v876_v43 = vunpack.c.h.bf16 %v1134_v25  ;;  %v1108_v32 = vld [vmem:[%s1631_s0 + $0xc0] sm:$0xff]  }
  0x40   :  { %v1013_v44 = vpack.c.bf16 %v508_v36, %v507_v35  ;;  %v318_v45 = vmax.f32 %v254_v37, 0.0  ;;  %v751_v46 = vunpack.c.l.bf16 %v1104_v34  ;;  %v752_v47 = vunpack.c.h.bf16 %v1104_v34  ;;  %v1139_v37 = vld [vmem:[%s1632_s1 + $0xc0] sm:$0xff]  }
  0x41   :  { %v509_v49 = vadd.f32 %v871_v24, %v317_v40  ;;  %v255_v50 = vadd.f32 %v1216_v4, %v187_v41  ;;  %v256_v51 = vadd.f32 %v1216_v4, %v188_v42  ;;  %v879_v52 = vunpack.c.l.bf16 %v1135_v39 }
  0x42   :  { %1163 = vst [vmem:[%s1635_s4 + $0x88] sm:$0xff] %v1013_v44   ;;  %v510_v54 = vadd.f32 %v872_v29, %v318_v45  ;;  %v189_v55 = vmul.f32 %v1211_v1, %v751_v46  ;;  %v190_v56 = vmul.f32 %v1211_v1, %v752_v47  ;;  %v880_v57 = vunpack.c.h.bf16 %v1135_v39  ;;  %v1109_v46 = vld [vmem:[%s1631_s0 + $0xc8] sm:$0xff]  }
  0x43   :  { %v319_v58 = vmax.f32 %v255_v50, 0.0  ;;  %v320_v59 = vmax.f32 %v256_v51, 0.0  ;;  %v755_v60 = vunpack.c.l.bf16 %v1105_v48  ;;  %v756_v61 = vunpack.c.h.bf16 %v1105_v48  ;;  %v1140_v51 = vld [vmem:[%s1632_s1 + $0xc8] sm:$0xff]  }
  0x44   :  { %v1018_v63 = vpack.c.bf16 %v510_v54, %v509_v49  ;;  %v257_v0 = vadd.f32 %v1216_v4, %v189_v55  ;;  %v258_v2 = vadd.f32 %v1216_v4, %v190_v56  ;;  %v883_v3 = vunpack.c.l.bf16 %v1136_v53 }
  0x45   :  { %v511_v5 = vadd.f32 %v875_v38, %v319_v58  ;;  %v512_v6 = vadd.f32 %v876_v43, %v320_v59  ;;  %v191_v7 = vmul.f32 %v1211_v1, %v755_v60  ;;  %v192_v8 = vmul.f32 %v1211_v1, %v756_v61  ;;  %v1110_v60 = vld [vmem:[%s1631_s0 + $0xd0] sm:$0xff]  }
  0x46   :  { %1164 = vst [vmem:[%s1635_s4 + $0x90] sm:$0xff] %v1018_v63   ;;  %v321_v10 = vmax.f32 %v257_v0, 0.0  ;;  %v322_v11 = vmax.f32 %v258_v2, 0.0  ;;  %v884_v12 = vunpack.c.h.bf16 %v1136_v53  ;;  %v759_v13 = vunpack.c.l.bf16 %v1106_v62 }
  0x47   :  { %v1023_v14 = vpack.c.bf16 %v512_v6, %v511_v5  ;;  %v259_v15 = vadd.f32 %v1216_v4, %v191_v7  ;;  %v260_v16 = vadd.f32 %v1216_v4, %v192_v8  ;;  %v760_v17 = vunpack.c.h.bf16 %v1106_v62  ;;  %v1141_v7 = vld [vmem:[%s1632_s1 + $0xd0] sm:$0xff]  }
  0x48   :  { %v513_v19 = vadd.f32 %v879_v52, %v321_v10  ;;  %v514_v20 = vadd.f32 %v880_v57, %v322_v11  ;;  %v193_v21 = vmul.f32 %v1211_v1, %v759_v13  ;;  %v887_v22 = vunpack.c.l.bf16 %v1137_v9 }
  0x49   :  { %1165 = vst [vmem:[%s1635_s4 + $0x98] sm:$0xff] %v1023_v14   ;;  %v323_v24 = vmax.f32 %v259_v15, 0.0  ;;  %v324_v25 = vmax.f32 %v260_v16, 0.0  ;;  %v194_v26 = vmul.f32 %v1211_v1, %v760_v17  ;;  %v888_v27 = vunpack.c.h.bf16 %v1137_v9  ;;  %v1111_v16 = vld [vmem:[%s1631_s0 + $0xd8] sm:$0xff]  }
  0x4a   :  { %v1028_v28 = vpack.c.bf16 %v514_v20, %v513_v19  ;;  %v261_v29 = vadd.f32 %v1216_v4, %v193_v21  ;;  %v763_v30 = vunpack.c.l.bf16 %v1107_v18  ;;  %v764_v31 = vunpack.c.h.bf16 %v1107_v18  ;;  %v1142_v21 = vld [vmem:[%s1632_s1 + $0xd8] sm:$0xff]  }
  0x4b   :  { %v515_v33 = vadd.f32 %v883_v3, %v323_v24  ;;  %v516_v34 = vadd.f32 %v884_v12, %v324_v25  ;;  %v262_v35 = vadd.f32 %v1216_v4, %v194_v26  ;;  %v891_v36 = vunpack.c.l.bf16 %v1138_v23 }
  0x4c   :  { %1166 = vst [vmem:[%s1635_s4 + $0xa0] sm:$0xff] %v1028_v28   ;;  %v325_v38 = vmax.f32 %v261_v29, 0.0  ;;  %v195_v39 = vmul.f32 %v1211_v1, %v763_v30  ;;  %v196_v40 = vmul.f32 %v1211_v1, %v764_v31  ;;  %v892_v41 = vunpack.c.h.bf16 %v1138_v23  ;;  %v1112_v30 = vld [vmem:[%s1631_s0 + $0xe0] sm:$0xff]  }
  0x4d   :  { %v1033_v42 = vpack.c.bf16 %v516_v34, %v515_v33  ;;  %v326_v43 = vmax.f32 %v262_v35, 0.0  ;;  %v767_v44 = vunpack.c.l.bf16 %v1108_v32  ;;  %v768_v45 = vunpack.c.h.bf16 %v1108_v32  ;;  %v1143_v35 = vld [vmem:[%s1632_s1 + $0xe0] sm:$0xff]  }
  0x4e   :  { %v517_v47 = vadd.f32 %v887_v22, %v325_v38  ;;  %v263_v48 = vadd.f32 %v1216_v4, %v195_v39  ;;  %v264_v49 = vadd.f32 %v1216_v4, %v196_v40  ;;  %v895_v50 = vunpack.c.l.bf16 %v1139_v37 }
  0x4f   :  { %1167 = vst [vmem:[%s1635_s4 + $0xa8] sm:$0xff] %v1033_v42   ;;  %v518_v52 = vadd.f32 %v888_v27, %v326_v43  ;;  %v197_v53 = vmul.f32 %v1211_v1, %v767_v44  ;;  %v198_v54 = vmul.f32 %v1211_v1, %v768_v45  ;;  %v896_v55 = vunpack.c.h.bf16 %v1139_v37  ;;  %v1113_v44 = vld [vmem:[%s1631_s0 + $0xe8] sm:$0xff]  }
  0x50   :  { %v327_v56 = vmax.f32 %v263_v48, 0.0  ;;  %v328_v57 = vmax.f32 %v264_v49, 0.0  ;;  %v771_v58 = vunpack.c.l.bf16 %v1109_v46  ;;  %v772_v59 = vunpack.c.h.bf16 %v1109_v46  ;;  %v1144_v49 = vld [vmem:[%s1632_s1 + $0xe8] sm:$0xff]  }
  0x51   :  { %v1038_v61 = vpack.c.bf16 %v518_v52, %v517_v47  ;;  %v265_v62 = vadd.f32 %v1216_v4, %v197_v53  ;;  %v266_v63 = vadd.f32 %v1216_v4, %v198_v54  ;;  %v899_v0 = vunpack.c.l.bf16 %v1140_v51 }
  0x52   :  { %v519_v2 = vadd.f32 %v891_v36, %v327_v56  ;;  %v520_v3 = vadd.f32 %v892_v41, %v328_v57  ;;  %v199_v5 = vmul.f32 %v1211_v1, %v771_v58  ;;  %v200_v6 = vmul.f32 %v1211_v1, %v772_v59  ;;  %v1114_v58 = vld [vmem:[%s1631_s0 + $0xf0] sm:$0xff]  }
  0x53   :  { %1168 = vst [vmem:[%s1635_s4 + $0xb0] sm:$0xff] %v1038_v61   ;;  %v329_v8 = vmax.f32 %v265_v62, 0.0  ;;  %v330_v9 = vmax.f32 %v266_v63, 0.0  ;;  %v900_v10 = vunpack.c.h.bf16 %v1140_v51  ;;  %v775_v11 = vunpack.c.l.bf16 %v1110_v60 }
  0x54   :  { %v1043_v12 = vpack.c.bf16 %v520_v3, %v519_v2  ;;  %v267_v13 = vadd.f32 %v1216_v4, %v199_v5  ;;  %v268_v14 = vadd.f32 %v1216_v4, %v200_v6  ;;  %v776_v15 = vunpack.c.h.bf16 %v1110_v60 }
  0x55   :  { %v521_v17 = vadd.f32 %v895_v50, %v329_v8  ;;  %v522_v18 = vadd.f32 %v896_v55, %v330_v9  ;;  %v201_v19 = vmul.f32 %v1211_v1, %v775_v11  ;;  %v903_v20 = vunpack.c.l.bf16 %v1141_v7  ;;  %v1145_v9 = vld [vmem:[%s1632_s1 + $0xf0] sm:$0xff]  }
  0x56   :  { %1169 = vst [vmem:[%s1635_s4 + $0xb8] sm:$0xff] %v1043_v12   ;;  %v331_v22 = vmax.f32 %v267_v13, 0.0  ;;  %v332_v23 = vmax.f32 %v268_v14, 0.0  ;;  %v202_v24 = vmul.f32 %v1211_v1, %v776_v15  ;;  %v904_v25 = vunpack.c.h.bf16 %v1141_v7  ;;  %v1115_v14 = vld [vmem:[%s1631_s0 + $0xf8] sm:$0xff]  }
  0x57   :  { %v1048_v26 = vpack.c.bf16 %v522_v18, %v521_v17  ;;  %v269_v27 = vadd.f32 %v1216_v4, %v201_v19  ;;  %v779_v28 = vunpack.c.l.bf16 %v1111_v16  ;;  %v780_v29 = vunpack.c.h.bf16 %v1111_v16 }
  0x58   :  { %v523_v31 = vadd.f32 %v899_v0, %v331_v22  ;;  %v524_v32 = vadd.f32 %v900_v10, %v332_v23  ;;  %v270_v33 = vadd.f32 %v1216_v4, %v202_v24  ;;  %v907_v34 = vunpack.c.l.bf16 %v1142_v21 }
  0x59   :  { %1170 = vst [vmem:[%s1635_s4 + $0xc0] sm:$0xff] %v1048_v26   ;;  %v333_v36 = vmax.f32 %v269_v27, 0.0  ;;  %v203_v37 = vmul.f32 %v1211_v1, %v779_v28  ;;  %v204_v38 = vmul.f32 %v1211_v1, %v780_v29  ;;  %v908_v39 = vunpack.c.h.bf16 %v1142_v21  ;;  %v1146_v26 = vld [vmem:[%s1632_s1 + $0xf8] sm:$0xff]  }
  0x5a   :  { %v1053_v40 = vpack.c.bf16 %v524_v32, %v523_v31  ;;  %v334_v41 = vmax.f32 %v270_v33, 0.0  ;;  %v783_v42 = vunpack.c.l.bf16 %v1112_v30  ;;  %v784_v43 = vunpack.c.h.bf16 %v1112_v30 }
  0x5b   :  { %v525_v45 = vadd.f32 %v903_v20, %v333_v36  ;;  %v271_v46 = vadd.f32 %v1216_v4, %v203_v37  ;;  %v272_v47 = vadd.f32 %v1216_v4, %v204_v38  ;;  %v911_v48 = vunpack.c.l.bf16 %v1143_v35 }
  0x5c   :  { %1171 = vst [vmem:[%s1635_s4 + $0xc8] sm:$0xff] %v1053_v40   ;;  %v526_v50 = vadd.f32 %v904_v25, %v334_v41  ;;  %v205_v51 = vmul.f32 %v1211_v1, %v783_v42  ;;  %v206_v52 = vmul.f32 %v1211_v1, %v784_v43  ;;  %v912_v53 = vunpack.c.h.bf16 %v1143_v35 }
  0x5d   :  { %v335_v54 = vmax.f32 %v271_v46, 0.0  ;;  %v336_v55 = vmax.f32 %v272_v47, 0.0  ;;  %v787_v56 = vunpack.c.l.bf16 %v1113_v44  ;;  %v788_v57 = vunpack.c.h.bf16 %v1113_v44 }
  0x5e   :  { %v1058_v59 = vpack.c.bf16 %v526_v50, %v525_v45  ;;  %v273_v60 = vadd.f32 %v1216_v4, %v205_v51  ;;  %v274_v61 = vadd.f32 %v1216_v4, %v206_v52  ;;  %v915_v62 = vunpack.c.l.bf16 %v1144_v49 }
  0x5f   :  { %v527_v63 = vadd.f32 %v907_v34, %v335_v54  ;;  %v528_v0 = vadd.f32 %v908_v39, %v336_v55  ;;  %v207_v2 = vmul.f32 %v1211_v1, %v787_v56  ;;  %v208_v3 = vmul.f32 %v1211_v1, %v788_v57 }
  0x60   :  { %1172 = vst [vmem:[%s1635_s4 + $0xd0] sm:$0xff] %v1058_v59   ;;  %v337_v5 = vmax.f32 %v273_v60, 0.0  ;;  %v338_v6 = vmax.f32 %v274_v61, 0.0  ;;  %v916_v7 = vunpack.c.h.bf16 %v1144_v49  ;;  %v791_v8 = vunpack.c.l.bf16 %v1114_v58 }
  0x61   :  { %v1063_v10 = vpack.c.bf16 %v528_v0, %v527_v63  ;;  %v275_v11 = vadd.f32 %v1216_v4, %v207_v2  ;;  %v276_v12 = vadd.f32 %v1216_v4, %v208_v3  ;;  %v792_v13 = vunpack.c.h.bf16 %v1114_v58 }
  0x62   :  { %v529_v15 = vadd.f32 %v911_v48, %v337_v5  ;;  %v530_v16 = vadd.f32 %v912_v53, %v338_v6  ;;  %v209_v17 = vmul.f32 %v1211_v1, %v791_v8  ;;  %v919_v21 = vunpack.c.l.bf16 %v1145_v9 }
  0x63   :  { %1173 = vst [vmem:[%s1635_s4 + $0xd8] sm:$0xff] %v1063_v10   ;;  %v339_v18 = vmax.f32 %v275_v11, 0.0  ;;  %v340_v19 = vmax.f32 %v276_v12, 0.0  ;;  %v210_v20 = vmul.f32 %v1211_v1, %v792_v13  ;;  %v795_v24 = vunpack.c.l.bf16 %v1115_v14 }
  0x64   :  { %v1068_v22 = vpack.c.bf16 %v530_v16, %v529_v15  ;;  %v277_v23 = vadd.f32 %v1216_v4, %v209_v17  ;;  %v796_v25 = vunpack.c.h.bf16 %v1115_v14  ;;  %v920_v30 = vunpack.c.h.bf16 %v1145_v9 }
  0x65   :  { %v531_v27 = vadd.f32 %v915_v62, %v339_v18  ;;  %v532_v28 = vadd.f32 %v916_v7, %v340_v19  ;;  %v278_v29 = vadd.f32 %v1216_v4, %v210_v20  ;;  %v211_v32 = vmul.f32 %v1211_v1, %v795_v24 }
  0x66   :  { %1174 = vst [vmem:[%s1635_s4 + $0xe0] sm:$0xff] %v1068_v22   ;;  %v341_v31 = vmax.f32 %v277_v23, 0.0  ;;  %v212_v33 = vmul.f32 %v1211_v1, %v796_v25  ;;  %v923_v36 = vunpack.c.l.bf16 %v1146_v26  ;;  %v924_v40 = vunpack.c.h.bf16 %v1146_v26 }
  0x67   :  { %v1073_v34 = vpack.c.bf16 %v532_v28, %v531_v27  ;;  %v342_v35 = vmax.f32 %v278_v29, 0.0  ;;  %v279_v38 = vadd.f32 %v1216_v4, %v211_v32 }
  0x68   :  { %v533_v37 = vadd.f32 %v919_v21, %v341_v31  ;;  %v280_v39 = vadd.f32 %v1216_v4, %v212_v33 }
  0x69   :  { %1175 = vst [vmem:[%s1635_s4 + $0xe8] sm:$0xff] %v1073_v34   ;;  %v534_v41 = vadd.f32 %v920_v30, %v342_v35  ;;  %v343_v42 = vmax.f32 %v279_v38, 0.0 }
  0x6a   :  { %v344_v43 = vmax.f32 %v280_v39, 0.0 }
  0x6b   :  { %v1078_v44 = vpack.c.bf16 %v534_v41, %v533_v37  ;;  %v535_v45 = vadd.f32 %v923_v36, %v343_v42 }
  0x6c   :  { %v536_v46 = vadd.f32 %v924_v40, %v344_v43 }
  0x6d   :  { %1176 = vst [vmem:[%s1635_s4 + $0xf0] sm:$0xff] %v1078_v44  }
  0x6e   :  { %v1083_v1 = vpack.c.bf16 %v536_v46, %v535_v45 }
  0x70   :  { %1177 = vst [vmem:[%s1635_s4 + $0xf8] sm:$0xff] %v1083_v1  }

// kernel: recurrent_block.6
= control target key start
LH: loop header
LB: loop body
LE: loop exit
PB: predicated region body
PF: predicated region fallthrough
CT: control target
= control target key end

     0   :  { %vm742_vm0 = vsmask.f32 3328  ;;  %vm743_vm1 = vsmask.f32 7440  ;;  %vm1971_vm2 = vcmask 1042432   ;;  %vm1972_vm3 = vcmask 1046532   ;;  %s8399_s1 = inlined_call_operand.vmem [shape: bf16[9,128,128], index: 1, kind: input, shape index: {}]   ;;  %s8400_s0 = inlined_call_operand.vmem [shape: bf16[2,18,18,128], index: 0, kind: input, shape index: {}]   ;;  %s8401_s2 = inlined_call_operand.vmem [shape: bf16[2,16,16,128], index: 2, kind: output, shape index: {0}]   ;;  %s8402_s3 = inlined_call_operand.vmem [shape: f32[1,2,128], index: 3, kind: output, shape index: {1}]  }
   0x1   :  { %v5643_v0 = vld [vmem:[%s8399_s1 + $0x38] sm:$0xff]  ;;  %v5642_v1 = vld [vmem:[%s8399_s1 + $0x30] sm:$0xff]  ;;  %v5641_v2 = vld [vmem:[%s8399_s1 + $0x28] sm:$0xff]  ;;  %vm4993_vm6 = vcmask 1040384  }
   0x2   :  { %5899 = vmatpush.bf16.msra.mxu1 %v5643_v0  ;;  %5900 = vmatpush.bf16.msra.mxu2 %v5643_v0  ;;  %v5640_v3 = vld [vmem:[%s8399_s1 + $0x20] sm:$0xff]  ;;  %v5639_v4 = vld [vmem:[%s8399_s1 + $0x18] sm:$0xff]  ;;  %v5638_v5 = vld [vmem:[%s8399_s1 + $0x10] sm:$0xff] }
   0x3   :  { %5901 = vmatpush.bf16.msra.mxu3 %v5643_v0  ;;  %509 = vmatpush.bf16.msra.mxu0 %v5643_v0  ;;  %v5637_v6 = vld [vmem:[%s8399_s1 + $0x8] sm:$0xff]  ;;  %v5636_v7 = vld [vmem:[%s8399_s1] sm:$0xff]  ;;  %v5659_v8 = vld [vmem:[%s8399_s1 + $0xb8] sm:$0xff] }
   0x4   :  { %v5667_v9 = vld [vmem:[%s8399_s1 + $0xf8] sm:$0xff]  ;;  %v5608_v10 = vld [vmem:[%s8400_s0 + $0x60] sm:$0xff]  ;;  %v5658_v16 = vld [vmem:[%s8399_s1 + $0xb0] sm:$0xff] }
   0x5   :  { %v5618_v11 = vld [vmem:[%s8400_s0 + $0xd8] sm:$0xff]  ;;  %v5600_v13 = vld [vmem:[%s8400_s0] sm:$0xff]  ;;  %v5666_v17 = vld [vmem:[%s8399_s1 + $0xf0] sm:$0xff] }
   0x6   :  { %5902 = vmatpush.bf16.msra.mxu1 %v5642_v1  ;;  %5903 = vmatpush.bf16.msra.mxu2 %v5642_v1  ;;  %v5626_v12 = vld [vmem:[%s8400_s0 + $0x138] sm:$0xff]  ;;  %v5650_v18 = vld [vmem:[%s8399_s1 + $0x70] sm:$0xff]  ;;  %v5657_v20 = vld [vmem:[%s8399_s1 + $0xa8] sm:$0xff] }
   0x7   :  { %5904 = vmatpush.bf16.msra.mxu3 %v5642_v1  ;;  %510 = vmatpush.bf16.msra.mxu0 %v5642_v1  ;;  %v5651_v14 = vld [vmem:[%s8399_s1 + $0x78] sm:$0xff]  ;;  %v5674_v19 = vld [vmem:[%s8399_s1 + $0x130] sm:$0xff]  ;;  %v5665_v21 = vld [vmem:[%s8399_s1 + $0xe8] sm:$0xff] }
   0x8   :  { %v5675_v15 = vld [vmem:[%s8399_s1 + $0x138] sm:$0xff]  ;;  %v5649_v22 = vld [vmem:[%s8399_s1 + $0x68] sm:$0xff]  ;;  %v5656_v28 = vld [vmem:[%s8399_s1 + $0xa0] sm:$0xff] }
   0x9   :  { %v5673_v23 = vld [vmem:[%s8399_s1 + $0x128] sm:$0xff]  ;;  %v5664_v29 = vld [vmem:[%s8399_s1 + $0xe0] sm:$0xff]  ;;  %v5610_v32 = vld [vmem:[%s8400_s0 + $0x78] sm:$0xff] }
   0xa   :  { %5905 = vmatpush.bf16.msra.mxu1 %v5641_v2  ;;  %5906 = vmatpush.bf16.msra.mxu2 %v5641_v2  ;;  %v5609_v24 = vld [vmem:[%s8400_s0 + $0x6c] sm:$0xff]  ;;  %v5619_v25 = vld [vmem:[%s8400_s0 + $0xe4] sm:$0xff]  ;;  %v6113_v35 = vld [vmem:[%s8400_s0 + $0x18] sm:$0xff] }
   0xb   :  { %5907 = vmatpush.bf16.msra.mxu3 %v5641_v2  ;;  %511 = vmatpush.bf16.msra.mxu0 %v5641_v2  ;;  %v5627_v26 = vld [vmem:[%s8400_s0 + $0x144] sm:$0xff]  ;;  %v6086_v27 = vld [vmem:[%s8400_s0 + $0xc] sm:$0xff]  ;;  %v5655_v36 = vld [vmem:[%s8399_s1 + $0x98] sm:$0xff] }
   0xc   :  { %v5648_v30 = vld [vmem:[%s8399_s1 + $0x60] sm:$0xff]  ;;  %v5620_v33 = vld [vmem:[%s8400_s0 + $0xf0] sm:$0xff]  ;;  %v5663_v37 = vld [vmem:[%s8399_s1 + $0xd8] sm:$0xff] }
   0xd   :  { %v5672_v31 = vld [vmem:[%s8399_s1 + $0x120] sm:$0xff]  ;;  %v5628_v34 = vld [vmem:[%s8400_s0 + $0x150] sm:$0xff]  ;;  %v5647_v38 = vld [vmem:[%s8399_s1 + $0x58] sm:$0xff] }
   0xe   :  { %5908 = vmatpush.bf16.msra.mxu1 %v5640_v3  ;;  %5909 = vmatpush.bf16.msra.mxu2 %v5640_v3  ;;  %v5671_v39 = vld [vmem:[%s8399_s1 + $0x118] sm:$0xff]  ;;  %v5611_v40 = vld [vmem:[%s8400_s0 + $0x84] sm:$0xff]  ;;  %v5654_v44 = vld [vmem:[%s8399_s1 + $0x90] sm:$0xff] }
   0xf   :  { %5910 = vmatpush.bf16.msra.mxu3 %v5640_v3  ;;  %512 = vmatpush.bf16.msra.mxu0 %v5640_v3  ;;  %v5621_v41 = vld [vmem:[%s8400_s0 + $0xfc] sm:$0xff]  ;;  %v6140_v43 = vld [vmem:[%s8400_s0 + $0x24] sm:$0xff]  ;;  %v5662_v45 = vld [vmem:[%s8399_s1 + $0xd0] sm:$0xff] }
  0x10   :  { %v5629_v42 = vld [vmem:[%s8400_s0 + $0x15c] sm:$0xff]  ;;  %v5646_v46 = vld [vmem:[%s8399_s1 + $0x50] sm:$0xff]  ;;  %v5622_v49 = vld [vmem:[%s8400_s0 + $0x108] sm:$0xff] }
  0x11   :  { %v5670_v47 = vld [vmem:[%s8399_s1 + $0x110] sm:$0xff]  ;;  %v5630_v50 = vld [vmem:[%s8400_s0 + $0x168] sm:$0xff]  ;;  %v5613_v56 = vld [vmem:[%s8400_s0 + $0x9c] sm:$0xff] }
  0x12   :  { %5911 = vmatpush.bf16.msra.mxu1 %v5639_v4  ;;  %5912 = vmatpush.bf16.msra.mxu2 %v5639_v4  ;;  %v5612_v48 = vld [vmem:[%s8400_s0 + $0x90] sm:$0xff]  ;;  %v5653_v52 = vld [vmem:[%s8399_s1 + $0x88] sm:$0xff]  ;;  %v6194_v59 = vld [vmem:[%s8400_s0 + $0x3c] sm:$0xff] }
  0x13   :  { %5913 = vmatpush.bf16.msra.mxu3 %v5639_v4  ;;  %513 = vmatpush.bf16.msra.mxu0 %v5639_v4  ;;  %v6167_v51 = vld [vmem:[%s8400_s0 + $0x30] sm:$0xff]  ;;  %v5661_v53 = vld [vmem:[%s8399_s1 + $0xc8] sm:$0xff]  ;;  %v5652_v60 = vld [vmem:[%s8399_s1 + $0x80] sm:$0xff] }
  0x14   :  { %v5645_v54 = vld [vmem:[%s8399_s1 + $0x48] sm:$0xff]  ;;  %v5623_v57 = vld [vmem:[%s8400_s0 + $0x114] sm:$0xff]  ;;  %v5660_v61 = vld [vmem:[%s8399_s1 + $0xc0] sm:$0xff] }
  0x15   :  { %v5669_v55 = vld [vmem:[%s8399_s1 + $0x108] sm:$0xff]  ;;  %v5631_v58 = vld [vmem:[%s8400_s0 + $0x174] sm:$0xff]  ;;  %v5644_v62 = vld [vmem:[%s8399_s1 + $0x40] sm:$0xff] }
  0x16   :  { %5914 = vmatpush.bf16.msra.mxu1 %v5638_v5  ;;  %5915 = vmatpush.bf16.msra.mxu2 %v5638_v5  ;;  %v5668_v63 = vld [vmem:[%s8399_s1 + $0x100] sm:$0xff]  ;;  %v5614_v0 = vld [vmem:[%s8400_s0 + $0xa8] sm:$0xff]  ;;  %vm6289_vm4 = vmor %vm742_vm0, %vm743_vm1 }
  0x17   :  { %5916 = vmatpush.bf16.msra.mxu3 %v5638_v5  ;;  %514 = vmatpush.bf16.msra.mxu0 %v5638_v5  ;;  %v5624_v1 = vld [vmem:[%s8400_s0 + $0x120] sm:$0xff]  ;;  %v6221_v3 = vld [vmem:[%s8400_s0 + $0x48] sm:$0xff]  ;;  %vm6295_vm5 = vmor %vm1971_vm2, %vm1972_vm3 }
  0x18   :  { %v5632_v2 = vld [vmem:[%s8400_s0 + $0x180] sm:$0xff] }
  0x19   :  { %v6226_v4 = vld [vmem:[%s8400_s0] sm:$0xf]  ;;  %v6231_v5 = vld [vmem:[%s8400_s0 + $0x4] sm:$0xf] }
  0x1a   :  { %5917 = vmatpush.bf16.msra.mxu1 %v5637_v6  ;;  %5918 = vmatpush.bf16.msra.mxu2 %v5637_v6 }
  0x1b   :  { %5919 = vmatpush.bf16.msra.mxu3 %v5637_v6  ;;  %515 = vmatpush.bf16.msra.mxu0 %v5637_v6  ;;  %v6236_v6 = vld [vmem:[%s8400_s0 + $0xc] sm:$0xf] }
  0x1e   :  { %5920 = vmatpush.bf16.msra.mxu1 %v5636_v7  ;;  %5921 = vmatpush.bf16.msra.mxu2 %v5636_v7 }
  0x1f   :  { %5922 = vmatpush.bf16.msra.mxu3 %v5636_v7  ;;  %516 = vmatpush.bf16.msra.mxu0 %v5636_v7  ;;  %v5691_v7 = vld [vmem:[%s8399_s1 + $0x1b8] sm:$0xff] }
  0x21   :  { %557 = vmatmul.bf16.vlgmr.msra.gmra.mxu1 %v5608_v10  ;;  %597 = vmatmul.bf16.vlgmr.msra.gmra.mxu2 %v5618_v11  ;;  %v746_v10 = vshrl.u32 %v6226_v4, 16  ;;  %v749_v11 = vshll.u32 %v6226_v4, 16 }
  0x22   :  { %2391 = vmatpush.bf16.msrb.mxu2 %v5659_v8  ;;  %637 = vmatmul.bf16.vlgmr.msra.gmra.mxu3 %v5626_v12  ;;  %v6245_v8 = vld [vmem:[%s8400_s0 + $0x10] sm:$0xf]  ;;  %v755_v12 = vshll.u32 %v6231_v5, 16 }
  0x23   :  { %2701 = vmatpush.bf16.msrb.mxu3 %v5667_v9  ;;  %517 = vmatmul.bf16.vlgmr.msra.gmra.mxu0 %v5600_v13  ;;  %v5699_v9 = vld [vmem:[%s8399_s1 + $0x1f8] sm:$0xff]  ;;  %v759_v13 = vshrl.u32 %v6231_v5, 16 }
  0x24   :  { %1706 = vmatpush.bf16.msrb.mxu1 %v5651_v14  ;;  %3055 = vmatpush.bf16.msrb.mxu0 %v5675_v15  ;;  %v770_v14 = vshrl.u32 %v6236_v6, 16  ;;  %v773_v15 = vshll.u32 %v6236_v6, 16 }
  0x26   :  { %2392 = vmatpush.bf16.msrb.mxu2 %v5658_v16  ;;  %v779_v16 = vshll.u32 %v6245_v8, 16 }
  0x27   :  { %2702 = vmatpush.bf16.msrb.mxu3 %v5666_v17  ;;  %v783_v17 = vshrl.u32 %v6245_v8, 16 }
  0x28   :  { %1707 = vmatpush.bf16.msrb.mxu1 %v5650_v18  ;;  %3056 = vmatpush.bf16.msrb.mxu0 %v5674_v19  ;;  %v5683_v18 = vld [vmem:[%s8399_s1 + $0x178] sm:$0xff]  ;;  %v748_v19 = vrot.slane %v746_v10, 4 }
  0x2a   :  { %2393 = vmatpush.bf16.msrb.mxu2 %v5657_v20  ;;  %v751_v20 = vrot.slane %v749_v11, 5 }
  0x2b   :  { %2703 = vmatpush.bf16.msrb.mxu3 %v5665_v21  ;;  %v5707_v21 = vld [vmem:[%s8399_s1 + $0x238] sm:$0xff] }
  0x2c   :  { %1708 = vmatpush.bf16.msrb.mxu1 %v5649_v22  ;;  %3057 = vmatpush.bf16.msrb.mxu0 %v5673_v23  ;;  %v757_v22 = vrot.slane %v755_v12, 5  ;;  %v761_v23 = vrot.slane %v759_v13, 4 }
  0x2e   :  { %2394 = vmatpush.bf16.msrb.mxu2 %v5656_v28  ;;  %v781_v28 = vrot.slane %v779_v16, 5 }
  0x2f   :  { %2704 = vmatpush.bf16.msrb.mxu3 %v5664_v29  ;;  %v785_v29 = vrot.slane %v783_v17, 4 }
  0x30   :  { %1709 = vmatpush.bf16.msrb.mxu1 %v5648_v30  ;;  %3058 = vmatpush.bf16.msrb.mxu0 %v5672_v31  ;;  %v6270_v30 = vld [vmem:[%s8400_s0 + $0x14] sm:$0x1]  ;;  %v752_v31 = vor.u32 %v751_v20, %v748_v19 }
  0x31   :  { %562 = vmatmul.bf16.gmra.mxu1 %v5609_v24  ;;  %602 = vmatmul.bf16.gmra.mxu2 %v5619_v25  ;;  %v83_v24 = vld [vmem:[%s8400_s0 + $0x8] sm:$0x1]  ;;  %v772_v25 = vrot.slane %v770_v14, 4 }
  0x32   :  { %642 = vmatmul.bf16.gmra.mxu3 %v5627_v26  ;;  %2395 = vmatpush.bf16.msrb.mxu2 %v5655_v36  ;;  %v775_v26 = vrot.slane %v773_v15, 5  ;;  %v5615_v36 = vld [vmem:[%s8400_s0 + $0xb4] sm:$0xff] }
  0x33   :  { %522 = vmatmul.bf16.gmra.mxu0 %v6086_v27  ;;  %2705 = vmatpush.bf16.msrb.mxu3 %v5663_v37  ;;  %v5625_v37 = vld [vmem:[%s8400_s0 + $0x12c] sm:$0xff] }
  0x34   :  { %1710 = vmatpush.bf16.msrb.mxu1 %v5647_v38  ;;  %3059 = vmatpush.bf16.msrb.mxu0 %v5671_v39  ;;  %v776_v38 = vor.u32 %v775_v26, %v772_v25  ;;  %v786_v39 = vor.u32 %v785_v29, %v781_v28  ;;  %v5213_v29 = vrot.slane %v6236_v6, 9  ;;  %v6349_v6 = vld [vmem:[%s8400_s0 + $0x28] sm:$0xf] }
  0x36   :  { %2396 = vmatpush.bf16.msrb.mxu2 %v5654_v44  ;;  %v753_v44 = vrot.slane %v752_v31, 4 }
  0x37   :  { %2706 = vmatpush.bf16.msrb.mxu3 %v5662_v45 }
  0x38   :  { %1711 = vmatpush.bf16.msrb.mxu1 %v5646_v46  ;;  %3060 = vmatpush.bf16.msrb.mxu0 %v5670_v47  ;;  %v5212_v47 = vrot.slane %v6226_v4, 9 }
  0x3a   :  { %2397 = vmatpush.bf16.msrb.mxu2 %v5653_v52  ;;  %v777_v52 = vrot.slane %v776_v38, 4 }
  0x3b   :  { %2707 = vmatpush.bf16.msrb.mxu3 %v5661_v53  ;;  %v787_v53 = vrot.slane %v786_v39, 4 }
  0x3c   :  { %1712 = vmatpush.bf16.msrb.mxu1 %v5645_v54  ;;  %3061 = vmatpush.bf16.msrb.mxu0 %v5669_v55 }
  0x3e   :  { %2398 = vmatpush.bf16.msrb.mxu2 %v5652_v60 }
  0x3f   :  { %2708 = vmatpush.bf16.msrb.mxu3 %v5660_v61 }
  0x40   :  { %1713 = vmatpush.bf16.msrb.mxu1 %v5644_v62  ;;  %3062 = vmatpush.bf16.msrb.mxu0 %v5668_v63  ;;  %v782_v63 = vsel %vm6289_vm4, %v777_v52, %v781_v28 }
  0x41   :  { %567 = vmatmul.bf16.gmra.mxu1 %v5610_v32  ;;  %607 = vmatmul.bf16.gmra.mxu2 %v5620_v33  ;;  %v762_v32 = vor.u32 %v761_v23, %v757_v22  ;;  %v765_v33 = vshll.u32 %v83_v24, 16  ;;  %v1532_v12 = vunpack.c.l.b16 %v782_v63 }
  0x42   :  { %647 = vmatmul.bf16.gmra.mxu3 %v5628_v34  ;;  %3687 = vmatpush.bf16.msra.mxu2 %v5691_v7  ;;  %v1976_v34 = vrot.slane %v6231_v5, 5 }
  0x43   :  { %527 = vmatmul.bf16.gmra.mxu0 %v6113_v35  ;;  %4041 = vmatpush.bf16.msra.mxu3 %v5699_v9  ;;  %v763_v45 = vrot.slane %v762_v32, 4  ;;  %v767_v46 = vrot.slane %v765_v33, 5  ;;  %v1986_v32 = vrot.slane %v6270_v30, 5 }
  0x44   :  { %3377 = vmatpush.bf16.msra.mxu1 %v5683_v18  ;;  %4363 = vmatpush.bf16.msra.mxu0 %v5707_v21  ;;  %v1977_v61 = vsel %vm6295_vm5, %v5212_v47, %v1976_v34  ;;  %v6328_v18 = vld [vmem:[%s8400_s0 + $0x20] sm:$0x1]  ;;  %v1983_v21 = vrot.slane %v6245_v8, 5  ;;  %v827_v47 = vshll.u32 %v6349_v6, 16 }
  0x45   :  { %v768_v60 = vsel %vm6289_vm4, %v763_v45, %v767_v46  ;;  %v2215_v10 = vunpack.c.l.b16 %v1977_v61  ;;  %v813_v26 = vshll.u32 %v6328_v18, 16 }
  0x46   :  { %v1531_v9 = vunpack.c.l.b16 %v768_v60  ;;  %v1985_v31 = vrot.slane %v1983_v21, 4  ;;  %v829_v61 = vrot.slane %v827_v47, 5  ;;  %v6426_v47 = vld [vmem:[%s8400_s0 + $0x38] sm:$0x1] }
  0x48   :  { %v1987_v39 = vsel %vm6295_vm5, %v1985_v31, %v1986_v32 }
  0x49   :  { %v2218_v52 = vunpack.c.l.b16 %v1987_v39 }
  0x51   :  { %572 = vmatmul.bf16.gmra.mxu1 %v5611_v40  ;;  %612 = vmatmul.bf16.gmra.mxu2 %v5621_v41  ;;  %v789_v40 = vshll.u32 %v6270_v30, 16  ;;  %v5633_v41 = vld [vmem:[%s8400_s0 + $0x18c] sm:$0xff]  ;;  %v1984_v30 = vsel %vm6295_vm5, %v5213_v29, %v1983_v21 }
  0x52   :  { %652 = vmatmul.bf16.gmra.mxu3 %v5629_v42  ;;  %v6286_v42 = vld [vmem:[%s8400_s0 + $0x54] sm:$0xff] }
  0x53   :  { %532 = vmatmul.bf16.gmra.mxu0 %v6140_v43  ;;  %v791_v54 = vrot.slane %v789_v40, 5 }
  0x61   :  { %577 = vmatmul.bf16.gmra.mxu1 %v5612_v48  ;;  %617 = vmatmul.bf16.gmra.mxu2 %v5622_v49  ;;  %v1978_v48 = vrot.slane %v1976_v34, 4  ;;  %v815_v34 = vrot.slane %v813_v26, 5 }
  0x62   :  { %657 = vmatmul.bf16.gmra.mxu3 %v5630_v50  ;;  %v1979_v50 = vrot.slane %v83_v24, 5 }
  0x63   :  { %537 = vmatmul.bf16.gmra.mxu0 %v6167_v51 }
  0x64   :  { %v1980_v62 = vsel %vm6295_vm5, %v1978_v48, %v1979_v50  ;;  %v831_v48 = vshrl.u32 %v6349_v6, 16  ;;  %v2217_v50 = vunpack.c.l.b16 %v1984_v30 }
  0x65   :  { %v2216_v11 = vunpack.c.l.b16 %v1980_v62 }
  0x66   :  { %v833_v62 = vrot.slane %v831_v48, 4 }
  0x67   :  { %v2279_v20 = vpack.c.b16 %v2216_v11, %v2215_v10 }
  0x68   :  { %v834_v11 = vor.u32 %v833_v62, %v829_v61 }
  0x71   :  { %582 = vmatmul.bf16.gmra.mxu1 %v5613_v56  ;;  %622 = vmatmul.bf16.gmra.mxu2 %v5623_v57  ;;  %v6302_v56 = vld [vmem:[%s8400_s0 + $0x18] sm:$0xf]  ;;  %v6307_v57 = vld [vmem:[%s8400_s0 + $0x1c] sm:$0xf] }
  0x72   :  { %662 = vmatmul.bf16.gmra.mxu3 %v5631_v58  ;;  %v758_v58 = vsel %vm6289_vm4, %v753_v44, %v757_v22  ;;  %v803_v4 = vshll.u32 %v6307_v57, 16  ;;  %v807_v5 = vshrl.u32 %v6307_v57, 16 }
  0x73   :  { %542 = vmatmul.bf16.gmra.mxu0 %v6194_v59  ;;  %v1530_v7 = vunpack.c.l.b16 %v758_v58 }
  0x74   :  { %v805_v16 = vrot.slane %v803_v4, 5  ;;  %v809_v17 = vrot.slane %v807_v5, 4  ;;  %v6379_v4 = vpack.c.b16 %v2218_v52, %v2217_v50  ;;  %v1997_v50 = vrot.slane %v6349_v6, 5 }
  0x75   :  { %v1594_v19 = vpack.c.b16 %v1531_v9, %v1530_v7 }
  0x76   :  { %v810_v25 = vor.u32 %v809_v17, %v805_v16  ;;  %8466 = vst [vmem:[#allocation7_spill] sm:$0xff] %v6379_v4  ;;  %v835_v17 = vrot.slane %v834_v11, 4  ;;  %v1999_v11 = vrot.slane %v1997_v50, 4 }
  0x78   :  { %v811_v33 = vrot.slane %v810_v25, 4 }
  0x81   :  { %587 = vmatmul.bf16.gmra.mxu1 %v5614_v0  ;;  %627 = vmatmul.bf16.gmra.mxu2 %v5624_v1  ;;  %v792_v0 = vsel %vm6289_vm4, %v787_v53, %v791_v54  ;;  %v794_v1 = vshrl.u32 %v6302_v56, 16 }
  0x82   :  { %667 = vmatmul.bf16.gmra.mxu3 %v5632_v2  ;;  %v797_v2 = vshll.u32 %v6302_v56, 16  ;;  %v1533_v13 = vunpack.c.l.b16 %v792_v0  ;;  %v1990_v0 = vrot.slane %v6307_v57, 5  ;;  %v5214_v57 = vrot.slane %v6302_v56, 9 }
  0x83   :  { %547 = vmatmul.bf16.gmra.mxu0 %v6221_v3  ;;  %v796_v14 = vrot.slane %v794_v1, 4  ;;  %v6375_v1 = vld [vmem:[%s8400_s0 + $0x2c] sm:$0x1] }
  0x84   :  { %v799_v15 = vrot.slane %v797_v2, 5  ;;  %v1595_v23 = vpack.c.b16 %v1533_v13, %v1532_v12  ;;  %v837_v12 = vshll.u32 %v6375_v1, 16  ;;  %v1992_v13 = vrot.slane %v1990_v0, 4 }
  0x85   :  { %v2000_v6 = vrot.slane %v6375_v1, 5  ;;  %v6462_v1 = vld [vmem:[%s8400_s0 + $0x40] sm:$0xf] }
  0x86   :  { %v800_v24 = vor.u32 %v799_v15, %v796_v14  ;;  %v1993_v14 = vrot.slane %v6328_v18, 5  ;;  %v6396_v15 = vld [vmem:[%s8400_s0 + $0x30] sm:$0xf]  ;;  %v839_v18 = vrot.slane %v837_v12, 5 }
  0x88   :  { %v801_v8 = vrot.slane %v800_v24, 4  ;;  %v845_v24 = vshll.u32 %v6396_v15, 16 }
  0x8a   :  { %v806_v40 = vsel %vm6289_vm4, %v801_v8, %v805_v16  ;;  %v6401_v16 = vld [vmem:[%s8400_s0 + $0x34] sm:$0xf]  ;;  %v840_v8 = vsel %vm6289_vm4, %v835_v17, %v839_v18  ;;  %v847_v39 = vrot.slane %v845_v24, 5 }
  0x8b   :  { %v1534_v53 = vunpack.c.l.b16 %v806_v40  ;;  %v851_v25 = vshll.u32 %v6401_v16, 16  ;;  %v855_v26 = vshrl.u32 %v6401_v16, 16  ;;  %v5682_v24 = vld [vmem:[%s8399_s1 + $0x170] sm:$0xff] }
  0x8c   :  { %3378 = vmatpush.bf16.msra.mxu1 %v5682_v24 }
  0x8d   :  { %v853_v40 = vrot.slane %v851_v25, 5 }
  0x91   :  { %592 = vmatmul.bf16.gmra.mxu1 %v5615_v36  ;;  %632 = vmatmul.bf16.gmra.mxu2 %v5625_v37  ;;  %v6344_v37 = vld [vmem:[%s8400_s0 + $0x24] sm:$0xf] }
  0x92   :  { %672 = vmatmul.bf16.gmra.mxu3 %v5633_v41  ;;  %v816_v41 = vsel %vm6289_vm4, %v811_v33, %v815_v34  ;;  %v818_v45 = vshrl.u32 %v6344_v37, 16  ;;  %v821_v46 = vshll.u32 %v6344_v37, 16 }
  0x93   :  { %552 = vmatmul.bf16.gmra.mxu0 %v6286_v42  ;;  %v1535_v54 = vunpack.c.l.b16 %v816_v41  ;;  %v857_v41 = vrot.slane %v855_v26, 4 }
  0x94   :  { %v820_v58 = vrot.slane %v818_v45, 4  ;;  %v823_v60 = vrot.slane %v821_v46, 5  ;;  %v1537_v46 = vunpack.c.l.b16 %v840_v8  ;;  %v875_v8 = vshll.u32 %v6462_v1, 16 }
  0x95   :  { %v6383_v7 = vpack.c.b16 %v1535_v54, %v1534_v53 }
  0x96   :  { %v824_v10 = vor.u32 %v823_v60, %v820_v58  ;;  %v858_v58 = vor.u32 %v857_v41, %v853_v40  ;;  %v861_v60 = vshll.u32 %v6426_v47, 16 }
  0x97   :  { %8467 = vst [vmem:[#allocation8_spill] sm:$0xff] %v6383_v7 }
  0x98   :  { %v825_v56 = vrot.slane %v824_v10, 4  ;;  %v5215_v10 = vrot.slane %v6344_v37, 9  ;;  %v5698_v37 = vld [vmem:[%s8399_s1 + $0x1f0] sm:$0xff] }
  0x99   :  { %4042 = vmatpush.bf16.msra.mxu3 %v5698_v37 }
  0x9a   :  { %v830_v32 = vsel %vm6289_vm4, %v825_v56, %v829_v61  ;;  %v6457_v56 = vld [vmem:[%s8400_s0 + $0x3c] sm:$0xf]  ;;  %v1998_v18 = vsel %vm6295_vm5, %v5215_v10, %v1997_v50 }
  0x9b   :  { %v1536_v45 = vunpack.c.l.b16 %v830_v32  ;;  %v866_v26 = vshrl.u32 %v6457_v56, 16  ;;  %v869_v32 = vshll.u32 %v6457_v56, 16 }
  0x9d   :  { %v6438_v62 = vpack.c.b16 %v1537_v46, %v1536_v45  ;;  %v868_v46 = vrot.slane %v866_v26, 4  ;;  %v871_v50 = vrot.slane %v869_v32, 5 }
  0x9e   :  { %v6331_v22 = vpop.f32.mrf.mxu1 }
  0x9f   :  { %8473 = vst [vmem:[#allocation14_spill] sm:$0xff] %v6438_v62 }
  0xa0   :  { %v6334_v28 = vpop.f32.mrf.mxu0 }
  0xa1   :  { %1714 = vmatmul.bf16.vlgmr.msrb.gmra.mxu1 %v1594_v19  ;;  %2399 = vmatmul.bf16.vlgmr.msrb.gmra.mxu2 %v2279_v20  ;;  %v1994_v20 = vsel %vm6295_vm5, %v1992_v13, %v1993_v14  ;;  %v863_v13 = vrot.slane %v861_v60, 5  ;;  %v5690_v14 = vld [vmem:[%s8399_s1 + $0x1b0] sm:$0xff]  ;;  %v6493_v60 = vld [vmem:[%s8400_s0 + $0x44] sm:$0x1] }
  0xa2   :  { %2709 = vmatmul.bf16.vlgmr.msrb.gmra.mxu3 %v6086_v27  ;;  %v2220_v34 = vunpack.c.l.b16 %v1994_v20  ;;  %3688 = vmatpush.bf16.msra.mxu2 %v5690_v14  ;;  %v872_v14 = vor.u32 %v871_v50, %v868_v46 }
  0xa3   :  { %3063 = vmatmul.bf16.vlgmr.msrb.gmra.mxu0 %v1595_v23 }
  0xa4   :  { %v6339_v36 = vpop.f32.mrf.mxu2  ;;  %v873_v24 = vrot.slane %v872_v14, 4 }
  0xa5   :  { %8462 = vst [vmem:[#allocation3_spill] sm:$0xff] %v6339_v36  ;;  %v6351_v38 = vpop.f32.mrf.mxu3  ;;  %v6831_v36 = vld [vmem:[%s8400_s0 + $0x8c] sm:$0x1] }
  0xa6   :  { %8463 = vst [vmem:[#allocation4_spill] sm:$0xff] %v6351_v38  ;;  %v6353_v27 = vpop.f32.mrf.mxu1 }
  0xa8   :  { %v6363_v44 = vpop.f32.mrf.mxu0 }
  0xac   :  { %v6369_v63 = vpop.f32.mrf.mxu2 }
  0xad   :  { %8464 = vst [vmem:[#allocation5_spill] sm:$0xff] %v6369_v63  ;;  %v6377_v2 = vpop.f32.mrf.mxu3 }
  0xae   :  { %8465 = vst [vmem:[#allocation6_spill] sm:$0xff] %v6377_v2  ;;  %v6381_v5 = vpop.f32.mrf.mxu1  ;;  %v6603_v2 = vld [vmem:[%s8400_s0 + $0x5c] sm:$0x1] }
  0xb0   :  { %v6385_v9 = vpop.f32.mrf.mxu0 }
  0xb1   :  { %1719 = vmatmul.bf16.gmra.mxu1 %v1595_v23  ;;  %2404 = vmatmul.bf16.gmra.mxu2 %v6379_v4  ;;  %v842_v23 = vshrl.u32 %v6396_v15, 16 }
  0xb2   :  { %2714 = vmatmul.bf16.gmra.mxu3 %v6113_v35  ;;  %v1991_v35 = vsel %vm6295_vm5, %v5214_v57, %v1990_v0  ;;  %v859_v57 = vrot.slane %v858_v58, 4 }
  0xb3   :  { %3068 = vmatmul.bf16.gmra.mxu0 %v6383_v7  ;;  %v2219_v33 = vunpack.c.l.b16 %v1991_v35  ;;  %v844_v30 = vrot.slane %v842_v23, 4  ;;  %v2001_v35 = vsel %vm6295_vm5, %v1999_v11, %v2000_v6 }
  0xb4   :  { %v6403_v19 = vpop.f32.mrf.mxu2  ;;  %v864_v23 = vsel %vm6289_vm4, %v859_v57, %v863_v13 }
  0xb5   :  { %8468 = vst [vmem:[#allocation9_spill] sm:$0xff] %v6403_v19  ;;  %v6409_v21 = vpop.f32.mrf.mxu3  ;;  %v6433_v53 = vpack.c.b16 %v2220_v34, %v2219_v33  ;;  %v848_v54 = vor.u32 %v847_v39, %v844_v30  ;;  %v879_v33 = vshrl.u32 %v6462_v1, 16  ;;  %v5706_v30 = vld [vmem:[%s8399_s1 + $0x230] sm:$0xff]  ;;  %v2221_v39 = vunpack.c.l.b16 %v1998_v18 }
  0xb6   :  { %8469 = vst [vmem:[#allocation10_spill] sm:$0xff] %v6409_v21  ;;  %v6415_v29 = vpop.f32.mrf.mxu1  ;;  %v1539_v45 = vunpack.c.l.b16 %v864_v23  ;;  %4364 = vmatpush.bf16.msra.mxu0 %v5706_v30  ;;  %v885_v18 = vshll.u32 %v6493_v60, 16 }
  0xb7   :  { %8472 = vst [vmem:[#allocation13_spill] sm:$0xff] %v6433_v53  ;;  %v849_v12 = vrot.slane %v848_v54, 4  ;;  %v877_v54 = vrot.slane %v875_v8, 5  ;;  %v881_v58 = vrot.slane %v879_v33, 4  ;;  %v6520_v33 = vld [vmem:[%s8400_s0 + $0x48] sm:$0xf] }
  0xb8   :  { %v6417_v31 = vpop.f32.mrf.mxu0  ;;  %v887_v32 = vrot.slane %v885_v18, 5  ;;  %v890_v46 = vshrl.u32 %v6520_v33, 16  ;;  %v893_v50 = vshll.u32 %v6520_v33, 16 }
  0xb9   :  { %v854_v20 = vsel %vm6289_vm4, %v849_v12, %v853_v40  ;;  %v2222_v40 = vunpack.c.l.b16 %v2001_v35  ;;  %v2004_v12 = vrot.slane %v6401_v16, 5  ;;  %v882_v37 = vor.u32 %v881_v58, %v877_v54 }
  0xba   :  { %v1538_v41 = vunpack.c.l.b16 %v854_v20  ;;  %v5216_v20 = vrot.slane %v6396_v15, 9  ;;  %v2007_v16 = vrot.slane %v6426_v47, 5  ;;  %v6525_v15 = vld [vmem:[%s8400_s0 + $0x4c] sm:$0xf] }
  0xbb   :  { %v6499_v6 = vpack.c.b16 %v2222_v40, %v2221_v39  ;;  %v2006_v23 = vrot.slane %v2004_v12, 4  ;;  %v883_v26 = vrot.slane %v882_v37, 4  ;;  %v878_v40 = vsel %vm6289_vm4, %v873_v24, %v877_v54 }
  0xbc   :  { %v6428_v48 = vpop.f32.mrf.mxu2  ;;  %v6504_v13 = vpack.c.b16 %v1539_v45, %v1538_v41  ;;  %v2005_v47 = vsel %vm6295_vm5, %v5216_v20, %v2004_v12  ;;  %v899_v58 = vshll.u32 %v6525_v15, 16  ;;  %v903_v14 = vshrl.u32 %v6525_v15, 16 }
  0xbd   :  { %8470 = vst [vmem:[#allocation11_spill] sm:$0xff] %v6428_v48  ;;  %v6431_v52 = vpop.f32.mrf.mxu3  ;;  %v2008_v39 = vsel %vm6295_vm5, %v2006_v23, %v2007_v16  ;;  %v888_v41 = vsel %vm6289_vm4, %v883_v26, %v887_v32  ;;  %v2223_v12 = vunpack.c.l.b16 %v2005_v47  ;;  %v1540_v18 = vunpack.c.l.b16 %v878_v40  ;;  %v6551_v32 = vld [vmem:[%s8400_s0 + $0x50] sm:$0x1]  ;;  %v6782_v48 = vld [vmem:[%s8400_s0 + $0x80] sm:$0x1] }
  0xbe   :  { %8471 = vst [vmem:[#allocation12_spill] sm:$0xff] %v6431_v52  ;;  %v6436_v61 = vpop.f32.mrf.mxu1  ;;  %v2224_v37 = vunpack.c.l.b16 %v2008_v39  ;;  %v1541_v20 = vunpack.c.l.b16 %v888_v41  ;;  %v892_v23 = vrot.slane %v890_v46, 4  ;;  %v895_v16 = vrot.slane %v893_v50, 5 }
  0xbf   :  { %8478 = vst [vmem:[#allocation19_spill] sm:$0xff] %v6499_v6  ;;  %v901_v54 = vrot.slane %v899_v58, 5  ;;  %v905_v24 = vrot.slane %v903_v14, 4  ;;  %v2011_v26 = vrot.slane %v6462_v1, 5  ;;  %v909_v50 = vshll.u32 %v6551_v32, 16 }
  0xc0   :  { %v6440_v0 = vpop.f32.mrf.mxu0  ;;  %8479 = vst [vmem:[#allocation20_spill] sm:$0xff] %v6504_v13  ;;  %v6559_v39 = vpack.c.b16 %v1541_v20, %v1540_v18  ;;  %v896_v41 = vor.u32 %v895_v16, %v892_v23  ;;  %v5217_v1 = vrot.slane %v6457_v56, 9  ;;  %v2014_v14 = vrot.slane %v6493_v60, 5  ;;  %v6578_v56 = vld [vmem:[%s8400_s0 + $0x58] sm:$0xf] }
  0xc1   :  { %1724 = vmatmul.bf16.gmra.mxu1 %v6383_v7  ;;  %2409 = vmatmul.bf16.gmra.mxu2 %v6433_v53  ;;  %v906_v46 = vor.u32 %v905_v24, %v901_v54  ;;  %v2013_v58 = vrot.slane %v2011_v26, 4  ;;  %v911_v18 = vrot.slane %v909_v50, 5 }
  0xc2   :  { %2719 = vmatmul.bf16.gmra.mxu3 %v6140_v43  ;;  %8485 = vst [vmem:[#allocation26_spill] sm:$0xff] %v6559_v39 }
  0xc3   :  { %3073 = vmatmul.bf16.gmra.mxu0 %v6438_v62  ;;  %v907_v60 = vrot.slane %v906_v46, 4  ;;  %v2015_v23 = vsel %vm6295_vm5, %v2013_v58, %v2014_v14 }
  0xc4   :  { %v6464_v43 = vpop.f32.mrf.mxu2  ;;  %v2226_v14 = vunpack.c.l.b16 %v2015_v23 }
  0xc5   :  { %8474 = vst [vmem:[#allocation15_spill] sm:$0xff] %v6464_v43  ;;  %v6466_v17 = vpop.f32.mrf.mxu3 }
  0xc6   :  { %8475 = vst [vmem:[#allocation16_spill] sm:$0xff] %v6466_v17  ;;  %v6479_v25 = vpop.f32.mrf.mxu1  ;;  %v6555_v17 = vpack.c.b16 %v2224_v37, %v2223_v12  ;;  %v6573_v12 = vld [vmem:[%s8400_s0 + $0x54] sm:$0xf]  ;;  %v897_v37 = vrot.slane %v896_v41, 4  ;;  %v927_v41 = vshrl.u32 %v6578_v56, 16 }
  0xc7   :  { %v914_v24 = vshrl.u32 %v6573_v12, 16 }
  0xc8   :  { %v6485_v34 = vpop.f32.mrf.mxu0  ;;  %8484 = vst [vmem:[#allocation25_spill] sm:$0xff] %v6555_v17  ;;  %v929_v21 = vrot.slane %v927_v41, 4  ;;  %v5218_v41 = vrot.slane %v6520_v33, 9 }
  0xcc   :  { %v6495_v10 = vpop.f32.mrf.mxu2 }
  0xcd   :  { %8476 = vst [vmem:[#allocation17_spill] sm:$0xff] %v6495_v10  ;;  %v6497_v11 = vpop.f32.mrf.mxu3 }
  0xce   :  { %8477 = vst [vmem:[#allocation18_spill] sm:$0xff] %v6497_v11  ;;  %v6502_v57 = vpop.f32.mrf.mxu1 }
  0xd0   :  { %v6507_v35 = vpop.f32.mrf.mxu0 }
  0xd1   :  { %1729 = vmatmul.bf16.gmra.mxu1 %v6438_v62  ;;  %2414 = vmatmul.bf16.gmra.mxu2 %v6499_v6 }
  0xd2   :  { %2724 = vmatmul.bf16.gmra.mxu3 %v6167_v51 }
  0xd3   :  { %3078 = vmatmul.bf16.gmra.mxu0 %v6504_v13 }
  0xd4   :  { %v6515_v8 = vpop.f32.mrf.mxu2 }
  0xd5   :  { %8480 = vst [vmem:[#allocation21_spill] sm:$0xff] %v6515_v8  ;;  %v6527_v51 = vpop.f32.mrf.mxu3 }
  0xd6   :  { %8481 = vst [vmem:[#allocation22_spill] sm:$0xff] %v6527_v51  ;;  %v6529_v30 = vpop.f32.mrf.mxu1 }
  0xd8   :  { %v6539_v45 = vpop.f32.mrf.mxu0 }
  0xdc   :  { %v6545_v51 = vpop.f32.mrf.mxu2 }
  0xdd   :  { %8482 = vst [vmem:[#allocation23_spill] sm:$0xff] %v6545_v51  ;;  %v6553_v11 = vpop.f32.mrf.mxu3  ;;  %v6728_v51 = vld [vmem:[%s8400_s0 + $0x74] sm:$0x1] }
  0xde   :  { %8483 = vst [vmem:[#allocation24_spill] sm:$0xff] %v6553_v11  ;;  %v6557_v47 = vpop.f32.mrf.mxu1  ;;  %v917_v11 = vshll.u32 %v6573_v12, 16 }
  0xe0   :  { %v6561_v40 = vpop.f32.mrf.mxu0 }
  0xe1   :  { %1734 = vmatmul.bf16.gmra.mxu1 %v6504_v13  ;;  %2419 = vmatmul.bf16.gmra.mxu2 %v6555_v17  ;;  %v923_v17 = vshll.u32 %v6578_v56, 16  ;;  %v919_v13 = vrot.slane %v917_v11, 5 }
  0xe2   :  { %2729 = vmatmul.bf16.gmra.mxu3 %v6194_v59  ;;  %v2012_v59 = vsel %vm6295_vm5, %v5217_v1, %v2011_v26  ;;  %v902_v26 = vsel %vm6289_vm4, %v897_v37, %v901_v54  ;;  %v912_v1 = vsel %vm6289_vm4, %v907_v60, %v911_v18  ;;  %v2018_v54 = vrot.slane %v6525_v15, 5 }
  0xe3   :  { %3083 = vmatmul.bf16.gmra.mxu0 %v6559_v39  ;;  %v2225_v58 = vunpack.c.l.b16 %v2012_v59  ;;  %v925_v52 = vrot.slane %v923_v17, 5  ;;  %v1542_v6 = vunpack.c.l.b16 %v902_v26  ;;  %v1543_v62 = vunpack.c.l.b16 %v912_v1 }
  0xe4   :  { %v6580_v20 = vpop.f32.mrf.mxu2  ;;  %v933_v17 = vshll.u32 %v6603_v2, 16  ;;  %v2020_v26 = vrot.slane %v2018_v54, 4  ;;  %v2021_v15 = vrot.slane %v6551_v32, 5 }
  0xe5   :  { %8486 = vst [vmem:[#allocation27_spill] sm:$0xff] %v6580_v20  ;;  %v6586_v16 = vpop.f32.mrf.mxu3  ;;  %v6610_v60 = vpack.c.b16 %v2226_v14, %v2225_v58  ;;  %v930_v59 = vor.u32 %v929_v21, %v925_v52  ;;  %v6615_v23 = vpack.c.b16 %v1543_v62, %v1542_v6  ;;  %v6628_v62 = vld [vmem:[%s8400_s0 + $0x60] sm:$0xf]  ;;  %v6633_v6 = vld [vmem:[%s8400_s0 + $0x64] sm:$0xf] }
  0xe6   :  { %8487 = vst [vmem:[#allocation28_spill] sm:$0xff] %v6586_v16  ;;  %v6592_v46 = vpop.f32.mrf.mxu1  ;;  %v916_v16 = vrot.slane %v914_v24, 4  ;;  %v935_v21 = vrot.slane %v933_v17, 5  ;;  %v941_v17 = vshll.u32 %v6628_v62, 16  ;;  %v2032_v20 = vrot.slane %v6633_v6, 5 }
  0xe7   :  { %8490 = vst [vmem:[#allocation31_spill] sm:$0xff] %v6610_v60 }
  0xe8   :  { %v6594_v50 = vpop.f32.mrf.mxu0  ;;  %v920_v18 = vor.u32 %v919_v13, %v916_v16  ;;  %8491 = vst [vmem:[#allocation32_spill] sm:$0xff] %v6615_v23  ;;  %v931_v13 = vrot.slane %v930_v59, 4  ;;  %v2019_v16 = vsel %vm6295_vm5, %v5218_v41, %v2018_v54  ;;  %v938_v59 = vshrl.u32 %v6628_v62, 16 }
  0xe9   :  { %v2227_v41 = vunpack.c.l.b16 %v2019_v16  ;;  %v2025_v16 = vrot.slane %v6578_v56, 5  ;;  %v2028_v56 = vrot.slane %v6603_v2, 5  ;;  %v6696_v2 = vld [vmem:[%s8400_s0 + $0x70] sm:$0xf] }
  0xea   :  { %v921_v1 = vrot.slane %v920_v18, 4  ;;  %v936_v14 = vsel %vm6289_vm4, %v931_v13, %v935_v21  ;;  %v6658_v21 = vld [vmem:[%s8400_s0 + $0x68] sm:$0x1] }
  0xec   :  { %v6605_v38 = vpop.f32.mrf.mxu2  ;;  %v926_v58 = vsel %vm6289_vm4, %v921_v1, %v925_v52  ;;  %v940_v52 = vrot.slane %v938_v59, 4  ;;  %v943_v1 = vrot.slane %v941_v17, 5  ;;  %v5219_v17 = vrot.slane %v6573_v12, 9 }
  0xed   :  { %8488 = vst [vmem:[#allocation29_spill] sm:$0xff] %v6605_v38  ;;  %v6608_v37 = vpop.f32.mrf.mxu3 }
  0xee   :  { %8489 = vst [vmem:[#allocation30_spill] sm:$0xff] %v6608_v37  ;;  %v6613_v11 = vpop.f32.mrf.mxu1  ;;  %v951_v37 = vshrl.u32 %v6633_v6, 16 }
  0xf0   :  { %v6617_v24 = vpop.f32.mrf.mxu0  ;;  %v953_v13 = vrot.slane %v951_v37, 4  ;;  %v957_v37 = vshll.u32 %v6658_v21, 16 }
  0xf1   :  { %1739 = vmatmul.bf16.gmra.mxu1 %v6559_v39  ;;  %2424 = vmatmul.bf16.gmra.mxu2 %v6610_v60  ;;  %v1545_v60 = vunpack.c.l.b16 %v936_v14  ;;  %v944_v14 = vor.u32 %v943_v1, %v940_v52  ;;  %v5689_v52 = vld [vmem:[%s8399_s1 + $0x1a8] sm:$0xff] }
  0xf2   :  { %2734 = vmatmul.bf16.gmra.mxu3 %v6221_v3  ;;  %v2022_v3 = vsel %vm6295_vm5, %v2020_v26, %v2021_v15  ;;  %v1544_v15 = vunpack.c.l.b16 %v926_v58  ;;  %v5697_v1 = vld [vmem:[%s8399_s1 + $0x1e8] sm:$0xff]  ;;  %3689 = vmatpush.bf16.msra.mxu2 %v5689_v52 }
  0xf3   :  { %3088 = vmatmul.bf16.gmra.mxu0 %v6615_v23  ;;  %v2228_v26 = vunpack.c.l.b16 %v2022_v3  ;;  %4043 = vmatpush.bf16.msra.mxu3 %v5697_v1 }
  0xf4   :  { %v6635_v33 = vpop.f32.mrf.mxu2  ;;  %v6669_v58 = vpack.c.b16 %v1545_v60, %v1544_v15  ;;  %v945_v60 = vrot.slane %v944_v14, 4  ;;  %v959_v15 = vrot.slane %v957_v37, 5 }
  0xf5   :  { %8492 = vst [vmem:[#allocation33_spill] sm:$0xff] %v6635_v33  ;;  %v6637_v32 = vpop.f32.mrf.mxu3  ;;  %v6664_v4 = vpack.c.b16 %v2228_v26, %v2227_v41  ;;  %v2027_v41 = vrot.slane %v2025_v16, 4 }
  0xf6   :  { %8493 = vst [vmem:[#allocation34_spill] sm:$0xff] %v6637_v32  ;;  %v6647_v18 = vpop.f32.mrf.mxu1  ;;  %v947_v32 = vshll.u32 %v6633_v6, 16  ;;  %v5220_v6 = vrot.slane %v6628_v62, 9  ;;  %v6757_v62 = vld [vmem:[%s8400_s0 + $0x7c] sm:$0xf] }
  0xf7   :  { %8496 = vst [vmem:[#allocation37_spill] sm:$0xff] %v6664_v4  ;;  %v2029_v37 = vsel %vm6295_vm5, %v2027_v41, %v2028_v56 }
  0xf8   :  { %v6653_v54 = vpop.f32.mrf.mxu0  ;;  %v949_v39 = vrot.slane %v947_v32, 5  ;;  %8497 = vst [vmem:[#allocation38_spill] sm:$0xff] %v6669_v58  ;;  %v2230_v41 = vunpack.c.l.b16 %v2029_v37 }
  0xfa   :  { %v954_v32 = vor.u32 %v953_v13, %v949_v39  ;;  %v950_v52 = vsel %vm6289_vm4, %v945_v60, %v949_v39  ;;  %v5705_v39 = vld [vmem:[%s8399_s1 + $0x228] sm:$0xff] }
  0xfb   :  { %4365 = vmatpush.bf16.msra.mxu0 %v5705_v39  ;;  %v1546_v56 = vunpack.c.l.b16 %v950_v52  ;;  %v981_v52 = vshll.u32 %v6728_v51, 16  ;;  %v5923_v39 = vld [vmem:[%s8400_s0 + $0x60] sm:$0xff] }
  0xfc   :  { %v6660_v53 = vpop.f32.mrf.mxu2  ;;  %v955_v26 = vrot.slane %v954_v32, 4  ;;  %v2026_v32 = vsel %vm6295_vm5, %v5219_v17, %v2025_v16  ;;  %v5681_v16 = vld [vmem:[%s8399_s1 + $0x168] sm:$0xff] }
  0xfd   :  { %8494 = vst [vmem:[#allocation35_spill] sm:$0xff] %v6660_v53  ;;  %v6662_v7 = vpop.f32.mrf.mxu3  ;;  %v2229_v17 = vunpack.c.l.b16 %v2026_v32  ;;  %3379 = vmatpush.bf16.msra.mxu1 %v5681_v16  ;;  %v2035_v16 = vrot.slane %v6658_v21, 5 }
  0xfe   :  { %8495 = vst [vmem:[#allocation36_spill] sm:$0xff] %v6662_v7  ;;  %v6667_v3 = vpop.f32.mrf.mxu1  ;;  %v960_v7 = vsel %vm6289_vm4, %v955_v26, %v959_v15 }
  0xff   :  { %v1547_v60 = vunpack.c.l.b16 %v960_v7  ;;  %v6732_v32 = vpack.c.b16 %v2230_v41, %v2229_v17  ;;  %v983_v41 = vrot.slane %v981_v52, 5 }
 0x100   :  { %v6672_v59 = vpop.f32.mrf.mxu0 }
 0x101   :  { %1744 = vmatmul.bf16.gmra.mxu1 %v6615_v23  ;;  %2429 = vmatmul.bf16.gmra.mxu2 %v6664_v4  ;;  %v971_v23 = vshll.u32 %v6696_v2, 16  ;;  %8502 = vst [vmem:[#allocation43_spill] sm:$0xff] %v6732_v32  ;;  %v6736_v7 = vpack.c.b16 %v1547_v60, %v1546_v56  ;;  %v2033_v60 = vsel %vm6295_vm5, %v5220_v6, %v2032_v20 }
 0x102   :  { %2739 = vmatmul.bf16.gmra.mxu3 %v6286_v42  ;;  %v6691_v42 = vld [vmem:[%s8400_s0 + $0x6c] sm:$0xf] }
 0x103   :  { %3093 = vmatmul.bf16.gmra.mxu0 %v6669_v58  ;;  %v962_v1 = vshrl.u32 %v6691_v42, 16  ;;  %v973_v53 = vrot.slane %v971_v23, 5  ;;  %8503 = vst [vmem:[#allocation44_spill] sm:$0xff] %v6736_v7 }
 0x104   :  { %v6686_v13 = vpop.f32.mrf.mxu2 }
 0x105   :  { %8498 = vst [vmem:[#allocation39_spill] sm:$0xff] %v6686_v13  ;;  %v6698_v12 = vpop.f32.mrf.mxu3  ;;  %v975_v13 = vshrl.u32 %v6696_v2, 16  ;;  %v964_v26 = vrot.slane %v962_v1, 4  ;;  %v2034_v1 = vrot.slane %v2032_v20, 4 }
 0x106   :  { %8499 = vst [vmem:[#allocation40_spill] sm:$0xff] %v6698_v12  ;;  %v6700_v14 = vpop.f32.mrf.mxu1  ;;  %v965_v12 = vshll.u32 %v6691_v42, 16 }
 0x107   :  { %v977_v33 = vrot.slane %v975_v13, 4 }
 0x108   :  { %v6710_v4 = vpop.f32.mrf.mxu0  ;;  %v967_v15 = vrot.slane %v965_v12, 5 }
 0x109   :  { %v978_v13 = vor.u32 %v977_v33, %v973_v53  ;;  %v6752_v33 = vld [vmem:[%s8400_s0 + $0x78] sm:$0xf] }
 0x10a   :  { %v968_v23 = vor.u32 %v967_v15, %v964_v26  ;;  %v2036_v26 = vsel %vm6295_vm5, %v2034_v1, %v2035_v16  ;;  %v2231_v1 = vunpack.c.l.b16 %v2033_v60 }
 0x10b   :  { %v979_v17 = vrot.slane %v978_v13, 4  ;;  %v2232_v16 = vunpack.c.l.b16 %v2036_v26 }
 0x10c   :  { %v6722_v38 = vpop.f32.mrf.mxu2  ;;  %v969_v21 = vrot.slane %v968_v23, 4  ;;  %v999_v23 = vshrl.u32 %v6757_v62, 16 }
 0x10d   :  { %8500 = vst [vmem:[#allocation41_spill] sm:$0xff] %v6722_v38  ;;  %v6730_v8 = vpop.f32.mrf.mxu3  ;;  %v984_v6 = vsel %vm6289_vm4, %v979_v17, %v983_v41  ;;  %v6789_v17 = vpack.c.b16 %v2232_v16, %v2231_v1 }
 0x10e   :  { %8501 = vst [vmem:[#allocation42_spill] sm:$0xff] %v6730_v8  ;;  %v6734_v37 = vpop.f32.mrf.mxu1  ;;  %v989_v8 = vshll.u32 %v6752_v33, 16  ;;  %v974_v20 = vsel %vm6289_vm4, %v969_v21, %v973_v53  ;;  %v1001_v38 = vrot.slane %v999_v23, 4  ;;  %v1549_v43 = vunpack.c.l.b16 %v984_v6 }
 0x10f   :  { %v1548_v10 = vunpack.c.l.b16 %v974_v20  ;;  %v2039_v53 = vrot.slane %v6696_v2, 5  ;;  %8509 = vst [vmem:[#allocation50_spill] sm:$0xff] %v6789_v17  ;;  %v5221_v23 = vrot.slane %v6691_v42, 9  ;;  %v2042_v2 = vrot.slane %v6728_v51, 5  ;;  %v6811_v51 = vld [vmem:[%s8400_s0 + $0x88] sm:$0xf] }
 0x110   :  { %v6738_v12 = vpop.f32.mrf.mxu0 }
 0x111   :  { %1749 = vmatmul.bf16.gmra.mxu1 %v6669_v58  ;;  %2434 = vmatmul.bf16.gmra.mxu2 %v6732_v32  ;;  %v995_v32 = vshll.u32 %v6757_v62, 16  ;;  %v991_v58 = vrot.slane %v989_v8, 5  ;;  %v1005_v8 = vshll.u32 %v6782_v48, 16  ;;  %v6792_v26 = vpack.c.b16 %v1549_v43, %v1548_v10  ;;  %v6806_v10 = vld [vmem:[%s8400_s0 + $0x84] sm:$0xf] }
 0x112   :  { %2744 = vmatmul.bf16.gmra.mxu3 %v5923_v39  ;;  %v986_v39 = vshrl.u32 %v6752_v33, 16  ;;  %v2041_v20 = vrot.slane %v2039_v53, 4  ;;  %v2040_v42 = vsel %vm6295_vm5, %v5221_v23, %v2039_v53  ;;  %v1023_v53 = vshrl.u32 %v6811_v51, 16 }
 0x113   :  { %3098 = vmatmul.bf16.gmra.mxu0 %v6736_v7  ;;  %v1007_v16 = vrot.slane %v1005_v8, 5 }
 0x114   :  { %v6759_v56 = vpop.f32.mrf.mxu2 }
 0x115   :  { %8504 = vst [vmem:[#allocation45_spill] sm:$0xff] %v6759_v56  ;;  %v6765_v15 = vpop.f32.mrf.mxu3  ;;  %v997_v56 = vrot.slane %v995_v32, 5 }
 0x116   :  { %8505 = vst [vmem:[#allocation46_spill] sm:$0xff] %v6765_v15  ;;  %v6771_v13 = vpop.f32.mrf.mxu1  ;;  %v988_v15 = vrot.slane %v986_v39, 4 }
 0x117   :  { %8506 = vst [vmem:[#allocation47_spill] sm:$0xff] %v6771_v13  ;;  %v1002_v60 = vor.u32 %v1001_v38, %v997_v56  ;;  %v5924_v38 = vld [vmem:[%s8400_s0 + $0x6c] sm:$0xff] }
 0x118   :  { %v6773_v52 = vpop.f32.mrf.mxu0  ;;  %v992_v41 = vor.u32 %v991_v58, %v988_v15 }
 0x119   :  { %v1003_v1 = vrot.slane %v1002_v60, 4  ;;  %v2043_v60 = vsel %vm6295_vm5, %v2041_v20, %v2042_v2 }
 0x11a   :  { %v993_v6 = vrot.slane %v992_v41, 4 }
 0x11b   :  { %v1008_v8 = vsel %vm6289_vm4, %v1003_v1, %v1007_v16  ;;  %v1025_v16 = vrot.slane %v1023_v53, 4 }
 0x11c   :  { %v6784_v19 = vpop.f32.mrf.mxu2  ;;  %v1551_v2 = vunpack.c.l.b16 %v1008_v8  ;;  %v1029_v8 = vshll.u32 %v6831_v36, 16 }
 0x11d   :  { %8507 = vst [vmem:[#allocation48_spill] sm:$0xff] %v6784_v19  ;;  %v6787_v21 = vpop.f32.mrf.mxu3 }
 0x11e   :  { %8508 = vst [vmem:[#allocation49_spill] sm:$0xff] %v6787_v21  ;;  %v1715_v32 = vpop.f32.mrf.mxu1  ;;  %v1013_v21 = vshll.u32 %v6806_v10, 16 }
 0x11f   :  { %v1875_v43 = vadd.f32 %v1715_v32, %v6334_v28  ;;  %v998_v28 = vsel %vm6289_vm4, %v993_v6, %v997_v56 }
 0x120   :  { %v3064_v39 = vpop.f32.mrf.mxu0  ;;  %v1550_v20 = vunpack.c.l.b16 %v998_v28  ;;  %v1015_v6 = vrot.slane %v1013_v21, 5 }
 0x121   :  { %1754 = vmatmul.bf16.gmra.mxu1 %v6736_v7  ;;  %2439 = vmatmul.bf16.gmra.mxu2 %v6789_v17  ;;  %v1019_v17 = vshll.u32 %v6811_v51, 16  ;;  %v2234_v7 = vunpack.c.l.b16 %v2043_v60  ;;  %v2046_v60 = vrot.slane %v6757_v62, 5  ;;  %v5925_v62 = vld [vmem:[%s8400_s0 + $0x78] sm:$0xff] }
 0x122   :  { %2749 = vmatmul.bf16.gmra.mxu3 %v5924_v38  ;;  %v1010_v38 = vshrl.u32 %v6806_v10, 16  ;;  %v6836_v28 = vpack.c.b16 %v1551_v2, %v1550_v20  ;;  %v6858_v2 = vld [vmem:[%s8400_s0 + $0x94] sm:$0xf] }
 0x123   :  { %3103 = vmatmul.bf16.gmra.mxu0 %v6792_v26  ;;  %v1021_v1 = vrot.slane %v1019_v17, 5 }
 0x124   :  { %v2400_v58 = vpop.f32.mrf.mxu2  ;;  %v1012_v56 = vrot.slane %v1010_v38, 4  ;;  %v2049_v38 = vrot.slane %v6782_v48, 5 }
 0x125   :  { %v2560_v15 = vadd.f32 %v2400_v58, %v1875_v43  ;;  %v2710_v41 = vpop.f32.mrf.mxu3  ;;  %v2233_v58 = vunpack.c.l.b16 %v2040_v42  ;;  %v1026_v17 = vor.u32 %v1025_v16, %v1021_v1 }
 0x126   :  { %v1717_v32 = vpop.f32.mrf.mxu1  ;;  %v1016_v21 = vor.u32 %v1015_v6, %v1012_v56 }
 0x127   :  { %v2870_v23 = vadd.f32 %v2710_v41, %v2560_v15  ;;  %v1876_v63 = vadd.f32 %v1717_v32, %v6363_v44  ;;  %v6833_v42 = vpack.c.b16 %v2234_v7, %v2233_v58  ;;  %v1031_v58 = vrot.slane %v1029_v8, 5 }
 0x128   :  { %v3066_v43 = vpop.f32.mrf.mxu0  ;;  %v1017_v53 = vrot.slane %v1016_v21, 4 }
 0x129   :  { %v6825_v19 = vadd.f32 %v3064_v39, %v2870_v23  ;;  %v1027_v23 = vrot.slane %v1026_v17, 4 }
 0x12b   :  { %8510 = vst [vmem:[#allocation51_spill] sm:$0xff] %v6825_v19 }
 0x12c   :  { %v2402_v13 = vpop.f32.mrf.mxu2 }
 0x12d   :  { %v2561_v15 = vadd.f32 %v2402_v13, %v1876_v63  ;;  %v2712_v41 = vpop.f32.mrf.mxu3  ;;  %v5222_v63 = vrot.slane %v6752_v33, 9  ;;  %v2048_v13 = vrot.slane %v2046_v60, 4  ;;  %v6853_v33 = vld [vmem:[%s8400_s0 + $0x90] sm:$0xf] }
 0x12e   :  { %v1720_v39 = vpop.f32.mrf.mxu1  ;;  %v1037_v8 = vshll.u32 %v6853_v33, 16 }
 0x12f   :  { %v2871_v44 = vadd.f32 %v2712_v41, %v2561_v15  ;;  %v1877_v20 = vadd.f32 %v1720_v39, %v6385_v9  ;;  %v2047_v48 = vsel %vm6295_vm5, %v5222_v63, %v2046_v60  ;;  %v2050_v9 = vsel %vm6295_vm5, %v2048_v13, %v2049_v38 }
 0x130   :  { %v3069_v32 = vpop.f32.mrf.mxu0  ;;  %v1022_v15 = vsel %vm6289_vm4, %v1017_v53, %v1021_v1  ;;  %v1032_v41 = vsel %vm6289_vm4, %v1027_v23, %v1031_v58  ;;  %v1034_v39 = vshrl.u32 %v6853_v33, 16  ;;  %v1047_v60 = vshrl.u32 %v6858_v2, 16 }
 0x131   :  { %1759 = vmatmul.bf16.gmra.mxu1 %v6792_v26  ;;  %2444 = vmatmul.bf16.gmra.mxu2 %v6833_v42  ;;  %v6842_v7 = vadd.f32 %v3066_v43, %v2871_v44  ;;  %v1043_v44 = vshll.u32 %v6858_v2, 16  ;;  %v2235_v63 = vunpack.c.l.b16 %v2047_v48  ;;  %v1552_v13 = vunpack.c.l.b16 %v1022_v15 }
 0x132   :  { %2754 = vmatmul.bf16.gmra.mxu3 %v5925_v62  ;;  %v2236_v62 = vunpack.c.l.b16 %v2050_v9  ;;  %v1553_v38 = vunpack.c.l.b16 %v1032_v41  ;;  %v1036_v1 = vrot.slane %v1034_v39, 4  ;;  %v1039_v23 = vrot.slane %v1037_v8, 5 }
 0x133   :  { %8511 = vst [vmem:[#allocation52_spill] sm:$0xff] %v6842_v7  ;;  %3108 = vmatmul.bf16.gmra.mxu0 %v6836_v28  ;;  %v1045_v58 = vrot.slane %v1043_v44, 5  ;;  %v6879_v7 = vld [vmem:[%s8400_s0 + $0x98] sm:$0x1] }
 0x134   :  { %v2405_v43 = vpop.f32.mrf.mxu2  ;;  %v6883_v41 = vpack.c.b16 %v1553_v38, %v1552_v13  ;;  %v1053_v8 = vshll.u32 %v6879_v7, 16  ;;  %v5926_v13 = vld [vmem:[%s8400_s0 + $0x84] sm:$0xff] }
 0x135   :  { %v2562_v56 = vadd.f32 %v2405_v43, %v1877_v20  ;;  %v2715_v6 = vpop.f32.mrf.mxu3  ;;  %v1049_v43 = vrot.slane %v1047_v60, 4  ;;  %v2056_v60 = vrot.slane %v6831_v36, 5  ;;  %v5688_v36 = vld [vmem:[%s8399_s1 + $0x1a0] sm:$0xff] }
 0x136   :  { %v1722_v16 = vpop.f32.mrf.mxu1  ;;  %3690 = vmatpush.bf16.msra.mxu2 %v5688_v36 }
 0x137   :  { %v2872_v21 = vadd.f32 %v2715_v6, %v2562_v56  ;;  %v1878_v53 = vadd.f32 %v1722_v16, %v6417_v31  ;;  %v2053_v6 = vrot.slane %v6811_v51, 5  ;;  %v1040_v16 = vor.u32 %v1039_v23, %v1036_v1 }
 0x138   :  { %v3071_v17 = vpop.f32.mrf.mxu0  ;;  %v5223_v51 = vrot.slane %v6806_v10, 9  ;;  %v6907_v10 = vld [vmem:[%s8400_s0 + $0xa0] sm:$0xf]  ;;  %v1055_v23 = vrot.slane %v1053_v8, 5 }
 0x139   :  { %v6872_v20 = vadd.f32 %v3069_v32, %v2872_v21  ;;  %v6881_v32 = vpack.c.b16 %v2236_v62, %v2235_v63  ;;  %v1050_v21 = vor.u32 %v1049_v43, %v1045_v58  ;;  %v2055_v44 = vrot.slane %v2053_v6, 4  ;;  %v6893_v63 = vld [vmem:[%s8400_s0 + $0x9c] sm:$0xf] }
 0x13a   :  { %v1041_v1 = vrot.slane %v1040_v16, 4 }
 0x13b   :  { %8512 = vst [vmem:[#allocation53_spill] sm:$0xff] %v6872_v20 }
 0x13c   :  { %v2407_v56 = vpop.f32.mrf.mxu2 }
 0x13d   :  { %v2563_v48 = vadd.f32 %v2407_v56, %v1878_v53  ;;  %v2717_v9 = vpop.f32.mrf.mxu3  ;;  %v1051_v53 = vrot.slane %v1050_v21, 4  ;;  %v2054_v56 = vsel %vm6295_vm5, %v5223_v51, %v2053_v6  ;;  %v1046_v6 = vsel %vm6289_vm4, %v1041_v1, %v1045_v58 }
 0x13e   :  { %v1725_v15 = vpop.f32.mrf.mxu1  ;;  %v2237_v36 = vunpack.c.l.b16 %v2054_v56  ;;  %v1554_v1 = vunpack.c.l.b16 %v1046_v6 }
 0x13f   :  { %v2873_v39 = vadd.f32 %v2717_v9, %v2563_v48  ;;  %v1879_v38 = vadd.f32 %v1725_v15, %v6440_v0  ;;  %v2057_v48 = vsel %vm6295_vm5, %v2055_v44, %v2056_v60  ;;  %v1058_v9 = vshrl.u32 %v6893_v63, 16  ;;  %v5680_v44 = vld [vmem:[%s8399_s1 + $0x160] sm:$0xff] }
 0x140   :  { %v3074_v31 = vpop.f32.mrf.mxu0  ;;  %v1067_v0 = vshll.u32 %v6907_v10, 16  ;;  %v1071_v15 = vshrl.u32 %v6907_v10, 16  ;;  %v1056_v51 = vsel %vm6289_vm4, %v1051_v53, %v1055_v23  ;;  %v5704_v60 = vld [vmem:[%s8399_s1 + $0x220] sm:$0xff]  ;;  %3380 = vmatpush.bf16.msra.mxu1 %v5680_v44 }
 0x141   :  { %1764 = vmatmul.bf16.gmra.mxu1 %v6836_v28  ;;  %2449 = vmatmul.bf16.gmra.mxu2 %v6881_v32  ;;  %v6895_v62 = vadd.f32 %v3071_v17, %v2873_v39  ;;  %v5696_v17 = vld [vmem:[%s8399_s1 + $0x1e0] sm:$0xff]  ;;  %v1555_v53 = vunpack.c.l.b16 %v1056_v51 }
 0x142   :  { %2759 = vmatmul.bf16.gmra.mxu3 %v5926_v13  ;;  %4366 = vmatpush.bf16.msra.mxu0 %v5704_v60  ;;  %v6936_v23 = vld [vmem:[%s8400_s0 + $0xa4] sm:$0x1]  ;;  %v5224_v60 = vrot.slane %v6853_v33, 9 }
 0x143   :  { %8513 = vst [vmem:[#allocation54_spill] sm:$0xff] %v6895_v62  ;;  %3113 = vmatmul.bf16.gmra.mxu0 %v6883_v41  ;;  %4044 = vmatpush.bf16.msra.mxu3 %v5696_v17  ;;  %v1061_v62 = vshll.u32 %v6893_v63, 16  ;;  %v2238_v17 = vunpack.c.l.b16 %v2057_v48  ;;  %v6943_v6 = vpack.c.b16 %v1555_v53, %v1554_v1 }
 0x144   :  { %v2410_v43 = vpop.f32.mrf.mxu2 }
 0x145   :  { %v2564_v39 = vadd.f32 %v2410_v43, %v1879_v38  ;;  %v2720_v13 = vpop.f32.mrf.mxu3  ;;  %v1060_v38 = vrot.slane %v1058_v9, 4  ;;  %v1063_v43 = vrot.slane %v1061_v62, 5  ;;  %v6939_v56 = vpack.c.b16 %v2238_v17, %v2237_v36  ;;  %8516 = vst [vmem:[#allocation57_spill] sm:$0xff] %v6943_v6  ;;  %v5927_v36 = vld [vmem:[%s8400_s0 + $0x90] sm:$0xff]  ;;  %v6964_v17 = vld [vmem:[%s8400_s0 + $0xac] sm:$0xf] }
 0x146   :  { %v1727_v16 = vpop.f32.mrf.mxu1  ;;  %v2060_v62 = vrot.slane %v6858_v2, 5 }
 0x147   :  { %v2874_v21 = vadd.f32 %v2720_v13, %v2564_v39  ;;  %v1069_v39 = vrot.slane %v1067_v0, 5  ;;  %v1073_v13 = vrot.slane %v1071_v15, 4  ;;  %v1880_v20 = vadd.f32 %v1727_v16, %v6485_v34  ;;  %8515 = vst [vmem:[#allocation56_spill] sm:$0xff] %v6939_v56 }
 0x148   :  { %v3076_v8 = vpop.f32.mrf.mxu0  ;;  %v1064_v0 = vor.u32 %v1063_v43, %v1060_v38  ;;  %v2063_v34 = vrot.slane %v6879_v7, 5  ;;  %v6959_v7 = vld [vmem:[%s8400_s0 + $0xa8] sm:$0xf]  ;;  %v2061_v38 = vsel %vm6295_vm5, %v5224_v60, %v2060_v62 }
 0x149   :  { %v6931_v58 = vadd.f32 %v3074_v31, %v2874_v21  ;;  %v1074_v15 = vor.u32 %v1073_v13, %v1069_v39  ;;  %v1077_v31 = vshll.u32 %v6936_v23, 16 }
 0x14b   :  { %8514 = vst [vmem:[#allocation55_spill] sm:$0xff] %v6931_v58  ;;  %v2062_v58 = vrot.slane %v2060_v62, 4  ;;  %v1075_v2 = vrot.slane %v1074_v15, 4  ;;  %v1091_v15 = vshll.u32 %v6964_v17, 16  ;;  %v1095_v62 = vshrl.u32 %v6964_v17, 16 }
 0x14c   :  { %v2412_v19 = vpop.f32.mrf.mxu2 }
 0x14d   :  { %v2565_v48 = vadd.f32 %v2412_v19, %v1880_v20  ;;  %v2722_v9 = vpop.f32.mrf.mxu3  ;;  %v1065_v19 = vrot.slane %v1064_v0, 4  ;;  %v1079_v20 = vrot.slane %v1077_v31, 5  ;;  %v2064_v1 = vsel %vm6295_vm5, %v2062_v58, %v2063_v34 }
 0x14e   :  { %v1730_v21 = vpop.f32.mrf.mxu1  ;;  %v1085_v0 = vshll.u32 %v6959_v7, 16  ;;  %v2240_v60 = vunpack.c.l.b16 %v2064_v1  ;;  %v2067_v1 = vrot.slane %v6907_v10, 5  ;;  %v5928_v10 = vld [vmem:[%s8400_s0 + $0x9c] sm:$0xff] }
 0x14f   :  { %v2875_v51 = vadd.f32 %v2722_v9, %v2565_v48  ;;  %v1881_v33 = vadd.f32 %v1730_v21, %v6507_v35  ;;  %v1070_v35 = vsel %vm6289_vm4, %v1065_v19, %v1069_v39  ;;  %v1080_v53 = vsel %vm6289_vm4, %v1075_v2, %v1079_v20 }
 0x150   :  { %v3079_v44 = vpop.f32.mrf.mxu0  ;;  %v1082_v9 = vshrl.u32 %v6959_v7, 16  ;;  %v1556_v58 = vunpack.c.l.b16 %v1070_v35  ;;  %v1557_v34 = vunpack.c.l.b16 %v1080_v53  ;;  %v1087_v19 = vrot.slane %v1085_v0, 5 }
 0x151   :  { %1769 = vmatmul.bf16.gmra.mxu1 %v6883_v41  ;;  %2454 = vmatmul.bf16.gmra.mxu2 %v6939_v56  ;;  %v6949_v16 = vadd.f32 %v3076_v8, %v2875_v51  ;;  %v2239_v51 = vunpack.c.l.b16 %v2061_v38  ;;  %v1093_v2 = vrot.slane %v1091_v15, 5  ;;  %v1097_v20 = vrot.slane %v1095_v62, 4 }
 0x152   :  { %2764 = vmatmul.bf16.gmra.mxu3 %v5927_v36  ;;  %v1084_v39 = vrot.slane %v1082_v9, 4  ;;  %v6989_v35 = vpack.c.b16 %v1557_v34, %v1556_v58  ;;  %v2069_v15 = vrot.slane %v2067_v1, 4 }
 0x153   :  { %8517 = vst [vmem:[#allocation58_spill] sm:$0xff] %v6949_v16  ;;  %3118 = vmatmul.bf16.gmra.mxu0 %v6943_v6  ;;  %v6986_v38 = vpack.c.b16 %v2240_v60, %v2239_v51  ;;  %v1098_v9 = vor.u32 %v1097_v20, %v1093_v2 }
 0x154   :  { %v2415_v8 = vpop.f32.mrf.mxu2  ;;  %8520 = vst [vmem:[#allocation61_spill] sm:$0xff] %v6989_v35  ;;  %v1088_v53 = vor.u32 %v1087_v19, %v1084_v39  ;;  %v7011_v39 = vld [vmem:[%s8400_s0 + $0xb8] sm:$0xf] }
 0x155   :  { %v2566_v43 = vadd.f32 %v2415_v8, %v1881_v33  ;;  %v2725_v13 = vpop.f32.mrf.mxu3  ;;  %v6984_v8 = vld [vmem:[%s8400_s0 + $0xb0] sm:$0x1]  ;;  %8519 = vst [vmem:[#allocation60_spill] sm:$0xff] %v6986_v38  ;;  %v1099_v60 = vrot.slane %v1098_v9, 4 }
 0x156   :  { %v1732_v48 = vpop.f32.mrf.mxu1  ;;  %v1101_v0 = vshll.u32 %v6984_v8, 16  ;;  %v1089_v51 = vrot.slane %v1088_v53, 4 }
 0x157   :  { %v2876_v31 = vadd.f32 %v2725_v13, %v2566_v43  ;;  %v1882_v33 = vadd.f32 %v1732_v48, %v6539_v45 }
 0x158   :  { %v3081_v21 = vpop.f32.mrf.mxu0  ;;  %v1103_v58 = vrot.slane %v1101_v0, 5 }
 0x159   :  { %v6978_v36 = vadd.f32 %v3079_v44, %v2876_v31  ;;  %v2070_v31 = vrot.slane %v6936_v23, 5 }
 0x15b   :  { %8518 = vst [vmem:[#allocation59_spill] sm:$0xff] %v6978_v36 }
 0x15c   :  { %v2417_v16 = vpop.f32.mrf.mxu2 }
 0x15d   :  { %v2567_v43 = vadd.f32 %v2417_v16, %v1882_v33  ;;  %v2727_v13 = vpop.f32.mrf.mxu3  ;;  %v5225_v16 = vrot.slane %v6893_v63, 9  ;;  %v7006_v63 = vld [vmem:[%s8400_s0 + $0xb4] sm:$0xf] }
 0x15e   :  { %v1735_v44 = vpop.f32.mrf.mxu1  ;;  %v1109_v0 = vshll.u32 %v7006_v63, 16 }
 0x15f   :  { %v2877_v45 = vadd.f32 %v2727_v13, %v2567_v43  ;;  %v1883_v34 = vadd.f32 %v1735_v44, %v6561_v40  ;;  %v2068_v23 = vsel %vm6295_vm5, %v5225_v16, %v2067_v1  ;;  %v2071_v40 = vsel %vm6295_vm5, %v2069_v15, %v2070_v31 }
 0x160   :  { %v3084_v48 = vpop.f32.mrf.mxu0  ;;  %v1094_v43 = vsel %vm6289_vm4, %v1089_v51, %v1093_v2  ;;  %v1104_v13 = vsel %vm6289_vm4, %v1099_v60, %v1103_v58  ;;  %v1106_v44 = vshrl.u32 %v7006_v63, 16  ;;  %v1119_v1 = vshrl.u32 %v7011_v39, 16 }
 0x161   :  { %1774 = vmatmul.bf16.gmra.mxu1 %v6943_v6  ;;  %2459 = vmatmul.bf16.gmra.mxu2 %v6986_v38  ;;  %v6995_v62 = vadd.f32 %v3081_v21, %v2877_v45  ;;  %v1115_v45 = vshll.u32 %v7011_v39, 16  ;;  %v2241_v16 = vunpack.c.l.b16 %v2068_v23  ;;  %v1558_v15 = vunpack.c.l.b16 %v1094_v43 }
 0x162   :  { %2769 = vmatmul.bf16.gmra.mxu3 %v5928_v10  ;;  %v2242_v10 = vunpack.c.l.b16 %v2071_v40  ;;  %v1559_v31 = vunpack.c.l.b16 %v1104_v13  ;;  %v1108_v2 = vrot.slane %v1106_v44, 4  ;;  %v1111_v60 = vrot.slane %v1109_v0, 5 }
 0x163   :  { %8521 = vst [vmem:[#allocation62_spill] sm:$0xff] %v6995_v62  ;;  %3123 = vmatmul.bf16.gmra.mxu0 %v6989_v35  ;;  %v1117_v58 = vrot.slane %v1115_v45, 5  ;;  %v2074_v43 = vrot.slane %v6964_v17, 5  ;;  %v5929_v45 = vld [vmem:[%s8400_s0 + $0xa8] sm:$0xff]  ;;  %v5226_v17 = vrot.slane %v6959_v7, 9 }
 0x164   :  { %v2420_v21 = vpop.f32.mrf.mxu2  ;;  %v7033_v23 = vpack.c.b16 %v2242_v10, %v2241_v16  ;;  %v7035_v40 = vpack.c.b16 %v1559_v31, %v1558_v15  ;;  %v130_v31 = vld [vmem:[%s8400_s0 + $0xc4] sm:$0xf] }
 0x165   :  { %v2568_v19 = vadd.f32 %v2420_v21, %v1883_v34  ;;  %v2730_v20 = vpop.f32.mrf.mxu3  ;;  %v1121_v21 = vrot.slane %v1119_v1, 4  ;;  %v129_v1 = vld [vmem:[%s8400_s0 + $0xc0] sm:$0xf] }
 0x166   :  { %v1737_v33 = vpop.f32.mrf.mxu1  ;;  %8523 = vst [vmem:[#allocation64_spill] sm:$0xff] %v7033_v23  ;;  %v2935_v7 = vshrl.u32 %v129_v1, 16 }
 0x167   :  { %v2878_v53 = vadd.f32 %v2730_v20, %v2568_v19  ;;  %v1884_v51 = vadd.f32 %v1737_v33, %v6594_v50  ;;  %v7031_v20 = vld [vmem:[%s8400_s0 + $0xbc] sm:$0x1]  ;;  %8524 = vst [vmem:[#allocation65_spill] sm:$0xff] %v7035_v40  ;;  %v1112_v33 = vor.u32 %v1111_v60, %v1108_v2  ;;  %v1122_v44 = vor.u32 %v1121_v21, %v1117_v58 }
 0x168   :  { %v3086_v9 = vpop.f32.mrf.mxu0  ;;  %v2938_v21 = vshll.u32 %v129_v1, 16  ;;  %v2937_v1 = vrot.slane %v2935_v7, 4 }
 0x169   :  { %v7025_v34 = vadd.f32 %v3084_v48, %v2878_v53  ;;  %v1125_v53 = vshll.u32 %v7031_v20, 16  ;;  %v1123_v10 = vrot.slane %v1122_v44, 4 }
 0x16b   :  { %8522 = vst [vmem:[#allocation63_spill] sm:$0xff] %v7025_v34  ;;  %v1127_v15 = vrot.slane %v1125_v53, 5 }
 0x16c   :  { %v2422_v19 = vpop.f32.mrf.mxu2 }
 0x16d   :  { %v2569_v62 = vadd.f32 %v2422_v19, %v1884_v51  ;;  %v2732_v36 = vpop.f32.mrf.mxu3 }
 0x16e   :  { %v1740_v48 = vpop.f32.mrf.mxu1 }
 0x16f   :  { %v2879_v13 = vadd.f32 %v2732_v36, %v2569_v62  ;;  %v2076_v36 = vrot.slane %v2074_v43, 4  ;;  %v2077_v62 = vrot.slane %v6984_v8, 5  ;;  %v1885_v16 = vadd.f32 %v1740_v48, %v6617_v24 }
 0x170   :  { %v3089_v50 = vpop.f32.mrf.mxu0  ;;  %v2075_v8 = vsel %vm6295_vm5, %v5226_v17, %v2074_v43  ;;  %v2944_v24 = vshll.u32 %v130_v31, 16  ;;  %v2948_v48 = vshrl.u32 %v130_v31, 16 }
 0x171   :  { %1779 = vmatmul.bf16.gmra.mxu1 %v6989_v35  ;;  %2464 = vmatmul.bf16.gmra.mxu2 %v7033_v23  ;;  %v7041_v0 = vadd.f32 %v3086_v9, %v2879_v13  ;;  %v1113_v9 = vrot.slane %v1112_v33, 4  ;;  %v2078_v13 = vsel %vm6295_vm5, %v2076_v36, %v2077_v62  ;;  %v131_v62 = vld [vmem:[%s8400_s0 + $0xc8] sm:$0x1] }
 0x172   :  { %2774 = vmatmul.bf16.gmra.mxu3 %v5929_v45  ;;  %v1128_v45 = vsel %vm6289_vm4, %v1123_v10, %v1127_v15  ;;  %v7064_v43 = vrot.slane %v2944_v24, 5  ;;  %v2950_v17 = vrot.slane %v2948_v48, 4  ;;  %v2081_v10 = vrot.slane %v7011_v39, 5 }
 0x173   :  { %8525 = vst [vmem:[#allocation66_spill] sm:$0xff] %v7041_v0  ;;  %3128 = vmatmul.bf16.gmra.mxu0 %v7035_v40  ;;  %v1118_v53 = vsel %vm6289_vm4, %v1113_v9, %v1117_v58  ;;  %v2940_v0 = vrot.slane %v2938_v21, 5  ;;  %v1561_v23 = vunpack.c.l.b16 %v1128_v45  ;;  %v5227_v24 = vrot.slane %v7006_v63, 9  ;;  %v5930_v63 = vld [vmem:[%s8400_s0 + $0xb4] sm:$0xff] }
 0x174   :  { %v2425_v2 = vpop.f32.mrf.mxu2  ;;  %v1560_v34 = vunpack.c.l.b16 %v1118_v53  ;;  %v2951_v21 = vor.u32 %v2950_v17, %v7064_v43  ;;  %v2083_v39 = vrot.slane %v2081_v10, 4 }
 0x175   :  { %v2570_v51 = vadd.f32 %v2425_v2, %v1885_v16  ;;  %v2735_v60 = vpop.f32.mrf.mxu3  ;;  %v2243_v16 = vunpack.c.l.b16 %v2075_v8  ;;  %v2244_v2 = vunpack.c.l.b16 %v2078_v13  ;;  %v2941_v15 = vor.u32 %v2940_v0, %v2937_v1  ;;  %v7090_v0 = vld [vmem:[%s8400_s0 + $0xdc] sm:$0xf]  ;;  %v7110_v1 = vld [vmem:[%s8400_s0 + $0xe4] sm:$0xf] }
 0x176   :  { %v1742_v19 = vpop.f32.mrf.mxu1  ;;  %v7073_v7 = vpack.c.b16 %v1561_v23, %v1560_v34  ;;  %v2954_v8 = vshll.u32 %v131_v62, 16  ;;  %v2084_v34 = vrot.slane %v7031_v20, 5  ;;  %v1143_v62 = vshrl.u32 %v7090_v0, 16 }
 0x177   :  { %v2880_v33 = vadd.f32 %v2735_v60, %v2570_v51  ;;  %v1886_v36 = vadd.f32 %v1742_v19, %v6653_v54  ;;  %v7070_v51 = vpack.c.b16 %v2244_v2, %v2243_v16  ;;  %v7079_v19 = vld [vmem:[%s8400_s0 + $0xd8] sm:$0xf]  ;;  %v2942_v23 = vrot.slane %v2941_v15, 4 }
 0x178   :  { %v3091_v44 = vpop.f32.mrf.mxu0  ;;  %v1130_v45 = vshrl.u32 %v7079_v19, 16  ;;  %v1133_v20 = vshll.u32 %v7079_v19, 16  ;;  %v5687_v16 = vld [vmem:[%s8399_s1 + $0x198] sm:$0xff]  ;;  %v2085_v15 = vsel %vm6295_vm5, %v2083_v39, %v2084_v34  ;;  %v1157_v39 = vshll.u32 %v7110_v1, 16 }
 0x179   :  { %8526 = vst [vmem:[#allocation67_spill] sm:$0xff] %v7070_v51  ;;  %v7082_v48 = vadd.f32 %v3089_v50, %v2880_v33  ;;  %v2952_v50 = vrot.slane %v2951_v21, 4  ;;  %v2956_v33 = vrot.slane %v2954_v8, 5  ;;  %3691 = vmatpush.bf16.msra.mxu2 %v5687_v16 }
 0x17a   :  { %v1135_v16 = vrot.slane %v1133_v20, 5  ;;  %v1159_v35 = vrot.slane %v1157_v39, 5 }
 0x17b   :  { %8527 = vst [vmem:[#allocation68_spill] sm:$0xff] %v7082_v48  ;;  %v2957_v8 = vsel %vm6289_vm4, %v2952_v50, %v2956_v33  ;;  %v5703_v50 = vld [vmem:[%s8399_s1 + $0x218] sm:$0xff] }
 0x17c   :  { %v2427_v31 = vpop.f32.mrf.mxu2  ;;  %4367 = vmatpush.bf16.msra.mxu0 %v5703_v50 }
 0x17d   :  { %v2571_v58 = vadd.f32 %v2427_v31, %v1886_v36  ;;  %v2737_v9 = vpop.f32.mrf.mxu3  ;;  %v1139_v36 = vshll.u32 %v7090_v0, 16  ;;  %v7117_v31 = vld [vmem:[%s8400_s0 + $0xe8] sm:$0xf] }
 0x17e   :  { %v1745_v60 = vpop.f32.mrf.mxu1  ;;  %v1163_v34 = vshll.u32 %v7117_v31, 16 }
 0x17f   :  { %v2881_v13 = vadd.f32 %v2737_v9, %v2571_v58  ;;  %v1887_v2 = vadd.f32 %v1745_v60, %v6672_v59  ;;  %v2082_v59 = vsel %vm6295_vm5, %v5227_v24, %v2081_v10  ;;  %v2947_v60 = vsel %vm6289_vm4, %v2942_v23, %v7064_v43  ;;  %v5679_v23 = vld [vmem:[%s8399_s1 + $0x158] sm:$0xff] }
 0x180   :  { %v3094_v54 = vpop.f32.mrf.mxu0  ;;  %v1154_v10 = vshrl.u32 %v7110_v1, 16  ;;  %v1167_v43 = vshrl.u32 %v7117_v31, 16  ;;  %v1141_v33 = vrot.slane %v1139_v36, 5  ;;  %v2245_v20 = vunpack.c.l.b16 %v2082_v59  ;;  %3381 = vmatpush.bf16.msra.mxu1 %v5679_v23  ;;  %v7151_v59 = vld [vmem:[%s8400_s0 + $0xec] sm:$0x1] }
 0x181   :  { %1784 = vmatmul.bf16.gmra.mxu1 %v7035_v40  ;;  %2469 = vmatmul.bf16.gmra.mxu2 %v7070_v51  ;;  %v7092_v53 = vadd.f32 %v3091_v44, %v2881_v13  ;;  %v5695_v44 = vld [vmem:[%s8399_s1 + $0x1d8] sm:$0xff]  ;;  %v7131_v13 = vld [vmem:[%s8400_s0 + $0xe0] sm:$0x1]  ;;  %v1165_v38 = vrot.slane %v1163_v34, 5  ;;  %v1173_v34 = vshll.u32 %v7151_v59, 16 }
 0x182   :  { %2779 = vmatmul.bf16.gmra.mxu3 %v5930_v63  ;;  %v1132_v63 = vrot.slane %v1130_v45, 4  ;;  %v1145_v45 = vrot.slane %v1143_v62, 4  ;;  %v1149_v48 = vshll.u32 %v7131_v13, 16  ;;  %v1156_v51 = vrot.slane %v1154_v10, 4 }
 0x183   :  { %8528 = vst [vmem:[#allocation69_spill] sm:$0xff] %v7092_v53  ;;  %3133 = vmatmul.bf16.gmra.mxu0 %v7073_v7  ;;  %4045 = vmatpush.bf16.msra.mxu3 %v5695_v44  ;;  %v1169_v6 = vrot.slane %v1167_v43, 4  ;;  %v2088_v62 = vrot.slane %v7090_v0, 5  ;;  %v2091_v23 = vrot.slane %v7131_v13, 5  ;;  %v1175_v50 = vrot.slane %v1173_v34, 5 }
 0x184   :  { %v2430_v17 = vpop.f32.mrf.mxu2  ;;  %v1136_v53 = vor.u32 %v1135_v16, %v1132_v63  ;;  %v1146_v36 = vor.u32 %v1145_v45, %v1141_v33  ;;  %v1151_v16 = vrot.slane %v1149_v48, 5  ;;  %v7168_v48 = vld [vmem:[%s8400_s0 + $0xf0] sm:$0xf] }
 0x185   :  { %v2572_v58 = vadd.f32 %v2430_v17, %v1887_v2  ;;  %v2740_v9 = vpop.f32.mrf.mxu3  ;;  %v2246_v2 = vunpack.c.l.b16 %v2085_v15  ;;  %v2999_v17 = vunpack.c.l.b16 %v2947_v60  ;;  %v1170_v39 = vor.u32 %v1169_v6, %v1165_v38 }
 0x186   :  { %v1747_v21 = vpop.f32.mrf.mxu1  ;;  %v1137_v63 = vrot.slane %v1136_v53, 4  ;;  %v1147_v43 = vrot.slane %v1146_v36, 4  ;;  %v1181_v36 = vshll.u32 %v7168_v48, 16 }
 0x187   :  { %v2882_v24 = vadd.f32 %v2740_v9, %v2572_v58  ;;  %v3000_v9 = vunpack.c.l.b16 %v2957_v8  ;;  %v1888_v40 = vadd.f32 %v1747_v21, %v6710_v4  ;;  %v7153_v60 = vpack.c.b16 %v2246_v2, %v2245_v20  ;;  %v5616_v4 = vld [vmem:[%s8400_s0 + $0xc0] sm:$0xff] }
 0x188   :  { %v3096_v44 = vpop.f32.mrf.mxu0  ;;  %v1142_v6 = vsel %vm6289_vm4, %v1137_v63, %v1141_v33  ;;  %v1171_v13 = vrot.slane %v1170_v39, 4  ;;  %v1178_v2 = vshrl.u32 %v7168_v48, 16 }
 0x189   :  { %v7143_v58 = vadd.f32 %v3094_v54, %v2882_v24  ;;  %v7158_v21 = vpack.c.b16 %v3000_v9, %v2999_v17  ;;  %v1160_v24 = vor.u32 %v1159_v35, %v1156_v51  ;;  %v7178_v35 = vld [vmem:[%s8400_s0 + $0xf4] sm:$0xf]  ;;  %v1562_v63 = vunpack.c.l.b16 %v1142_v6  ;;  %v7200_v6 = vld [vmem:[%s8400_s0 + $0xf8] sm:$0x1] }
 0x18a   :  { %v1180_v34 = vrot.slane %v1178_v2, 4 }
 0x18c   :  { %v2432_v56 = vpop.f32.mrf.mxu2 }
 0x18d   :  { %v2573_v54 = vadd.f32 %v2432_v56, %v1888_v40  ;;  %v2742_v15 = vpop.f32.mrf.mxu3  ;;  %v5228_v56 = vrot.slane %v7079_v19, 9  ;;  %v2090_v40 = vrot.slane %v2088_v62, 4  ;;  %v1161_v19 = vrot.slane %v1160_v24, 4 }
 0x18e   :  { %v1750_v8 = vpop.f32.mrf.mxu1 }
 0x18f   :  { %v2883_v10 = vadd.f32 %v2742_v15, %v2573_v54  ;;  %v1889_v51 = vadd.f32 %v1750_v8, %v6738_v12  ;;  %v2089_v20 = vsel %vm6295_vm5, %v5228_v56, %v2088_v62  ;;  %v2092_v33 = vsel %vm6295_vm5, %v2090_v40, %v2091_v23 }
 0x190   :  { %v3099_v0 = vpop.f32.mrf.mxu0  ;;  %v1187_v12 = vshll.u32 %v7178_v35, 16  ;;  %v1191_v54 = vshrl.u32 %v7178_v35, 16  ;;  %v1166_v62 = vsel %vm6289_vm4, %v1161_v19, %v1165_v38  ;;  %v2247_v24 = vunpack.c.l.b16 %v2089_v20 }
 0x191   :  { %1789 = vmatmul.bf16.gmra.mxu1 %v7073_v7  ;;  %2474 = vmatmul.bf16.gmra.mxu2 %v7153_v60  ;;  %v7170_v53 = vadd.f32 %v3096_v44, %v2883_v10  ;;  %v1152_v44 = vsel %vm6289_vm4, %v1147_v43, %v1151_v16  ;;  %v1176_v16 = vsel %vm6289_vm4, %v1171_v13, %v1175_v50  ;;  %v2248_v39 = vunpack.c.l.b16 %v2092_v33 }
 0x192   :  { %2784 = vmatmul.bf16.gmra.mxu3 %v5616_v4  ;;  %v1563_v10 = vunpack.c.l.b16 %v1152_v44  ;;  %v1183_v43 = vrot.slane %v1181_v36, 5  ;;  %v1189_v56 = vrot.slane %v1187_v12, 5  ;;  %v1193_v40 = vrot.slane %v1191_v54, 4 }
 0x193   :  { %3138 = vmatmul.bf16.gmra.mxu0 %v7158_v21  ;;  %v2295_v50 = vpack.c.b16 %v2248_v39, %v2247_v24  ;;  %v2095_v44 = vrot.slane %v7117_v31, 5 }
 0x194   :  { %v2435_v45 = vpop.f32.mrf.mxu2  ;;  %v1610_v13 = vpack.c.b16 %v1563_v10, %v1562_v63  ;;  %v1184_v2 = vor.u32 %v1183_v43, %v1180_v34  ;;  %v5931_v10 = vld [vmem:[%s8400_s0 + $0xe4] sm:$0xff] }
 0x195   :  { %v2574_v17 = vadd.f32 %v2435_v45, %v1889_v51  ;;  %v2745_v9 = vpop.f32.mrf.mxu3  ;;  %v1564_v51 = vunpack.c.l.b16 %v1166_v62  ;;  %v1565_v45 = vunpack.c.l.b16 %v1176_v16  ;;  %v2097_v62 = vrot.slane %v2095_v44, 4 }
 0x196   :  { %v1752_v15 = vpop.f32.mrf.mxu1 }
 0x197   :  { %v2884_v8 = vadd.f32 %v2745_v9, %v2574_v17  ;;  %v1890_v38 = vadd.f32 %v1752_v15, %v6773_v52  ;;  %v1194_v17 = vor.u32 %v1193_v40, %v1189_v56  ;;  %v1611_v36 = vpack.c.b16 %v1565_v45, %v1564_v51 }
 0x198   :  { %v3101_v4 = vpop.f32.mrf.mxu0  ;;  %v2098_v52 = vrot.slane %v7151_v59, 5  ;;  %v1185_v15 = vrot.slane %v1184_v2, 4  ;;  %v7221_v59 = vld [vmem:[%s8400_s0 + $0x100] sm:$0xf] }
 0x199   :  { %v7195_v23 = vadd.f32 %v3099_v0, %v2884_v8  ;;  %v1197_v0 = vshll.u32 %v7200_v6, 16  ;;  %v5229_v8 = vrot.slane %v7110_v1, 9  ;;  %v1195_v63 = vrot.slane %v1194_v17, 4  ;;  %v7216_v1 = vld [vmem:[%s8400_s0 + $0xfc] sm:$0xf] }
 0x19a   :  { %v2099_v40 = vsel %vm6295_vm5, %v2097_v62, %v2098_v52 }
 0x19b   :  { %v1199_v31 = vrot.slane %v1197_v0, 5  ;;  %v2096_v39 = vsel %vm6295_vm5, %v5229_v8, %v2095_v44  ;;  %v2250_v2 = vunpack.c.l.b16 %v2099_v40 }
 0x19c   :  { %v2437_v19 = vpop.f32.mrf.mxu2 }
 0x19d   :  { %v2575_v20 = vadd.f32 %v2437_v19, %v1890_v38  ;;  %v2747_v33 = vpop.f32.mrf.mxu3  ;;  %v1200_v51 = vsel %vm6289_vm4, %v1195_v63, %v1199_v31  ;;  %v1202_v38 = vshrl.u32 %v7216_v1, 16  ;;  %v1205_v19 = vshll.u32 %v7216_v1, 16 }
 0x19e   :  { %v1755_v9 = vpop.f32.mrf.mxu1  ;;  %v1567_v0 = vunpack.c.l.b16 %v1200_v51  ;;  %v5230_v51 = vrot.slane %v7168_v48, 9  ;;  %v7262_v48 = vld [vmem:[%s8400_s0 + $0x108] sm:$0xf] }
 0x19f   :  { %v2885_v12 = vadd.f32 %v2747_v33, %v2575_v20  ;;  %v1891_v24 = vadd.f32 %v1755_v9, %v6331_v22  ;;  %v1190_v22 = vsel %vm6289_vm4, %v1185_v15, %v1189_v56  ;;  %v2249_v33 = vunpack.c.l.b16 %v2096_v39  ;;  %v7241_v15 = vld [vmem:[%s8400_s0 + $0x104] sm:$0x1] }
 0x1a0   :  { %v3104_v54 = vpop.f32.mrf.mxu0  ;;  %v1566_v17 = vunpack.c.l.b16 %v1190_v22  ;;  %v1204_v56 = vrot.slane %v1202_v38, 4  ;;  %v1221_v40 = vshll.u32 %v7241_v15, 16 }
 0x1a1   :  { %1794 = vmatmul.bf16.gmra.mxu1 %v1610_v13  ;;  %2479 = vmatmul.bf16.gmra.mxu2 %v2295_v50  ;;  %v7207_v16 = vadd.f32 %v3101_v4, %v2885_v12  ;;  %v1211_v13 = vshll.u32 %v7221_v59, 16  ;;  %v1215_v50 = vshrl.u32 %v7221_v59, 16  ;;  %v1207_v12 = vrot.slane %v1205_v19, 5 }
 0x1a2   :  { %2789 = vmatmul.bf16.gmra.mxu3 %v5931_v10  ;;  %v7246_v39 = vpack.c.b16 %v1567_v0, %v1566_v17  ;;  %v2105_v19 = vrot.slane %v7200_v6, 5 }
 0x1a3   :  { %3143 = vmatmul.bf16.gmra.mxu0 %v1611_v36  ;;  %v1213_v8 = vrot.slane %v1211_v13, 5  ;;  %v1217_v62 = vrot.slane %v1215_v50, 4 }
 0x1a4   :  { %v2440_v4 = vpop.f32.mrf.mxu2 }
 0x1a5   :  { %v2576_v34 = vadd.f32 %v2440_v4, %v1891_v24  ;;  %v2750_v43 = vpop.f32.mrf.mxu3  ;;  %v7243_v24 = vpack.c.b16 %v2250_v2, %v2249_v33  ;;  %v2102_v4 = vrot.slane %v7178_v35, 5  ;;  %v5932_v35 = vld [vmem:[%s8400_s0 + $0xf0] sm:$0xff]  ;;  %v7267_v33 = vld [vmem:[%s8400_s0 + $0x10c] sm:$0xf] }
 0x1a6   :  { %v1757_v45 = vpop.f32.mrf.mxu1 }
 0x1a7   :  { %v2886_v44 = vadd.f32 %v2750_v43, %v2576_v34  ;;  %v1892_v52 = vadd.f32 %v1757_v45, %v6353_v27  ;;  %v1208_v34 = vor.u32 %v1207_v12, %v1204_v56  ;;  %v1218_v43 = vor.u32 %v1217_v62, %v1213_v8 }
 0x1a8   :  { %v3106_v20 = vpop.f32.mrf.mxu0  ;;  %v2104_v45 = vrot.slane %v2102_v4, 4  ;;  %v2103_v6 = vsel %vm6295_vm5, %v5230_v51, %v2102_v4  ;;  %v1226_v62 = vshrl.u32 %v7262_v48, 16  ;;  %v1239_v4 = vshrl.u32 %v7267_v33, 16 }
 0x1a9   :  { %v7235_v9 = vadd.f32 %v3104_v54, %v2886_v44  ;;  %v1209_v13 = vrot.slane %v1208_v34, 4  ;;  %v1219_v50 = vrot.slane %v1218_v43, 4  ;;  %v1223_v44 = vrot.slane %v1221_v40, 5 }
 0x1ab   :  { %v1214_v56 = vsel %vm6289_vm4, %v1209_v13, %v1213_v8  ;;  %v1224_v12 = vsel %vm6289_vm4, %v1219_v50, %v1223_v44  ;;  %v1228_v8 = vrot.slane %v1226_v62, 4  ;;  %v2109_v50 = vrot.slane %v7221_v59, 5  ;;  %v7288_v44 = vld [vmem:[%s8400_s0 + $0x110] sm:$0x1] }
 0x1ac   :  { %v2442_v63 = vpop.f32.mrf.mxu2  ;;  %v1568_v40 = vunpack.c.l.b16 %v1214_v56  ;;  %v1245_v56 = vshll.u32 %v7288_v44, 16  ;;  %v5231_v59 = vrot.slane %v7216_v1, 9  ;;  %v2112_v62 = vrot.slane %v7241_v15, 5  ;;  %v5686_v1 = vld [vmem:[%s8399_s1 + $0x190] sm:$0xff]  ;;  %v7316_v15 = vld [vmem:[%s8400_s0 + $0x118] sm:$0xf] }
 0x1ad   :  { %v2577_v31 = vadd.f32 %v2442_v63, %v1892_v52  ;;  %v2752_v10 = vpop.f32.mrf.mxu3  ;;  %3692 = vmatpush.bf16.msra.mxu2 %v5686_v1 }
 0x1ae   :  { %v1760_v54 = vpop.f32.mrf.mxu1 }
 0x1af   :  { %v2887_v27 = vadd.f32 %v2752_v10, %v2577_v31  ;;  %v1229_v31 = vshll.u32 %v7262_v48, 16  ;;  %v1235_v10 = vshll.u32 %v7267_v33, 16 }
 0x1b0   :  { %v3109_v22 = vpop.f32.mrf.mxu0 }
 0x1b1   :  { %1799 = vmatmul.bf16.gmra.mxu1 %v1611_v36  ;;  %2484 = vmatmul.bf16.gmra.mxu2 %v7243_v24  ;;  %v7251_v38 = vadd.f32 %v3106_v20, %v2887_v27  ;;  %v1893_v36 = vadd.f32 %v1760_v54, %v6381_v5  ;;  %v2106_v5 = vsel %vm6295_vm5, %v2104_v45, %v2105_v19  ;;  %v2251_v54 = vunpack.c.l.b16 %v2103_v6 }
 0x1b2   :  { %2794 = vmatmul.bf16.gmra.mxu3 %v5932_v35  ;;  %v2252_v34 = vunpack.c.l.b16 %v2106_v5  ;;  %v1569_v27 = vunpack.c.l.b16 %v1224_v12  ;;  %v1231_v45 = vrot.slane %v1229_v31, 5  ;;  %v1237_v35 = vrot.slane %v1235_v10, 5  ;;  %v5933_v10 = vld [vmem:[%s8400_s0 + $0xfc] sm:$0xff] }
 0x1b3   :  { %3148 = vmatmul.bf16.gmra.mxu0 %v7246_v39  ;;  %v1241_v19 = vrot.slane %v1239_v4, 4  ;;  %v2111_v12 = vrot.slane %v2109_v50, 4 }
 0x1b4   :  { %v2445_v20 = vpop.f32.mrf.mxu2 }
 0x1b5   :  { %v2578_v2 = vadd.f32 %v2445_v20, %v1893_v36  ;;  %v2755_v17 = vpop.f32.mrf.mxu3  ;;  %v1242_v5 = vor.u32 %v1241_v19, %v1237_v35 }
 0x1b6   :  { %v1762_v0 = vpop.f32.mrf.mxu1 }
 0x1b7   :  { %v2888_v52 = vadd.f32 %v2755_v17, %v2578_v2  ;;  %v1894_v51 = vadd.f32 %v1762_v0, %v6415_v29  ;;  %v7292_v17 = vpack.c.b16 %v1569_v27, %v1568_v40  ;;  %v1232_v0 = vor.u32 %v1231_v45, %v1228_v8 }
 0x1b8   :  { %v3111_v63 = vpop.f32.mrf.mxu0  ;;  %v1247_v40 = vrot.slane %v1245_v56, 5  ;;  %v2110_v8 = vsel %vm6295_vm5, %v5231_v59, %v2109_v50  ;;  %v5678_v56 = vld [vmem:[%s8399_s1 + $0x150] sm:$0xff] }
 0x1b9   :  { %v7281_v43 = vadd.f32 %v3109_v22, %v2888_v52  ;;  %v7290_v22 = vpack.c.b16 %v2252_v34, %v2251_v54  ;;  %v7302_v52 = vld [vmem:[%s8400_s0 + $0x114] sm:$0xf]  ;;  %v1233_v54 = vrot.slane %v1232_v0, 4  ;;  %v1243_v34 = vrot.slane %v1242_v5, 4  ;;  %3382 = vmatpush.bf16.msra.mxu1 %v5678_v56 }
 0x1ba   :  { %v1250_v45 = vshrl.u32 %v7302_v52, 16  ;;  %v5702_v59 = vld [vmem:[%s8399_s1 + $0x210] sm:$0xff]  ;;  %v5232_v56 = vrot.slane %v7262_v48, 9 }
 0x1bb   :  { %v1238_v50 = vsel %vm6289_vm4, %v1233_v54, %v1237_v35  ;;  %v1248_v5 = vsel %vm6289_vm4, %v1243_v34, %v1247_v40  ;;  %4368 = vmatpush.bf16.msra.mxu0 %v5702_v59  ;;  %v7345_v40 = vld [vmem:[%s8400_s0 + $0x11c] sm:$0x1] }
 0x1bc   :  { %v2447_v13 = vpop.f32.mrf.mxu2  ;;  %v1570_v54 = vunpack.c.l.b16 %v1238_v50  ;;  %v1571_v34 = vunpack.c.l.b16 %v1248_v5 }
 0x1bd   :  { %v2579_v36 = vadd.f32 %v2447_v13, %v1894_v51  ;;  %v2757_v20 = vpop.f32.mrf.mxu3  ;;  %v2113_v51 = vsel %vm6295_vm5, %v2111_v12, %v2112_v62  ;;  %v2253_v12 = vunpack.c.l.b16 %v2110_v8 }
 0x1be   :  { %v1765_v2 = vpop.f32.mrf.mxu1  ;;  %v2254_v62 = vunpack.c.l.b16 %v2113_v51  ;;  %v2116_v51 = vrot.slane %v7267_v33, 5 }
 0x1bf   :  { %v2889_v6 = vadd.f32 %v2757_v20, %v2579_v36  ;;  %v1895_v4 = vadd.f32 %v1765_v2, %v6436_v61  ;;  %v1253_v36 = vshll.u32 %v7302_v52, 16  ;;  %v1259_v61 = vshll.u32 %v7316_v15, 16 }
 0x1c0   :  { %v3114_v29 = vpop.f32.mrf.mxu0  ;;  %v1263_v20 = vshrl.u32 %v7316_v15, 16  ;;  %v7348_v8 = vpack.c.b16 %v2254_v62, %v2253_v12  ;;  %v2118_v59 = vrot.slane %v2116_v51, 4 }
 0x1c1   :  { %1804 = vmatmul.bf16.gmra.mxu1 %v7246_v39  ;;  %2489 = vmatmul.bf16.gmra.mxu2 %v7290_v22  ;;  %v7304_v31 = vadd.f32 %v3111_v63, %v2889_v6  ;;  %v5694_v63 = vld [vmem:[%s8399_s1 + $0x1d0] sm:$0xff]  ;;  %v1255_v1 = vrot.slane %v1253_v36, 5 }
 0x1c2   :  { %2799 = vmatmul.bf16.gmra.mxu3 %v5933_v10  ;;  %v1252_v10 = vrot.slane %v1250_v45, 4 }
 0x1c3   :  { %3153 = vmatmul.bf16.gmra.mxu0 %v7292_v17  ;;  %4046 = vmatpush.bf16.msra.mxu3 %v5694_v63  ;;  %v1261_v63 = vrot.slane %v1259_v61, 5 }
 0x1c4   :  { %v2450_v27 = vpop.f32.mrf.mxu2  ;;  %v1256_v36 = vor.u32 %v1255_v1, %v1252_v10  ;;  %v5934_v10 = vld [vmem:[%s8400_s0 + $0x108] sm:$0xff]  ;;  %v7373_v1 = vld [vmem:[%s8400_s0 + $0x124] sm:$0xf] }
 0x1c5   :  { %v2580_v19 = vadd.f32 %v2450_v27, %v1895_v4  ;;  %v2760_v13 = vpop.f32.mrf.mxu3  ;;  %v1265_v4 = vrot.slane %v1263_v20, 4 }
 0x1c6   :  { %v1767_v2 = vpop.f32.mrf.mxu1  ;;  %v1257_v33 = vrot.slane %v1256_v36, 4 }
 0x1c7   :  { %v2890_v6 = vadd.f32 %v2760_v13, %v2580_v19  ;;  %v1896_v27 = vadd.f32 %v1767_v2, %v6479_v25  ;;  %v1266_v61 = vor.u32 %v1265_v4, %v1261_v63  ;;  %v2119_v25 = vrot.slane %v7288_v44, 5  ;;  %v7368_v44 = vld [vmem:[%s8400_s0 + $0x120] sm:$0xf] }
 0x1c8   :  { %v3116_v0 = vpop.f32.mrf.mxu0  ;;  %v2117_v4 = vsel %vm6295_vm5, %v5232_v56, %v2116_v51  ;;  %v1277_v36 = vshll.u32 %v7368_v44, 16  ;;  %v1287_v51 = vshrl.u32 %v7373_v1, 16 }
 0x1c9   :  { %v7340_v35 = vadd.f32 %v3114_v29, %v2890_v6  ;;  %v1269_v29 = vshll.u32 %v7345_v40, 16  ;;  %v7352_v6 = vpack.c.b16 %v1571_v34, %v1570_v54  ;;  %v1267_v2 = vrot.slane %v1266_v61, 4 }
 0x1ca   :  { %v1283_v61 = vshll.u32 %v7373_v1, 16 }
 0x1cb   :  { %v1271_v12 = vrot.slane %v1269_v29, 5 }
 0x1cc   :  { %v2452_v19 = vpop.f32.mrf.mxu2 }
 0x1cd   :  { %v2581_v45 = vadd.f32 %v2452_v19, %v1896_v27  ;;  %v2762_v13 = vpop.f32.mrf.mxu3  ;;  %v2120_v27 = vsel %vm6295_vm5, %v2118_v59, %v2119_v25  ;;  %v1272_v19 = vsel %vm6289_vm4, %v1267_v2, %v1271_v12  ;;  %v1285_v2 = vrot.slane %v1283_v61, 5 }
 0x1ce   :  { %v1770_v20 = vpop.f32.mrf.mxu1  ;;  %v2256_v56 = vunpack.c.l.b16 %v2120_v27  ;;  %v1573_v25 = vunpack.c.l.b16 %v1272_v19  ;;  %v1289_v12 = vrot.slane %v1287_v51, 4  ;;  %v2123_v27 = vrot.slane %v7316_v15, 5  ;;  %v5935_v15 = vld [vmem:[%s8400_s0 + $0x114] sm:$0xff] }
 0x1cf   :  { %v2891_v50 = vadd.f32 %v2762_v13, %v2581_v45  ;;  %v1897_v48 = vadd.f32 %v1770_v20, %v6502_v57  ;;  %v1262_v57 = vsel %vm6289_vm4, %v1257_v33, %v1261_v63  ;;  %v1274_v13 = vshrl.u32 %v7368_v44, 16 }
 0x1d0   :  { %v3119_v5 = vpop.f32.mrf.mxu0  ;;  %v1572_v59 = vunpack.c.l.b16 %v1262_v57  ;;  %v1279_v33 = vrot.slane %v1277_v36, 5  ;;  %v2125_v61 = vrot.slane %v2123_v27, 4 }
 0x1d1   :  { %1809 = vmatmul.bf16.gmra.mxu1 %v7292_v17  ;;  %2494 = vmatmul.bf16.gmra.mxu2 %v7348_v8  ;;  %v7358_v62 = vadd.f32 %v3116_v0, %v2891_v50  ;;  %v2255_v50 = vunpack.c.l.b16 %v2117_v4  ;;  %v1276_v63 = vrot.slane %v1274_v13, 4  ;;  %v1290_v13 = vor.u32 %v1289_v12, %v1285_v2 }
 0x1d2   :  { %2804 = vmatmul.bf16.gmra.mxu3 %v5934_v10  ;;  %v7398_v57 = vpack.c.b16 %v1573_v25, %v1572_v59 }
 0x1d3   :  { %8529 = vst [vmem:[#allocation70_spill] sm:$0xff] %v7358_v62  ;;  %3158 = vmatmul.bf16.gmra.mxu0 %v7352_v6  ;;  %v7395_v4 = vpack.c.b16 %v2256_v56, %v2255_v50  ;;  %v1280_v19 = vor.u32 %v1279_v33, %v1276_v63  ;;  %v1291_v56 = vrot.slane %v1290_v13, 4  ;;  %v7420_v63 = vld [vmem:[%s8400_s0 + $0x130] sm:$0xf] }
 0x1d4   :  { %v2455_v0 = vpop.f32.mrf.mxu2 }
 0x1d5   :  { %v2582_v54 = vadd.f32 %v2455_v0, %v1897_v48  ;;  %v2765_v34 = vpop.f32.mrf.mxu3  ;;  %v7393_v0 = vld [vmem:[%s8400_s0 + $0x128] sm:$0x1]  ;;  %v1281_v50 = vrot.slane %v1280_v19, 4 }
 0x1d6   :  { %v1772_v45 = vpop.f32.mrf.mxu1  ;;  %v1293_v36 = vshll.u32 %v7393_v0, 16 }
 0x1d7   :  { %v2892_v29 = vadd.f32 %v2765_v34, %v2582_v54  ;;  %v1898_v48 = vadd.f32 %v1772_v45, %v6529_v30 }
 0x1d8   :  { %v3121_v20 = vpop.f32.mrf.mxu0  ;;  %v1295_v59 = vrot.slane %v1293_v36, 5 }
 0x1d9   :  { %v7387_v10 = vadd.f32 %v3119_v5, %v2892_v29  ;;  %v2126_v29 = vrot.slane %v7345_v40, 5 }
 0x1db   :  { %8530 = vst [vmem:[#allocation71_spill] sm:$0xff] %v7387_v10 }
 0x1dc   :  { %v2457_v62 = vpop.f32.mrf.mxu2 }
 0x1dd   :  { %v2583_v54 = vadd.f32 %v2457_v62, %v1898_v48  ;;  %v2767_v34 = vpop.f32.mrf.mxu3  ;;  %v5233_v62 = vrot.slane %v7302_v52, 9  ;;  %v7415_v52 = vld [vmem:[%s8400_s0 + $0x12c] sm:$0xf] }
 0x1de   :  { %v1775_v5 = vpop.f32.mrf.mxu1  ;;  %v1301_v36 = vshll.u32 %v7415_v52, 16 }
 0x1df   :  { %v2893_v30 = vadd.f32 %v2767_v34, %v2583_v54  ;;  %v1899_v25 = vadd.f32 %v1775_v5, %v6557_v47  ;;  %v2124_v40 = vsel %vm6295_vm5, %v5233_v62, %v2123_v27  ;;  %v2127_v47 = vsel %vm6295_vm5, %v2125_v61, %v2126_v29 }
 0x1e0   :  { %v3124_v45 = vpop.f32.mrf.mxu0  ;;  %v1286_v54 = vsel %vm6289_vm4, %v1281_v50, %v1285_v2  ;;  %v1296_v34 = vsel %vm6289_vm4, %v1291_v56, %v1295_v59  ;;  %v1298_v5 = vshrl.u32 %v7415_v52, 16  ;;  %v1311_v27 = vshrl.u32 %v7420_v63, 16 }
 0x1e1   :  { %1814 = vmatmul.bf16.gmra.mxu1 %v7352_v6  ;;  %2499 = vmatmul.bf16.gmra.mxu2 %v7395_v4  ;;  %v7404_v51 = vadd.f32 %v3121_v20, %v2893_v30  ;;  %v1307_v30 = vshll.u32 %v7420_v63, 16  ;;  %v2257_v62 = vunpack.c.l.b16 %v2124_v40  ;;  %v1574_v61 = vunpack.c.l.b16 %v1286_v54 }
 0x1e2   :  { %2809 = vmatmul.bf16.gmra.mxu3 %v5935_v15  ;;  %v2258_v15 = vunpack.c.l.b16 %v2127_v47  ;;  %v1575_v29 = vunpack.c.l.b16 %v1296_v34  ;;  %v1300_v2 = vrot.slane %v1298_v5, 4  ;;  %v1303_v56 = vrot.slane %v1301_v36, 5 }
 0x1e3   :  { %8531 = vst [vmem:[#allocation72_spill] sm:$0xff] %v7404_v51  ;;  %3163 = vmatmul.bf16.gmra.mxu0 %v7398_v57  ;;  %v1309_v59 = vrot.slane %v1307_v30, 5  ;;  %v7441_v51 = vld [vmem:[%s8400_s0 + $0x134] sm:$0x1] }
 0x1e4   :  { %v2460_v20 = vpop.f32.mrf.mxu2  ;;  %v7445_v34 = vpack.c.b16 %v1575_v29, %v1574_v61  ;;  %v1317_v36 = vshll.u32 %v7441_v51, 16  ;;  %v5936_v61 = vld [vmem:[%s8400_s0 + $0x120] sm:$0xff] }
 0x1e5   :  { %v2584_v33 = vadd.f32 %v2460_v20, %v1899_v25  ;;  %v2770_v12 = vpop.f32.mrf.mxu3  ;;  %v1313_v20 = vrot.slane %v1311_v27, 4  ;;  %v2133_v27 = vrot.slane %v7393_v0, 5 }
 0x1e6   :  { %v1777_v48 = vpop.f32.mrf.mxu1 }
 0x1e7   :  { %v2894_v19 = vadd.f32 %v2770_v12, %v2584_v33  ;;  %v1900_v50 = vadd.f32 %v1777_v48, %v6592_v46  ;;  %v2130_v12 = vrot.slane %v7373_v1, 5  ;;  %v1304_v48 = vor.u32 %v1303_v56, %v1300_v2 }
 0x1e8   :  { %v3126_v13 = vpop.f32.mrf.mxu0  ;;  %v5234_v1 = vrot.slane %v7368_v44, 9  ;;  %v7466_v44 = vld [vmem:[%s8400_s0 + $0x13c] sm:$0xf] }
 0x1e9   :  { %v7434_v25 = vadd.f32 %v3124_v45, %v2894_v19  ;;  %v7443_v45 = vpack.c.b16 %v2258_v15, %v2257_v62  ;;  %v1314_v19 = vor.u32 %v1313_v20, %v1309_v59  ;;  %v2132_v30 = vrot.slane %v2130_v12, 4  ;;  %v7455_v62 = vld [vmem:[%s8400_s0 + $0x138] sm:$0xf] }
 0x1ea   :  { %v1305_v29 = vrot.slane %v1304_v48, 4 }
 0x1eb   :  { %8532 = vst [vmem:[#allocation73_spill] sm:$0xff] %v7434_v25  ;;  %v1315_v2 = vrot.slane %v1314_v19, 4  ;;  %v2134_v20 = vsel %vm6295_vm5, %v2132_v30, %v2133_v27 }
 0x1ec   :  { %v2462_v33 = vpop.f32.mrf.mxu2  ;;  %8533 = vst [vmem:[#allocation74_spill] sm:$0xff] %v7443_v45  ;;  %v2260_v30 = vunpack.c.l.b16 %v2134_v20 }
 0x1ed   :  { %v2585_v40 = vadd.f32 %v2462_v33, %v1900_v50  ;;  %v2772_v47 = vpop.f32.mrf.mxu3  ;;  %v1319_v50 = vrot.slane %v1317_v36, 5  ;;  %v1322_v33 = vshrl.u32 %v7455_v62, 16  ;;  %v1310_v36 = vsel %vm6289_vm4, %v1305_v29, %v1309_v59 }
 0x1ee   :  { %v1780_v54 = vpop.f32.mrf.mxu1  ;;  %v1576_v10 = vunpack.c.l.b16 %v1310_v36  ;;  %v5235_v36 = vrot.slane %v7415_v52, 9  ;;  %v5693_v52 = vld [vmem:[%s8399_s1 + $0x1c8] sm:$0xff] }
 0x1ef   :  { %v2895_v5 = vadd.f32 %v2772_v47, %v2585_v40  ;;  %v1901_v0 = vadd.f32 %v1780_v54, %v6613_v11  ;;  %v1335_v11 = vshrl.u32 %v7466_v44, 16  ;;  %v1324_v27 = vrot.slane %v1322_v33, 4  ;;  %4047 = vmatpush.bf16.msra.mxu3 %v5693_v52 }
 0x1f0   :  { %v3129_v46 = vpop.f32.mrf.mxu0 }
 0x1f1   :  { %1819 = vmatmul.bf16.gmra.mxu1 %v7398_v57  ;;  %2504 = vmatmul.bf16.gmra.mxu2 %v7443_v45  ;;  %v7457_v15 = vadd.f32 %v3126_v13, %v2895_v5  ;;  %v2131_v13 = vsel %vm6295_vm5, %v5234_v1, %v2130_v12  ;;  %v1325_v5 = vshll.u32 %v7455_v62, 16  ;;  %v1320_v12 = vsel %vm6289_vm4, %v1315_v2, %v1319_v50 }
 0x1f2   :  { %2814 = vmatmul.bf16.gmra.mxu3 %v5936_v61  ;;  %v1331_v61 = vshll.u32 %v7466_v44, 16  ;;  %v2259_v1 = vunpack.c.l.b16 %v2131_v13  ;;  %v1577_v45 = vunpack.c.l.b16 %v1320_v12  ;;  %v2137_v2 = vrot.slane %v7420_v63, 5 }
 0x1f3   :  { %8534 = vst [vmem:[#allocation75_spill] sm:$0xff] %v7457_v15  ;;  %3168 = vmatmul.bf16.gmra.mxu0 %v7445_v34  ;;  %v1337_v15 = vrot.slane %v1335_v11, 4 }
 0x1f4   :  { %v2465_v56 = vpop.f32.mrf.mxu2  ;;  %v2139_v12 = vrot.slane %v2137_v2, 4 }
 0x1f5   :  { %v2586_v40 = vadd.f32 %v2465_v56, %v1901_v0  ;;  %v2775_v47 = vpop.f32.mrf.mxu3  ;;  %v1327_v0 = vrot.slane %v1325_v5, 5  ;;  %v1333_v56 = vrot.slane %v1331_v61, 5  ;;  %v7493_v61 = vpack.c.b16 %v1577_v45, %v1576_v10  ;;  %v5937_v10 = vld [vmem:[%s8400_s0 + $0x12c] sm:$0xff] }
 0x1f6   :  { %v1782_v54 = vpop.f32.mrf.mxu1 }
 0x1f7   :  { %v2896_v48 = vadd.f32 %v2775_v47, %v2586_v40  ;;  %v7486_v40 = vld [vmem:[%s8400_s0 + $0x140] sm:$0x1]  ;;  %v1902_v59 = vadd.f32 %v1782_v54, %v6647_v18  ;;  %v7489_v47 = vpack.c.b16 %v2260_v30, %v2259_v1  ;;  %v1328_v20 = vor.u32 %v1327_v0, %v1324_v27  ;;  %v7520_v30 = vld [vmem:[%s8400_s0 + $0x148] sm:$0xf] }
 0x1f8   :  { %v3131_v19 = vpop.f32.mrf.mxu0  ;;  %v1338_v33 = vor.u32 %v1337_v15, %v1333_v56  ;;  %v2140_v18 = vrot.slane %v7441_v51, 5  ;;  %v5685_v51 = vld [vmem:[%s8399_s1 + $0x188] sm:$0xff]  ;;  %v2138_v0 = vsel %vm6295_vm5, %v5235_v36, %v2137_v2  ;;  %v1355_v2 = vshll.u32 %v7520_v30, 16 }
 0x1f9   :  { %v7481_v25 = vadd.f32 %v3129_v46, %v2896_v48  ;;  %v1341_v46 = vshll.u32 %v7486_v40, 16  ;;  %v1329_v63 = vrot.slane %v1328_v20, 4  ;;  %3693 = vmatpush.bf16.msra.mxu2 %v5685_v51 }
 0x1fa   :  { %v1339_v54 = vrot.slane %v1338_v33, 4 }
 0x1fb   :  { %8535 = vst [vmem:[#allocation76_spill] sm:$0xff] %v7481_v25  ;;  %v1343_v1 = vrot.slane %v1341_v46, 5 }
 0x1fc   :  { %v2467_v29 = vpop.f32.mrf.mxu2 }
 0x1fd   :  { %v2587_v50 = vadd.f32 %v2467_v29, %v1902_v59  ;;  %v2777_v13 = vpop.f32.mrf.mxu3 }
 0x1fe   :  { %v1785_v5 = vpop.f32.mrf.mxu1 }
 0x1ff   :  { %v2897_v11 = vadd.f32 %v2777_v13, %v2587_v50  ;;  %v1903_v45 = vadd.f32 %v1785_v5, %v6667_v3  ;;  %v2141_v3 = vsel %vm6295_vm5, %v2139_v12, %v2140_v18  ;;  %v1334_v50 = vsel %vm6289_vm4, %v1329_v63, %v1333_v56  ;;  %v5677_v12 = vld [vmem:[%s8399_s1 + $0x148] sm:$0xff] }
 0x200   :  { %v3134_v48 = vpop.f32.mrf.mxu0  ;;  %v1344_v13 = vsel %vm6289_vm4, %v1339_v54, %v1343_v1  ;;  %v1359_v5 = vshrl.u32 %v7520_v30, 16  ;;  %v5701_v56 = vld [vmem:[%s8399_s1 + $0x208] sm:$0xff]  ;;  %v2261_v18 = vunpack.c.l.b16 %v2138_v0  ;;  %v2262_v63 = vunpack.c.l.b16 %v2141_v3  ;;  %3383 = vmatpush.bf16.msra.mxu1 %v5677_v12 }
 0x201   :  { %1824 = vmatmul.bf16.gmra.mxu1 %v7445_v34  ;;  %2509 = vmatmul.bf16.gmra.mxu2 %v7489_v47  ;;  %v7499_v15 = vadd.f32 %v3131_v19, %v2897_v11  ;;  %v7515_v19 = vld [vmem:[%s8400_s0 + $0x144] sm:$0xf]  ;;  %v1578_v54 = vunpack.c.l.b16 %v1334_v50  ;;  %v1579_v1 = vunpack.c.l.b16 %v1344_v13  ;;  %v2144_v13 = vrot.slane %v7466_v44, 5  ;;  %v5938_v44 = vld [vmem:[%s8400_s0 + $0x138] sm:$0xff] }
 0x202   :  { %2819 = vmatmul.bf16.gmra.mxu3 %v5937_v10  ;;  %v1346_v33 = vshrl.u32 %v7515_v19, 16  ;;  %v1349_v46 = vshll.u32 %v7515_v19, 16  ;;  %4369 = vmatpush.bf16.msra.mxu0 %v5701_v56  ;;  %v7548_v50 = vpack.c.b16 %v2262_v63, %v2261_v18  ;;  %v2147_v56 = vrot.slane %v7486_v40, 5 }
 0x203   :  { %8536 = vst [vmem:[#allocation77_spill] sm:$0xff] %v7499_v15  ;;  %3173 = vmatmul.bf16.gmra.mxu0 %v7493_v61 }
 0x204   :  { %v2470_v27 = vpop.f32.mrf.mxu2  ;;  %v1348_v51 = vrot.slane %v1346_v33, 4  ;;  %v1351_v52 = vrot.slane %v1349_v46, 5  ;;  %8538 = vst [vmem:[#allocation79_spill] sm:$0xff] %v7548_v50 }
 0x205   :  { %v2588_v59 = vadd.f32 %v2470_v27, %v1903_v45  ;;  %v2780_v29 = vpop.f32.mrf.mxu3  ;;  %v1357_v45 = vrot.slane %v1355_v2, 5  ;;  %v1361_v27 = vrot.slane %v1359_v5, 4  ;;  %v2146_v5 = vrot.slane %v2144_v13, 4 }
 0x206   :  { %v1787_v20 = vpop.f32.mrf.mxu1  ;;  %v1352_v33 = vor.u32 %v1351_v52, %v1348_v51  ;;  %v7573_v51 = vld [vmem:[%s8400_s0 + $0x154] sm:$0xf] }
 0x207   :  { %v2898_v11 = vadd.f32 %v2780_v29, %v2588_v59  ;;  %v1904_v59 = vadd.f32 %v1787_v20, %v6700_v14  ;;  %v7546_v29 = vld [vmem:[%s8400_s0 + $0x14c] sm:$0x1]  ;;  %v1362_v46 = vor.u32 %v1361_v27, %v1357_v45 }
 0x208   :  { %v3136_v36 = vpop.f32.mrf.mxu0  ;;  %v1365_v2 = vshll.u32 %v7546_v29, 16  ;;  %v1353_v18 = vrot.slane %v1352_v33, 4 }
 0x209   :  { %v7540_v10 = vadd.f32 %v3134_v48, %v2898_v11  ;;  %v7551_v11 = vpack.c.b16 %v1579_v1, %v1578_v54  ;;  %v1363_v63 = vrot.slane %v1362_v46, 4 }
 0x20a   :  { %v1367_v54 = vrot.slane %v1365_v2, 5 }
 0x20b   :  { %8537 = vst [vmem:[#allocation78_spill] sm:$0xff] %v7540_v10  ;;  %v7594_v10 = vld [vmem:[%s8400_s0 + $0x158] sm:$0x1] }
 0x20c   :  { %v2472_v15 = vpop.f32.mrf.mxu2  ;;  %8539 = vst [vmem:[#allocation80_spill] sm:$0xff] %v7551_v11 }
 0x20d   :  { %v2589_v0 = vadd.f32 %v2472_v15, %v1904_v59  ;;  %v2782_v3 = vpop.f32.mrf.mxu3  ;;  %v5236_v15 = vrot.slane %v7455_v62, 9  ;;  %v7568_v62 = vld [vmem:[%s8400_s0 + $0x150] sm:$0xf] }
 0x20e   :  { %v1790_v48 = vpop.f32.mrf.mxu1  ;;  %v1373_v2 = vshll.u32 %v7568_v62, 16 }
 0x20f   :  { %v2899_v14 = vadd.f32 %v2782_v3, %v2589_v0  ;;  %v1905_v1 = vadd.f32 %v1790_v48, %v6734_v37  ;;  %v2145_v40 = vsel %vm6295_vm5, %v5236_v15, %v2144_v13  ;;  %v2148_v37 = vsel %vm6295_vm5, %v2146_v5, %v2147_v56 }
 0x210   :  { %v3139_v20 = vpop.f32.mrf.mxu0  ;;  %v1358_v0 = vsel %vm6289_vm4, %v1353_v18, %v1357_v45  ;;  %v1368_v3 = vsel %vm6289_vm4, %v1363_v63, %v1367_v54  ;;  %v1370_v48 = vshrl.u32 %v7568_v62, 16  ;;  %v1383_v13 = vshrl.u32 %v7573_v51, 16  ;;  %v8542_v18 = vld [vmem:[#allocation47_spill] sm:$0xff] }
 0x211   :  { %1829 = vmatmul.bf16.gmra.mxu1 %v7493_v61  ;;  %2514 = vmatmul.bf16.gmra.mxu2 %v7548_v50  ;;  %v7557_v12 = vadd.f32 %v3136_v36, %v2899_v14  ;;  %v1379_v14 = vshll.u32 %v7573_v51, 16  ;;  %v2263_v15 = vunpack.c.l.b16 %v2145_v40  ;;  %v1580_v5 = vunpack.c.l.b16 %v1358_v0 }
 0x212   :  { %2824 = vmatmul.bf16.gmra.mxu3 %v5938_v44  ;;  %v2264_v44 = vunpack.c.l.b16 %v2148_v37  ;;  %v1581_v56 = vunpack.c.l.b16 %v1368_v3  ;;  %v1372_v45 = vrot.slane %v1370_v48, 4  ;;  %v1375_v63 = vrot.slane %v1373_v2, 5 }
 0x213   :  { %8540 = vst [vmem:[#allocation81_spill] sm:$0xff] %v7557_v12  ;;  %3178 = vmatmul.bf16.gmra.mxu0 %v7551_v11  ;;  %v1381_v54 = vrot.slane %v1379_v14, 5  ;;  %v1385_v12 = vrot.slane %v1383_v13, 4  ;;  %v1389_v14 = vshll.u32 %v7594_v10, 16 }
 0x214   :  { %v2475_v36 = vpop.f32.mrf.mxu2  ;;  %v7598_v3 = vpack.c.b16 %v1581_v56, %v1580_v5 }
 0x215   :  { %v2590_v52 = vadd.f32 %v2475_v36, %v1905_v1  ;;  %v2785_v27 = vpop.f32.mrf.mxu3  ;;  %v1386_v2 = vor.u32 %v1385_v12, %v1381_v54  ;;  %v5939_v12 = vld [vmem:[%s8400_s0 + $0x144] sm:$0xff] }
 0x216   :  { %v1792_v59 = vpop.f32.mrf.mxu1  ;;  %8544 = vst [vmem:[#allocation83_spill] sm:$0xff] %v7598_v3 }
 0x217   :  { %v2900_v33 = vadd.f32 %v2785_v27, %v2590_v52  ;;  %v1906_v36 = vadd.f32 %v1792_v59, %v8542_v18  ;;  %v2151_v27 = vrot.slane %v7520_v30, 5  ;;  %v5237_v30 = vrot.slane %v7515_v19, 9  ;;  %v7619_v19 = vld [vmem:[%s8400_s0 + $0x160] sm:$0xf] }
 0x218   :  { %v3141_v46 = vpop.f32.mrf.mxu0  ;;  %v2154_v18 = vrot.slane %v7546_v29, 5  ;;  %v8546_v29 = vld [vmem:[#allocation3_spill] sm:$0xff] }
 0x219   :  { %v7587_v1 = vadd.f32 %v3139_v20, %v2900_v33  ;;  %v7596_v20 = vpack.c.b16 %v2264_v44, %v2263_v15  ;;  %v1376_v33 = vor.u32 %v1375_v63, %v1372_v45  ;;  %v2153_v13 = vrot.slane %v2151_v27, 4  ;;  %v7608_v15 = vld [vmem:[%s8400_s0 + $0x15c] sm:$0xf] }
 0x21a   :  { %v1387_v45 = vrot.slane %v1386_v2, 4 }
 0x21b   :  { %8541 = vst [vmem:[#allocation82_spill] sm:$0xff] %v7587_v1  ;;  %v1377_v56 = vrot.slane %v1376_v33, 4 }
 0x21c   :  { %v2477_v52 = vpop.f32.mrf.mxu2  ;;  %8543 = vst [vmem:[#allocation47_spill] sm:$0xff] %v7596_v20 }
 0x21d   :  { %v2591_v40 = vadd.f32 %v2477_v52, %v1906_v36  ;;  %v2787_v37 = vpop.f32.mrf.mxu3  ;;  %v1391_v36 = vrot.slane %v1389_v14, 5  ;;  %v2155_v52 = vsel %vm6295_vm5, %v2153_v13, %v2154_v18 }
 0x21e   :  { %v1795_v0 = vpop.f32.mrf.mxu1  ;;  %v2266_v13 = vunpack.c.l.b16 %v2155_v52 }
 0x21f   :  { %v2901_v48 = vadd.f32 %v2787_v37, %v2591_v40  ;;  %v1907_v5 = vadd.f32 %v1795_v0, %v8546_v29  ;;  %v1394_v40 = vshrl.u32 %v7608_v15, 16  ;;  %v1407_v0 = vshrl.u32 %v7619_v19, 16 }
 0x220   :  { %v3144_v59 = vpop.f32.mrf.mxu0  ;;  %v1382_v29 = vsel %vm6289_vm4, %v1377_v56, %v1381_v54 }
 0x221   :  { %1834 = vmatmul.bf16.gmra.mxu1 %v7551_v11  ;;  %2519 = vmatmul.bf16.gmra.mxu2 %v7596_v20  ;;  %v7610_v44 = vadd.f32 %v3141_v46, %v2901_v48  ;;  %v2152_v46 = vsel %vm6295_vm5, %v5237_v30, %v2151_v27  ;;  %v1392_v27 = vsel %vm6289_vm4, %v1387_v45, %v1391_v36  ;;  %v1396_v18 = vrot.slane %v1394_v40, 4 }
 0x222   :  { %2829 = vmatmul.bf16.gmra.mxu3 %v5939_v12  ;;  %v1397_v12 = vshll.u32 %v7608_v15, 16  ;;  %v2265_v30 = vunpack.c.l.b16 %v2152_v46  ;;  %v1409_v1 = vrot.slane %v1407_v0, 4  ;;  %v1582_v11 = vunpack.c.l.b16 %v1382_v29 }
 0x223   :  { %8545 = vst [vmem:[#allocation84_spill] sm:$0xff] %v7610_v44  ;;  %3183 = vmatmul.bf16.gmra.mxu0 %v7598_v3  ;;  %v1403_v44 = vshll.u32 %v7619_v19, 16  ;;  %v1583_v25 = vunpack.c.l.b16 %v1392_v27  ;;  %v2158_v45 = vrot.slane %v7573_v51, 5  ;;  %v5238_v29 = vrot.slane %v7568_v62, 9 }
 0x224   :  { %v2480_v63 = vpop.f32.mrf.mxu2  ;;  %v7642_v50 = vpack.c.b16 %v2266_v13, %v2265_v30 }
 0x225   :  { %v2592_v37 = vadd.f32 %v2480_v63, %v1907_v5  ;;  %v2790_v48 = vpop.f32.mrf.mxu3  ;;  %v1399_v5 = vrot.slane %v1397_v12, 5  ;;  %v1405_v63 = vrot.slane %v1403_v44, 5  ;;  %v7646_v12 = vpack.c.b16 %v1583_v25, %v1582_v11  ;;  %v5940_v25 = vld [vmem:[%s8400_s0 + $0x150] sm:$0xff] }
 0x226   :  { %v1797_v33 = vpop.f32.mrf.mxu1  ;;  %v2160_v27 = vrot.slane %v2158_v45, 4  ;;  %v8552_v11 = vld [vmem:[#allocation9_spill] sm:$0xff] }
 0x227   :  { %v2902_v2 = vadd.f32 %v2790_v48, %v2592_v37  ;;  %v7639_v37 = vld [vmem:[%s8400_s0 + $0x164] sm:$0x1]  ;;  %v8548_v48 = vld [vmem:[#allocation5_spill] sm:$0xff]  ;;  %v1400_v44 = vor.u32 %v1399_v5, %v1396_v18  ;;  %v1410_v52 = vor.u32 %v1409_v1, %v1405_v63  ;;  %8550 = vst [vmem:[#allocation85_spill] sm:$0xff] %v7646_v12  ;;  %v7667_v18 = vld [vmem:[%s8400_s0 + $0x16c] sm:$0xf]  ;;  %v2159_v5 = vsel %vm6295_vm5, %v5238_v29, %v2158_v45 }
 0x228   :  { %v3146_v14 = vpop.f32.mrf.mxu0  ;;  %v1908_v54 = vadd.f32 %v1797_v33, %v8548_v48  ;;  %8549 = vst [vmem:[#allocation5_spill] sm:$0xff] %v7642_v50  ;;  %v2161_v33 = vrot.slane %v7594_v10, 5  ;;  %v7662_v10 = vld [vmem:[%s8400_s0 + $0x168] sm:$0xf]  ;;  %v1431_v45 = vshrl.u32 %v7667_v18, 16 }
 0x229   :  { %v7634_v20 = vadd.f32 %v3144_v59, %v2902_v2  ;;  %v1413_v59 = vshll.u32 %v7639_v37, 16  ;;  %v1401_v51 = vrot.slane %v1400_v44, 4  ;;  %v1411_v30 = vrot.slane %v1410_v52, 4 }
 0x22a   :  { %v1418_v52 = vshrl.u32 %v7662_v10, 16 }
 0x22b   :  { %8547 = vst [vmem:[#allocation3_spill] sm:$0xff] %v7634_v20  ;;  %v1415_v13 = vrot.slane %v1413_v59, 5  ;;  %v1421_v59 = vshll.u32 %v7662_v10, 16  ;;  %v7687_v20 = vld [vmem:[%s8400_s0 + $0x170] sm:$0x1] }
 0x22c   :  { %v2482_v56 = vpop.f32.mrf.mxu2 }
 0x22d   :  { %v2593_v36 = vadd.f32 %v2482_v56, %v1908_v54  ;;  %v2792_v46 = vpop.f32.mrf.mxu3  ;;  %v2162_v56 = vsel %vm6295_vm5, %v2160_v27, %v2161_v33 }
 0x22e   :  { %v1800_v40 = vpop.f32.mrf.mxu1 }
 0x22f   :  { %v2903_v0 = vadd.f32 %v2792_v46, %v2593_v36  ;;  %v1909_v62 = vadd.f32 %v1800_v40, %v8552_v11  ;;  %v1406_v36 = vsel %vm6289_vm4, %v1401_v51, %v1405_v63  ;;  %v1416_v46 = vsel %vm6289_vm4, %v1411_v30, %v1415_v13 }
 0x230   :  { %v3149_v2 = vpop.f32.mrf.mxu0  ;;  %v1427_v40 = vshll.u32 %v7667_v18, 16  ;;  %v2268_v11 = vunpack.c.l.b16 %v2162_v56  ;;  %v1584_v27 = vunpack.c.l.b16 %v1406_v36  ;;  %v1585_v33 = vunpack.c.l.b16 %v1416_v46 }
 0x231   :  { %1839 = vmatmul.bf16.gmra.mxu1 %v7598_v3  ;;  %2524 = vmatmul.bf16.gmra.mxu2 %v7642_v50  ;;  %v7652_v1 = vadd.f32 %v3146_v14, %v2903_v0  ;;  %v1420_v63 = vrot.slane %v1418_v52, 4  ;;  %v1423_v51 = vrot.slane %v1421_v59, 5  ;;  %v1433_v13 = vrot.slane %v1431_v45, 4 }
 0x232   :  { %2834 = vmatmul.bf16.gmra.mxu3 %v5940_v25  ;;  %v2267_v25 = vunpack.c.l.b16 %v2159_v5  ;;  %v1429_v30 = vrot.slane %v1427_v40, 5  ;;  %v2165_v56 = vrot.slane %v7619_v19, 5  ;;  %v7692_v36 = vpack.c.b16 %v1585_v33, %v1584_v27  ;;  %v5941_v19 = vld [vmem:[%s8400_s0 + $0x15c] sm:$0xff] }
 0x233   :  { %8551 = vst [vmem:[#allocation86_spill] sm:$0xff] %v7652_v1  ;;  %3188 = vmatmul.bf16.gmra.mxu0 %v7646_v12  ;;  %v1424_v46 = vor.u32 %v1423_v51, %v1420_v63  ;;  %v1437_v59 = vshll.u32 %v7687_v20, 16  ;;  %v5684_v33 = vld [vmem:[%s8399_s1 + $0x180] sm:$0xff]  ;;  %v7715_v51 = vld [vmem:[%s8400_s0 + $0x174] sm:$0xf] }
 0x234   :  { %v2485_v14 = vpop.f32.mrf.mxu2  ;;  %v7689_v5 = vpack.c.b16 %v2268_v11, %v2267_v25  ;;  %8556 = vst [vmem:[#allocation87_spill] sm:$0xff] %v7692_v36  ;;  %v1434_v52 = vor.u32 %v1433_v13, %v1429_v30  ;;  %3694 = vmatpush.bf16.msra.mxu2 %v5684_v33 }
 0x235   :  { %v2594_v48 = vadd.f32 %v2485_v14, %v1909_v62  ;;  %v2795_v54 = vpop.f32.mrf.mxu3  ;;  %v8554_v14 = vld [vmem:[#allocation11_spill] sm:$0xff]  ;;  %v1425_v25 = vrot.slane %v1424_v46, 4  ;;  %v1439_v27 = vrot.slane %v1437_v59, 5 }
 0x236   :  { %v1802_v44 = vpop.f32.mrf.mxu1  ;;  %8555 = vst [vmem:[#allocation11_spill] sm:$0xff] %v7689_v5  ;;  %v1435_v11 = vrot.slane %v1434_v52, 4 }
 0x237   :  { %v2904_v0 = vadd.f32 %v2795_v54, %v2594_v48  ;;  %v1910_v1 = vadd.f32 %v1802_v44, %v8554_v14  ;;  %v1430_v52 = vsel %vm6289_vm4, %v1425_v25, %v1429_v30  ;;  %v5700_v30 = vld [vmem:[%s8399_s1 + $0x200] sm:$0xff] }
 0x238   :  { %v3151_v29 = vpop.f32.mrf.mxu0  ;;  %v1440_v59 = vsel %vm6289_vm4, %v1435_v11, %v1439_v27  ;;  %4370 = vmatpush.bf16.msra.mxu0 %v5700_v30  ;;  %v1586_v11 = vunpack.c.l.b16 %v1430_v52  ;;  %v2175_v30 = vrot.slane %v7687_v20, 5  ;;  %v7772_v20 = vld [vmem:[%s8400_s0 + $0x184] sm:$0xf] }
 0x239   :  { %v7681_v62 = vadd.f32 %v3149_v2, %v2904_v0  ;;  %v2168_v0 = vrot.slane %v7639_v37, 5  ;;  %v7720_v37 = vld [vmem:[%s8400_s0 + $0x178] sm:$0xf]  ;;  %v1587_v27 = vunpack.c.l.b16 %v1440_v59 }
 0x23b   :  { %8553 = vst [vmem:[#allocation9_spill] sm:$0xff] %v7681_v62  ;;  %v7751_v59 = vpack.c.b16 %v1587_v27, %v1586_v11 }
 0x23c   :  { %v2487_v50 = vpop.f32.mrf.mxu2 }
 0x23d   :  { %v2595_v48 = vadd.f32 %v2487_v50, %v1910_v1  ;;  %v2797_v54 = vpop.f32.mrf.mxu3  ;;  %v5239_v50 = vrot.slane %v7608_v15, 9  ;;  %v2167_v1 = vrot.slane %v2165_v56, 4  ;;  %v5692_v15 = vld [vmem:[%s8399_s1 + $0x1c0] sm:$0xff]  ;;  %8562 = vst [vmem:[#allocation89_spill] sm:$0xff] %v7751_v59 }
 0x23e   :  { %v1805_v2 = vpop.f32.mrf.mxu1  ;;  %4048 = vmatpush.bf16.msra.mxu3 %v5692_v15  ;;  %v1445_v15 = vshll.u32 %v7715_v51, 16 }
 0x23f   :  { %v2905_v44 = vadd.f32 %v2797_v54, %v2595_v48  ;;  %v2166_v54 = vsel %vm6295_vm5, %v5239_v50, %v2165_v56  ;;  %v1455_v56 = vshrl.u32 %v7720_v37, 16  ;;  %v5676_v50 = vld [vmem:[%s8399_s1 + $0x140] sm:$0xff] }
 0x240   :  { %v3154_v40 = vpop.f32.mrf.mxu0  ;;  %3384 = vmatpush.bf16.msra.mxu1 %v5676_v50 }
 0x241   :  { %1844 = vmatmul.bf16.gmra.mxu1 %v7646_v12  ;;  %2529 = vmatmul.bf16.gmra.mxu2 %v7689_v5  ;;  %v7698_v45 = vadd.f32 %v3151_v29, %v2905_v44  ;;  %v8558_v29 = vld [vmem:[#allocation15_spill] sm:$0xff]  ;;  %v1442_v44 = vshrl.u32 %v7715_v51, 16  ;;  %v1457_v62 = vrot.slane %v1455_v56, 4  ;;  %v2172_v12 = vrot.slane %v7667_v18, 5 }
 0x242   :  { %2839 = vmatmul.bf16.gmra.mxu3 %v5941_v19  ;;  %v1911_v63 = vadd.f32 %v1805_v2, %v8558_v29  ;;  %v2169_v2 = vsel %vm6295_vm5, %v2167_v1, %v2168_v0  ;;  %v1451_v29 = vshll.u32 %v7720_v37, 16  ;;  %v2269_v1 = vunpack.c.l.b16 %v2166_v54  ;;  %v7747_v54 = vld [vmem:[%s8400_s0 + $0x17c] sm:$0x1] }
 0x243   :  { %8557 = vst [vmem:[#allocation88_spill] sm:$0xff] %v7698_v45  ;;  %3193 = vmatmul.bf16.gmra.mxu0 %v7692_v36  ;;  %v2270_v0 = vunpack.c.l.b16 %v2169_v2  ;;  %v5240_v18 = vrot.slane %v7662_v10, 9  ;;  %v2174_v56 = vrot.slane %v2172_v12, 4  ;;  %v8564_v10 = vld [vmem:[#allocation21_spill] sm:$0xff] }
 0x244   :  { %v2490_v13 = vpop.f32.mrf.mxu2  ;;  %v1453_v45 = vrot.slane %v1451_v29, 5  ;;  %v1461_v29 = vshll.u32 %v7747_v54, 16 }
 0x245   :  { %v2596_v14 = vadd.f32 %v2490_v13, %v1911_v63  ;;  %v2800_v48 = vpop.f32.mrf.mxu3  ;;  %v1444_v63 = vrot.slane %v1442_v44, 4  ;;  %v8560_v13 = vld [vmem:[#allocation17_spill] sm:$0xff] }
 0x246   :  { %v1807_v46 = vpop.f32.mrf.mxu1 }
 0x247   :  { %v2906_v19 = vadd.f32 %v2800_v48, %v2596_v14  ;;  %v1912_v14 = vadd.f32 %v1807_v46, %v8560_v13  ;;  %v1447_v48 = vrot.slane %v1445_v15, 5  ;;  %v1458_v15 = vor.u32 %v1457_v62, %v1453_v45  ;;  %v5942_v62 = vld [vmem:[%s8400_s0 + $0x168] sm:$0xff] }
 0x248   :  { %v3156_v33 = vpop.f32.mrf.mxu0 }
 0x249   :  { %v7740_v25 = vadd.f32 %v3154_v40, %v2906_v19  ;;  %v7749_v40 = vpack.c.b16 %v2270_v0, %v2269_v1  ;;  %v1448_v19 = vor.u32 %v1447_v48, %v1444_v63  ;;  %v1459_v27 = vrot.slane %v1458_v15, 4 }
 0x24a   :  { %v1463_v63 = vrot.slane %v1461_v29, 5 }
 0x24b   :  { %8559 = vst [vmem:[#allocation15_spill] sm:$0xff] %v7740_v25  ;;  %v1449_v11 = vrot.slane %v1448_v19, 4 }
 0x24c   :  { %v2492_v5 = vpop.f32.mrf.mxu2  ;;  %8561 = vst [vmem:[#allocation17_spill] sm:$0xff] %v7749_v40 }
 0x24d   :  { %v2597_v2 = vadd.f32 %v2492_v5, %v1912_v14  ;;  %v2802_v50 = vpop.f32.mrf.mxu3  ;;  %v7761_v5 = vld [vmem:[%s8400_s0 + $0x180] sm:$0xf]  ;;  %v2176_v14 = vsel %vm6295_vm5, %v2174_v56, %v2175_v30 }
 0x24e   :  { %v1810_v52 = vpop.f32.mrf.mxu1  ;;  %v1466_v48 = vshrl.u32 %v7761_v5, 16  ;;  %v2272_v56 = vunpack.c.l.b16 %v2176_v14 }
 0x24f   :  { %v2907_v44 = vadd.f32 %v2802_v50, %v2597_v2  ;;  %v1913_v0 = vadd.f32 %v1810_v52, %v8564_v10  ;;  %v1479_v52 = vshrl.u32 %v7772_v20, 16  ;;  %v1454_v10 = vsel %vm6289_vm4, %v1449_v11, %v1453_v45 }
 0x250   :  { %v3159_v46 = vpop.f32.mrf.mxu0  ;;  %v1468_v30 = vrot.slane %v1466_v48, 4 }
 0x251   :  { %1849 = vmatmul.bf16.gmra.mxu1 %v7692_v36  ;;  %2534 = vmatmul.bf16.gmra.mxu2 %v7749_v40  ;;  %v7763_v1 = vadd.f32 %v3156_v33, %v2907_v44  ;;  %v2173_v33 = vsel %vm6295_vm5, %v5240_v18, %v2172_v12  ;;  %v1469_v44 = vshll.u32 %v7761_v5, 16  ;;  %v1464_v12 = vsel %vm6289_vm4, %v1459_v27, %v1463_v63 }
 0x252   :  { %2844 = vmatmul.bf16.gmra.mxu3 %v5942_v62  ;;  %v1475_v62 = vshll.u32 %v7772_v20, 16  ;;  %v2271_v18 = vunpack.c.l.b16 %v2173_v33  ;;  %v1588_v40 = vunpack.c.l.b16 %v1454_v10  ;;  %v1589_v36 = vunpack.c.l.b16 %v1464_v12 }
 0x253   :  { %8563 = vst [vmem:[#allocation90_spill] sm:$0xff] %v7763_v1  ;;  %3198 = vmatmul.bf16.gmra.mxu0 %v7751_v59  ;;  %v1481_v1 = vrot.slane %v1479_v52, 4  ;;  %v2179_v27 = vrot.slane %v7720_v37, 5  ;;  %v5241_v10 = vrot.slane %v7715_v51, 9  ;;  %v8570_v51 = vld [vmem:[#allocation27_spill] sm:$0xff] }
 0x254   :  { %v2495_v13 = vpop.f32.mrf.mxu2  ;;  %v7795_v3 = vpack.c.b16 %v2272_v56, %v2271_v18 }
 0x255   :  { %v2598_v2 = vadd.f32 %v2495_v13, %v1913_v0  ;;  %v2805_v50 = vpop.f32.mrf.mxu3  ;;  %v1471_v0 = vrot.slane %v1469_v44, 5  ;;  %v1477_v13 = vrot.slane %v1475_v62, 5  ;;  %v7799_v62 = vpack.c.b16 %v1589_v36, %v1588_v40  ;;  %v5943_v36 = vld [vmem:[%s8400_s0 + $0x174] sm:$0xff] }
 0x256   :  { %v1812_v19 = vpop.f32.mrf.mxu1  ;;  %v2181_v12 = vrot.slane %v2179_v27, 4 }
 0x257   :  { %v2908_v15 = vadd.f32 %v2805_v50, %v2598_v2  ;;  %v7792_v2 = vld [vmem:[%s8400_s0 + $0x188] sm:$0x1]  ;;  %v8566_v50 = vld [vmem:[#allocation23_spill] sm:$0xff]  ;;  %v1472_v14 = vor.u32 %v1471_v0, %v1468_v30  ;;  %v1482_v48 = vor.u32 %v1481_v1, %v1477_v13  ;;  %8568 = vst [vmem:[#allocation91_spill] sm:$0xff] %v7799_v62  ;;  %v7820_v30 = vld [vmem:[%s8400_s0 + $0x190] sm:$0xf]  ;;  %v2180_v0 = vsel %vm6295_vm5, %v5241_v10, %v2179_v27 }
 0x258   :  { %v3161_v29 = vpop.f32.mrf.mxu0  ;;  %v1914_v45 = vadd.f32 %v1812_v19, %v8566_v50  ;;  %8567 = vst [vmem:[#allocation23_spill] sm:$0xff] %v7795_v3  ;;  %v2182_v19 = vrot.slane %v7747_v54, 5  ;;  %v7815_v54 = vld [vmem:[%s8400_s0 + $0x18c] sm:$0xf]  ;;  %v1503_v27 = vshrl.u32 %v7820_v30, 16 }
 0x259   :  { %v7787_v25 = vadd.f32 %v3159_v46, %v2908_v15  ;;  %v1485_v46 = vshll.u32 %v7792_v2, 16  ;;  %v1473_v37 = vrot.slane %v1472_v14, 4  ;;  %v1483_v18 = vrot.slane %v1482_v48, 4 }
 0x25a   :  { %v1490_v48 = vshrl.u32 %v7815_v54, 16 }
 0x25b   :  { %8565 = vst [vmem:[#allocation21_spill] sm:$0xff] %v7787_v25  ;;  %v1487_v56 = vrot.slane %v1485_v46, 5  ;;  %v1493_v46 = vshll.u32 %v7815_v54, 16  ;;  %v7840_v25 = vld [vmem:[%s8400_s0 + $0x194] sm:$0x1] }
 0x25c   :  { %v2497_v11 = vpop.f32.mrf.mxu2 }
 0x25d   :  { %v2599_v63 = vadd.f32 %v2497_v11, %v1914_v45  ;;  %v2807_v33 = vpop.f32.mrf.mxu3  ;;  %v2183_v11 = vsel %vm6295_vm5, %v2181_v12, %v2182_v19 }
 0x25e   :  { %v1815_v44 = vpop.f32.mrf.mxu1 }
 0x25f   :  { %v2909_v52 = vadd.f32 %v2807_v33, %v2599_v63  ;;  %v1915_v40 = vadd.f32 %v1815_v44, %v8570_v51  ;;  %v1478_v63 = vsel %vm6289_vm4, %v1473_v37, %v1477_v13  ;;  %v1488_v33 = vsel %vm6289_vm4, %v1483_v18, %v1487_v56 }
 0x260   :  { %v3164_v15 = vpop.f32.mrf.mxu0  ;;  %v1499_v44 = vshll.u32 %v7820_v30, 16  ;;  %v2274_v51 = vunpack.c.l.b16 %v2183_v11  ;;  %v1590_v12 = vunpack.c.l.b16 %v1478_v63  ;;  %v1591_v19 = vunpack.c.l.b16 %v1488_v33 }
 0x261   :  { %1854 = vmatmul.bf16.gmra.mxu1 %v7751_v59  ;;  %2539 = vmatmul.bf16.gmra.mxu2 %v7795_v3  ;;  %v7805_v1 = vadd.f32 %v3161_v29, %v2909_v52  ;;  %v1492_v13 = vrot.slane %v1490_v48, 4  ;;  %v1495_v37 = vrot.slane %v1493_v46, 5  ;;  %v1505_v56 = vrot.slane %v1503_v27, 4 }
 0x262   :  { %2849 = vmatmul.bf16.gmra.mxu3 %v5943_v36  ;;  %v2273_v36 = vunpack.c.l.b16 %v2180_v0  ;;  %v1501_v18 = vrot.slane %v1499_v44, 5  ;;  %v2186_v11 = vrot.slane %v7772_v20, 5  ;;  %v7845_v63 = vpack.c.b16 %v1591_v19, %v1590_v12  ;;  %v5944_v20 = vld [vmem:[%s8400_s0 + $0x180] sm:$0xff]  ;;  %v8575_v19 = vld [vmem:[#allocation33_spill] sm:$0xff] }
 0x263   :  { %8569 = vst [vmem:[#allocation92_spill] sm:$0xff] %v7805_v1  ;;  %3203 = vmatmul.bf16.gmra.mxu0 %v7799_v62  ;;  %v1496_v33 = vor.u32 %v1495_v37, %v1492_v13  ;;  %v1509_v46 = vshll.u32 %v7840_v25, 16  ;;  %v184_v37 = vld [vmem:[%s8400_s0 + $0x19c] sm:$0xf] }
 0x264   :  { %v2500_v29 = vpop.f32.mrf.mxu2  ;;  %v7842_v0 = vpack.c.b16 %v2274_v51, %v2273_v36  ;;  %v1506_v48 = vor.u32 %v1505_v56, %v1501_v18 }
 0x265   :  { %v2600_v50 = vadd.f32 %v2500_v29, %v1915_v40  ;;  %v2810_v45 = vpop.f32.mrf.mxu3  ;;  %v8572_v29 = vld [vmem:[#allocation29_spill] sm:$0xff]  ;;  %v1497_v36 = vrot.slane %v1496_v33, 4  ;;  %v1511_v12 = vrot.slane %v1509_v46, 5 }
 0x266   :  { %v1817_v14 = vpop.f32.mrf.mxu1  ;;  %8573 = vst [vmem:[#allocation29_spill] sm:$0xff] %v7842_v0  ;;  %v1507_v51 = vrot.slane %v1506_v48, 4 }
 0x267   :  { %v2910_v52 = vadd.f32 %v2810_v45, %v2600_v50  ;;  %v1916_v1 = vadd.f32 %v1817_v14, %v8572_v29 }
 0x268   :  { %v3166_v10 = vpop.f32.mrf.mxu0  ;;  %v1512_v33 = vsel %vm6289_vm4, %v1507_v51, %v1511_v12  ;;  %v185_v51 = vld [vmem:[%s8400_s0 + $0x1a0] sm:$0x1] }
 0x269   :  { %v7834_v40 = vadd.f32 %v3164_v15, %v2910_v52  ;;  %v2189_v52 = vrot.slane %v7792_v2, 5 }
 0x26b   :  { %8571 = vst [vmem:[#allocation27_spill] sm:$0xff] %v7834_v40 }
 0x26c   :  { %v2502_v3 = vpop.f32.mrf.mxu2 }
 0x26d   :  { %v2601_v50 = vadd.f32 %v2502_v3, %v1916_v1  ;;  %v2812_v45 = vpop.f32.mrf.mxu3  ;;  %v5242_v3 = vrot.slane %v7761_v5, 9  ;;  %v2188_v1 = vrot.slane %v2186_v11, 4  ;;  %v183_v5 = vld [vmem:[%s8400_s0 + $0x198] sm:$0xf] }
 0x26e   :  { %v1820_v15 = vpop.f32.mrf.mxu1  ;;  %v2959_v48 = vshrl.u32 %v183_v5, 16 }
 0x26f   :  { %v2911_v14 = vadd.f32 %v2812_v45, %v2601_v50  ;;  %v1917_v13 = vadd.f32 %v1820_v15, %v8575_v19  ;;  %v2187_v50 = vsel %vm6295_vm5, %v5242_v3, %v2186_v11  ;;  %v2190_v45 = vsel %vm6295_vm5, %v2188_v1, %v2189_v52  ;;  %v8576_v1 = vld [vmem:[#allocation35_spill] sm:$0xff] }
 0x270   :  { %v3169_v44 = vpop.f32.mrf.mxu0  ;;  %v1502_v15 = vsel %vm6289_vm4, %v1497_v36, %v1501_v18  ;;  %v2968_v19 = vshll.u32 %v184_v37, 16  ;;  %v1593_v3 = vunpack.c.l.b16 %v1512_v33  ;;  %v2978_v33 = vshll.u32 %v185_v51, 16 }
 0x271   :  { %1859 = vmatmul.bf16.gmra.mxu1 %v7799_v62  ;;  %2544 = vmatmul.bf16.gmra.mxu2 %v7842_v0  ;;  %v7851_v27 = vadd.f32 %v3166_v10, %v2911_v14  ;;  %v1592_v11 = vunpack.c.l.b16 %v1502_v15  ;;  %v2961_v0 = vrot.slane %v2959_v48, 4 }
 0x272   :  { %2854 = vmatmul.bf16.gmra.mxu3 %v5944_v20  ;;  %v2962_v20 = vshll.u32 %v183_v5, 16  ;;  %v2970_v18 = vrot.slane %v2968_v19, 5 }
 0x273   :  { %8574 = vst [vmem:[#allocation93_spill] sm:$0xff] %v7851_v27  ;;  %3208 = vmatmul.bf16.gmra.mxu0 %v7845_v63  ;;  %v2276_v27 = vunpack.c.l.b16 %v2190_v45 }
 0x274   :  { %v2505_v10 = vpop.f32.mrf.mxu2  ;;  %v2964_v62 = vrot.slane %v2962_v20, 5 }
 0x275   :  { %v2602_v56 = vadd.f32 %v2505_v10, %v1917_v13  ;;  %v2815_v29 = vpop.f32.mrf.mxu3  ;;  %v2972_v13 = vshrl.u32 %v184_v37, 16  ;;  %v2275_v10 = vunpack.c.l.b16 %v2187_v50 }
 0x276   :  { %v1822_v2 = vpop.f32.mrf.mxu1 }
 0x277   :  { %v2912_v46 = vadd.f32 %v2815_v29, %v2602_v56  ;;  %v1918_v52 = vadd.f32 %v1822_v2, %v8576_v1  ;;  %v2974_v36 = vrot.slane %v2972_v13, 4  ;;  %v7879_v37 = vpack.c.b16 %v2276_v27, %v2275_v10 }
 0x278   :  { %v3171_v14 = vpop.f32.mrf.mxu0  ;;  %v2193_v29 = vrot.slane %v7820_v30, 5  ;;  %v2965_v2 = vor.u32 %v2964_v62, %v2961_v0  ;;  %v5243_v30 = vrot.slane %v7815_v54, 9  ;;  %v2196_v62 = vrot.slane %v7840_v25, 5  ;;  %v8577_v0 = vld [vmem:[#allocation39_spill] sm:$0xff] }
 0x279   :  { %v7873_v40 = vadd.f32 %v3169_v44, %v2912_v46  ;;  %v7881_v44 = vpack.c.b16 %v1593_v3, %v1592_v11  ;;  %v2975_v15 = vor.u32 %v2974_v36, %v2970_v18  ;;  %v2980_v13 = vrot.slane %v2978_v33, 5 }
 0x27a   :  { %v2195_v27 = vrot.slane %v2193_v29, 4  ;;  %v2966_v20 = vrot.slane %v2965_v2, 4  ;;  %v2194_v1 = vsel %vm6295_vm5, %v5243_v30, %v2193_v29 }
 0x27b   :  { %v2976_v19 = vrot.slane %v2975_v15, 4  ;;  %v8579_v15 = vld [vmem:[#allocation41_spill] sm:$0xff] }
 0x27c   :  { %v2507_v59 = vpop.f32.mrf.mxu2  ;;  %v2971_v25 = vsel %vm6289_vm4, %v2966_v20, %v2970_v18  ;;  %v5634_v18 = vld [vmem:[%s8400_s0 + $0x198] sm:$0xff] }
 0x27d   :  { %v2603_v12 = vadd.f32 %v2507_v59, %v1918_v52  ;;  %v2817_v5 = vpop.f32.mrf.mxu3  ;;  %v5945_v59 = vld [vmem:[%s8400_s0 + $0x18c] sm:$0xff]  ;;  %v2197_v52 = vsel %vm6295_vm5, %v2195_v27, %v2196_v62  ;;  %v2981_v51 = vsel %vm6289_vm4, %v2976_v19, %v2980_v13 }
 0x27e   :  { %v1825_v56 = vpop.f32.mrf.mxu1  ;;  %v3002_v2 = vunpack.c.l.b16 %v2981_v51  ;;  %v8581_v19 = vld [vmem:[#allocation45_spill] sm:$0xff] }
 0x27f   :  { %v2913_v50 = vadd.f32 %v2817_v5, %v2603_v12  ;;  %v1919_v46 = vadd.f32 %v1825_v56, %v8577_v0  ;;  %v2277_v12 = vunpack.c.l.b16 %v2194_v1  ;;  %v2278_v5 = vunpack.c.l.b16 %v2197_v52 }
 0x280   :  { %v3174_v45 = vpop.f32.mrf.mxu0 }
 0x281   :  { %1864 = vmatmul.bf16.gmra.mxu1 %v7845_v63  ;;  %2549 = vmatmul.bf16.gmra.mxu2 %v7879_v37  ;;  %v7886_v48 = vadd.f32 %v3171_v14, %v2913_v50  ;;  %v3001_v50 = vunpack.c.l.b16 %v2971_v25  ;;  %v7906_v27 = vpack.c.b16 %v2278_v5, %v2277_v12  ;;  %v8583_v25 = vld [vmem:[#allocation48_spill] sm:$0xff] }
 0x282   :  { %2859 = vmatmul.bf16.gmra.mxu3 %v5945_v59 }
 0x283   :  { %3213 = vmatmul.bf16.gmra.mxu0 %v7881_v44  ;;  %v7911_v0 = vpack.c.b16 %v3002_v2, %v3001_v50 }
 0x284   :  { %v2510_v10 = vpop.f32.mrf.mxu2 }
 0x285   :  { %v2604_v14 = vadd.f32 %v2510_v10, %v1919_v46  ;;  %v2820_v11 = vpop.f32.mrf.mxu3 }
 0x286   :  { %v1827_v3 = vpop.f32.mrf.mxu1 }
 0x287   :  { %v2914_v36 = vadd.f32 %v2820_v11, %v2604_v14  ;;  %v1920_v33 = vadd.f32 %v1827_v3, %v8579_v15 }
 0x288   :  { %v3176_v54 = vpop.f32.mrf.mxu0 }
 0x289   :  { %v7903_v56 = vadd.f32 %v3174_v45, %v2914_v36 }
 0x28b   :  { %8578 = vst [vmem:[#allocation33_spill] sm:$0xff] %v7903_v56 }
 0x28c   :  { %v2512_v29 = vpop.f32.mrf.mxu2 }
 0x28d   :  { %v2605_v59 = vadd.f32 %v2512_v29, %v1920_v33  ;;  %v2822_v30 = vpop.f32.mrf.mxu3  ;;  %v8584_v33 = vld [vmem:[#allocation7_spill] sm:$0xff]  ;;  %v5946_v29 = vld [vmem:[%s8400_s0 + $0x18] sm:$0xff] }
 0x28e   :  { %v1830_v62 = vpop.f32.mrf.mxu1 }
 0x28f   :  { %v2915_v46 = vadd.f32 %v2822_v30, %v2605_v59  ;;  %v1921_v13 = vadd.f32 %v1830_v62, %v8581_v19  ;;  %v8586_v30 = vld [vmem:[#allocation8_spill] sm:$0xff]  ;;  %v8587_v62 = vld [vmem:[#allocation13_spill] sm:$0xff] }
 0x290   :  { %v3179_v20 = vpop.f32.mrf.mxu0 }
 0x291   :  { %1869 = vmatmul.bf16.gmra.mxu1 %v7881_v44  ;;  %2554 = vmatmul.bf16.gmra.mxu2 %v7906_v27  ;;  %v7915_v45 = vadd.f32 %v3176_v54, %v2915_v46 }
 0x292   :  { %2864 = vmatmul.bf16.gmra.mxu3 %v5634_v18  ;;  %v8588_v18 = vld [vmem:[#allocation4_spill] sm:$0xff] }
 0x293   :  { %8580 = vst [vmem:[#allocation35_spill] sm:$0xff] %v7915_v45  ;;  %3218 = vmatmul.bf16.gmra.mxu0 %v7911_v0 }
 0x294   :  { %v2515_v10 = vpop.f32.mrf.mxu2 }
 0x295   :  { %v2606_v14 = vadd.f32 %v2515_v10, %v1921_v13  ;;  %v2825_v11 = vpop.f32.mrf.mxu3 }
 0x296   :  { %v1832_v3 = vpop.f32.mrf.mxu1 }
 0x297   :  { %v2916_v1 = vadd.f32 %v2825_v11, %v2606_v14  ;;  %v1922_v51 = vadd.f32 %v1832_v3, %v8583_v25 }
 0x298   :  { %v3181_v52 = vpop.f32.mrf.mxu0 }
 0x299   :  { %v7919_v36 = vadd.f32 %v3179_v20, %v2916_v1  ;;  %v8590_v1 = vld [vmem:[#allocation6_spill] sm:$0xff] }
 0x29b   :  { %8582 = vst [vmem:[#allocation39_spill] sm:$0xff] %v7919_v36 }
 0x29c   :  { %v2517_v12 = vpop.f32.mrf.mxu2 }
 0x29d   :  { %v2607_v5 = vadd.f32 %v2517_v12, %v1922_v51  ;;  %v2827_v50 = vpop.f32.mrf.mxu3 }
 0x29e   :  { %v1835_v54 = vpop.f32.mrf.mxu1 }
 0x29f   :  { %v2917_v2 = vadd.f32 %v2827_v50, %v2607_v5  ;;  %v1923_v46 = vadd.f32 %v1835_v54, %v8588_v18  ;;  %v5947_v54 = vld [vmem:[%s8400_s0 + $0x24] sm:$0xff] }
 0x2a0   :  { %v3184_v15 = vpop.f32.mrf.mxu0 }
 0x2a1   :  { %3385 = vmatmul.bf16.vlgmr.msra.gmra.mxu1 %v8584_v33  ;;  %3695 = vmatmul.bf16.vlgmr.msra.gmra.mxu2 %v5946_v29  ;;  %v7926_v59 = vadd.f32 %v3181_v52, %v2917_v2  ;;  %v8592_v29 = vld [vmem:[#allocation14_spill] sm:$0xff] }
 0x2a2   :  { %4049 = vmatmul.bf16.vlgmr.msra.gmra.mxu3 %v8586_v30  ;;  %v8594_v30 = vld [vmem:[#allocation10_spill] sm:$0xff] }
 0x2a3   :  { %8585 = vst [vmem:[#allocation41_spill] sm:$0xff] %v7926_v59  ;;  %4371 = vmatmul.bf16.vlgmr.msra.gmra.mxu0 %v8587_v62 }
 0x2a4   :  { %v2520_v20 = vpop.f32.mrf.mxu2 }
 0x2a5   :  { %v2608_v19 = vadd.f32 %v2520_v20, %v1923_v46  ;;  %v2830_v13 = vpop.f32.mrf.mxu3 }
 0x2a6   :  { %v1837_v10 = vpop.f32.mrf.mxu1 }
 0x2a7   :  { %v2918_v14 = vadd.f32 %v2830_v13, %v2608_v19  ;;  %v1924_v25 = vadd.f32 %v1837_v10, %v8590_v1  ;;  %v8596_v1 = vld [vmem:[#allocation12_spill] sm:$0xff] }
 0x2a8   :  { %v3186_v11 = vpop.f32.mrf.mxu0 }
 0x2a9   :  { %v7931_v3 = vadd.f32 %v3184_v15, %v2918_v14  ;;  %v8593_v15 = vld [vmem:[#allocation19_spill] sm:$0xff] }
 0x2ab   :  { %8589 = vst [vmem:[#allocation45_spill] sm:$0xff] %v7931_v3 }
 0x2ac   :  { %v2522_v51 = vpop.f32.mrf.mxu2 }
 0x2ad   :  { %v2609_v12 = vadd.f32 %v2522_v51, %v1924_v25  ;;  %v2832_v52 = vpop.f32.mrf.mxu3 }
 0x2ae   :  { %v1840_v5 = vpop.f32.mrf.mxu1 }
 0x2af   :  { %v2919_v50 = vadd.f32 %v2832_v52, %v2609_v12  ;;  %v1925_v18 = vadd.f32 %v1840_v5, %v8594_v30  ;;  %v5948_v5 = vld [vmem:[%s8400_s0 + $0x30] sm:$0xff]  ;;  %v8598_v30 = vld [vmem:[#allocation20_spill] sm:$0xff] }
 0x2b0   :  { %v3189_v2 = vpop.f32.mrf.mxu0 }
 0x2b1   :  { %3390 = vmatmul.bf16.gmra.mxu1 %v8587_v62  ;;  %3700 = vmatmul.bf16.gmra.mxu2 %v5947_v54  ;;  %v7938_v33 = vadd.f32 %v3186_v11, %v2919_v50 }
 0x2b2   :  { %4054 = vmatmul.bf16.gmra.mxu3 %v8592_v29 }
 0x2b3   :  { %8591 = vst [vmem:[#allocation48_spill] sm:$0xff] %v7938_v33  ;;  %4376 = vmatmul.bf16.gmra.mxu0 %v8593_v15 }
 0x2b4   :  { %v2525_v46 = vpop.f32.mrf.mxu2 }
 0x2b5   :  { %v2610_v20 = vadd.f32 %v2525_v46, %v1925_v18  ;;  %v2835_v19 = vpop.f32.mrf.mxu3  ;;  %v8600_v18 = vld [vmem:[#allocation16_spill] sm:$0xff] }
 0x2b6   :  { %v1842_v13 = vpop.f32.mrf.mxu1 }
 0x2b7   :  { %v2920_v10 = vadd.f32 %v2835_v19, %v2610_v20  ;;  %v1926_v25 = vadd.f32 %v1842_v13, %v8596_v1 }
 0x2b8   :  { %v3191_v14 = vpop.f32.mrf.mxu0 }
 0x2b9   :  { %v7943_v62 = vadd.f32 %v3189_v2, %v2920_v10  ;;  %v8599_v2 = vld [vmem:[#allocation25_spill] sm:$0xff] }
 0x2bb   :  { %8595 = vst [vmem:[#allocation7_spill] sm:$0xff] %v7943_v62 }
 0x2bc   :  { %v2527_v51 = vpop.f32.mrf.mxu2 }
 0x2bd   :  { %v2611_v12 = vadd.f32 %v2527_v51, %v1926_v25  ;;  %v2837_v11 = vpop.f32.mrf.mxu3  ;;  %v8602_v51 = vld [vmem:[#allocation18_spill] sm:$0xff] }
 0x2be   :  { %v1845_v52 = vpop.f32.mrf.mxu1 }
 0x2bf   :  { %v2921_v50 = vadd.f32 %v2837_v11, %v2611_v12  ;;  %v1927_v46 = vadd.f32 %v1845_v52, %v8600_v18  ;;  %v5949_v52 = vld [vmem:[%s8400_s0 + $0x3c] sm:$0xff] }
 0x2c0   :  { %v3194_v54 = vpop.f32.mrf.mxu0 }
 0x2c1   :  { %3395 = vmatmul.bf16.gmra.mxu1 %v8593_v15  ;;  %3705 = vmatmul.bf16.gmra.mxu2 %v5948_v5  ;;  %v7950_v29 = vadd.f32 %v3191_v14, %v2921_v50 }
 0x2c2   :  { %4059 = vmatmul.bf16.gmra.mxu3 %v8598_v30 }
 0x2c3   :  { %8597 = vst [vmem:[#allocation8_spill] sm:$0xff] %v7950_v29  ;;  %4381 = vmatmul.bf16.gmra.mxu0 %v8599_v2 }
 0x2c4   :  { %v2530_v20 = vpop.f32.mrf.mxu2 }
 0x2c5   :  { %v2612_v19 = vadd.f32 %v2530_v20, %v1927_v46  ;;  %v2840_v13 = vpop.f32.mrf.mxu3  ;;  %v8604_v46 = vld [vmem:[#allocation26_spill] sm:$0xff] }
 0x2c6   :  { %v1847_v10 = vpop.f32.mrf.mxu1  ;;  %v8606_v20 = vld [vmem:[#allocation22_spill] sm:$0xff] }
 0x2c7   :  { %v2922_v1 = vadd.f32 %v2840_v13, %v2612_v19  ;;  %v1928_v12 = vadd.f32 %v1847_v10, %v8602_v51 }
 0x2c8   :  { %v3196_v25 = vpop.f32.mrf.mxu0 }
 0x2c9   :  { %v7955_v15 = vadd.f32 %v3194_v54, %v2922_v1  ;;  %v8605_v54 = vld [vmem:[#allocation31_spill] sm:$0xff] }
 0x2cb   :  { %8601 = vst [vmem:[#allocation13_spill] sm:$0xff] %v7955_v15 }
 0x2cc   :  { %v2532_v11 = vpop.f32.mrf.mxu2 }
 0x2cd   :  { %v2613_v5 = vadd.f32 %v2532_v11, %v1928_v12  ;;  %v2842_v14 = vpop.f32.mrf.mxu3 }
 0x2ce   :  { %v1850_v50 = vpop.f32.mrf.mxu1 }
 0x2cf   :  { %v2923_v29 = vadd.f32 %v2842_v14, %v2613_v5  ;;  %v1929_v19 = vadd.f32 %v1850_v50, %v8606_v20  ;;  %v8608_v5 = vld [vmem:[#allocation24_spill] sm:$0xff] }
 0x2d0   :  { %v3199_v30 = vpop.f32.mrf.mxu0  ;;  %v5950_v50 = vld [vmem:[%s8400_s0 + $0x48] sm:$0xff] }
 0x2d1   :  { %3400 = vmatmul.bf16.gmra.mxu1 %v8599_v2  ;;  %3710 = vmatmul.bf16.gmra.mxu2 %v5949_v52  ;;  %v7962_v18 = vadd.f32 %v3196_v25, %v2923_v29 }
 0x2d2   :  { %4064 = vmatmul.bf16.gmra.mxu3 %v8604_v46 }
 0x2d3   :  { %8603 = vst [vmem:[#allocation4_spill] sm:$0xff] %v7962_v18  ;;  %4386 = vmatmul.bf16.gmra.mxu0 %v8605_v54 }
 0x2d4   :  { %v2535_v13 = vpop.f32.mrf.mxu2 }
 0x2d5   :  { %v2614_v10 = vadd.f32 %v2535_v13, %v1929_v19  ;;  %v2845_v1 = vpop.f32.mrf.mxu3  ;;  %v8610_v19 = vld [vmem:[#allocation32_spill] sm:$0xff] }
 0x2d6   :  { %v1852_v51 = vpop.f32.mrf.mxu1  ;;  %v8612_v13 = vld [vmem:[#allocation28_spill] sm:$0xff] }
 0x2d7   :  { %v2924_v12 = vadd.f32 %v2845_v1, %v2614_v10  ;;  %v1930_v14 = vadd.f32 %v1852_v51, %v8608_v5 }
 0x2d8   :  { %v3201_v11 = vpop.f32.mrf.mxu0 }
 0x2d9   :  { %v7967_v2 = vadd.f32 %v3199_v30, %v2924_v12  ;;  %v8611_v30 = vld [vmem:[#allocation37_spill] sm:$0xff] }
 0x2db   :  { %8607 = vst [vmem:[#allocation6_spill] sm:$0xff] %v7967_v2 }
 0x2dc   :  { %v2537_v15 = vpop.f32.mrf.mxu2 }
 0x2dd   :  { %v2615_v52 = vadd.f32 %v2537_v15, %v1930_v14  ;;  %v2847_v29 = vpop.f32.mrf.mxu3 }
 0x2de   :  { %v1855_v25 = vpop.f32.mrf.mxu1 }
 0x2df   :  { %v2925_v18 = vadd.f32 %v2847_v29, %v2615_v52  ;;  %v1931_v10 = vadd.f32 %v1855_v25, %v8612_v13  ;;  %v8614_v52 = vld [vmem:[#allocation30_spill] sm:$0xff] }
 0x2e0   :  { %v3204_v46 = vpop.f32.mrf.mxu0  ;;  %v5951_v25 = vld [vmem:[%s8400_s0 + $0x54] sm:$0xff] }
 0x2e1   :  { %3405 = vmatmul.bf16.gmra.mxu1 %v8605_v54  ;;  %3715 = vmatmul.bf16.gmra.mxu2 %v5950_v50  ;;  %v7974_v20 = vadd.f32 %v3201_v11, %v2925_v18 }
 0x2e2   :  { %4069 = vmatmul.bf16.gmra.mxu3 %v8610_v19 }
 0x2e3   :  { %8609 = vst [vmem:[#allocation14_spill] sm:$0xff] %v7974_v20  ;;  %4391 = vmatmul.bf16.gmra.mxu0 %v8611_v30 }
 0x2e4   :  { %v2540_v15 = vpop.f32.mrf.mxu2 }
 0x2e5   :  { %v2616_v1 = vadd.f32 %v2540_v15, %v1931_v10  ;;  %v2850_v51 = vpop.f32.mrf.mxu3  ;;  %v8616_v10 = vld [vmem:[#allocation38_spill] sm:$0xff] }
 0x2e6   :  { %v1857_v12 = vpop.f32.mrf.mxu1  ;;  %v8618_v15 = vld [vmem:[#allocation34_spill] sm:$0xff] }
 0x2e7   :  { %v2926_v5 = vadd.f32 %v2850_v51, %v2616_v1  ;;  %v1932_v29 = vadd.f32 %v1857_v12, %v8614_v52 }
 0x2e8   :  { %v3206_v14 = vpop.f32.mrf.mxu0 }
 0x2e9   :  { %v7979_v54 = vadd.f32 %v3204_v46, %v2926_v5  ;;  %v8617_v46 = vld [vmem:[#allocation43_spill] sm:$0xff] }
 0x2eb   :  { %8613 = vst [vmem:[#allocation19_spill] sm:$0xff] %v7979_v54 }
 0x2ec   :  { %v2542_v2 = vpop.f32.mrf.mxu2 }
 0x2ed   :  { %v2617_v50 = vadd.f32 %v2542_v2, %v1932_v29  ;;  %v2852_v18 = vpop.f32.mrf.mxu3 }
 0x2ee   :  { %v1860_v11 = vpop.f32.mrf.mxu1 }
 0x2ef   :  { %v2927_v20 = vadd.f32 %v2852_v18, %v2617_v50  ;;  %v1933_v1 = vadd.f32 %v1860_v11, %v8618_v15  ;;  %v8620_v50 = vld [vmem:[#allocation36_spill] sm:$0xff]  ;;  %v5952_v11 = vld [vmem:[%s8400_s0 + $0x60] sm:$0xff] }
 0x2f0   :  { %v3209_v19 = vpop.f32.mrf.mxu0 }
 0x2f1   :  { %3410 = vmatmul.bf16.gmra.mxu1 %v8611_v30  ;;  %3720 = vmatmul.bf16.gmra.mxu2 %v5951_v25  ;;  %v7986_v13 = vadd.f32 %v3206_v14, %v2927_v20 }
 0x2f2   :  { %4074 = vmatmul.bf16.gmra.mxu3 %v8616_v10 }
 0x2f3   :  { %8615 = vst [vmem:[#allocation10_spill] sm:$0xff] %v7986_v13  ;;  %4396 = vmatmul.bf16.gmra.mxu0 %v8617_v46 }
 0x2f4   :  { %v2545_v2 = vpop.f32.mrf.mxu2 }
 0x2f5   :  { %v2618_v51 = vadd.f32 %v2545_v2, %v1933_v1  ;;  %v2855_v12 = vpop.f32.mrf.mxu3  ;;  %v8622_v1 = vld [vmem:[#allocation44_spill] sm:$0xff] }
 0x2f6   :  { %v1862_v5 = vpop.f32.mrf.mxu1  ;;  %v8624_v2 = vld [vmem:[#allocation40_spill] sm:$0xff] }
 0x2f7   :  { %v2928_v52 = vadd.f32 %v2855_v12, %v2618_v51  ;;  %v1934_v18 = vadd.f32 %v1862_v5, %v8620_v50 }
 0x2f8   :  { %v3211_v29 = vpop.f32.mrf.mxu0 }
 0x2f9   :  { %v7991_v30 = vadd.f32 %v3209_v19, %v2928_v52  ;;  %v8623_v19 = vld [vmem:[#allocation50_spill] sm:$0xff] }
 0x2fb   :  { %8619 = vst [vmem:[#allocation12_spill] sm:$0xff] %v7991_v30 }
 0x2fc   :  { %v2547_v54 = vpop.f32.mrf.mxu2 }
 0x2fd   :  { %v2619_v25 = vadd.f32 %v2547_v54, %v1934_v18  ;;  %v2857_v20 = vpop.f32.mrf.mxu3 }
 0x2fe   :  { %v1865_v14 = vpop.f32.mrf.mxu1 }
 0x2ff   :  { %v2929_v13 = vadd.f32 %v2857_v20, %v2619_v25  ;;  %v1935_v51 = vadd.f32 %v1865_v14, %v8624_v2  ;;  %v8626_v25 = vld [vmem:[#allocation42_spill] sm:$0xff]  ;;  %v5953_v14 = vld [vmem:[%s8400_s0 + $0x6c] sm:$0xff] }
 0x300   :  { %v3214_v10 = vpop.f32.mrf.mxu0 }
 0x301   :  { %3415 = vmatmul.bf16.gmra.mxu1 %v8617_v46  ;;  %3725 = vmatmul.bf16.gmra.mxu2 %v5952_v11  ;;  %v7998_v15 = vadd.f32 %v3211_v29, %v2929_v13 }
 0x302   :  { %4079 = vmatmul.bf16.gmra.mxu3 %v8622_v1 }
 0x303   :  { %8621 = vst [vmem:[#allocation20_spill] sm:$0xff] %v7998_v15  ;;  %4401 = vmatmul.bf16.gmra.mxu0 %v8623_v19 }
 0x304   :  { %v2550_v54 = vpop.f32.mrf.mxu2 }
 0x305   :  { %v2620_v12 = vadd.f32 %v2550_v54, %v1935_v51  ;;  %v2860_v5 = vpop.f32.mrf.mxu3 }
 0x306   :  { %v1867_v52 = vpop.f32.mrf.mxu1 }
 0x307   :  { %v2930_v50 = vadd.f32 %v2860_v5, %v2620_v12  ;;  %v1936_v20 = vadd.f32 %v1867_v52, %v8626_v25  ;;  %v8630_v25 = vld [vmem:[#allocation49_spill] sm:$0xff] }
 0x308   :  { %v3216_v18 = vpop.f32.mrf.mxu0 }
 0x309   :  { %v8003_v46 = vadd.f32 %v3214_v10, %v2930_v50  ;;  %v8628_v10 = vld [vmem:[#allocation46_spill] sm:$0xff] }
 0x30b   :  { %8625 = vst [vmem:[#allocation25_spill] sm:$0xff] %v8003_v46 }
 0x30c   :  { %v2552_v30 = vpop.f32.mrf.mxu2 }
 0x30d   :  { %v2621_v11 = vadd.f32 %v2552_v30, %v1936_v20  ;;  %v2862_v13 = vpop.f32.mrf.mxu3 }
 0x30e   :  { %v1870_v29 = vpop.f32.mrf.mxu1 }
 0x30f   :  { %v2931_v15 = vadd.f32 %v2862_v13, %v2621_v11  ;;  %v1937_v51 = vadd.f32 %v1870_v29, %v8628_v10  ;;  %v5954_v29 = vld [vmem:[%s8400_s0 + $0x78] sm:$0xff] }
 0x310   :  { %v3219_v1 = vpop.f32.mrf.mxu0 }
 0x311   :  { %3420 = vmatmul.bf16.gmra.mxu1 %v8623_v19  ;;  %3730 = vmatmul.bf16.gmra.mxu2 %v5953_v14  ;;  %v8010_v2 = vadd.f32 %v3216_v18, %v2931_v15 }
 0x312   :  { %4084 = vmatmul.bf16.gmra.mxu3 %v6792_v26 }
 0x313   :  { %8627 = vst [vmem:[#allocation16_spill] sm:$0xff] %v8010_v2  ;;  %4406 = vmatmul.bf16.gmra.mxu0 %v6833_v42 }
 0x314   :  { %v2555_v30 = vpop.f32.mrf.mxu2 }
 0x315   :  { %v2622_v54 = vadd.f32 %v2555_v30, %v1937_v51  ;;  %v2865_v12 = vpop.f32.mrf.mxu3 }
 0x316   :  { %v1872_v5 = vpop.f32.mrf.mxu1 }
 0x317   :  { %v2932_v52 = vadd.f32 %v2865_v12, %v2622_v54  ;;  %v1938_v20 = vadd.f32 %v1872_v5, %v8630_v25 }
 0x318   :  { %v3221_v50 = vpop.f32.mrf.mxu0 }
 0x319   :  { %v8015_v19 = vadd.f32 %v3219_v1, %v2932_v52  ;;  %v8632_v1 = vld [vmem:[#allocation51_spill] sm:$0xff] }
 0x31b   :  { %8629 = vst [vmem:[#allocation18_spill] sm:$0xff] %v8015_v19 }
 0x31c   :  { %v2557_v11 = vpop.f32.mrf.mxu2 }
 0x31d   :  { %v2623_v13 = vadd.f32 %v2557_v11, %v1938_v20  ;;  %v2867_v15 = vpop.f32.mrf.mxu3 }
 0x31e   :  { %v3386_v18 = vpop.f32.mrf.mxu1 }
 0x31f   :  { %v2933_v14 = vadd.f32 %v2867_v15, %v2623_v13  ;;  %v3546_v51 = vadd.f32 %v3386_v18, %v8632_v1  ;;  %v5955_v18 = vld [vmem:[%s8400_s0 + $0x84] sm:$0xff] }
 0x320   :  { %v4372_v26 = vpop.f32.mrf.mxu0 }
 0x321   :  { %3425 = vmatmul.bf16.gmra.mxu1 %v6833_v42  ;;  %3735 = vmatmul.bf16.gmra.mxu2 %v5954_v29  ;;  %v8022_v10 = vadd.f32 %v3221_v50, %v2933_v14  ;;  %v8633_v42 = vld [vmem:[#allocation52_spill] sm:$0xff] }
 0x322   :  { %4089 = vmatmul.bf16.gmra.mxu3 %v6836_v28 }
 0x323   :  { %8631 = vst [vmem:[#allocation26_spill] sm:$0xff] %v8022_v10  ;;  %4411 = vmatmul.bf16.gmra.mxu0 %v6881_v32 }
 0x324   :  { %v3696_v30 = vpop.f32.mrf.mxu2 }
 0x325   :  { %v4050_v54 = vpop.f32.mrf.mxu3  ;;  %v3856_v12 = vadd.f32 %v3696_v30, %v3546_v51  ;;  %v8634_v51 = vld [vmem:[#allocation56_spill] sm:$0xff] }
 0x326   :  { %v3388_v5 = vpop.f32.mrf.mxu1 }
 0x327   :  { %v4210_v25 = vadd.f32 %v4050_v54, %v3856_v12  ;;  %v3547_v20 = vadd.f32 %v3388_v5, %v8633_v42 }
 0x328   :  { %v4374_v52 = vpop.f32.mrf.mxu0 }
 0x329   :  { %v4532_v29 = vadd.f32 %v4372_v26, %v4210_v25  ;;  %v8635_v26 = vld [vmem:[#allocation53_spill] sm:$0xff] }
 0x32b   :  { %v4860_v1 = vmul.f32 %v4532_v29, %v4532_v29 }
 0x32c   :  { %v3698_v11 = vpop.f32.mrf.mxu2 }
 0x32d   :  { %v3857_v13 = vadd.f32 %v3698_v11, %v3547_v20  ;;  %v4052_v15 = vpop.f32.mrf.mxu3 }
 0x32e   :  { %v3391_v50 = vpop.f32.mrf.mxu1 }
 0x32f   :  { %v4211_v14 = vadd.f32 %v4052_v15, %v3857_v13  ;;  %v3548_v5 = vadd.f32 %v3391_v50, %v8635_v26 }
 0x330   :  { %v4377_v10 = vpop.f32.mrf.mxu0 }
 0x331   :  { %v4533_v28 = vadd.f32 %v4374_v52, %v4211_v14  ;;  %3430 = vmatmul.bf16.gmra.mxu1 %v6881_v32  ;;  %3740 = vmatmul.bf16.gmra.mxu2 %v5955_v18  ;;  %v8636_v18 = vld [vmem:[#allocation54_spill] sm:$0xff] }
 0x332   :  { %4094 = vmatmul.bf16.gmra.mxu3 %v6883_v41 }
 0x333   :  { %4416 = vmatmul.bf16.gmra.mxu0 %v8634_v51  ;;  %v5711_v30 = vpack.c.bf16 %v4533_v28, %v4532_v29  ;;  %v4791_v54 = vadd.f32 %v4533_v28, %v4532_v29  ;;  %v4861_v12 = vmul.f32 %v4533_v28, %v4533_v28 }
 0x334   :  { %v3701_v25 = vpop.f32.mrf.mxu2 }
 0x335   :  { %5712 = vst [vmem:[%s8401_s2] sm:$0xff] %v5711_v30   ;;  %v4924_v32 = vadd.f32 %v4861_v12, %v4860_v1  ;;  %v3858_v52 = vadd.f32 %v3701_v25, %v3548_v5  ;;  %v4055_v42 = vpop.f32.mrf.mxu3  ;;  %v5956_v1 = vld [vmem:[%s8400_s0 + $0x90] sm:$0xff]  ;;  %v8638_v30 = vld [vmem:[#allocation60_spill] sm:$0xff] }
 0x336   :  { %v3393_v20 = vpop.f32.mrf.mxu1 }
 0x337   :  { %v4212_v11 = vadd.f32 %v4055_v42, %v3858_v52  ;;  %v3549_v19 = vadd.f32 %v3393_v20, %v8636_v18  ;;  %v8640_v18 = vld [vmem:[#allocation58_spill] sm:$0xff] }
 0x338   :  { %v4379_v13 = vpop.f32.mrf.mxu0 }
 0x339   :  { %v4534_v15 = vadd.f32 %v4377_v10, %v4212_v11  ;;  %v8637_v10 = vld [vmem:[#allocation57_spill] sm:$0xff] }
 0x33b   :  { %v4792_v41 = vadd.f32 %v4791_v54, %v4534_v15  ;;  %v4862_v14 = vmul.f32 %v4534_v15, %v4534_v15 }
 0x33c   :  { %v3703_v29 = vpop.f32.mrf.mxu2 }
 0x33d   :  { %v4925_v28 = vadd.f32 %v4924_v32, %v4862_v14  ;;  %v3859_v2 = vadd.f32 %v3703_v29, %v3549_v19  ;;  %v4057_v50 = vpop.f32.mrf.mxu3  ;;  %v8639_v19 = vld [vmem:[#allocation55_spill] sm:$0xff] }
 0x33e   :  { %v3396_v26 = vpop.f32.mrf.mxu1 }
 0x33f   :  { %v4213_v46 = vadd.f32 %v4057_v50, %v3859_v2  ;;  %v3550_v25 = vadd.f32 %v3396_v26, %v8639_v19 }
 0x340   :  { %v4382_v62 = vpop.f32.mrf.mxu0 }
 0x341   :  { %v4535_v33 = vadd.f32 %v4379_v13, %v4213_v46  ;;  %3435 = vmatmul.bf16.gmra.mxu1 %v8634_v51  ;;  %3745 = vmatmul.bf16.gmra.mxu2 %v5956_v1 }
 0x342   :  { %4099 = vmatmul.bf16.gmra.mxu3 %v8637_v10 }
 0x343   :  { %4421 = vmatmul.bf16.gmra.mxu0 %v8638_v30  ;;  %v5716_v54 = vpack.c.bf16 %v4535_v33, %v4534_v15  ;;  %v4793_v12 = vadd.f32 %v4792_v41, %v4535_v33  ;;  %v4863_v5 = vmul.f32 %v4535_v33, %v4535_v33 }
 0x344   :  { %v3706_v32 = vpop.f32.mrf.mxu2 }
 0x345   :  { %5868 = vst [vmem:[%s8401_s2 + $0x8] sm:$0xff] %v5716_v54   ;;  %v4926_v46 = vadd.f32 %v4925_v28, %v4863_v5  ;;  %v3860_v2 = vadd.f32 %v3706_v32, %v3550_v25  ;;  %v4060_v51 = vpop.f32.mrf.mxu3  ;;  %v5957_v28 = vld [vmem:[%s8400_s0 + $0x9c] sm:$0xff]  ;;  %v8642_v54 = vld [vmem:[#allocation64_spill] sm:$0xff] }
 0x346   :  { %v3398_v52 = vpop.f32.mrf.mxu1  ;;  %v8643_v32 = vld [vmem:[#allocation59_spill] sm:$0xff] }
 0x347   :  { %v4214_v42 = vadd.f32 %v4060_v51, %v3860_v2  ;;  %v3551_v15 = vadd.f32 %v3398_v52, %v8640_v18 }
 0x348   :  { %v4384_v20 = vpop.f32.mrf.mxu0 }
 0x349   :  { %v4536_v11 = vadd.f32 %v4382_v62, %v4214_v42  ;;  %v8641_v62 = vld [vmem:[#allocation61_spill] sm:$0xff] }
 0x34b   :  { %v4794_v13 = vadd.f32 %v4793_v12, %v4536_v11  ;;  %v4864_v14 = vmul.f32 %v4536_v11, %v4536_v11 }
 0x34c   :  { %v3708_v41 = vpop.f32.mrf.mxu2 }
 0x34d   :  { %v4927_v33 = vadd.f32 %v4926_v46, %v4864_v14  ;;  %v3861_v29 = vadd.f32 %v3708_v41, %v3551_v15  ;;  %v4062_v50 = vpop.f32.mrf.mxu3 }
 0x34e   :  { %v3401_v26 = vpop.f32.mrf.mxu1 }
 0x34f   :  { %v4215_v1 = vadd.f32 %v4062_v50, %v3861_v29  ;;  %v3552_v46 = vadd.f32 %v3401_v26, %v8643_v32  ;;  %v8644_v29 = vld [vmem:[#allocation62_spill] sm:$0xff] }
 0x350   :  { %v4387_v10 = vpop.f32.mrf.mxu0 }
 0x351   :  { %v4537_v19 = vadd.f32 %v4384_v20, %v4215_v1  ;;  %3440 = vmatmul.bf16.gmra.mxu1 %v8638_v30  ;;  %3750 = vmatmul.bf16.gmra.mxu2 %v5957_v28 }
 0x352   :  { %4104 = vmatmul.bf16.gmra.mxu3 %v8641_v62 }
 0x353   :  { %4426 = vmatmul.bf16.gmra.mxu0 %v8642_v54  ;;  %v5721_v12 = vpack.c.bf16 %v4537_v19, %v4536_v11  ;;  %v4795_v5 = vadd.f32 %v4794_v13, %v4537_v19  ;;  %v4865_v25 = vmul.f32 %v4537_v19, %v4537_v19 }
 0x354   :  { %v3711_v2 = vpop.f32.mrf.mxu2 }
 0x355   :  { %5869 = vst [vmem:[%s8401_s2 + $0x10] sm:$0xff] %v5721_v12   ;;  %v4928_v30 = vadd.f32 %v4927_v33, %v4865_v25  ;;  %v3862_v51 = vadd.f32 %v3711_v2, %v3552_v46  ;;  %v4065_v52 = vpop.f32.mrf.mxu3  ;;  %v5958_v33 = vld [vmem:[%s8400_s0 + $0xa8] sm:$0xff]  ;;  %v8646_v12 = vld [vmem:[#allocation67_spill] sm:$0xff] }
 0x356   :  { %v3403_v42 = vpop.f32.mrf.mxu1  ;;  %v8647_v2 = vld [vmem:[#allocation63_spill] sm:$0xff] }
 0x357   :  { %v4216_v20 = vadd.f32 %v4065_v52, %v3862_v51  ;;  %v3553_v11 = vadd.f32 %v3403_v42, %v8644_v29 }
 0x358   :  { %v4389_v14 = vpop.f32.mrf.mxu0 }
 0x359   :  { %v4538_v18 = vadd.f32 %v4387_v10, %v4216_v20  ;;  %v8645_v10 = vld [vmem:[#allocation65_spill] sm:$0xff] }
 0x35b   :  { %v4796_v15 = vadd.f32 %v4795_v5, %v4538_v18  ;;  %v4866_v41 = vmul.f32 %v4538_v18, %v4538_v18 }
 0x35c   :  { %v3713_v13 = vpop.f32.mrf.mxu2 }
 0x35d   :  { %v4929_v50 = vadd.f32 %v4928_v30, %v4866_v41  ;;  %v3863_v1 = vadd.f32 %v3713_v13, %v3553_v11  ;;  %v4067_v26 = vpop.f32.mrf.mxu3 }
 0x35e   :  { %v3406_v19 = vpop.f32.mrf.mxu1 }
 0x35f   :  { %v4217_v28 = vadd.f32 %v4067_v26, %v3863_v1  ;;  %v3554_v30 = vadd.f32 %v3406_v19, %v8647_v2  ;;  %v8648_v1 = vld [vmem:[#allocation66_spill] sm:$0xff] }
 0x360   :  { %v4392_v62 = vpop.f32.mrf.mxu0 }
 0x361   :  { %v4539_v32 = vadd.f32 %v4389_v14, %v4217_v28  ;;  %3445 = vmatmul.bf16.gmra.mxu1 %v8642_v54  ;;  %3755 = vmatmul.bf16.gmra.mxu2 %v5958_v33  ;;  %v5959_v33 = vld [vmem:[%s8400_s0 + $0xc4] sm:$0xf] }
 0x362   :  { %4109 = vmatmul.bf16.gmra.mxu3 %v8645_v10 }
 0x363   :  { %4431 = vmatmul.bf16.gmra.mxu0 %v8646_v12  ;;  %v5726_v5 = vpack.c.bf16 %v4539_v32, %v4538_v18  ;;  %v4797_v25 = vadd.f32 %v4796_v15, %v4539_v32  ;;  %v4867_v46 = vmul.f32 %v4539_v32, %v4539_v32 }
 0x364   :  { %v3716_v51 = vpop.f32.mrf.mxu2 }
 0x365   :  { %5870 = vst [vmem:[%s8401_s2 + $0x18] sm:$0xff] %v5726_v5   ;;  %v4930_v54 = vadd.f32 %v4929_v50, %v4867_v46  ;;  %v3864_v52 = vadd.f32 %v3716_v51, %v3554_v30  ;;  %v4070_v42 = vpop.f32.mrf.mxu3  ;;  %v3292_v50 = vrot.slane %v5959_v33, 5  ;;  %v5962_v51 = vld [vmem:[%s8400_s0 + $0xc8] sm:$0x1] }
 0x366   :  { %v3408_v20 = vpop.f32.mrf.mxu1 }
 0x367   :  { %v4218_v14 = vadd.f32 %v4070_v42, %v3864_v52  ;;  %v3555_v18 = vadd.f32 %v3408_v20, %v8648_v1  ;;  %v3294_v30 = vrot.slane %v3292_v50, 4  ;;  %v8649_v20 = vld [vmem:[#allocation68_spill] sm:$0xff] }
 0x368   :  { %v4394_v41 = vpop.f32.mrf.mxu0 }
 0x369   :  { %v4540_v29 = vadd.f32 %v4392_v62, %v4218_v14  ;;  %v5960_v62 = vld [vmem:[%s8400_s0 + $0xb4] sm:$0xff] }
 0x36b   :  { %v4798_v11 = vadd.f32 %v4797_v25, %v4540_v29  ;;  %v4868_v13 = vmul.f32 %v4540_v29, %v4540_v29  ;;  %v5961_v25 = vld [vmem:[%s8400_s0 + $0xc0] sm:$0xf] }
 0x36c   :  { %v3718_v15 = vpop.f32.mrf.mxu2  ;;  %v5396_v2 = vrot.slane %v5961_v25, 9 }
 0x36d   :  { %v4931_v26 = vadd.f32 %v4930_v54, %v4868_v13  ;;  %v3865_v28 = vadd.f32 %v3718_v15, %v3555_v18  ;;  %v4072_v19 = vpop.f32.mrf.mxu3  ;;  %v8090_v54 = vld [vmem:[%s8400_s0 + $0xcc] sm:$0xf] }
 0x36e   :  { %v3411_v32 = vpop.f32.mrf.mxu1 }
 0x36f   :  { %v4219_v10 = vadd.f32 %v4072_v19, %v3865_v28  ;;  %v3556_v14 = vadd.f32 %v3411_v32, %v8649_v20  ;;  %v3921_v28 = vshrl.u32 %v8090_v54, 16  ;;  %v134_v20 = vld [vmem:[%s8400_s0 + $0xd4] sm:$0x1] }
 0x370   :  { %v4397_v5 = vpop.f32.mrf.mxu0 }
 0x371   :  { %v4541_v46 = vadd.f32 %v4394_v41, %v4219_v10  ;;  %3450 = vmatmul.bf16.gmra.mxu1 %v8646_v12  ;;  %3760 = vmatmul.bf16.gmra.mxu2 %v5960_v62  ;;  %v3295_v12 = vrot.slane %v5962_v51, 5  ;;  %v8096_v41 = vld [vmem:[%s8400_s0 + $0xd0] sm:$0xf]  ;;  %v3923_v25 = vrot.slane %v3921_v28, 4 }
 0x372   :  { %4114 = vmatmul.bf16.gmra.mxu3 %v7073_v7  ;;  %v3930_v19 = vshll.u32 %v8096_v41, 16  ;;  %v3934_v32 = vshrl.u32 %v8096_v41, 16 }
 0x373   :  { %4436 = vmatmul.bf16.gmra.mxu0 %v7153_v60  ;;  %v5731_v52 = vpack.c.bf16 %v4541_v46, %v4540_v29  ;;  %v4799_v7 = vadd.f32 %v4798_v11, %v4541_v46  ;;  %v4869_v42 = vmul.f32 %v4541_v46, %v4541_v46  ;;  %v3924_v29 = vshll.u32 %v8090_v54, 16 }
 0x374   :  { %v3721_v13 = vpop.f32.mrf.mxu2  ;;  %v3293_v46 = vsel %vm6295_vm5, %v5396_v2, %v3292_v50  ;;  %v3296_v62 = vsel %vm6295_vm5, %v3294_v30, %v3295_v12 }
 0x375   :  { %5871 = vst [vmem:[%s8401_s2 + $0x20] sm:$0xff] %v5731_v52   ;;  %v4932_v1 = vadd.f32 %v4931_v26, %v4869_v42  ;;  %v3866_v18 = vadd.f32 %v3721_v13, %v3556_v14  ;;  %v4075_v15 = vpop.f32.mrf.mxu3  ;;  %v3926_v51 = vrot.slane %v3924_v29, 5  ;;  %v3321_v52 = vunpack.c.l.b16 %v3293_v46 }
 0x376   :  { %v3413_v11 = vpop.f32.mrf.mxu1  ;;  %v3322_v42 = vunpack.c.l.b16 %v3296_v62  ;;  %v3932_v14 = vrot.slane %v3930_v19, 5  ;;  %v3936_v13 = vrot.slane %v3934_v32, 4 }
 0x377   :  { %v4220_v33 = vadd.f32 %v4075_v15, %v3866_v18  ;;  %v8650_v15 = vld [vmem:[#allocation69_spill] sm:$0xff]  ;;  %v3927_v30 = vor.u32 %v3926_v51, %v3923_v25 }
 0x378   :  { %v4399_v10 = vpop.f32.mrf.mxu0  ;;  %v3557_v59 = vadd.f32 %v3413_v11, %v8650_v15  ;;  %v3325_v28 = vpack.c.b16 %v3322_v42, %v3321_v52  ;;  %v3937_v29 = vor.u32 %v3936_v13, %v3932_v14  ;;  %v5550_v11 = vrot.slane %v8090_v54, 9 }
 0x379   :  { %v4542_v26 = vadd.f32 %v4397_v5, %v4220_v33  ;;  %v3940_v5 = vshll.u32 %v134_v20, 16  ;;  %v4278_v33 = vrot.slane %v8096_v41, 5  ;;  %v4281_v41 = vrot.slane %v134_v20, 5 }
 0x37b   :  { %v4800_v3 = vadd.f32 %v4799_v7, %v4542_v26  ;;  %v4870_v18 = vmul.f32 %v4542_v26, %v4542_v26  ;;  %v5963_v7 = vld [vmem:[%s8400_s0 + $0xc0] sm:$0xff]  ;;  %v4280_v19 = vrot.slane %v4278_v33, 4 }
 0x37c   :  { %v3723_v36 = vpop.f32.mrf.mxu2 }
 0x37d   :  { %v4933_v50 = vadd.f32 %v4932_v1, %v4870_v18  ;;  %v3867_v2 = vadd.f32 %v3723_v36, %v3557_v59  ;;  %v4077_v45 = vpop.f32.mrf.mxu3  ;;  %v3928_v1 = vrot.slane %v3927_v30, 4  ;;  %v3942_v36 = vrot.slane %v3940_v5, 5 }
 0x37e   :  { %v3416_v12 = vpop.f32.mrf.mxu1  ;;  %v3938_v59 = vrot.slane %v3937_v29, 4 }
 0x37f   :  { %v4221_v46 = vadd.f32 %v4077_v45, %v3867_v2  ;;  %v3933_v13 = vsel %vm6289_vm4, %v3928_v1, %v3932_v14 }
 0x380   :  { %v4402_v62 = vpop.f32.mrf.mxu0  ;;  %v3985_v20 = vunpack.c.l.b16 %v3933_v13 }
 0x381   :  { %v4543_v56 = vadd.f32 %v4399_v10, %v4221_v46  ;;  %3455 = vmatmul.bf16.gmra.mxu1 %v7153_v60  ;;  %3765 = vmatmul.bf16.gmra.mxu2 %v5963_v7  ;;  %v3558_v60 = vadd.f32 %v3416_v12, %v7143_v58  ;;  %v4279_v58 = vsel %vm6295_vm5, %v5550_v11, %v4278_v33  ;;  %v5617_v33 = vld [vmem:[%s8400_s0 + $0xcc] sm:$0xff] }
 0x382   :  { %4119 = vmatmul.bf16.gmra.mxu3 %v7158_v21 }
 0x383   :  { %4441 = vmatmul.bf16.gmra.mxu0 %v3325_v28  ;;  %v5736_v45 = vpack.c.bf16 %v4543_v56, %v4542_v26  ;;  %v4801_v32 = vadd.f32 %v4800_v3, %v4543_v56  ;;  %v4871_v10 = vmul.f32 %v4543_v56, %v4543_v56  ;;  %v3943_v3 = vsel %vm6289_vm4, %v3938_v59, %v3942_v36 }
 0x384   :  { %v3726_v25 = vpop.f32.mrf.mxu2  ;;  %v4282_v56 = vsel %vm6295_vm5, %v4280_v19, %v4281_v41  ;;  %v3986_v15 = vunpack.c.l.b16 %v3943_v3 }
 0x385   :  { %5872 = vst [vmem:[%s8401_s2 + $0x28] sm:$0xff] %v5736_v45   ;;  %v4934_v51 = vadd.f32 %v4933_v50, %v4871_v10  ;;  %v3868_v52 = vadd.f32 %v3726_v25, %v3558_v60  ;;  %v4080_v42 = vpop.f32.mrf.mxu3  ;;  %v4307_v50 = vunpack.c.l.b16 %v4279_v58  ;;  %v4308_v2 = vunpack.c.l.b16 %v4282_v56 }
 0x386   :  { %v3418_v21 = vpop.f32.mrf.mxu1  ;;  %v3989_v36 = vpack.c.b16 %v3986_v15, %v3985_v20 }
 0x387   :  { %v4222_v54 = vadd.f32 %v4080_v42, %v3868_v52  ;;  %v3559_v14 = vadd.f32 %v3418_v21, %v7170_v53  ;;  %v4311_v59 = vpack.c.b16 %v4308_v2, %v4307_v50  ;;  %v5964_v2 = vld [vmem:[%s8400_s0 + $0xf0] sm:$0xff] }
 0x388   :  { %v4404_v18 = vpop.f32.mrf.mxu0 }
 0x389   :  { %v4544_v26 = vadd.f32 %v4402_v62, %v4222_v54 }
 0x38b   :  { %v4802_v30 = vadd.f32 %v4801_v32, %v4544_v26  ;;  %v4872_v5 = vmul.f32 %v4544_v26, %v4544_v26 }
 0x38c   :  { %v3728_v12 = vpop.f32.mrf.mxu2 }
 0x38d   :  { %v4935_v29 = vadd.f32 %v4934_v51, %v4872_v5  ;;  %v3869_v46 = vadd.f32 %v3728_v12, %v3559_v14  ;;  %v4082_v7 = vpop.f32.mrf.mxu3 }
 0x38e   :  { %v3421_v1 = vpop.f32.mrf.mxu1 }
 0x38f   :  { %v4223_v62 = vadd.f32 %v4082_v7, %v3869_v46  ;;  %v3560_v32 = vadd.f32 %v3421_v1, %v7195_v23 }
 0x390   :  { %v4407_v11 = vpop.f32.mrf.mxu0 }
 0x391   :  { %v4545_v19 = vadd.f32 %v4404_v18, %v4223_v62  ;;  %3460 = vmatmul.bf16.gmra.mxu1 %v3325_v28  ;;  %3770 = vmatmul.bf16.gmra.mxu2 %v5617_v33 }
 0x392   :  { %4124 = vmatmul.bf16.gmra.mxu3 %v3989_v36 }
 0x393   :  { %4446 = vmatmul.bf16.gmra.mxu0 %v4311_v59  ;;  %v5741_v41 = vpack.c.bf16 %v4545_v19, %v4544_v26  ;;  %v4803_v53 = vadd.f32 %v4802_v30, %v4545_v19  ;;  %v4873_v45 = vmul.f32 %v4545_v19, %v4545_v19 }
 0x394   :  { %v3731_v10 = vpop.f32.mrf.mxu2 }
 0x395   :  { %5873 = vst [vmem:[%s8401_s2 + $0x30] sm:$0xff] %v5741_v41   ;;  %v4936_v60 = vadd.f32 %v4935_v29, %v4873_v45  ;;  %v3870_v25 = vadd.f32 %v3731_v10, %v3560_v32  ;;  %v4085_v51 = vpop.f32.mrf.mxu3 }
 0x396   :  { %v3423_v52 = vpop.f32.mrf.mxu1 }
 0x397   :  { %v4224_v42 = vadd.f32 %v4085_v51, %v3870_v25  ;;  %v3561_v18 = vadd.f32 %v3423_v52, %v7207_v16 }
 0x398   :  { %v4409_v21 = vpop.f32.mrf.mxu0 }
 0x399   :  { %v4546_v28 = vadd.f32 %v4407_v11, %v4224_v42 }
 0x39b   :  { %v4804_v13 = vadd.f32 %v4803_v53, %v4546_v28  ;;  %v4874_v54 = vmul.f32 %v4546_v28, %v4546_v28 }
 0x39c   :  { %v3733_v3 = vpop.f32.mrf.mxu2 }
 0x39d   :  { %v4937_v58 = vadd.f32 %v4936_v60, %v4874_v54  ;;  %v3871_v56 = vadd.f32 %v3733_v3, %v3561_v18  ;;  %v4087_v23 = vpop.f32.mrf.mxu3  ;;  %v5965_v60 = vld [vmem:[%s8400_s0 + $0xfc] sm:$0xff] }
 0x39e   :  { %v3426_v26 = vpop.f32.mrf.mxu1 }
 0x39f   :  { %v4225_v20 = vadd.f32 %v4087_v23, %v3871_v56  ;;  %v3562_v14 = vadd.f32 %v3426_v26, %v7235_v9 }
 0x3a0   :  { %v4412_v15 = vpop.f32.mrf.mxu0 }
 0x3a1   :  { %v4547_v50 = vadd.f32 %v4409_v21, %v4225_v20  ;;  %3465 = vmatmul.bf16.gmra.mxu1 %v7243_v24  ;;  %3775 = vmatmul.bf16.gmra.mxu2 %v5964_v2 }
 0x3a2   :  { %4129 = vmatmul.bf16.gmra.mxu3 %v7246_v39 }
 0x3a3   :  { %4451 = vmatmul.bf16.gmra.mxu0 %v7290_v22  ;;  %v5746_v16 = vpack.c.bf16 %v4547_v50, %v4546_v28  ;;  %v4805_v30 = vadd.f32 %v4804_v13, %v4547_v50  ;;  %v4875_v5 = vmul.f32 %v4547_v50, %v4547_v50 }
 0x3a4   :  { %v3736_v12 = vpop.f32.mrf.mxu2 }
 0x3a5   :  { %5874 = vst [vmem:[%s8401_s2 + $0x38] sm:$0xff] %v5746_v16   ;;  %v4938_v24 = vadd.f32 %v4937_v58, %v4875_v5  ;;  %v3872_v29 = vadd.f32 %v3736_v12, %v3562_v14  ;;  %v4090_v46 = vpop.f32.mrf.mxu3 }
 0x3a6   :  { %v3428_v7 = vpop.f32.mrf.mxu1 }
 0x3a7   :  { %v4226_v33 = vadd.f32 %v4090_v46, %v3872_v29  ;;  %v3563_v62 = vadd.f32 %v3428_v7, %v7251_v38 }
 0x3a8   :  { %v4414_v1 = vpop.f32.mrf.mxu0 }
 0x3a9   :  { %v4548_v36 = vadd.f32 %v4412_v15, %v4226_v33 }
 0x3ab   :  { %v4806_v39 = vadd.f32 %v4805_v30, %v4548_v36  ;;  %v4876_v59 = vmul.f32 %v4548_v36, %v4548_v36  ;;  %v5966_v30 = vld [vmem:[%s8400_s0 + $0x108] sm:$0xff] }
 0x3ac   :  { %v3738_v11 = vpop.f32.mrf.mxu2 }
 0x3ad   :  { %v4939_v19 = vadd.f32 %v4938_v24, %v4876_v59  ;;  %v3873_v41 = vadd.f32 %v3738_v11, %v3563_v62  ;;  %v4092_v9 = vpop.f32.mrf.mxu3  ;;  %v8651_v59 = vld [vmem:[#allocation70_spill] sm:$0xff] }
 0x3ae   :  { %v3431_v53 = vpop.f32.mrf.mxu1 }
 0x3af   :  { %v4227_v45 = vadd.f32 %v4092_v9, %v3873_v41  ;;  %v3564_v52 = vadd.f32 %v3431_v53, %v7281_v43 }
 0x3b0   :  { %v4417_v32 = vpop.f32.mrf.mxu0 }
 0x3b1   :  { %v4549_v10 = vadd.f32 %v4414_v1, %v4227_v45  ;;  %3470 = vmatmul.bf16.gmra.mxu1 %v7290_v22  ;;  %3780 = vmatmul.bf16.gmra.mxu2 %v5965_v60  ;;  %v8652_v60 = vld [vmem:[#allocation74_spill] sm:$0xff] }
 0x3b2   :  { %4134 = vmatmul.bf16.gmra.mxu3 %v7292_v17 }
 0x3b3   :  { %4456 = vmatmul.bf16.gmra.mxu0 %v7348_v8  ;;  %v5751_v38 = vpack.c.bf16 %v4549_v10, %v4548_v36  ;;  %v4807_v25 = vadd.f32 %v4806_v39, %v4549_v10  ;;  %v4877_v51 = vmul.f32 %v4549_v10, %v4549_v10  ;;  %v5967_v10 = vld [vmem:[%s8400_s0 + $0x114] sm:$0xff] }
 0x3b4   :  { %v3741_v42 = vpop.f32.mrf.mxu2 }
 0x3b5   :  { %5875 = vst [vmem:[%s8401_s2 + $0x40] sm:$0xff] %v5751_v38   ;;  %v4940_v22 = vadd.f32 %v4939_v19, %v4877_v51  ;;  %v3874_v21 = vadd.f32 %v3741_v42, %v3564_v52  ;;  %v4095_v28 = vpop.f32.mrf.mxu3  ;;  %v8653_v52 = vld [vmem:[#allocation71_spill] sm:$0xff] }
 0x3b6   :  { %v3433_v13 = vpop.f32.mrf.mxu1 }
 0x3b7   :  { %v4228_v54 = vadd.f32 %v4095_v28, %v3874_v21  ;;  %v3565_v56 = vadd.f32 %v3433_v13, %v7304_v31 }
 0x3b8   :  { %v4419_v18 = vpop.f32.mrf.mxu0 }
 0x3b9   :  { %v4550_v3 = vadd.f32 %v4417_v32, %v4228_v54 }
 0x3bb   :  { %v4808_v17 = vadd.f32 %v4807_v25, %v4550_v3  ;;  %v4878_v58 = vmul.f32 %v4550_v3, %v4550_v3 }
 0x3bc   :  { %v3743_v23 = vpop.f32.mrf.mxu2 }
 0x3bd   :  { %v4941_v26 = vadd.f32 %v4940_v22, %v4878_v58  ;;  %v3875_v20 = vadd.f32 %v3743_v23, %v3565_v56  ;;  %v4097_v43 = vpop.f32.mrf.mxu3  ;;  %v8654_v58 = vld [vmem:[#allocation72_spill] sm:$0xff] }
 0x3be   :  { %v3436_v15 = vpop.f32.mrf.mxu1 }
 0x3bf   :  { %v4229_v50 = vadd.f32 %v4097_v43, %v3875_v20  ;;  %v3566_v12 = vadd.f32 %v3436_v15, %v7340_v35 }
 0x3c0   :  { %v4422_v2 = vpop.f32.mrf.mxu0 }
 0x3c1   :  { %v4551_v16 = vadd.f32 %v4419_v18, %v4229_v50  ;;  %3475 = vmatmul.bf16.gmra.mxu1 %v7348_v8  ;;  %3785 = vmatmul.bf16.gmra.mxu2 %v5966_v30  ;;  %v5968_v30 = vld [vmem:[%s8400_s0 + $0x120] sm:$0xff] }
 0x3c2   :  { %4139 = vmatmul.bf16.gmra.mxu3 %v7352_v6 }
 0x3c3   :  { %4461 = vmatmul.bf16.gmra.mxu0 %v7395_v4  ;;  %v5756_v31 = vpack.c.bf16 %v4551_v16, %v4550_v3  ;;  %v4809_v5 = vadd.f32 %v4808_v17, %v4551_v16  ;;  %v4879_v14 = vmul.f32 %v4551_v16, %v4551_v16 }
 0x3c4   :  { %v3746_v24 = vpop.f32.mrf.mxu2 }
 0x3c5   :  { %5876 = vst [vmem:[%s8401_s2 + $0x48] sm:$0xff] %v5756_v31   ;;  %v4942_v8 = vadd.f32 %v4941_v26, %v4879_v14  ;;  %v3876_v29 = vadd.f32 %v3746_v24, %v3566_v12  ;;  %v4100_v46 = vpop.f32.mrf.mxu3  ;;  %v8655_v12 = vld [vmem:[#allocation73_spill] sm:$0xff] }
 0x3c6   :  { %v3438_v7 = vpop.f32.mrf.mxu1 }
 0x3c7   :  { %v4230_v33 = vadd.f32 %v4100_v46, %v3876_v29  ;;  %v3567_v62 = vadd.f32 %v3438_v7, %v8651_v59  ;;  %v8656_v59 = vld [vmem:[#allocation75_spill] sm:$0xff] }
 0x3c8   :  { %v4424_v1 = vpop.f32.mrf.mxu0 }
 0x3c9   :  { %v4552_v36 = vadd.f32 %v4422_v2, %v4230_v33 }
 0x3cb   :  { %v4810_v6 = vadd.f32 %v4809_v5, %v4552_v36  ;;  %v4880_v39 = vmul.f32 %v4552_v36, %v4552_v36 }
 0x3cc   :  { %v3748_v11 = vpop.f32.mrf.mxu2 }
 0x3cd   :  { %v4943_v19 = vadd.f32 %v4942_v8, %v4880_v39  ;;  %v3877_v41 = vadd.f32 %v3748_v11, %v3567_v62  ;;  %v4102_v35 = vpop.f32.mrf.mxu3 }
 0x3ce   :  { %v3441_v9 = vpop.f32.mrf.mxu1 }
 0x3cf   :  { %v4231_v53 = vadd.f32 %v4102_v35, %v3877_v41  ;;  %v3568_v42 = vadd.f32 %v3441_v9, %v8653_v52  ;;  %v8658_v52 = vld [vmem:[#allocation76_spill] sm:$0xff] }
 0x3d0   :  { %v4427_v45 = vpop.f32.mrf.mxu0 }
 0x3d1   :  { %v4553_v32 = vadd.f32 %v4424_v1, %v4231_v53  ;;  %3480 = vmatmul.bf16.gmra.mxu1 %v7395_v4  ;;  %3790 = vmatmul.bf16.gmra.mxu2 %v5967_v10  ;;  %v5969_v10 = vld [vmem:[%s8400_s0 + $0x12c] sm:$0xff] }
 0x3d2   :  { %4144 = vmatmul.bf16.gmra.mxu3 %v7398_v57 }
 0x3d3   :  { %4466 = vmatmul.bf16.gmra.mxu0 %v8652_v60  ;;  %v5761_v38 = vpack.c.bf16 %v4553_v32, %v4552_v36  ;;  %v4811_v25 = vadd.f32 %v4810_v6, %v4553_v32  ;;  %v4881_v51 = vmul.f32 %v4553_v32, %v4553_v32 }
 0x3d4   :  { %v3751_v22 = vpop.f32.mrf.mxu2 }
 0x3d5   :  { %5877 = vst [vmem:[%s8401_s2 + $0x50] sm:$0xff] %v5761_v38   ;;  %v4944_v4 = vadd.f32 %v4943_v19, %v4881_v51  ;;  %v3878_v21 = vadd.f32 %v3751_v22, %v3568_v42  ;;  %v4105_v28 = vpop.f32.mrf.mxu3 }
 0x3d6   :  { %v3443_v13 = vpop.f32.mrf.mxu1 }
 0x3d7   :  { %v4232_v54 = vadd.f32 %v4105_v28, %v3878_v21  ;;  %v3569_v56 = vadd.f32 %v3443_v13, %v8654_v58 }
 0x3d8   :  { %v4429_v18 = vpop.f32.mrf.mxu0 }
 0x3d9   :  { %v4554_v3 = vadd.f32 %v4427_v45, %v4232_v54 }
 0x3db   :  { %v4812_v57 = vadd.f32 %v4811_v25, %v4554_v3  ;;  %v4882_v17 = vmul.f32 %v4554_v3, %v4554_v3 }
 0x3dc   :  { %v3753_v23 = vpop.f32.mrf.mxu2 }
 0x3dd   :  { %v4945_v26 = vadd.f32 %v4944_v4, %v4882_v17  ;;  %v3879_v20 = vadd.f32 %v3753_v23, %v3569_v56  ;;  %v4107_v43 = vpop.f32.mrf.mxu3 }
 0x3de   :  { %v3446_v15 = vpop.f32.mrf.mxu1 }
 0x3df   :  { %v4233_v50 = vadd.f32 %v4107_v43, %v3879_v20  ;;  %v3570_v24 = vadd.f32 %v3446_v15, %v8655_v12  ;;  %v8662_v12 = vld [vmem:[#allocation78_spill] sm:$0xff] }
 0x3e0   :  { %v4432_v2 = vpop.f32.mrf.mxu0 }
 0x3e1   :  { %v4555_v16 = vadd.f32 %v4429_v18, %v4233_v50  ;;  %3485 = vmatmul.bf16.gmra.mxu1 %v8652_v60  ;;  %3795 = vmatmul.bf16.gmra.mxu2 %v5968_v30  ;;  %v8657_v60 = vld [vmem:[#allocation79_spill] sm:$0xff] }
 0x3e2   :  { %4149 = vmatmul.bf16.gmra.mxu3 %v7445_v34  ;;  %v8661_v30 = vld [vmem:[#allocation47_spill] sm:$0xff] }
 0x3e3   :  { %4471 = vmatmul.bf16.gmra.mxu0 %v7489_v47  ;;  %v5766_v31 = vpack.c.bf16 %v4555_v16, %v4554_v3  ;;  %v4813_v5 = vadd.f32 %v4812_v57, %v4555_v16  ;;  %v4883_v14 = vmul.f32 %v4555_v16, %v4555_v16  ;;  %v8659_v57 = vld [vmem:[#allocation77_spill] sm:$0xff]  ;;  %v8660_v16 = vld [vmem:[#allocation80_spill] sm:$0xff] }
 0x3e4   :  { %v3756_v8 = vpop.f32.mrf.mxu2 }
 0x3e5   :  { %5878 = vst [vmem:[%s8401_s2 + $0x58] sm:$0xff] %v5766_v31   ;;  %v4946_v29 = vadd.f32 %v4945_v26, %v4883_v14  ;;  %v3880_v46 = vadd.f32 %v3756_v8, %v3570_v24  ;;  %v4110_v7 = vpop.f32.mrf.mxu3 }
 0x3e6   :  { %v3448_v33 = vpop.f32.mrf.mxu1 }
 0x3e7   :  { %v4234_v1 = vadd.f32 %v4110_v7, %v3880_v46  ;;  %v3571_v62 = vadd.f32 %v3448_v33, %v8656_v59  ;;  %v8663_v59 = vld [vmem:[#allocation81_spill] sm:$0xff] }
 0x3e8   :  { %v4434_v36 = vpop.f32.mrf.mxu0 }
 0x3e9   :  { %v4556_v6 = vadd.f32 %v4432_v2, %v4234_v1  ;;  %v5970_v2 = vld [vmem:[%s8400_s0 + $0x138] sm:$0xff] }
 0x3eb   :  { %v4814_v34 = vadd.f32 %v4813_v5, %v4556_v6  ;;  %v4884_v39 = vmul.f32 %v4556_v6, %v4556_v6 }
 0x3ec   :  { %v3758_v11 = vpop.f32.mrf.mxu2 }
 0x3ed   :  { %v4947_v19 = vadd.f32 %v4946_v29, %v4884_v39  ;;  %v3881_v41 = vadd.f32 %v3758_v11, %v3571_v62  ;;  %v4112_v35 = vpop.f32.mrf.mxu3 }
 0x3ee   :  { %v3451_v9 = vpop.f32.mrf.mxu1 }
 0x3ef   :  { %v4235_v53 = vadd.f32 %v4112_v35, %v3881_v41  ;;  %v3572_v42 = vadd.f32 %v3451_v9, %v8658_v52 }
 0x3f0   :  { %v4437_v45 = vpop.f32.mrf.mxu0 }
 0x3f1   :  { %v4557_v32 = vadd.f32 %v4434_v36, %v4235_v53  ;;  %3490 = vmatmul.bf16.gmra.mxu1 %v7489_v47  ;;  %3800 = vmatmul.bf16.gmra.mxu2 %v5969_v10  ;;  %v5971_v10 = vld [vmem:[%s8400_s0 + $0x144] sm:$0xff] }
 0x3f2   :  { %4154 = vmatmul.bf16.gmra.mxu3 %v7493_v61 }
 0x3f3   :  { %4476 = vmatmul.bf16.gmra.mxu0 %v8657_v60  ;;  %v5771_v38 = vpack.c.bf16 %v4557_v32, %v4556_v6  ;;  %v4815_v25 = vadd.f32 %v4814_v34, %v4557_v32  ;;  %v4885_v51 = vmul.f32 %v4557_v32, %v4557_v32 }
 0x3f4   :  { %v3761_v22 = vpop.f32.mrf.mxu2 }
 0x3f5   :  { %5879 = vst [vmem:[%s8401_s2 + $0x60] sm:$0xff] %v5771_v38   ;;  %v4948_v47 = vadd.f32 %v4947_v19, %v4885_v51  ;;  %v3882_v4 = vadd.f32 %v3761_v22, %v3572_v42  ;;  %v4115_v21 = vpop.f32.mrf.mxu3  ;;  %v8665_v38 = vld [vmem:[#allocation5_spill] sm:$0xff]  ;;  %v8666_v42 = vld [vmem:[#allocation82_spill] sm:$0xff] }
 0x3f6   :  { %v3453_v28 = vpop.f32.mrf.mxu1 }
 0x3f7   :  { %v4236_v13 = vadd.f32 %v4115_v21, %v3882_v4  ;;  %v3573_v17 = vadd.f32 %v3453_v28, %v8659_v57 }
 0x3f8   :  { %v4439_v54 = vpop.f32.mrf.mxu0 }
 0x3f9   :  { %v4558_v18 = vadd.f32 %v4437_v45, %v4236_v13 }
 0x3fb   :  { %v4816_v61 = vadd.f32 %v4815_v25, %v4558_v18  ;;  %v4886_v3 = vmul.f32 %v4558_v18, %v4558_v18 }
 0x3fc   :  { %v3763_v58 = vpop.f32.mrf.mxu2 }
 0x3fd   :  { %v4949_v56 = vadd.f32 %v4948_v47, %v4886_v3  ;;  %v3883_v23 = vadd.f32 %v3763_v58, %v3573_v17  ;;  %v4117_v26 = vpop.f32.mrf.mxu3  ;;  %v8667_v17 = vld [vmem:[#allocation84_spill] sm:$0xff] }
 0x3fe   :  { %v3456_v20 = vpop.f32.mrf.mxu1 }
 0x3ff   :  { %v4237_v43 = vadd.f32 %v4117_v26, %v3883_v23  ;;  %v3574_v24 = vadd.f32 %v3456_v20, %v8662_v12 }
 0x400   :  { %v4442_v15 = vpop.f32.mrf.mxu0 }
 0x401   :  { %v4559_v50 = vadd.f32 %v4439_v54, %v4237_v43  ;;  %3495 = vmatmul.bf16.gmra.mxu1 %v8657_v60  ;;  %3805 = vmatmul.bf16.gmra.mxu2 %v5970_v2  ;;  %v8664_v60 = vld [vmem:[#allocation83_spill] sm:$0xff] }
 0x402   :  { %4159 = vmatmul.bf16.gmra.mxu3 %v8660_v16  ;;  %v5972_v16 = vld [vmem:[%s8400_s0 + $0x150] sm:$0xff] }
 0x403   :  { %4481 = vmatmul.bf16.gmra.mxu0 %v8661_v30  ;;  %v5776_v31 = vpack.c.bf16 %v4559_v50, %v4558_v18  ;;  %v4817_v5 = vadd.f32 %v4816_v61, %v4559_v50  ;;  %v4887_v14 = vmul.f32 %v4559_v50, %v4559_v50 }
 0x404   :  { %v3766_v8 = vpop.f32.mrf.mxu2 }
 0x405   :  { %5880 = vst [vmem:[%s8401_s2 + $0x68] sm:$0xff] %v5776_v31   ;;  %v4950_v29 = vadd.f32 %v4949_v56, %v4887_v14  ;;  %v3884_v46 = vadd.f32 %v3766_v8, %v3574_v24  ;;  %v4120_v7 = vpop.f32.mrf.mxu3  ;;  %v8669_v31 = vld [vmem:[#allocation11_spill] sm:$0xff] }
 0x406   :  { %v3458_v33 = vpop.f32.mrf.mxu1  ;;  %v8670_v24 = vld [vmem:[#allocation3_spill] sm:$0xff] }
 0x407   :  { %v4238_v1 = vadd.f32 %v4120_v7, %v3884_v46  ;;  %v3575_v62 = vadd.f32 %v3458_v33, %v8663_v59 }
 0x408   :  { %v4444_v36 = vpop.f32.mrf.mxu0 }
 0x409   :  { %v4560_v6 = vadd.f32 %v4442_v15, %v4238_v1 }
 0x40b   :  { %v4818_v34 = vadd.f32 %v4817_v5, %v4560_v6  ;;  %v4888_v39 = vmul.f32 %v4560_v6, %v4560_v6 }
 0x40c   :  { %v3768_v11 = vpop.f32.mrf.mxu2 }
 0x40d   :  { %v4951_v19 = vadd.f32 %v4950_v29, %v4888_v39  ;;  %v3885_v41 = vadd.f32 %v3768_v11, %v3575_v62  ;;  %v4122_v35 = vpop.f32.mrf.mxu3  ;;  %v8671_v62 = vld [vmem:[#allocation86_spill] sm:$0xff] }
 0x40e   :  { %v3461_v9 = vpop.f32.mrf.mxu1 }
 0x40f   :  { %v4239_v53 = vadd.f32 %v4122_v35, %v3885_v41  ;;  %v3576_v22 = vadd.f32 %v3461_v9, %v8666_v42 }
 0x410   :  { %v4447_v45 = vpop.f32.mrf.mxu0 }
 0x411   :  { %v4561_v32 = vadd.f32 %v4444_v36, %v4239_v53  ;;  %3500 = vmatmul.bf16.gmra.mxu1 %v8661_v30  ;;  %3810 = vmatmul.bf16.gmra.mxu2 %v5971_v10  ;;  %v8668_v30 = vld [vmem:[#allocation85_spill] sm:$0xff] }
 0x412   :  { %4164 = vmatmul.bf16.gmra.mxu3 %v8664_v60  ;;  %v5973_v60 = vld [vmem:[%s8400_s0 + $0x15c] sm:$0xff] }
 0x413   :  { %4486 = vmatmul.bf16.gmra.mxu0 %v8665_v38  ;;  %v5781_v25 = vpack.c.bf16 %v4561_v32, %v4560_v6  ;;  %v4819_v51 = vadd.f32 %v4818_v34, %v4561_v32  ;;  %v4889_v52 = vmul.f32 %v4561_v32, %v4561_v32 }
 0x414   :  { %v3771_v47 = vpop.f32.mrf.mxu2 }
 0x415   :  { %5881 = vst [vmem:[%s8401_s2 + $0x70] sm:$0xff] %v5781_v25   ;;  %v4952_v4 = vadd.f32 %v4951_v19, %v4889_v52  ;;  %v3886_v21 = vadd.f32 %v3771_v47, %v3576_v22  ;;  %v4125_v28 = vpop.f32.mrf.mxu3  ;;  %v8673_v25 = vld [vmem:[#allocation17_spill] sm:$0xff] }
 0x416   :  { %v3463_v13 = vpop.f32.mrf.mxu1  ;;  %v8674_v22 = vld [vmem:[#allocation9_spill] sm:$0xff] }
 0x417   :  { %v4240_v54 = vadd.f32 %v4125_v28, %v3886_v21  ;;  %v3577_v58 = vadd.f32 %v3463_v13, %v8667_v17 }
 0x418   :  { %v4449_v18 = vpop.f32.mrf.mxu0 }
 0x419   :  { %v4562_v61 = vadd.f32 %v4447_v45, %v4240_v54 }
 0x41b   :  { %v4820_v3 = vadd.f32 %v4819_v51, %v4562_v61  ;;  %v4890_v57 = vmul.f32 %v4562_v61, %v4562_v61 }
 0x41c   :  { %v3773_v56 = vpop.f32.mrf.mxu2 }
 0x41d   :  { %v4953_v23 = vadd.f32 %v4952_v4, %v4890_v57  ;;  %v3887_v26 = vadd.f32 %v3773_v56, %v3577_v58  ;;  %v4127_v20 = vpop.f32.mrf.mxu3  ;;  %v8675_v58 = vld [vmem:[#allocation88_spill] sm:$0xff] }
 0x41e   :  { %v3466_v43 = vpop.f32.mrf.mxu1 }
 0x41f   :  { %v4241_v15 = vadd.f32 %v4127_v20, %v3887_v26  ;;  %v3578_v8 = vadd.f32 %v3466_v43, %v8670_v24 }
 0x420   :  { %v4452_v50 = vpop.f32.mrf.mxu0 }
 0x421   :  { %v4563_v2 = vadd.f32 %v4449_v18, %v4241_v15  ;;  %3505 = vmatmul.bf16.gmra.mxu1 %v8665_v38  ;;  %3815 = vmatmul.bf16.gmra.mxu2 %v5972_v16  ;;  %v8672_v38 = vld [vmem:[#allocation87_spill] sm:$0xff] }
 0x422   :  { %4169 = vmatmul.bf16.gmra.mxu3 %v8668_v30  ;;  %v5974_v30 = vld [vmem:[%s8400_s0 + $0x168] sm:$0xff] }
 0x423   :  { %4491 = vmatmul.bf16.gmra.mxu0 %v8669_v31  ;;  %v5786_v5 = vpack.c.bf16 %v4563_v2, %v4562_v61  ;;  %v4821_v14 = vadd.f32 %v4820_v3, %v4563_v2  ;;  %v4891_v12 = vmul.f32 %v4563_v2, %v4563_v2 }
 0x424   :  { %v3776_v29 = vpop.f32.mrf.mxu2 }
 0x425   :  { %5882 = vst [vmem:[%s8401_s2 + $0x78] sm:$0xff] %v5786_v5   ;;  %v4954_v46 = vadd.f32 %v4953_v23, %v4891_v12  ;;  %v3888_v7 = vadd.f32 %v3776_v29, %v3578_v8  ;;  %v4130_v33 = vpop.f32.mrf.mxu3  ;;  %v8677_v5 = vld [vmem:[#allocation23_spill] sm:$0xff] }
 0x426   :  { %v3468_v1 = vpop.f32.mrf.mxu1  ;;  %v8678_v8 = vld [vmem:[#allocation15_spill] sm:$0xff] }
 0x427   :  { %v4242_v36 = vadd.f32 %v4130_v33, %v3888_v7  ;;  %v3579_v11 = vadd.f32 %v3468_v1, %v8671_v62 }
 0x428   :  { %v4454_v6 = vpop.f32.mrf.mxu0 }
 0x429   :  { %v4564_v34 = vadd.f32 %v4452_v50, %v4242_v36 }
 0x42b   :  { %v4822_v39 = vadd.f32 %v4821_v14, %v4564_v34  ;;  %v4892_v59 = vmul.f32 %v4564_v34, %v4564_v34 }
 0x42c   :  { %v3778_v19 = vpop.f32.mrf.mxu2 }
 0x42d   :  { %v4955_v41 = vadd.f32 %v4954_v46, %v4892_v59  ;;  %v3889_v35 = vadd.f32 %v3778_v19, %v3579_v11  ;;  %v4132_v9 = vpop.f32.mrf.mxu3  ;;  %v8679_v11 = vld [vmem:[#allocation90_spill] sm:$0xff] }
 0x42e   :  { %v3471_v53 = vpop.f32.mrf.mxu1 }
 0x42f   :  { %v4243_v45 = vadd.f32 %v4132_v9, %v3889_v35  ;;  %v3580_v47 = vadd.f32 %v3471_v53, %v8674_v22 }
 0x430   :  { %v4457_v32 = vpop.f32.mrf.mxu0 }
 0x431   :  { %v4565_v10 = vadd.f32 %v4454_v6, %v4243_v45  ;;  %3510 = vmatmul.bf16.gmra.mxu1 %v8669_v31  ;;  %3820 = vmatmul.bf16.gmra.mxu2 %v5973_v60  ;;  %v8676_v31 = vld [vmem:[#allocation89_spill] sm:$0xff] }
 0x432   :  { %4174 = vmatmul.bf16.gmra.mxu3 %v8672_v38  ;;  %v5975_v38 = vld [vmem:[%s8400_s0 + $0x174] sm:$0xff] }
 0x433   :  { %4496 = vmatmul.bf16.gmra.mxu0 %v8673_v25  ;;  %v5791_v51 = vpack.c.bf16 %v4565_v10, %v4564_v34  ;;  %v4823_v52 = vadd.f32 %v4822_v39, %v4565_v10  ;;  %v4893_v42 = vmul.f32 %v4565_v10, %v4565_v10 }
 0x434   :  { %v3781_v4 = vpop.f32.mrf.mxu2 }
 0x435   :  { %5883 = vst [vmem:[%s8401_s2 + $0x80] sm:$0xff] %v5791_v51   ;;  %v4956_v21 = vadd.f32 %v4955_v41, %v4893_v42  ;;  %v3890_v28 = vadd.f32 %v3781_v4, %v3580_v47  ;;  %v4135_v13 = vpop.f32.mrf.mxu3  ;;  %v8681_v51 = vld [vmem:[#allocation29_spill] sm:$0xff] }
 0x436   :  { %v3473_v54 = vpop.f32.mrf.mxu1  ;;  %v8682_v47 = vld [vmem:[#allocation21_spill] sm:$0xff] }
 0x437   :  { %v4244_v18 = vadd.f32 %v4135_v13, %v3890_v28  ;;  %v3581_v56 = vadd.f32 %v3473_v54, %v8675_v58 }
 0x438   :  { %v4459_v61 = vpop.f32.mrf.mxu0 }
 0x439   :  { %v4566_v3 = vadd.f32 %v4457_v32, %v4244_v18 }
 0x43b   :  { %v4824_v57 = vadd.f32 %v4823_v52, %v4566_v3  ;;  %v4894_v17 = vmul.f32 %v4566_v3, %v4566_v3 }
 0x43c   :  { %v3783_v23 = vpop.f32.mrf.mxu2 }
 0x43d   :  { %v4957_v26 = vadd.f32 %v4956_v21, %v4894_v17  ;;  %v3891_v20 = vadd.f32 %v3783_v23, %v3581_v56  ;;  %v4137_v43 = vpop.f32.mrf.mxu3  ;;  %v8683_v56 = vld [vmem:[#allocation92_spill] sm:$0xff] }
 0x43e   :  { %v3476_v15 = vpop.f32.mrf.mxu1 }
 0x43f   :  { %v4245_v50 = vadd.f32 %v4137_v43, %v3891_v20  ;;  %v3582_v29 = vadd.f32 %v3476_v15, %v8678_v8 }
 0x440   :  { %v4462_v2 = vpop.f32.mrf.mxu0 }
 0x441   :  { %v4567_v16 = vadd.f32 %v4459_v61, %v4245_v50  ;;  %3515 = vmatmul.bf16.gmra.mxu1 %v8673_v25  ;;  %3825 = vmatmul.bf16.gmra.mxu2 %v5974_v30  ;;  %v8680_v25 = vld [vmem:[#allocation91_spill] sm:$0xff] }
 0x442   :  { %4179 = vmatmul.bf16.gmra.mxu3 %v8676_v31  ;;  %v5976_v31 = vld [vmem:[%s8400_s0 + $0x180] sm:$0xff] }
 0x443   :  { %4501 = vmatmul.bf16.gmra.mxu0 %v8677_v5  ;;  %v5796_v14 = vpack.c.bf16 %v4567_v16, %v4566_v3  ;;  %v4825_v12 = vadd.f32 %v4824_v57, %v4567_v16  ;;  %v4895_v24 = vmul.f32 %v4567_v16, %v4567_v16 }
 0x444   :  { %v3786_v46 = vpop.f32.mrf.mxu2 }
 0x445   :  { %5884 = vst [vmem:[%s8401_s2 + $0x88] sm:$0xff] %v5796_v14   ;;  %v4958_v7 = vadd.f32 %v4957_v26, %v4895_v24  ;;  %v3892_v33 = vadd.f32 %v3786_v46, %v3582_v29  ;;  %v4140_v1 = vpop.f32.mrf.mxu3  ;;  %v8684_v24 = vld [vmem:[#allocation27_spill] sm:$0xff] }
 0x446   :  { %v3478_v36 = vpop.f32.mrf.mxu1 }
 0x447   :  { %v4246_v6 = vadd.f32 %v4140_v1, %v3892_v33  ;;  %v3583_v19 = vadd.f32 %v3478_v36, %v8679_v11 }
 0x448   :  { %v4464_v34 = vpop.f32.mrf.mxu0 }
 0x449   :  { %v4568_v39 = vadd.f32 %v4462_v2, %v4246_v6 }
 0x44b   :  { %v4826_v59 = vadd.f32 %v4825_v12, %v4568_v39  ;;  %v4896_v62 = vmul.f32 %v4568_v39, %v4568_v39 }
 0x44c   :  { %v3788_v41 = vpop.f32.mrf.mxu2 }
 0x44d   :  { %v4959_v35 = vadd.f32 %v4958_v7, %v4896_v62  ;;  %v3893_v9 = vadd.f32 %v3788_v41, %v3583_v19  ;;  %v4142_v53 = vpop.f32.mrf.mxu3 }
 0x44e   :  { %v3481_v45 = vpop.f32.mrf.mxu1 }
 0x44f   :  { %v4247_v32 = vadd.f32 %v4142_v53, %v3893_v9  ;;  %v3584_v4 = vadd.f32 %v3481_v45, %v8682_v47  ;;  %v5977_v53 = vld [vmem:[%s8400_s0 + $0x19c] sm:$0xf] }
 0x450   :  { %v4467_v10 = vpop.f32.mrf.mxu0  ;;  %v3299_v45 = vrot.slane %v5977_v53, 5 }
 0x451   :  { %v4569_v60 = vadd.f32 %v4464_v34, %v4247_v32  ;;  %3520 = vmatmul.bf16.gmra.mxu1 %v8677_v5  ;;  %3830 = vmatmul.bf16.gmra.mxu2 %v5975_v38  ;;  %v5978_v38 = vld [vmem:[%s8400_s0 + $0x18c] sm:$0xff] }
 0x452   :  { %4184 = vmatmul.bf16.gmra.mxu3 %v8680_v25  ;;  %v5979_v25 = vld [vmem:[%s8400_s0 + $0x198] sm:$0xf] }
 0x453   :  { %4506 = vmatmul.bf16.gmra.mxu0 %v8681_v51  ;;  %v5801_v52 = vpack.c.bf16 %v4569_v60, %v4568_v39  ;;  %v4827_v42 = vadd.f32 %v4826_v59, %v4569_v60  ;;  %v4897_v22 = vmul.f32 %v4569_v60, %v4569_v60  ;;  %v8685_v59 = vld [vmem:[#allocation93_spill] sm:$0xff] }
 0x454   :  { %v3791_v21 = vpop.f32.mrf.mxu2 }
 0x455   :  { %5885 = vst [vmem:[%s8401_s2 + $0x90] sm:$0xff] %v5801_v52   ;;  %v4960_v28 = vadd.f32 %v4959_v35, %v4897_v22  ;;  %v3894_v13 = vadd.f32 %v3791_v21, %v3584_v4  ;;  %v4145_v54 = vpop.f32.mrf.mxu3  ;;  %v3301_v52 = vrot.slane %v3299_v45, 4  ;;  %v8302_v22 = vld [vmem:[%s8400_s0 + $0x1a4] sm:$0xf] }
 0x456   :  { %v3483_v18 = vpop.f32.mrf.mxu1 }
 0x457   :  { %v4248_v61 = vadd.f32 %v4145_v54, %v3894_v13  ;;  %v3585_v23 = vadd.f32 %v3483_v18, %v8683_v56 }
 0x458   :  { %v4469_v3 = vpop.f32.mrf.mxu0 }
 0x459   :  { %v4570_v57 = vadd.f32 %v4467_v10, %v4248_v61 }
 0x45b   :  { %v4828_v17 = vadd.f32 %v4827_v42, %v4570_v57  ;;  %v4898_v58 = vmul.f32 %v4570_v57, %v4570_v57  ;;  %v5980_v42 = vld [vmem:[%s8400_s0 + $0x1a0] sm:$0x1] }
 0x45c   :  { %v3793_v26 = vpop.f32.mrf.mxu2 }
 0x45d   :  { %v4961_v20 = vadd.f32 %v4960_v28, %v4898_v58  ;;  %v3895_v43 = vadd.f32 %v3793_v26, %v3585_v23  ;;  %v4147_v15 = vpop.f32.mrf.mxu3  ;;  %v8308_v28 = vld [vmem:[%s8400_s0 + $0x1a8] sm:$0xf] }
 0x45e   :  { %v3486_v50 = vpop.f32.mrf.mxu1  ;;  %v3958_v58 = vshrl.u32 %v8308_v28, 16 }
 0x45f   :  { %v4249_v2 = vadd.f32 %v4147_v15, %v3895_v43  ;;  %v3586_v8 = vadd.f32 %v3486_v50, %v8684_v24 }
 0x460   :  { %v4472_v16 = vpop.f32.mrf.mxu0 }
 0x461   :  { %v4571_v30 = vadd.f32 %v4469_v3, %v4249_v2  ;;  %3525 = vmatmul.bf16.gmra.mxu1 %v8681_v51  ;;  %3835 = vmatmul.bf16.gmra.mxu2 %v5976_v31  ;;  %v5397_v51 = vrot.slane %v5979_v25, 9  ;;  %v3945_v3 = vshrl.u32 %v8302_v22, 16 }
 0x462   :  { %4189 = vmatmul.bf16.gmra.mxu3 %v7845_v63 }
 0x463   :  { %4511 = vmatmul.bf16.gmra.mxu0 %v7879_v37  ;;  %v5806_v5 = vpack.c.bf16 %v4571_v30, %v4570_v57  ;;  %v4829_v14 = vadd.f32 %v4828_v17, %v4571_v30  ;;  %v4899_v12 = vmul.f32 %v4571_v30, %v4571_v30  ;;  %v3948_v57 = vshll.u32 %v8302_v22, 16  ;;  %v188_v30 = vld [vmem:[%s8400_s0 + $0x1ac] sm:$0x1] }
 0x464   :  { %v3796_v29 = vpop.f32.mrf.mxu2  ;;  %v3300_v26 = vsel %vm6295_vm5, %v5397_v51, %v3299_v45  ;;  %v3947_v15 = vrot.slane %v3945_v3, 4  ;;  %v4288_v53 = vrot.slane %v188_v30, 5 }
 0x465   :  { %5886 = vst [vmem:[%s8401_s2 + $0x98] sm:$0xff] %v5806_v5   ;;  %v4962_v46 = vadd.f32 %v4961_v20, %v4899_v12  ;;  %v3896_v7 = vadd.f32 %v3796_v29, %v3586_v8  ;;  %v4150_v33 = vpop.f32.mrf.mxu3  ;;  %v3950_v50 = vrot.slane %v3948_v57, 5  ;;  %v3323_v2 = vunpack.c.l.b16 %v3300_v26  ;;  %v8687_v57 = vld [vmem:[#allocation35_spill] sm:$0xff] }
 0x466   :  { %v3488_v1 = vpop.f32.mrf.mxu1  ;;  %v3960_v5 = vrot.slane %v3958_v58, 4 }
 0x467   :  { %v4250_v36 = vadd.f32 %v4150_v33, %v3896_v7  ;;  %v3587_v62 = vadd.f32 %v3488_v1, %v8685_v59  ;;  %v3951_v33 = vor.u32 %v3950_v50, %v3947_v15  ;;  %v3964_v1 = vshll.u32 %v188_v30, 16 }
 0x468   :  { %v4474_v6 = vpop.f32.mrf.mxu0 }
 0x469   :  { %v4572_v34 = vadd.f32 %v4472_v16, %v4250_v36 }
 0x46b   :  { %v4830_v63 = vadd.f32 %v4829_v14, %v4572_v34  ;;  %v4900_v39 = vmul.f32 %v4572_v34, %v4572_v34 }
 0x46c   :  { %v3798_v11 = vpop.f32.mrf.mxu2 }
 0x46d   :  { %v4963_v19 = vadd.f32 %v4962_v46, %v4900_v39  ;;  %v3897_v41 = vadd.f32 %v3798_v11, %v3587_v62  ;;  %v4152_v35 = vpop.f32.mrf.mxu3  ;;  %v3952_v11 = vrot.slane %v3951_v33, 4 }
 0x46e   :  { %v3491_v9 = vpop.f32.mrf.mxu1 }
 0x46f   :  { %v4251_v32 = vadd.f32 %v4152_v35, %v3897_v41  ;;  %v3588_v21 = vadd.f32 %v3491_v9, %v7873_v40  ;;  %v3954_v40 = vshll.u32 %v8308_v28, 16  ;;  %v5551_v35 = vrot.slane %v8302_v22, 9 }
 0x470   :  { %v4477_v10 = vpop.f32.mrf.mxu0 }
 0x471   :  { %v4573_v60 = vadd.f32 %v4474_v6, %v4251_v32  ;;  %3530 = vmatmul.bf16.gmra.mxu1 %v7879_v37  ;;  %3840 = vmatmul.bf16.gmra.mxu2 %v5978_v38  ;;  %v3302_v37 = vrot.slane %v5980_v42, 5  ;;  %v3956_v31 = vrot.slane %v3954_v40, 5 }
 0x472   :  { %4194 = vmatmul.bf16.gmra.mxu3 %v7881_v44 }
 0x473   :  { %4516 = vmatmul.bf16.gmra.mxu0 %v7906_v27  ;;  %v5811_v47 = vpack.c.bf16 %v4573_v60, %v4572_v34  ;;  %v4831_v44 = vadd.f32 %v4830_v63, %v4573_v60  ;;  %v4901_v4 = vmul.f32 %v4573_v60, %v4573_v60  ;;  %v3303_v20 = vsel %vm6295_vm5, %v3301_v52, %v3302_v37  ;;  %v8686_v60 = vld [vmem:[#allocation33_spill] sm:$0xff] }
 0x474   :  { %v3801_v13 = vpop.f32.mrf.mxu2  ;;  %v3324_v16 = vunpack.c.l.b16 %v3303_v20  ;;  %v3961_v34 = vor.u32 %v3960_v5, %v3956_v31  ;;  %v4285_v63 = vrot.slane %v8308_v28, 5  ;;  %v3957_v42 = vsel %vm6289_vm4, %v3952_v11, %v3956_v31  ;;  %v8688_v31 = vld [vmem:[#allocation39_spill] sm:$0xff] }
 0x475   :  { %5887 = vst [vmem:[%s8401_s2 + $0xa0] sm:$0xff] %v5811_v47   ;;  %v4964_v54 = vadd.f32 %v4963_v19, %v4901_v4  ;;  %v3898_v18 = vadd.f32 %v3801_v13, %v3588_v21  ;;  %v4155_v61 = vpop.f32.mrf.mxu3  ;;  %v3966_v19 = vrot.slane %v3964_v1, 5  ;;  %v3987_v28 = vunpack.c.l.b16 %v3957_v42 }
 0x476   :  { %v3493_v17 = vpop.f32.mrf.mxu1  ;;  %v3326_v6 = vpack.c.b16 %v3324_v16, %v3323_v2  ;;  %v3962_v41 = vrot.slane %v3961_v34, 4  ;;  %v4287_v9 = vrot.slane %v4285_v63, 4 }
 0x477   :  { %v4252_v56 = vadd.f32 %v4155_v61, %v3898_v18  ;;  %v3589_v24 = vadd.f32 %v3493_v17, %v7886_v48  ;;  %v5981_v48 = vld [vmem:[%s8400_s0 + $0x198] sm:$0xff] }
 0x478   :  { %v4479_v23 = vpop.f32.mrf.mxu0  ;;  %v3967_v47 = vsel %vm6289_vm4, %v3962_v41, %v3966_v19  ;;  %v4289_v4 = vsel %vm6295_vm5, %v4287_v9, %v4288_v53 }
 0x479   :  { %v4574_v43 = vadd.f32 %v4477_v10, %v4252_v56  ;;  %v3988_v13 = vunpack.c.l.b16 %v3967_v47  ;;  %v4310_v18 = vunpack.c.l.b16 %v4289_v4 }
 0x47b   :  { %v4832_v14 = vadd.f32 %v4831_v44, %v4574_v43  ;;  %v4902_v12 = vmul.f32 %v4574_v43, %v4574_v43  ;;  %v4286_v44 = vsel %vm6295_vm5, %v5551_v35, %v4285_v63  ;;  %v3990_v55 = vpack.c.b16 %v3988_v13, %v3987_v28 }
 0x47c   :  { %v3803_v8 = vpop.f32.mrf.mxu2 }
 0x47d   :  { %v4965_v29 = vadd.f32 %v4964_v54, %v4902_v12  ;;  %v3899_v46 = vadd.f32 %v3803_v8, %v3589_v24  ;;  %v4157_v7 = vpop.f32.mrf.mxu3  ;;  %v4309_v54 = vunpack.c.l.b16 %v4286_v44 }
 0x47e   :  { %v3496_v36 = vpop.f32.mrf.mxu1 }
 0x47f   :  { %v4253_v39 = vadd.f32 %v4157_v7, %v3899_v46  ;;  %v4312_v20 = vpack.c.b16 %v4310_v18, %v4309_v54 }
 0x480   :  { %v4482_v59 = vpop.f32.mrf.mxu0 }
 0x481   :  { %v4575_v62 = vadd.f32 %v4479_v23, %v4253_v39  ;;  %3535 = vmatmul.bf16.gmra.mxu1 %v7906_v27  ;;  %3845 = vmatmul.bf16.gmra.mxu2 %v5981_v48  ;;  %v3590_v27 = vadd.f32 %v3496_v36, %v8686_v60  ;;  %v5635_v23 = vld [vmem:[%s8400_s0 + $0x1a4] sm:$0xff] }
 0x482   :  { %4199 = vmatmul.bf16.gmra.mxu3 %v7911_v0 }
 0x483   :  { %4521 = vmatmul.bf16.gmra.mxu0 %v3326_v6  ;;  %v5816_v45 = vpack.c.bf16 %v4575_v62, %v4574_v43  ;;  %v4833_v32 = vadd.f32 %v4832_v14, %v4575_v62  ;;  %v4903_v10 = vmul.f32 %v4575_v62, %v4575_v62 }
 0x484   :  { %v3806_v38 = vpop.f32.mrf.mxu2 }
 0x485   :  { %5888 = vst [vmem:[%s8401_s2 + $0xa8] sm:$0xff] %v5816_v45   ;;  %v4966_v25 = vadd.f32 %v4965_v29, %v4903_v10  ;;  %v3900_v51 = vadd.f32 %v3806_v38, %v3590_v27  ;;  %v4160_v52 = vpop.f32.mrf.mxu3  ;;  %v8690_v45 = vld [vmem:[#allocation45_spill] sm:$0xff] }
 0x486   :  { %v3498_v0 = vpop.f32.mrf.mxu1 }
 0x487   :  { %v4254_v37 = vadd.f32 %v4160_v52, %v3900_v51  ;;  %v3591_v17 = vadd.f32 %v3498_v0, %v8687_v57 }
 0x488   :  { %v4484_v22 = vpop.f32.mrf.mxu0 }
 0x489   :  { %v4576_v21 = vadd.f32 %v4482_v59, %v4254_v37 }
 0x48b   :  { %v4834_v61 = vadd.f32 %v4833_v32, %v4576_v21  ;;  %v4904_v3 = vmul.f32 %v4576_v21, %v4576_v21 }
 0x48c   :  { %v3808_v40 = vpop.f32.mrf.mxu2 }
 0x48d   :  { %v4967_v58 = vadd.f32 %v4966_v25, %v4904_v3  ;;  %v3901_v56 = vadd.f32 %v3808_v40, %v3591_v17  ;;  %v4162_v49 = vpop.f32.mrf.mxu3  ;;  %v8692_v40 = vld [vmem:[#allocation7_spill] sm:$0xff] }
 0x48e   :  { %v3501_v26 = vpop.f32.mrf.mxu1 }
 0x48f   :  { %v4255_v43 = vadd.f32 %v4162_v49, %v3901_v56  ;;  %v3592_v5 = vadd.f32 %v3501_v26, %v8688_v31 }
 0x490   :  { %v4487_v15 = vpop.f32.mrf.mxu0 }
 0x491   :  { %v4577_v50 = vadd.f32 %v4484_v22, %v4255_v43  ;;  %3540 = vmatmul.bf16.gmra.mxu1 %v3326_v6  ;;  %3850 = vmatmul.bf16.gmra.mxu2 %v5635_v23  ;;  %v8689_v6 = vld [vmem:[#allocation41_spill] sm:$0xff]  ;;  %v8691_v22 = vld [vmem:[#allocation48_spill] sm:$0xff] }
 0x492   :  { %4204 = vmatmul.bf16.gmra.mxu3 %v3990_v55 }
 0x493   :  { %4526 = vmatmul.bf16.gmra.mxu0 %v4312_v20  ;;  %v5821_v2 = vpack.c.bf16 %v4577_v50, %v4576_v21  ;;  %v4835_v16 = vadd.f32 %v4834_v61, %v4577_v50  ;;  %v4905_v30 = vmul.f32 %v4577_v50, %v4577_v50 }
 0x494   :  { %v3811_v14 = vpop.f32.mrf.mxu2 }
 0x495   :  { %5889 = vst [vmem:[%s8401_s2 + $0xb0] sm:$0xff] %v5821_v2   ;;  %v4968_v12 = vadd.f32 %v4967_v58, %v4905_v30  ;;  %v3902_v24 = vadd.f32 %v3811_v14, %v3592_v5  ;;  %v4165_v8 = vpop.f32.mrf.mxu3 }
 0x496   :  { %v3503_v29 = vpop.f32.mrf.mxu1 }
 0x497   :  { %v4256_v46 = vadd.f32 %v4165_v8, %v3902_v24  ;;  %v3593_v34 = vadd.f32 %v3503_v29, %v8689_v6 }
 0x498   :  { %v4489_v7 = vpop.f32.mrf.mxu0 }
 0x499   :  { %v4578_v33 = vadd.f32 %v4487_v15, %v4256_v46 }
 0x49b   :  { %v4836_v1 = vadd.f32 %v4835_v16, %v4578_v33  ;;  %v4906_v36 = vmul.f32 %v4578_v33, %v4578_v33  ;;  %v8693_v16 = vld [vmem:[#allocation8_spill] sm:$0xff] }
 0x49c   :  { %v3813_v63 = vpop.f32.mrf.mxu2 }
 0x49d   :  { %v4969_v39 = vadd.f32 %v4968_v12, %v4906_v36  ;;  %v3903_v59 = vadd.f32 %v3813_v63, %v3593_v34  ;;  %v4167_v62 = vpop.f32.mrf.mxu3  ;;  %v8694_v36 = vld [vmem:[#allocation13_spill] sm:$0xff] }
 0x49e   :  { %v3506_v48 = vpop.f32.mrf.mxu1 }
 0x49f   :  { %v4257_v11 = vadd.f32 %v4167_v62, %v3903_v59  ;;  %v3594_v32 = vadd.f32 %v3506_v48, %v8690_v45 }
 0x4a0   :  { %v4492_v19 = vpop.f32.mrf.mxu0 }
 0x4a1   :  { %v4579_v41 = vadd.f32 %v4489_v7, %v4257_v11 }
 0x4a3   :  { %v5826_v35 = vpack.c.bf16 %v4579_v41, %v4578_v33  ;;  %v4837_v9 = vadd.f32 %v4836_v1, %v4579_v41  ;;  %v4907_v53 = vmul.f32 %v4579_v41, %v4579_v41 }
 0x4a4   :  { %v3816_v10 = vpop.f32.mrf.mxu2 }
 0x4a5   :  { %5890 = vst [vmem:[%s8401_s2 + $0xb8] sm:$0xff] %v5826_v35   ;;  %v4970_v60 = vadd.f32 %v4969_v39, %v4907_v53  ;;  %v3904_v27 = vadd.f32 %v3816_v10, %v3594_v32  ;;  %v4170_v38 = vpop.f32.mrf.mxu3 }
 0x4a6   :  { %v3508_v25 = vpop.f32.mrf.mxu1 }
 0x4a7   :  { %v4258_v51 = vadd.f32 %v4170_v38, %v3904_v27  ;;  %v3595_v47 = vadd.f32 %v3508_v25, %v8691_v22 }
 0x4a8   :  { %v4494_v52 = vpop.f32.mrf.mxu0 }
 0x4a9   :  { %v4580_v0 = vadd.f32 %v4492_v19, %v4258_v51 }
 0x4ab   :  { %v4838_v42 = vadd.f32 %v4837_v9, %v4580_v0  ;;  %v4908_v37 = vmul.f32 %v4580_v0, %v4580_v0  ;;  %v8695_v9 = vld [vmem:[#allocation4_spill] sm:$0xff] }
 0x4ac   :  { %v3818_v44 = vpop.f32.mrf.mxu2 }
 0x4ad   :  { %v4971_v4 = vadd.f32 %v4970_v60, %v4908_v37  ;;  %v3905_v21 = vadd.f32 %v3818_v44, %v3595_v47  ;;  %v4172_v28 = vpop.f32.mrf.mxu3  ;;  %v8696_v37 = vld [vmem:[#allocation6_spill] sm:$0xff] }
 0x4ae   :  { %v3511_v13 = vpop.f32.mrf.mxu1 }
 0x4af   :  { %v4259_v54 = vadd.f32 %v4172_v28, %v3905_v21  ;;  %v3596_v58 = vadd.f32 %v3511_v13, %v8692_v40 }
 0x4b0   :  { %v4497_v18 = vpop.f32.mrf.mxu0 }
 0x4b1   :  { %v4581_v61 = vadd.f32 %v4494_v52, %v4259_v54 }
 0x4b3   :  { %v5831_v3 = vpack.c.bf16 %v4581_v61, %v4580_v0  ;;  %v4839_v57 = vadd.f32 %v4838_v42, %v4581_v61  ;;  %v4909_v17 = vmul.f32 %v4581_v61, %v4581_v61 }
 0x4b4   :  { %v3821_v56 = vpop.f32.mrf.mxu2 }
 0x4b5   :  { %5891 = vst [vmem:[%s8401_s2 + $0xc0] sm:$0xff] %v5831_v3   ;;  %v4972_v49 = vadd.f32 %v4971_v4, %v4909_v17  ;;  %v3906_v23 = vadd.f32 %v3821_v56, %v3596_v58  ;;  %v4175_v26 = vpop.f32.mrf.mxu3 }
 0x4b6   :  { %v3513_v55 = vpop.f32.mrf.mxu1 }
 0x4b7   :  { %v4260_v20 = vadd.f32 %v4175_v26, %v3906_v23  ;;  %v3597_v30 = vadd.f32 %v3513_v55, %v8693_v16 }
 0x4b8   :  { %v4499_v43 = vpop.f32.mrf.mxu0 }
 0x4b9   :  { %v4582_v15 = vadd.f32 %v4497_v18, %v4260_v20 }
 0x4bb   :  { %v4840_v50 = vadd.f32 %v4839_v57, %v4582_v15  ;;  %v4910_v2 = vmul.f32 %v4582_v15, %v4582_v15  ;;  %v8697_v57 = vld [vmem:[#allocation14_spill] sm:$0xff] }
 0x4bc   :  { %v3823_v31 = vpop.f32.mrf.mxu2 }
 0x4bd   :  { %v4973_v5 = vadd.f32 %v4972_v49, %v4910_v2  ;;  %v3907_v14 = vadd.f32 %v3823_v31, %v3597_v30  ;;  %v4177_v12 = vpop.f32.mrf.mxu3  ;;  %v8698_v2 = vld [vmem:[#allocation19_spill] sm:$0xff] }
 0x4be   :  { %v3516_v24 = vpop.f32.mrf.mxu1 }
 0x4bf   :  { %v4261_v8 = vadd.f32 %v4177_v12, %v3907_v14  ;;  %v3598_v6 = vadd.f32 %v3516_v24, %v8694_v36 }
 0x4c0   :  { %v4502_v29 = vpop.f32.mrf.mxu0 }
 0x4c1   :  { %v4583_v46 = vadd.f32 %v4499_v43, %v4261_v8 }
 0x4c3   :  { %v5836_v7 = vpack.c.bf16 %v4583_v46, %v4582_v15  ;;  %v4841_v33 = vadd.f32 %v4840_v50, %v4583_v46  ;;  %v4911_v1 = vmul.f32 %v4583_v46, %v4583_v46 }
 0x4c4   :  { %v3826_v34 = vpop.f32.mrf.mxu2 }
 0x4c5   :  { %5892 = vst [vmem:[%s8401_s2 + $0xc8] sm:$0xff] %v5836_v7   ;;  %v4974_v63 = vadd.f32 %v4973_v5, %v4911_v1  ;;  %v3908_v39 = vadd.f32 %v3826_v34, %v3598_v6  ;;  %v4180_v59 = vpop.f32.mrf.mxu3 }
 0x4c6   :  { %v3518_v62 = vpop.f32.mrf.mxu1 }
 0x4c7   :  { %v4262_v48 = vadd.f32 %v4180_v59, %v3908_v39  ;;  %v3599_v53 = vadd.f32 %v3518_v62, %v8695_v9 }
 0x4c8   :  { %v4504_v11 = vpop.f32.mrf.mxu0 }
 0x4c9   :  { %v4584_v19 = vadd.f32 %v4502_v29, %v4262_v48 }
 0x4cb   :  { %v4842_v41 = vadd.f32 %v4841_v33, %v4584_v19  ;;  %v4912_v35 = vmul.f32 %v4584_v19, %v4584_v19  ;;  %v8699_v33 = vld [vmem:[#allocation10_spill] sm:$0xff] }
 0x4cc   :  { %v3828_v45 = vpop.f32.mrf.mxu2 }
 0x4cd   :  { %v4975_v32 = vadd.f32 %v4974_v63, %v4912_v35  ;;  %v3909_v10 = vadd.f32 %v3828_v45, %v3599_v53  ;;  %v4182_v60 = vpop.f32.mrf.mxu3  ;;  %v8700_v35 = vld [vmem:[#allocation12_spill] sm:$0xff] }
 0x4ce   :  { %v3521_v27 = vpop.f32.mrf.mxu1 }
 0x4cf   :  { %v4263_v38 = vadd.f32 %v4182_v60, %v3909_v10  ;;  %v3600_v22 = vadd.f32 %v3521_v27, %v8696_v37 }
 0x4d0   :  { %v4507_v25 = vpop.f32.mrf.mxu0 }
 0x4d1   :  { %v4585_v51 = vadd.f32 %v4504_v11, %v4263_v38 }
 0x4d3   :  { %v5841_v52 = vpack.c.bf16 %v4585_v51, %v4584_v19  ;;  %v4843_v0 = vadd.f32 %v4842_v41, %v4585_v51  ;;  %v4913_v42 = vmul.f32 %v4585_v51, %v4585_v51 }
 0x4d4   :  { %v3831_v47 = vpop.f32.mrf.mxu2 }
 0x4d5   :  { %5893 = vst [vmem:[%s8401_s2 + $0xd0] sm:$0xff] %v5841_v52   ;;  %v4976_v44 = vadd.f32 %v4975_v32, %v4913_v42  ;;  %v3910_v4 = vadd.f32 %v3831_v47, %v3600_v22  ;;  %v4185_v21 = vpop.f32.mrf.mxu3 }
 0x4d6   :  { %v3523_v28 = vpop.f32.mrf.mxu1 }
 0x4d7   :  { %v4264_v13 = vadd.f32 %v4185_v21, %v3910_v4  ;;  %v3601_v17 = vadd.f32 %v3523_v28, %v8697_v57 }
 0x4d8   :  { %v4509_v54 = vpop.f32.mrf.mxu0 }
 0x4d9   :  { %v4586_v18 = vadd.f32 %v4507_v25, %v4264_v13 }
 0x4db   :  { %v4844_v61 = vadd.f32 %v4843_v0, %v4586_v18  ;;  %v4914_v3 = vmul.f32 %v4586_v18, %v4586_v18  ;;  %v8701_v0 = vld [vmem:[#allocation20_spill] sm:$0xff] }
 0x4dc   :  { %v3833_v40 = vpop.f32.mrf.mxu2 }
 0x4dd   :  { %v4977_v58 = vadd.f32 %v4976_v44, %v4914_v3  ;;  %v3911_v56 = vadd.f32 %v3833_v40, %v3601_v17  ;;  %v4187_v49 = vpop.f32.mrf.mxu3  ;;  %v8702_v3 = vld [vmem:[#allocation25_spill] sm:$0xff] }
 0x4de   :  { %v3526_v23 = vpop.f32.mrf.mxu1 }
 0x4df   :  { %v4265_v26 = vadd.f32 %v4187_v49, %v3911_v56  ;;  %v3602_v16 = vadd.f32 %v3526_v23, %v8698_v2 }
 0x4e0   :  { %v4512_v55 = vpop.f32.mrf.mxu0 }
 0x4e1   :  { %v4587_v20 = vadd.f32 %v4509_v54, %v4265_v26 }
 0x4e3   :  { %v5846_v43 = vpack.c.bf16 %v4587_v20, %v4586_v18  ;;  %v4845_v15 = vadd.f32 %v4844_v61, %v4587_v20  ;;  %v4915_v50 = vmul.f32 %v4587_v20, %v4587_v20 }
 0x4e4   :  { %v3836_v30 = vpop.f32.mrf.mxu2 }
 0x4e5   :  { %5894 = vst [vmem:[%s8401_s2 + $0xd8] sm:$0xff] %v5846_v43   ;;  %v4978_v31 = vadd.f32 %v4977_v58, %v4915_v50  ;;  %v3912_v5 = vadd.f32 %v3836_v30, %v3602_v16  ;;  %v4190_v14 = vpop.f32.mrf.mxu3  ;;  %v8703_v43 = vld [vmem:[#allocation16_spill] sm:$0xff] }
 0x4e6   :  { %v3528_v12 = vpop.f32.mrf.mxu1 }
 0x4e7   :  { %v4266_v24 = vadd.f32 %v4190_v14, %v3912_v5  ;;  %v3603_v1 = vadd.f32 %v3528_v12, %v8699_v33 }
 0x4e8   :  { %v4514_v8 = vpop.f32.mrf.mxu0 }
 0x4e9   :  { %v4588_v29 = vadd.f32 %v4512_v55, %v4266_v24 }
 0x4eb   :  { %v4846_v46 = vadd.f32 %v4845_v15, %v4588_v29  ;;  %v4916_v7 = vmul.f32 %v4588_v29, %v4588_v29 }
 0x4ec   :  { %v3838_v36 = vpop.f32.mrf.mxu2 }
 0x4ed   :  { %v4979_v6 = vadd.f32 %v4978_v31, %v4916_v7  ;;  %v3913_v34 = vadd.f32 %v3838_v36, %v3603_v1  ;;  %v4192_v63 = vpop.f32.mrf.mxu3 }
 0x4ee   :  { %v3531_v39 = vpop.f32.mrf.mxu1 }
 0x4ef   :  { %v4267_v59 = vadd.f32 %v4192_v63, %v3913_v34  ;;  %v3604_v9 = vadd.f32 %v3531_v39, %v8700_v35 }
 0x4f0   :  { %v4517_v62 = vpop.f32.mrf.mxu0 }
 0x4f1   :  { %v4589_v48 = vadd.f32 %v4514_v8, %v4267_v59 }
 0x4f3   :  { %v5851_v11 = vpack.c.bf16 %v4589_v48, %v4588_v29  ;;  %v4847_v19 = vadd.f32 %v4846_v46, %v4589_v48  ;;  %v4917_v41 = vmul.f32 %v4589_v48, %v4589_v48  ;;  %v8704_v46 = vld [vmem:[#allocation18_spill] sm:$0xff] }
 0x4f4   :  { %v3841_v53 = vpop.f32.mrf.mxu2 }
 0x4f5   :  { %5895 = vst [vmem:[%s8401_s2 + $0xe0] sm:$0xff] %v5851_v11   ;;  %v4980_v45 = vadd.f32 %v4979_v6, %v4917_v41  ;;  %v3914_v32 = vadd.f32 %v3841_v53, %v3604_v9  ;;  %v4195_v10 = vpop.f32.mrf.mxu3  ;;  %v8705_v11 = vld [vmem:[#allocation26_spill] sm:$0xff] }
 0x4f6   :  { %v3533_v60 = vpop.f32.mrf.mxu1 }
 0x4f7   :  { %v4268_v27 = vadd.f32 %v4195_v10, %v3914_v32  ;;  %v3605_v42 = vadd.f32 %v3533_v60, %v8701_v0 }
 0x4f8   :  { %v4519_v38 = vpop.f32.mrf.mxu0 }
 0x4f9   :  { %v4590_v25 = vadd.f32 %v4517_v62, %v4268_v27 }
 0x4fb   :  { %v4848_v51 = vadd.f32 %v4847_v19, %v4590_v25  ;;  %v4918_v52 = vmul.f32 %v4590_v25, %v4590_v25 }
 0x4fc   :  { %v3843_v37 = vpop.f32.mrf.mxu2 }
 0x4fd   :  { %v4981_v22 = vadd.f32 %v4980_v45, %v4918_v52  ;;  %v3915_v47 = vadd.f32 %v3843_v37, %v3605_v42  ;;  %v4197_v44 = vpop.f32.mrf.mxu3 }
 0x4fe   :  { %v3536_v4 = vpop.f32.mrf.mxu1 }
 0x4ff   :  { %v4269_v21 = vadd.f32 %v4197_v44, %v3915_v47  ;;  %v3606_v57 = vadd.f32 %v3536_v4, %v8702_v3 }
 0x500   :  { %v4522_v13 = vpop.f32.mrf.mxu0 }
 0x501   :  { %v4591_v28 = vadd.f32 %v4519_v38, %v4269_v21 }
 0x503   :  { %v5856_v54 = vpack.c.bf16 %v4591_v28, %v4590_v25  ;;  %v4849_v18 = vadd.f32 %v4848_v51, %v4591_v28  ;;  %v4919_v61 = vmul.f32 %v4591_v28, %v4591_v28 }
 0x504   :  { %v3846_v17 = vpop.f32.mrf.mxu2 }
 0x505   :  { %5896 = vst [vmem:[%s8401_s2 + $0xe8] sm:$0xff] %v5856_v54   ;;  %v4982_v40 = vadd.f32 %v4981_v22, %v4919_v61  ;;  %v3916_v58 = vadd.f32 %v3846_v17, %v3606_v57  ;;  %v4200_v56 = vpop.f32.mrf.mxu3 }
 0x506   :  { %v3538_v49 = vpop.f32.mrf.mxu1 }
 0x507   :  { %v4270_v23 = vadd.f32 %v4200_v56, %v3916_v58  ;;  %v3607_v15 = vadd.f32 %v3538_v49, %v8703_v43 }
 0x508   :  { %v4524_v50 = vpop.f32.mrf.mxu0 }
 0x509   :  { %v4592_v26 = vadd.f32 %v4522_v13, %v4270_v23 }
 0x50b   :  { %v4850_v55 = vadd.f32 %v4849_v18, %v4592_v26  ;;  %v4920_v20 = vmul.f32 %v4592_v26, %v4592_v26 }
 0x50c   :  { %v3848_v2 = vpop.f32.mrf.mxu2 }
 0x50d   :  { %v4983_v16 = vadd.f32 %v4982_v40, %v4920_v20  ;;  %v3917_v30 = vadd.f32 %v3848_v2, %v3607_v15  ;;  %v4202_v31 = vpop.f32.mrf.mxu3 }
 0x50e   :  { %v3541_v5 = vpop.f32.mrf.mxu1 }
 0x50f   :  { %v4271_v14 = vadd.f32 %v4202_v31, %v3917_v30  ;;  %v3608_v7 = vadd.f32 %v3541_v5, %v8704_v46 }
 0x510   :  { %v4527_v34 = vpop.f32.mrf.mxu0 }
 0x511   :  { %v4593_v12 = vadd.f32 %v4524_v50, %v4271_v14 }
 0x513   :  { %v5861_v24 = vpack.c.bf16 %v4593_v12, %v4592_v26  ;;  %v4851_v8 = vadd.f32 %v4850_v55, %v4593_v12  ;;  %v4921_v29 = vmul.f32 %v4593_v12, %v4593_v12 }
 0x514   :  { %v3851_v33 = vpop.f32.mrf.mxu2 }
 0x515   :  { %5897 = vst [vmem:[%s8401_s2 + $0xf0] sm:$0xff] %v5861_v24   ;;  %v4984_v1 = vadd.f32 %v4983_v16, %v4921_v29  ;;  %v3918_v36 = vadd.f32 %v3851_v33, %v3608_v7  ;;  %v4205_v6 = vpop.f32.mrf.mxu3 }
 0x516   :  { %v3543_v39 = vpop.f32.mrf.mxu1 }
 0x517   :  { %v4272_v63 = vadd.f32 %v4205_v6, %v3918_v36  ;;  %v3609_v19 = vadd.f32 %v3543_v39, %v8705_v11 }
 0x518   :  { %v4529_v32 = vpop.f32.mrf.mxu0 }
 0x519   :  { %v4594_v59 = vadd.f32 %v4527_v34, %v4272_v63 }
 0x51b   :  { %v4852_v62 = vadd.f32 %v4851_v8, %v4594_v59  ;;  %v4922_v48 = vmul.f32 %v4594_v59, %v4594_v59 }
 0x51c   :  { %v3853_v41 = vpop.f32.mrf.mxu2 }
 0x51d   :  { %v4985_v35 = vadd.f32 %v4984_v1, %v4922_v48  ;;  %v3919_v9 = vadd.f32 %v3853_v41, %v3609_v19  ;;  %v4207_v53 = vpop.f32.mrf.mxu3 }
 0x51f   :  { %v4273_v45 = vadd.f32 %v4207_v53, %v3919_v9 }
 0x521   :  { %v4595_v10 = vadd.f32 %v4529_v32, %v4273_v45 }
 0x523   :  { %v5866_v60 = vpack.c.bf16 %v4595_v10, %v4594_v59  ;;  %v4853_v27 = vadd.f32 %v4852_v62, %v4595_v10  ;;  %v4923_v38 = vmul.f32 %v4595_v10, %v4595_v10 }
 0x525   :  { %5898 = vst [vmem:[%s8401_s2 + $0xf8] sm:$0xff] %v5866_v60   ;;  %v4854_v25 = vrot.slane %v4853_v27, 4  ;;  %v4986_v51 = vadd.f32 %v4985_v35, %v4923_v38 }
 0x527   :  { %v4855_v52 = vadd.f32 %v4854_v25, %v4853_v27  ;;  %v4987_v0 = vrot.slane %v4986_v51, 4 }
 0x529   :  { %v4856_v42 = vrot.slane %v4855_v52, 2  ;;  %v4988_v37 = vadd.f32 %v4987_v0, %v4986_v51 }
 0x52b   :  { %v4857_v22 = vadd.f32 %v4856_v42, %v4855_v52  ;;  %v4989_v47 = vrot.slane %v4988_v37, 2 }
 0x52d   :  { %v4858_v44 = vrot.slane %v4857_v22, 1  ;;  %v4990_v4 = vadd.f32 %v4989_v47, %v4988_v37 }
 0x52f   :  { %v4991_v21 = vrot.slane %v4990_v4, 1  ;;  %v4859_v28 = vadd.f32 %v4858_v44, %v4857_v22 }
 0x531   :  { %v4992_v13 = vadd.f32 %v4991_v21, %v4990_v4 }
 0x533   :  { %v4994_v54 = vsel %vm4993_vm6, %v4859_v28, %v4992_v13 }
 0x534   :  { %4995 = vst [vmem:[%s8402_s3] sm:$0x3] %v4994_v54 }

</bundles_post_ra>
